<compile_context>
chip_gen: v5e
topology: v5e:2x2
jax: 0.10.0
libtpu: 0.0.40
codegen_flags: <defaults>
</compile_context>

<pallas_src>
import functools

import jax
import jax.numpy as jnp
import numpy as np
from jax import lax
from jax.experimental import pallas as pl
from jax.experimental.pallas import tpu as pltpu


def sppf_kernel(x_ref, o_ref, *, H, W):
    n_blk = x_ref.shape[0]
    HW = H * W
    neg = jnp.array(-jnp.inf, dtype=x_ref.dtype)

    # Lane-only validity masks, built once per grid step; broadcast over sublanes
    # (channels) inside jnp.where.  Reused by every image and all 3 pool stages.
    lane = lax.broadcasted_iota(jnp.int32, (1, HW), 1)   # flattened spatial index
    w = lane % W
    w_shifts = (-2, -1, 1, 2)                             # along width (lanes)
    h_shifts = (-2 * W, -W, W, 2 * W)                     # along height (lanes)
    w_masks = tuple(((w + d) >= 0) & ((w + d) < W) for d in w_shifts)
    h_masks = tuple(((lane + s) >= 0) & ((lane + s) < HW) for s in h_shifts)

    def pool_1d(v, shifts, masks):
        # 5-tap max (window 5, stride 1, pad 2 == -inf) along one spatial direction.
        # TODO(synk): if this ever becomes XLU-bound on v6e at compute-bound block
        # sizes, switch to a running-max tree (saves one max/select per direction).
        out = v
        for s, m in zip(shifts, masks):
            shifted = pltpu.roll(v, shift=(-s) % HW, axis=1)  # shifted[i] = v[i + s]
            out = jnp.maximum(out, jnp.where(m, shifted, neg))
        return out

    def pool_5x5(v):
        return pool_1d(pool_1d(v, w_shifts, w_masks), h_shifts, h_masks)

    for i in range(n_blk):            # static unroll over images in the block
        x = x_ref[i]                  # (c_blk, H*W), spatial flattened on lanes
        o_ref[i, 3] = x               # pass-through plane stored immediately
        p1 = pool_5x5(x)
        o_ref[i, 0] = p1
        p2 = pool_5x5(p1)
        o_ref[i, 1] = p2
        p3 = pool_5x5(p2)
        o_ref[i, 2] = p3
        # Fused torch.cat((p1, p2, p3, x), dim=1) — matches the module's order.


def _vmem_budget():
    """(working-set budget, vmem_limit_bytes), generation-aware."""
    try:
        phys = int(pltpu.get_tpu_info().vmem_capacity_bytes)
    except Exception:
        phys = 64 * 1024 * 1024          # conservative fallback (v7x per-TC VMEM)
    # Double-buffered in+out working set: ~24 MiB on v7x (64 MiB), ~44 MiB on v5e/v6e (128 MiB).
    work = min(int(phys * 0.375), 44 * 1024 * 1024)
    limit = min(phys, work + 16 * 1024 * 1024)
    return work, limit


def _choose_tiles(N, C, HW, itemsize, budget_bytes, max_unroll=8):
    """Pick (n_blk, c_blk) so the double-buffered in+out block fits the budget,
    prefer full C, and keep >= 2 grid steps along N (v7x dual TensorCores)."""
    def cost(n_blk, c_blk):              # input block + 4-plane output block, x2 buffers
        return 2 * 5 * n_blk * c_blk * HW * itemsize

    sub = max(8, 32 // max(1, itemsize))  # sublane alignment: 8 f32 / 16 bf16 / 32 int8
    c_cands = sorted({d for d in range(1, C + 1) if C % d == 0 and (d % sub == 0 or d == C)},
                     reverse=True)
    c_blk = next((d for d in c_cands if cost(1, d) <= budget_bytes), min(c_cands))

    n_cap = max(1, N // 2) if (N >= 2 and C // c_blk == 1) else N
    n_cap = min(n_cap, max_unroll)        # bound in-kernel unroll / code size
    n_cands = sorted([d for d in range(1, N + 1) if N % d == 0 and d <= n_cap], reverse=True)
    n_blk = next((d for d in n_cands if cost(d, c_blk) <= budget_bytes), 1)
    return n_blk, c_blk


def sppf_forward(x):
    """x: (N, C, H, W) float -> (N, 4C, H, W) = cat([mp(x), mp^2(x), mp^3(x), x], 1)."""
    N, C, H, W = x.shape
    HW = H * W
    work_budget, vmem_limit = _vmem_budget()
    n_blk, c_blk = _choose_tiles(N, C, HW, x.dtype.itemsize, work_budget)

    xf = x.reshape(N, C, HW)              # contiguous -> free view
    grid = (N // n_blk, C // c_blk)       # (2, 1) for the test shape

    out = pl.pallas_call(
        functools.partial(sppf_kernel, H=H, W=W),
        out_shape=jax.ShapeDtypeStruct((N, 4, C, HW), x.dtype),
        grid_spec=pltpu.PrefetchScalarGridSpec(
            num_scalar_prefetch=0,
            grid=grid,
            in_specs=[pl.BlockSpec((n_blk, c_blk, HW), lambda n, c: (n, c, 0))],
            out_specs=pl.BlockSpec((n_blk, 4, c_blk, HW), lambda n, c: (n, 0, c, 0)),
        ),
        compiler_params=pltpu.CompilerParams(
            dimension_semantics=("parallel", "parallel"),
            vmem_limit_bytes=vmem_limit,
        ),
    )(xf)

    # (N, 4, C, H*W) -> (N, 4C, H, W): contiguous, copy-free reshape.
    return out.reshape(N, 4 * C, H, W)


def _reference(x):
    """Pure-JAX reference: chained 5x5 maxpool (stride 1, pad 2), NCHW + concat."""
    def mp(a):
        return lax.reduce_window(
            a, -jnp.inf, lax.max,
            window_dimensions=(1, 1, 5, 5),
            window_strides=(1, 1, 1, 1),
            padding=((0, 0), (0, 0), (2, 2), (2, 2)))
    p1 = mp(x)
    p2 = mp(p1)
    p3 = mp(p2)
    return jnp.concatenate([p1, p2, p3, x], axis=1)


if __name__ == "__main__":
    key = jax.random.PRNGKey(0)
    # Shape of the original PyTorch module's input: (8, 32, 16, 16).
    x = jax.random.normal(key, (8, 32, 16, 16), dtype=jnp.float32)

    out = jax.block_until_ready(jax.jit(sppf_forward)(x))
    ref = jax.block_until_ready(_reference(x))

    np.testing.assert_allclose(np.asarray(out), np.asarray(ref), rtol=0, atol=0)
    assert out.shape == (8, 4 * 32, 16, 16)

    print("KERNEL_OK")
</pallas_src>

<mosaic_0001>
module attributes {stable_mosaic.version = 11 : i64} {
  func.func @sppf_kernel(%arg0: i32, %arg1: i32, %arg2: memref<4x32x256xf32, #tpu.memory_space<vmem>>, %arg3: memref<4x4x32x256xf32, #tpu.memory_space<vmem>>) attributes {dimension_semantics = [#tpu.dimension_semantics<parallel>, #tpu.dimension_semantics<parallel>], iteration_bounds = array<i64: 2, 1>, scalar_prefetch = 0 : i64, scratch_operands = 0 : i64, tpu.core_type = #tpu.core_type<tc>, window_params = [{transform_indices = @transform_0, window_bounds = array<i64: 4, 32, 256>}, {transform_indices = @transform_1, window_bounds = array<i64: 4, 4, 32, 256>}]} {
    %0 = tpu.iota {dimensions = array<i32: 1>} : vector<1x256xi32>
    %c16_i32 = arith.constant 16 : i32
    %c0_i32 = arith.constant 0 : i32
    %1 = arith.cmpi eq, %c16_i32, %c0_i32 : i32
    %c1_i32 = arith.constant 1 : i32
    %2 = arith.select %1, %c1_i32, %c16_i32 : i32
    %3 = vector.broadcast %2 : i32 to vector<1x256xi32>
    %4 = arith.remsi %0, %3 : vector<1x256xi32>
    %c0_i32_0 = arith.constant 0 : i32
    %5 = vector.broadcast %c0_i32_0 : i32 to vector<1x256xi32>
    %6 = arith.cmpi ne, %4, %5 : vector<1x256xi32>
    %c0_i32_1 = arith.constant 0 : i32
    %7 = vector.broadcast %c0_i32_1 : i32 to vector<1x256xi32>
    %8 = arith.cmpi slt, %4, %7 : vector<1x256xi32>
    %c0_i32_2 = arith.constant 0 : i32
    %9 = arith.cmpi slt, %2, %c0_i32_2 : i32
    %10 = vector.broadcast %9 : i1 to vector<1x256xi1>
    %11 = vector.broadcast %10 : vector<1x256xi1> to vector<1x256xi1>
    %12 = arith.xori %8, %11 : vector<1x256xi1>
    %13 = arith.andi %12, %6 : vector<1x256xi1>
    %14 = vector.broadcast %2 : i32 to vector<1x256xi32>
    %15 = arith.addi %4, %14 : vector<1x256xi32>
    %16 = arith.select %13, %15, %4 : vector<1x256xi1>, vector<1x256xi32>
    %c-2_i32 = arith.constant -2 : i32
    %17 = vector.broadcast %c-2_i32 : i32 to vector<1x256xi32>
    %18 = arith.addi %16, %17 : vector<1x256xi32>
    %c0_i32_3 = arith.constant 0 : i32
    %19 = vector.broadcast %c0_i32_3 : i32 to vector<1x256xi32>
    %20 = arith.cmpi sge, %18, %19 : vector<1x256xi32>
    %c-2_i32_4 = arith.constant -2 : i32
    %21 = vector.broadcast %c-2_i32_4 : i32 to vector<1x256xi32>
    %22 = arith.addi %16, %21 : vector<1x256xi32>
    %c16_i32_5 = arith.constant 16 : i32
    %23 = vector.broadcast %c16_i32_5 : i32 to vector<1x256xi32>
    %24 = arith.cmpi slt, %22, %23 : vector<1x256xi32>
    %25 = arith.andi %20, %24 : vector<1x256xi1>
    %c-1_i32 = arith.constant -1 : i32
    %26 = vector.broadcast %c-1_i32 : i32 to vector<1x256xi32>
    %27 = arith.addi %16, %26 : vector<1x256xi32>
    %c0_i32_6 = arith.constant 0 : i32
    %28 = vector.broadcast %c0_i32_6 : i32 to vector<1x256xi32>
    %29 = arith.cmpi sge, %27, %28 : vector<1x256xi32>
    %c-1_i32_7 = arith.constant -1 : i32
    %30 = vector.broadcast %c-1_i32_7 : i32 to vector<1x256xi32>
    %31 = arith.addi %16, %30 : vector<1x256xi32>
    %c16_i32_8 = arith.constant 16 : i32
    %32 = vector.broadcast %c16_i32_8 : i32 to vector<1x256xi32>
    %33 = arith.cmpi slt, %31, %32 : vector<1x256xi32>
    %34 = arith.andi %29, %33 : vector<1x256xi1>
    %c1_i32_9 = arith.constant 1 : i32
    %35 = vector.broadcast %c1_i32_9 : i32 to vector<1x256xi32>
    %36 = arith.addi %16, %35 : vector<1x256xi32>
    %c0_i32_10 = arith.constant 0 : i32
    %37 = vector.broadcast %c0_i32_10 : i32 to vector<1x256xi32>
    %38 = arith.cmpi sge, %36, %37 : vector<1x256xi32>
    %c1_i32_11 = arith.constant 1 : i32
    %39 = vector.broadcast %c1_i32_11 : i32 to vector<1x256xi32>
    %40 = arith.addi %16, %39 : vector<1x256xi32>
    %c16_i32_12 = arith.constant 16 : i32
    %41 = vector.broadcast %c16_i32_12 : i32 to vector<1x256xi32>
    %42 = arith.cmpi slt, %40, %41 : vector<1x256xi32>
    %43 = arith.andi %38, %42 : vector<1x256xi1>
    %c2_i32 = arith.constant 2 : i32
    %44 = vector.broadcast %c2_i32 : i32 to vector<1x256xi32>
    %45 = arith.addi %16, %44 : vector<1x256xi32>
    %c0_i32_13 = arith.constant 0 : i32
    %46 = vector.broadcast %c0_i32_13 : i32 to vector<1x256xi32>
    %47 = arith.cmpi sge, %45, %46 : vector<1x256xi32>
    %c2_i32_14 = arith.constant 2 : i32
    %48 = vector.broadcast %c2_i32_14 : i32 to vector<1x256xi32>
    %49 = arith.addi %16, %48 : vector<1x256xi32>
    %c16_i32_15 = arith.constant 16 : i32
    %50 = vector.broadcast %c16_i32_15 : i32 to vector<1x256xi32>
    %51 = arith.cmpi slt, %49, %50 : vector<1x256xi32>
    %52 = arith.andi %47, %51 : vector<1x256xi1>
    %c-32_i32 = arith.constant -32 : i32
    %53 = vector.broadcast %c-32_i32 : i32 to vector<1x256xi32>
    %54 = arith.addi %0, %53 : vector<1x256xi32>
    %c0_i32_16 = arith.constant 0 : i32
    %55 = vector.broadcast %c0_i32_16 : i32 to vector<1x256xi32>
    %56 = arith.cmpi sge, %54, %55 : vector<1x256xi32>
    %c-32_i32_17 = arith.constant -32 : i32
    %57 = vector.broadcast %c-32_i32_17 : i32 to vector<1x256xi32>
    %58 = arith.addi %0, %57 : vector<1x256xi32>
    %c256_i32 = arith.constant 256 : i32
    %59 = vector.broadcast %c256_i32 : i32 to vector<1x256xi32>
    %60 = arith.cmpi slt, %58, %59 : vector<1x256xi32>
    %61 = arith.andi %56, %60 : vector<1x256xi1>
    %c-16_i32 = arith.constant -16 : i32
    %62 = vector.broadcast %c-16_i32 : i32 to vector<1x256xi32>
    %63 = arith.addi %0, %62 : vector<1x256xi32>
    %c0_i32_18 = arith.constant 0 : i32
    %64 = vector.broadcast %c0_i32_18 : i32 to vector<1x256xi32>
    %65 = arith.cmpi sge, %63, %64 : vector<1x256xi32>
    %c-16_i32_19 = arith.constant -16 : i32
    %66 = vector.broadcast %c-16_i32_19 : i32 to vector<1x256xi32>
    %67 = arith.addi %0, %66 : vector<1x256xi32>
    %c256_i32_20 = arith.constant 256 : i32
    %68 = vector.broadcast %c256_i32_20 : i32 to vector<1x256xi32>
    %69 = arith.cmpi slt, %67, %68 : vector<1x256xi32>
    %70 = arith.andi %65, %69 : vector<1x256xi1>
    %c16_i32_21 = arith.constant 16 : i32
    %71 = vector.broadcast %c16_i32_21 : i32 to vector<1x256xi32>
    %72 = arith.addi %0, %71 : vector<1x256xi32>
    %c0_i32_22 = arith.constant 0 : i32
    %73 = vector.broadcast %c0_i32_22 : i32 to vector<1x256xi32>
    %74 = arith.cmpi sge, %72, %73 : vector<1x256xi32>
    %c16_i32_23 = arith.constant 16 : i32
    %75 = vector.broadcast %c16_i32_23 : i32 to vector<1x256xi32>
    %76 = arith.addi %0, %75 : vector<1x256xi32>
    %c256_i32_24 = arith.constant 256 : i32
    %77 = vector.broadcast %c256_i32_24 : i32 to vector<1x256xi32>
    %78 = arith.cmpi slt, %76, %77 : vector<1x256xi32>
    %79 = arith.andi %74, %78 : vector<1x256xi1>
    %c32_i32 = arith.constant 32 : i32
    %80 = vector.broadcast %c32_i32 : i32 to vector<1x256xi32>
    %81 = arith.addi %0, %80 : vector<1x256xi32>
    %c0_i32_25 = arith.constant 0 : i32
    %82 = vector.broadcast %c0_i32_25 : i32 to vector<1x256xi32>
    %83 = arith.cmpi sge, %81, %82 : vector<1x256xi32>
    %c32_i32_26 = arith.constant 32 : i32
    %84 = vector.broadcast %c32_i32_26 : i32 to vector<1x256xi32>
    %85 = arith.addi %0, %84 : vector<1x256xi32>
    %c256_i32_27 = arith.constant 256 : i32
    %86 = vector.broadcast %c256_i32_27 : i32 to vector<1x256xi32>
    %87 = arith.cmpi slt, %85, %86 : vector<1x256xi32>
    %88 = arith.andi %83, %87 : vector<1x256xi1>
    %c0 = arith.constant 0 : index
    %c0_28 = arith.constant 0 : index
    %c0_29 = arith.constant 0 : index
    %89 = vector.load %arg2[%c0, %c0_28, %c0_29] : memref<4x32x256xf32, #tpu.memory_space<vmem>>, vector<1x32x256xf32>
    %90 = vector.shape_cast %89 : vector<1x32x256xf32> to vector<32x256xf32>
    %c0_30 = arith.constant 0 : index
    %c3 = arith.constant 3 : index
    %c0_31 = arith.constant 0 : index
    %c0_32 = arith.constant 0 : index
    %91 = vector.load %arg3[%c0_30, %c3, %c0_31, %c0_32] : memref<4x4x32x256xf32, #tpu.memory_space<vmem>>, vector<1x1x32x256xf32>
    %92 = vector.shape_cast %91 : vector<1x1x32x256xf32> to vector<32x256xf32>
    %93 = vector.shape_cast %90 : vector<32x256xf32> to vector<1x1x32x256xf32>
    tpu.vector_store %arg3[%c0_30, %c3, %c0_31, %c0_32], %93 {strides = array<i32>} : memref<4x4x32x256xf32, #tpu.memory_space<vmem>>, vector<1x1x32x256xf32>,
    %c2_i32_33 = arith.constant 2 : i32
    %94 = tpu.dynamic_rotate %90 by %c2_i32_33 dim 1 : vector<32x256xf32>, i32 -> vector<32x256xf32>
    %cst = arith.constant 0xFF800000 : f32
    %95 = vector.shape_cast %25 : vector<1x256xi1> to vector<1x256xi1>
    %96 = vector.broadcast %95 : vector<1x256xi1> to vector<32x256xi1>
    %97 = vector.broadcast %cst : f32 to vector<32x256xf32>
    %98 = arith.select %96, %94, %97 : vector<32x256xi1>, vector<32x256xf32>
    %99 = arith.maximumf %90, %98 : vector<32x256xf32>
    %c1_i32_34 = arith.constant 1 : i32
    %100 = tpu.dynamic_rotate %90 by %c1_i32_34 dim 1 : vector<32x256xf32>, i32 -> vector<32x256xf32>
    %cst_35 = arith.constant 0xFF800000 : f32
    %101 = vector.shape_cast %34 : vector<1x256xi1> to vector<1x256xi1>
    %102 = vector.broadcast %101 : vector<1x256xi1> to vector<32x256xi1>
    %103 = vector.broadcast %cst_35 : f32 to vector<32x256xf32>
    %104 = arith.select %102, %100, %103 : vector<32x256xi1>, vector<32x256xf32>
    %105 = arith.maximumf %99, %104 : vector<32x256xf32>
    %c255_i32 = arith.constant 255 : i32
    %106 = tpu.dynamic_rotate %90 by %c255_i32 dim 1 : vector<32x256xf32>, i32 -> vector<32x256xf32>
    %cst_36 = arith.constant 0xFF800000 : f32
    %107 = vector.shape_cast %43 : vector<1x256xi1> to vector<1x256xi1>
    %108 = vector.broadcast %107 : vector<1x256xi1> to vector<32x256xi1>
    %109 = vector.broadcast %cst_36 : f32 to vector<32x256xf32>
    %110 = arith.select %108, %106, %109 : vector<32x256xi1>, vector<32x256xf32>
    %111 = arith.maximumf %105, %110 : vector<32x256xf32>
    %c254_i32 = arith.constant 254 : i32
    %112 = tpu.dynamic_rotate %90 by %c254_i32 dim 1 : vector<32x256xf32>, i32 -> vector<32x256xf32>
    %cst_37 = arith.constant 0xFF800000 : f32
    %113 = vector.shape_cast %52 : vector<1x256xi1> to vector<1x256xi1>
    %114 = vector.broadcast %113 : vector<1x256xi1> to vector<32x256xi1>
    %115 = vector.broadcast %cst_37 : f32 to vector<32x256xf32>
    %116 = arith.select %114, %112, %115 : vector<32x256xi1>, vector<32x256xf32>
    %117 = arith.maximumf %111, %116 : vector<32x256xf32>
    %c32_i32_38 = arith.constant 32 : i32
    %118 = tpu.dynamic_rotate %117 by %c32_i32_38 dim 1 : vector<32x256xf32>, i32 -> vector<32x256xf32>
    %cst_39 = arith.constant 0xFF800000 : f32
    %119 = vector.shape_cast %61 : vector<1x256xi1> to vector<1x256xi1>
    %120 = vector.broadcast %119 : vector<1x256xi1> to vector<32x256xi1>
    %121 = vector.broadcast %cst_39 : f32 to vector<32x256xf32>
    %122 = arith.select %120, %118, %121 : vector<32x256xi1>, vector<32x256xf32>
    %123 = arith.maximumf %117, %122 : vector<32x256xf32>
    %c16_i32_40 = arith.constant 16 : i32
    %124 = tpu.dynamic_rotate %117 by %c16_i32_40 dim 1 : vector<32x256xf32>, i32 -> vector<32x256xf32>
    %cst_41 = arith.constant 0xFF800000 : f32
    %125 = vector.shape_cast %70 : vector<1x256xi1> to vector<1x256xi1>
    %126 = vector.broadcast %125 : vector<1x256xi1> to vector<32x256xi1>
    %127 = vector.broadcast %cst_41 : f32 to vector<32x256xf32>
    %128 = arith.select %126, %124, %127 : vector<32x256xi1>, vector<32x256xf32>
    %129 = arith.maximumf %123, %128 : vector<32x256xf32>
    %c240_i32 = arith.constant 240 : i32
    %130 = tpu.dynamic_rotate %117 by %c240_i32 dim 1 : vector<32x256xf32>, i32 -> vector<32x256xf32>
    %cst_42 = arith.constant 0xFF800000 : f32
    %131 = vector.shape_cast %79 : vector<1x256xi1> to vector<1x256xi1>
    %132 = vector.broadcast %131 : vector<1x256xi1> to vector<32x256xi1>
    %133 = vector.broadcast %cst_42 : f32 to vector<32x256xf32>
    %134 = arith.select %132, %130, %133 : vector<32x256xi1>, vector<32x256xf32>
    %135 = arith.maximumf %129, %134 : vector<32x256xf32>
    %c224_i32 = arith.constant 224 : i32
    %136 = tpu.dynamic_rotate %117 by %c224_i32 dim 1 : vector<32x256xf32>, i32 -> vector<32x256xf32>
    %cst_43 = arith.constant 0xFF800000 : f32
    %137 = vector.shape_cast %88 : vector<1x256xi1> to vector<1x256xi1>
    %138 = vector.broadcast %137 : vector<1x256xi1> to vector<32x256xi1>
    %139 = vector.broadcast %cst_43 : f32 to vector<32x256xf32>
    %140 = arith.select %138, %136, %139 : vector<32x256xi1>, vector<32x256xf32>
    %141 = arith.maximumf %135, %140 : vector<32x256xf32>
    %c0_44 = arith.constant 0 : index
    %c0_45 = arith.constant 0 : index
    %c0_46 = arith.constant 0 : index
    %c0_47 = arith.constant 0 : index
    %142 = vector.load %arg3[%c0_44, %c0_45, %c0_46, %c0_47] : memref<4x4x32x256xf32, #tpu.memory_space<vmem>>, vector<1x1x32x256xf32>
    %143 = vector.shape_cast %142 : vector<1x1x32x256xf32> to vector<32x256xf32>
    %144 = vector.shape_cast %141 : vector<32x256xf32> to vector<1x1x32x256xf32>
    tpu.vector_store %arg3[%c0_44, %c0_45, %c0_46, %c0_47], %144 {strides = array<i32>} : memref<4x4x32x256xf32, #tpu.memory_space<vmem>>, vector<1x1x32x256xf32>,
    %c2_i32_48 = arith.constant 2 : i32
    %145 = tpu.dynamic_rotate %141 by %c2_i32_48 dim 1 : vector<32x256xf32>, i32 -> vector<32x256xf32>
    %cst_49 = arith.constant 0xFF800000 : f32
    %146 = vector.shape_cast %25 : vector<1x256xi1> to vector<1x256xi1>
    %147 = vector.broadcast %146 : vector<1x256xi1> to vector<32x256xi1>
    %148 = vector.broadcast %cst_49 : f32 to vector<32x256xf32>
    %149 = arith.select %147, %145, %148 : vector<32x256xi1>, vector<32x256xf32>
    %150 = arith.maximumf %141, %149 : vector<32x256xf32>
    %c1_i32_50 = arith.constant 1 : i32
    %151 = tpu.dynamic_rotate %141 by %c1_i32_50 dim 1 : vector<32x256xf32>, i32 -> vector<32x256xf32>
    %cst_51 = arith.constant 0xFF800000 : f32
    %152 = vector.shape_cast %34 : vector<1x256xi1> to vector<1x256xi1>
    %153 = vector.broadcast %152 : vector<1x256xi1> to vector<32x256xi1>
    %154 = vector.broadcast %cst_51 : f32 to vector<32x256xf32>
    %155 = arith.select %153, %151, %154 : vector<32x256xi1>, vector<32x256xf32>
    %156 = arith.maximumf %150, %155 : vector<32x256xf32>
    %c255_i32_52 = arith.constant 255 : i32
    %157 = tpu.dynamic_rotate %141 by %c255_i32_52 dim 1 : vector<32x256xf32>, i32 -> vector<32x256xf32>
    %cst_53 = arith.constant 0xFF800000 : f32
    %158 = vector.shape_cast %43 : vector<1x256xi1> to vector<1x256xi1>
    %159 = vector.broadcast %158 : vector<1x256xi1> to vector<32x256xi1>
    %160 = vector.broadcast %cst_53 : f32 to vector<32x256xf32>
    %161 = arith.select %159, %157, %160 : vector<32x256xi1>, vector<32x256xf32>
    %162 = arith.maximumf %156, %161 : vector<32x256xf32>
    %c254_i32_54 = arith.constant 254 : i32
    %163 = tpu.dynamic_rotate %141 by %c254_i32_54 dim 1 : vector<32x256xf32>, i32 -> vector<32x256xf32>
    %cst_55 = arith.constant 0xFF800000 : f32
    %164 = vector.shape_cast %52 : vector<1x256xi1> to vector<1x256xi1>
    %165 = vector.broadcast %164 : vector<1x256xi1> to vector<32x256xi1>
    %166 = vector.broadcast %cst_55 : f32 to vector<32x256xf32>
    %167 = arith.select %165, %163, %166 : vector<32x256xi1>, vector<32x256xf32>
    %168 = arith.maximumf %162, %167 : vector<32x256xf32>
    %c32_i32_56 = arith.constant 32 : i32
    %169 = tpu.dynamic_rotate %168 by %c32_i32_56 dim 1 : vector<32x256xf32>, i32 -> vector<32x256xf32>
    %cst_57 = arith.constant 0xFF800000 : f32
    %170 = vector.shape_cast %61 : vector<1x256xi1> to vector<1x256xi1>
    %171 = vector.broadcast %170 : vector<1x256xi1> to vector<32x256xi1>
    %172 = vector.broadcast %cst_57 : f32 to vector<32x256xf32>
    %173 = arith.select %171, %169, %172 : vector<32x256xi1>, vector<32x256xf32>
    %174 = arith.maximumf %168, %173 : vector<32x256xf32>
    %c16_i32_58 = arith.constant 16 : i32
    %175 = tpu.dynamic_rotate %168 by %c16_i32_58 dim 1 : vector<32x256xf32>, i32 -> vector<32x256xf32>
    %cst_59 = arith.constant 0xFF800000 : f32
    %176 = vector.shape_cast %70 : vector<1x256xi1> to vector<1x256xi1>
    %177 = vector.broadcast %176 : vector<1x256xi1> to vector<32x256xi1>
    %178 = vector.broadcast %cst_59 : f32 to vector<32x256xf32>
    %179 = arith.select %177, %175, %178 : vector<32x256xi1>, vector<32x256xf32>
    %180 = arith.maximumf %174, %179 : vector<32x256xf32>
    %c240_i32_60 = arith.constant 240 : i32
    %181 = tpu.dynamic_rotate %168 by %c240_i32_60 dim 1 : vector<32x256xf32>, i32 -> vector<32x256xf32>
    %cst_61 = arith.constant 0xFF800000 : f32
    %182 = vector.shape_cast %79 : vector<1x256xi1> to vector<1x256xi1>
    %183 = vector.broadcast %182 : vector<1x256xi1> to vector<32x256xi1>
    %184 = vector.broadcast %cst_61 : f32 to vector<32x256xf32>
    %185 = arith.select %183, %181, %184 : vector<32x256xi1>, vector<32x256xf32>
    %186 = arith.maximumf %180, %185 : vector<32x256xf32>
    %c224_i32_62 = arith.constant 224 : i32
    %187 = tpu.dynamic_rotate %168 by %c224_i32_62 dim 1 : vector<32x256xf32>, i32 -> vector<32x256xf32>
    %cst_63 = arith.constant 0xFF800000 : f32
    %188 = vector.shape_cast %88 : vector<1x256xi1> to vector<1x256xi1>
    %189 = vector.broadcast %188 : vector<1x256xi1> to vector<32x256xi1>
    %190 = vector.broadcast %cst_63 : f32 to vector<32x256xf32>
    %191 = arith.select %189, %187, %190 : vector<32x256xi1>, vector<32x256xf32>
    %192 = arith.maximumf %186, %191 : vector<32x256xf32>
    %c0_64 = arith.constant 0 : index
    %c1 = arith.constant 1 : index
    %c0_65 = arith.constant 0 : index
    %c0_66 = arith.constant 0 : index
    %193 = vector.load %arg3[%c0_64, %c1, %c0_65, %c0_66] : memref<4x4x32x256xf32, #tpu.memory_space<vmem>>, vector<1x1x32x256xf32>
    %194 = vector.shape_cast %193 : vector<1x1x32x256xf32> to vector<32x256xf32>
    %195 = vector.shape_cast %192 : vector<32x256xf32> to vector<1x1x32x256xf32>
    tpu.vector_store %arg3[%c0_64, %c1, %c0_65, %c0_66], %195 {strides = array<i32>} : memref<4x4x32x256xf32, #tpu.memory_space<vmem>>, vector<1x1x32x256xf32>,
    %c2_i32_67 = arith.constant 2 : i32
    %196 = tpu.dynamic_rotate %192 by %c2_i32_67 dim 1 : vector<32x256xf32>, i32 -> vector<32x256xf32>
    %cst_68 = arith.constant 0xFF800000 : f32
    %197 = vector.shape_cast %25 : vector<1x256xi1> to vector<1x256xi1>
    %198 = vector.broadcast %197 : vector<1x256xi1> to vector<32x256xi1>
    %199 = vector.broadcast %cst_68 : f32 to vector<32x256xf32>
    %200 = arith.select %198, %196, %199 : vector<32x256xi1>, vector<32x256xf32>
    %201 = arith.maximumf %192, %200 : vector<32x256xf32>
    %c1_i32_69 = arith.constant 1 : i32
    %202 = tpu.dynamic_rotate %192 by %c1_i32_69 dim 1 : vector<32x256xf32>, i32 -> vector<32x256xf32>
    %cst_70 = arith.constant 0xFF800000 : f32
    %203 = vector.shape_cast %34 : vector<1x256xi1> to vector<1x256xi1>
    %204 = vector.broadcast %203 : vector<1x256xi1> to vector<32x256xi1>
    %205 = vector.broadcast %cst_70 : f32 to vector<32x256xf32>
    %206 = arith.select %204, %202, %205 : vector<32x256xi1>, vector<32x256xf32>
    %207 = arith.maximumf %201, %206 : vector<32x256xf32>
    %c255_i32_71 = arith.constant 255 : i32
    %208 = tpu.dynamic_rotate %192 by %c255_i32_71 dim 1 : vector<32x256xf32>, i32 -> vector<32x256xf32>
    %cst_72 = arith.constant 0xFF800000 : f32
    %209 = vector.shape_cast %43 : vector<1x256xi1> to vector<1x256xi1>
    %210 = vector.broadcast %209 : vector<1x256xi1> to vector<32x256xi1>
    %211 = vector.broadcast %cst_72 : f32 to vector<32x256xf32>
    %212 = arith.select %210, %208, %211 : vector<32x256xi1>, vector<32x256xf32>
    %213 = arith.maximumf %207, %212 : vector<32x256xf32>
    %c254_i32_73 = arith.constant 254 : i32
    %214 = tpu.dynamic_rotate %192 by %c254_i32_73 dim 1 : vector<32x256xf32>, i32 -> vector<32x256xf32>
    %cst_74 = arith.constant 0xFF800000 : f32
    %215 = vector.shape_cast %52 : vector<1x256xi1> to vector<1x256xi1>
    %216 = vector.broadcast %215 : vector<1x256xi1> to vector<32x256xi1>
    %217 = vector.broadcast %cst_74 : f32 to vector<32x256xf32>
    %218 = arith.select %216, %214, %217 : vector<32x256xi1>, vector<32x256xf32>
    %219 = arith.maximumf %213, %218 : vector<32x256xf32>
    %c32_i32_75 = arith.constant 32 : i32
    %220 = tpu.dynamic_rotate %219 by %c32_i32_75 dim 1 : vector<32x256xf32>, i32 -> vector<32x256xf32>
    %cst_76 = arith.constant 0xFF800000 : f32
    %221 = vector.shape_cast %61 : vector<1x256xi1> to vector<1x256xi1>
    %222 = vector.broadcast %221 : vector<1x256xi1> to vector<32x256xi1>
    %223 = vector.broadcast %cst_76 : f32 to vector<32x256xf32>
    %224 = arith.select %222, %220, %223 : vector<32x256xi1>, vector<32x256xf32>
    %225 = arith.maximumf %219, %224 : vector<32x256xf32>
    %c16_i32_77 = arith.constant 16 : i32
    %226 = tpu.dynamic_rotate %219 by %c16_i32_77 dim 1 : vector<32x256xf32>, i32 -> vector<32x256xf32>
    %cst_78 = arith.constant 0xFF800000 : f32
    %227 = vector.shape_cast %70 : vector<1x256xi1> to vector<1x256xi1>
    %228 = vector.broadcast %227 : vector<1x256xi1> to vector<32x256xi1>
    %229 = vector.broadcast %cst_78 : f32 to vector<32x256xf32>
    %230 = arith.select %228, %226, %229 : vector<32x256xi1>, vector<32x256xf32>
    %231 = arith.maximumf %225, %230 : vector<32x256xf32>
    %c240_i32_79 = arith.constant 240 : i32
    %232 = tpu.dynamic_rotate %219 by %c240_i32_79 dim 1 : vector<32x256xf32>, i32 -> vector<32x256xf32>
    %cst_80 = arith.constant 0xFF800000 : f32
    %233 = vector.shape_cast %79 : vector<1x256xi1> to vector<1x256xi1>
    %234 = vector.broadcast %233 : vector<1x256xi1> to vector<32x256xi1>
    %235 = vector.broadcast %cst_80 : f32 to vector<32x256xf32>
    %236 = arith.select %234, %232, %235 : vector<32x256xi1>, vector<32x256xf32>
    %237 = arith.maximumf %231, %236 : vector<32x256xf32>
    %c224_i32_81 = arith.constant 224 : i32
    %238 = tpu.dynamic_rotate %219 by %c224_i32_81 dim 1 : vector<32x256xf32>, i32 -> vector<32x256xf32>
    %cst_82 = arith.constant 0xFF800000 : f32
    %239 = vector.shape_cast %88 : vector<1x256xi1> to vector<1x256xi1>
    %240 = vector.broadcast %239 : vector<1x256xi1> to vector<32x256xi1>
    %241 = vector.broadcast %cst_82 : f32 to vector<32x256xf32>
    %242 = arith.select %240, %238, %241 : vector<32x256xi1>, vector<32x256xf32>
    %243 = arith.maximumf %237, %242 : vector<32x256xf32>
    %c0_83 = arith.constant 0 : index
    %c2 = arith.constant 2 : index
    %c0_84 = arith.constant 0 : index
    %c0_85 = arith.constant 0 : index
    %244 = vector.load %arg3[%c0_83, %c2, %c0_84, %c0_85] : memref<4x4x32x256xf32, #tpu.memory_space<vmem>>, vector<1x1x32x256xf32>
    %245 = vector.shape_cast %244 : vector<1x1x32x256xf32> to vector<32x256xf32>
    %246 = vector.shape_cast %243 : vector<32x256xf32> to vector<1x1x32x256xf32>
    tpu.vector_store %arg3[%c0_83, %c2, %c0_84, %c0_85], %246 {strides = array<i32>} : memref<4x4x32x256xf32, #tpu.memory_space<vmem>>, vector<1x1x32x256xf32>,
    %c1_86 = arith.constant 1 : index
    %c0_87 = arith.constant 0 : index
    %c0_88 = arith.constant 0 : index
    %247 = vector.load %arg2[%c1_86, %c0_87, %c0_88] : memref<4x32x256xf32, #tpu.memory_space<vmem>>, vector<1x32x256xf32>
    %248 = vector.shape_cast %247 : vector<1x32x256xf32> to vector<32x256xf32>
    %c1_89 = arith.constant 1 : index
    %c3_90 = arith.constant 3 : index
    %c0_91 = arith.constant 0 : index
    %c0_92 = arith.constant 0 : index
    %249 = vector.load %arg3[%c1_89, %c3_90, %c0_91, %c0_92] : memref<4x4x32x256xf32, #tpu.memory_space<vmem>>, vector<1x1x32x256xf32>
    %250 = vector.shape_cast %249 : vector<1x1x32x256xf32> to vector<32x256xf32>
    %251 = vector.shape_cast %248 : vector<32x256xf32> to vector<1x1x32x256xf32>
    tpu.vector_store %arg3[%c1_89, %c3_90, %c0_91, %c0_92], %251 {strides = array<i32>} : memref<4x4x32x256xf32, #tpu.memory_space<vmem>>, vector<1x1x32x256xf32>,
    %c2_i32_93 = arith.constant 2 : i32
    %252 = tpu.dynamic_rotate %248 by %c2_i32_93 dim 1 : vector<32x256xf32>, i32 -> vector<32x256xf32>
    %cst_94 = arith.constant 0xFF800000 : f32
    %253 = vector.shape_cast %25 : vector<1x256xi1> to vector<1x256xi1>
    %254 = vector.broadcast %253 : vector<1x256xi1> to vector<32x256xi1>
    %255 = vector.broadcast %cst_94 : f32 to vector<32x256xf32>
    %256 = arith.select %254, %252, %255 : vector<32x256xi1>, vector<32x256xf32>
    %257 = arith.maximumf %248, %256 : vector<32x256xf32>
    %c1_i32_95 = arith.constant 1 : i32
    %258 = tpu.dynamic_rotate %248 by %c1_i32_95 dim 1 : vector<32x256xf32>, i32 -> vector<32x256xf32>
    %cst_96 = arith.constant 0xFF800000 : f32
    %259 = vector.shape_cast %34 : vector<1x256xi1> to vector<1x256xi1>
    %260 = vector.broadcast %259 : vector<1x256xi1> to vector<32x256xi1>
    %261 = vector.broadcast %cst_96 : f32 to vector<32x256xf32>
    %262 = arith.select %260, %258, %261 : vector<32x256xi1>, vector<32x256xf32>
    %263 = arith.maximumf %257, %262 : vector<32x256xf32>
    %c255_i32_97 = arith.constant 255 : i32
    %264 = tpu.dynamic_rotate %248 by %c255_i32_97 dim 1 : vector<32x256xf32>, i32 -> vector<32x256xf32>
    %cst_98 = arith.constant 0xFF800000 : f32
    %265 = vector.shape_cast %43 : vector<1x256xi1> to vector<1x256xi1>
    %266 = vector.broadcast %265 : vector<1x256xi1> to vector<32x256xi1>
    %267 = vector.broadcast %cst_98 : f32 to vector<32x256xf32>
    %268 = arith.select %266, %264, %267 : vector<32x256xi1>, vector<32x256xf32>
    %269 = arith.maximumf %263, %268 : vector<32x256xf32>
    %c254_i32_99 = arith.constant 254 : i32
    %270 = tpu.dynamic_rotate %248 by %c254_i32_99 dim 1 : vector<32x256xf32>, i32 -> vector<32x256xf32>
    %cst_100 = arith.constant 0xFF800000 : f32
    %271 = vector.shape_cast %52 : vector<1x256xi1> to vector<1x256xi1>
    %272 = vector.broadcast %271 : vector<1x256xi1> to vector<32x256xi1>
    %273 = vector.broadcast %cst_100 : f32 to vector<32x256xf32>
    %274 = arith.select %272, %270, %273 : vector<32x256xi1>, vector<32x256xf32>
    %275 = arith.maximumf %269, %274 : vector<32x256xf32>
    %c32_i32_101 = arith.constant 32 : i32
    %276 = tpu.dynamic_rotate %275 by %c32_i32_101 dim 1 : vector<32x256xf32>, i32 -> vector<32x256xf32>
    %cst_102 = arith.constant 0xFF800000 : f32
    %277 = vector.shape_cast %61 : vector<1x256xi1> to vector<1x256xi1>
    %278 = vector.broadcast %277 : vector<1x256xi1> to vector<32x256xi1>
    %279 = vector.broadcast %cst_102 : f32 to vector<32x256xf32>
    %280 = arith.select %278, %276, %279 : vector<32x256xi1>, vector<32x256xf32>
    %281 = arith.maximumf %275, %280 : vector<32x256xf32>
    %c16_i32_103 = arith.constant 16 : i32
    %282 = tpu.dynamic_rotate %275 by %c16_i32_103 dim 1 : vector<32x256xf32>, i32 -> vector<32x256xf32>
    %cst_104 = arith.constant 0xFF800000 : f32
    %283 = vector.shape_cast %70 : vector<1x256xi1> to vector<1x256xi1>
    %284 = vector.broadcast %283 : vector<1x256xi1> to vector<32x256xi1>
    %285 = vector.broadcast %cst_104 : f32 to vector<32x256xf32>
    %286 = arith.select %284, %282, %285 : vector<32x256xi1>, vector<32x256xf32>
    %287 = arith.maximumf %281, %286 : vector<32x256xf32>
    %c240_i32_105 = arith.constant 240 : i32
    %288 = tpu.dynamic_rotate %275 by %c240_i32_105 dim 1 : vector<32x256xf32>, i32 -> vector<32x256xf32>
    %cst_106 = arith.constant 0xFF800000 : f32
    %289 = vector.shape_cast %79 : vector<1x256xi1> to vector<1x256xi1>
    %290 = vector.broadcast %289 : vector<1x256xi1> to vector<32x256xi1>
    %291 = vector.broadcast %cst_106 : f32 to vector<32x256xf32>
    %292 = arith.select %290, %288, %291 : vector<32x256xi1>, vector<32x256xf32>
    %293 = arith.maximumf %287, %292 : vector<32x256xf32>
    %c224_i32_107 = arith.constant 224 : i32
    %294 = tpu.dynamic_rotate %275 by %c224_i32_107 dim 1 : vector<32x256xf32>, i32 -> vector<32x256xf32>
    %cst_108 = arith.constant 0xFF800000 : f32
    %295 = vector.shape_cast %88 : vector<1x256xi1> to vector<1x256xi1>
    %296 = vector.broadcast %295 : vector<1x256xi1> to vector<32x256xi1>
    %297 = vector.broadcast %cst_108 : f32 to vector<32x256xf32>
    %298 = arith.select %296, %294, %297 : vector<32x256xi1>, vector<32x256xf32>
    %299 = arith.maximumf %293, %298 : vector<32x256xf32>
    %c1_109 = arith.constant 1 : index
    %c0_110 = arith.constant 0 : index
    %c0_111 = arith.constant 0 : index
    %c0_112 = arith.constant 0 : index
    %300 = vector.load %arg3[%c1_109, %c0_110, %c0_111, %c0_112] : memref<4x4x32x256xf32, #tpu.memory_space<vmem>>, vector<1x1x32x256xf32>
    %301 = vector.shape_cast %300 : vector<1x1x32x256xf32> to vector<32x256xf32>
    %302 = vector.shape_cast %299 : vector<32x256xf32> to vector<1x1x32x256xf32>
    tpu.vector_store %arg3[%c1_109, %c0_110, %c0_111, %c0_112], %302 {strides = array<i32>} : memref<4x4x32x256xf32, #tpu.memory_space<vmem>>, vector<1x1x32x256xf32>,
    %c2_i32_113 = arith.constant 2 : i32
    %303 = tpu.dynamic_rotate %299 by %c2_i32_113 dim 1 : vector<32x256xf32>, i32 -> vector<32x256xf32>
    %cst_114 = arith.constant 0xFF800000 : f32
    %304 = vector.shape_cast %25 : vector<1x256xi1> to vector<1x256xi1>
    %305 = vector.broadcast %304 : vector<1x256xi1> to vector<32x256xi1>
    %306 = vector.broadcast %cst_114 : f32 to vector<32x256xf32>
    %307 = arith.select %305, %303, %306 : vector<32x256xi1>, vector<32x256xf32>
    %308 = arith.maximumf %299, %307 : vector<32x256xf32>
    %c1_i32_115 = arith.constant 1 : i32
    %309 = tpu.dynamic_rotate %299 by %c1_i32_115 dim 1 : vector<32x256xf32>, i32 -> vector<32x256xf32>
    %cst_116 = arith.constant 0xFF800000 : f32
    %310 = vector.shape_cast %34 : vector<1x256xi1> to vector<1x256xi1>
    %311 = vector.broadcast %310 : vector<1x256xi1> to vector<32x256xi1>
    %312 = vector.broadcast %cst_116 : f32 to vector<32x256xf32>
    %313 = arith.select %311, %309, %312 : vector<32x256xi1>, vector<32x256xf32>
    %314 = arith.maximumf %308, %313 : vector<32x256xf32>
    %c255_i32_117 = arith.constant 255 : i32
    %315 = tpu.dynamic_rotate %299 by %c255_i32_117 dim 1 : vector<32x256xf32>, i32 -> vector<32x256xf32>
    %cst_118 = arith.constant 0xFF800000 : f32
    %316 = vector.shape_cast %43 : vector<1x256xi1> to vector<1x256xi1>
    %317 = vector.broadcast %316 : vector<1x256xi1> to vector<32x256xi1>
    %318 = vector.broadcast %cst_118 : f32 to vector<32x256xf32>
    %319 = arith.select %317, %315, %318 : vector<32x256xi1>, vector<32x256xf32>
    %320 = arith.maximumf %314, %319 : vector<32x256xf32>
    %c254_i32_119 = arith.constant 254 : i32
    %321 = tpu.dynamic_rotate %299 by %c254_i32_119 dim 1 : vector<32x256xf32>, i32 -> vector<32x256xf32>
    %cst_120 = arith.constant 0xFF800000 : f32
    %322 = vector.shape_cast %52 : vector<1x256xi1> to vector<1x256xi1>
    %323 = vector.broadcast %322 : vector<1x256xi1> to vector<32x256xi1>
    %324 = vector.broadcast %cst_120 : f32 to vector<32x256xf32>
    %325 = arith.select %323, %321, %324 : vector<32x256xi1>, vector<32x256xf32>
    %326 = arith.maximumf %320, %325 : vector<32x256xf32>
    %c32_i32_121 = arith.constant 32 : i32
    %327 = tpu.dynamic_rotate %326 by %c32_i32_121 dim 1 : vector<32x256xf32>, i32 -> vector<32x256xf32>
    %cst_122 = arith.constant 0xFF800000 : f32
    %328 = vector.shape_cast %61 : vector<1x256xi1> to vector<1x256xi1>
    %329 = vector.broadcast %328 : vector<1x256xi1> to vector<32x256xi1>
    %330 = vector.broadcast %cst_122 : f32 to vector<32x256xf32>
    %331 = arith.select %329, %327, %330 : vector<32x256xi1>, vector<32x256xf32>
    %332 = arith.maximumf %326, %331 : vector<32x256xf32>
    %c16_i32_123 = arith.constant 16 : i32
    %333 = tpu.dynamic_rotate %326 by %c16_i32_123 dim 1 : vector<32x256xf32>, i32 -> vector<32x256xf32>
    %cst_124 = arith.constant 0xFF800000 : f32
    %334 = vector.shape_cast %70 : vector<1x256xi1> to vector<1x256xi1>
    %335 = vector.broadcast %334 : vector<1x256xi1> to vector<32x256xi1>
    %336 = vector.broadcast %cst_124 : f32 to vector<32x256xf32>
    %337 = arith.select %335, %333, %336 : vector<32x256xi1>, vector<32x256xf32>
    %338 = arith.maximumf %332, %337 : vector<32x256xf32>
    %c240_i32_125 = arith.constant 240 : i32
    %339 = tpu.dynamic_rotate %326 by %c240_i32_125 dim 1 : vector<32x256xf32>, i32 -> vector<32x256xf32>
    %cst_126 = arith.constant 0xFF800000 : f32
    %340 = vector.shape_cast %79 : vector<1x256xi1> to vector<1x256xi1>
    %341 = vector.broadcast %340 : vector<1x256xi1> to vector<32x256xi1>
    %342 = vector.broadcast %cst_126 : f32 to vector<32x256xf32>
    %343 = arith.select %341, %339, %342 : vector<32x256xi1>, vector<32x256xf32>
    %344 = arith.maximumf %338, %343 : vector<32x256xf32>
    %c224_i32_127 = arith.constant 224 : i32
    %345 = tpu.dynamic_rotate %326 by %c224_i32_127 dim 1 : vector<32x256xf32>, i32 -> vector<32x256xf32>
    %cst_128 = arith.constant 0xFF800000 : f32
    %346 = vector.shape_cast %88 : vector<1x256xi1> to vector<1x256xi1>
    %347 = vector.broadcast %346 : vector<1x256xi1> to vector<32x256xi1>
    %348 = vector.broadcast %cst_128 : f32 to vector<32x256xf32>
    %349 = arith.select %347, %345, %348 : vector<32x256xi1>, vector<32x256xf32>
    %350 = arith.maximumf %344, %349 : vector<32x256xf32>
    %c1_129 = arith.constant 1 : index
    %c1_130 = arith.constant 1 : index
    %c0_131 = arith.constant 0 : index
    %c0_132 = arith.constant 0 : index
    %351 = vector.load %arg3[%c1_129, %c1_130, %c0_131, %c0_132] : memref<4x4x32x256xf32, #tpu.memory_space<vmem>>, vector<1x1x32x256xf32>
    %352 = vector.shape_cast %351 : vector<1x1x32x256xf32> to vector<32x256xf32>
    %353 = vector.shape_cast %350 : vector<32x256xf32> to vector<1x1x32x256xf32>
    tpu.vector_store %arg3[%c1_129, %c1_130, %c0_131, %c0_132], %353 {strides = array<i32>} : memref<4x4x32x256xf32, #tpu.memory_space<vmem>>, vector<1x1x32x256xf32>,
    %c2_i32_133 = arith.constant 2 : i32
    %354 = tpu.dynamic_rotate %350 by %c2_i32_133 dim 1 : vector<32x256xf32>, i32 -> vector<32x256xf32>
    %cst_134 = arith.constant 0xFF800000 : f32
    %355 = vector.shape_cast %25 : vector<1x256xi1> to vector<1x256xi1>
    %356 = vector.broadcast %355 : vector<1x256xi1> to vector<32x256xi1>
    %357 = vector.broadcast %cst_134 : f32 to vector<32x256xf32>
    %358 = arith.select %356, %354, %357 : vector<32x256xi1>, vector<32x256xf32>
    %359 = arith.maximumf %350, %358 : vector<32x256xf32>
    %c1_i32_135 = arith.constant 1 : i32
    %360 = tpu.dynamic_rotate %350 by %c1_i32_135 dim 1 : vector<32x256xf32>, i32 -> vector<32x256xf32>
    %cst_136 = arith.constant 0xFF800000 : f32
    %361 = vector.shape_cast %34 : vector<1x256xi1> to vector<1x256xi1>
    %362 = vector.broadcast %361 : vector<1x256xi1> to vector<32x256xi1>
    %363 = vector.broadcast %cst_136 : f32 to vector<32x256xf32>
    %364 = arith.select %362, %360, %363 : vector<32x256xi1>, vector<32x256xf32>
    %365 = arith.maximumf %359, %364 : vector<32x256xf32>
    %c255_i32_137 = arith.constant 255 : i32
    %366 = tpu.dynamic_rotate %350 by %c255_i32_137 dim 1 : vector<32x256xf32>, i32 -> vector<32x256xf32>
    %cst_138 = arith.constant 0xFF800000 : f32
    %367 = vector.shape_cast %43 : vector<1x256xi1> to vector<1x256xi1>
    %368 = vector.broadcast %367 : vector<1x256xi1> to vector<32x256xi1>
    %369 = vector.broadcast %cst_138 : f32 to vector<32x256xf32>
    %370 = arith.select %368, %366, %369 : vector<32x256xi1>, vector<32x256xf32>
    %371 = arith.maximumf %365, %370 : vector<32x256xf32>
    %c254_i32_139 = arith.constant 254 : i32
    %372 = tpu.dynamic_rotate %350 by %c254_i32_139 dim 1 : vector<32x256xf32>, i32 -> vector<32x256xf32>
    %cst_140 = arith.constant 0xFF800000 : f32
    %373 = vector.shape_cast %52 : vector<1x256xi1> to vector<1x256xi1>
    %374 = vector.broadcast %373 : vector<1x256xi1> to vector<32x256xi1>
    %375 = vector.broadcast %cst_140 : f32 to vector<32x256xf32>
    %376 = arith.select %374, %372, %375 : vector<32x256xi1>, vector<32x256xf32>
    %377 = arith.maximumf %371, %376 : vector<32x256xf32>
    %c32_i32_141 = arith.constant 32 : i32
    %378 = tpu.dynamic_rotate %377 by %c32_i32_141 dim 1 : vector<32x256xf32>, i32 -> vector<32x256xf32>
    %cst_142 = arith.constant 0xFF800000 : f32
    %379 = vector.shape_cast %61 : vector<1x256xi1> to vector<1x256xi1>
    %380 = vector.broadcast %379 : vector<1x256xi1> to vector<32x256xi1>
    %381 = vector.broadcast %cst_142 : f32 to vector<32x256xf32>
    %382 = arith.select %380, %378, %381 : vector<32x256xi1>, vector<32x256xf32>
    %383 = arith.maximumf %377, %382 : vector<32x256xf32>
    %c16_i32_143 = arith.constant 16 : i32
    %384 = tpu.dynamic_rotate %377 by %c16_i32_143 dim 1 : vector<32x256xf32>, i32 -> vector<32x256xf32>
    %cst_144 = arith.constant 0xFF800000 : f32
    %385 = vector.shape_cast %70 : vector<1x256xi1> to vector<1x256xi1>
    %386 = vector.broadcast %385 : vector<1x256xi1> to vector<32x256xi1>
    %387 = vector.broadcast %cst_144 : f32 to vector<32x256xf32>
    %388 = arith.select %386, %384, %387 : vector<32x256xi1>, vector<32x256xf32>
    %389 = arith.maximumf %383, %388 : vector<32x256xf32>
    %c240_i32_145 = arith.constant 240 : i32
    %390 = tpu.dynamic_rotate %377 by %c240_i32_145 dim 1 : vector<32x256xf32>, i32 -> vector<32x256xf32>
    %cst_146 = arith.constant 0xFF800000 : f32
    %391 = vector.shape_cast %79 : vector<1x256xi1> to vector<1x256xi1>
    %392 = vector.broadcast %391 : vector<1x256xi1> to vector<32x256xi1>
    %393 = vector.broadcast %cst_146 : f32 to vector<32x256xf32>
    %394 = arith.select %392, %390, %393 : vector<32x256xi1>, vector<32x256xf32>
    %395 = arith.maximumf %389, %394 : vector<32x256xf32>
    %c224_i32_147 = arith.constant 224 : i32
    %396 = tpu.dynamic_rotate %377 by %c224_i32_147 dim 1 : vector<32x256xf32>, i32 -> vector<32x256xf32>
    %cst_148 = arith.constant 0xFF800000 : f32
    %397 = vector.shape_cast %88 : vector<1x256xi1> to vector<1x256xi1>
    %398 = vector.broadcast %397 : vector<1x256xi1> to vector<32x256xi1>
    %399 = vector.broadcast %cst_148 : f32 to vector<32x256xf32>
    %400 = arith.select %398, %396, %399 : vector<32x256xi1>, vector<32x256xf32>
    %401 = arith.maximumf %395, %400 : vector<32x256xf32>
    %c1_149 = arith.constant 1 : index
    %c2_150 = arith.constant 2 : index
    %c0_151 = arith.constant 0 : index
    %c0_152 = arith.constant 0 : index
    %402 = vector.load %arg3[%c1_149, %c2_150, %c0_151, %c0_152] : memref<4x4x32x256xf32, #tpu.memory_space<vmem>>, vector<1x1x32x256xf32>
    %403 = vector.shape_cast %402 : vector<1x1x32x256xf32> to vector<32x256xf32>
    %404 = vector.shape_cast %401 : vector<32x256xf32> to vector<1x1x32x256xf32>
    tpu.vector_store %arg3[%c1_149, %c2_150, %c0_151, %c0_152], %404 {strides = array<i32>} : memref<4x4x32x256xf32, #tpu.memory_space<vmem>>, vector<1x1x32x256xf32>,
    %c2_153 = arith.constant 2 : index
    %c0_154 = arith.constant 0 : index
    %c0_155 = arith.constant 0 : index
    %405 = vector.load %arg2[%c2_153, %c0_154, %c0_155] : memref<4x32x256xf32, #tpu.memory_space<vmem>>, vector<1x32x256xf32>
    %406 = vector.shape_cast %405 : vector<1x32x256xf32> to vector<32x256xf32>
    %c2_156 = arith.constant 2 : index
    %c3_157 = arith.constant 3 : index
    %c0_158 = arith.constant 0 : index
    %c0_159 = arith.constant 0 : index
    %407 = vector.load %arg3[%c2_156, %c3_157, %c0_158, %c0_159] : memref<4x4x32x256xf32, #tpu.memory_space<vmem>>, vector<1x1x32x256xf32>
    %408 = vector.shape_cast %407 : vector<1x1x32x256xf32> to vector<32x256xf32>
    %409 = vector.shape_cast %406 : vector<32x256xf32> to vector<1x1x32x256xf32>
    tpu.vector_store %arg3[%c2_156, %c3_157, %c0_158, %c0_159], %409 {strides = array<i32>} : memref<4x4x32x256xf32, #tpu.memory_space<vmem>>, vector<1x1x32x256xf32>,
    %c2_i32_160 = arith.constant 2 : i32
    %410 = tpu.dynamic_rotate %406 by %c2_i32_160 dim 1 : vector<32x256xf32>, i32 -> vector<32x256xf32>
    %cst_161 = arith.constant 0xFF800000 : f32
    %411 = vector.shape_cast %25 : vector<1x256xi1> to vector<1x256xi1>
    %412 = vector.broadcast %411 : vector<1x256xi1> to vector<32x256xi1>
    %413 = vector.broadcast %cst_161 : f32 to vector<32x256xf32>
    %414 = arith.select %412, %410, %413 : vector<32x256xi1>, vector<32x256xf32>
    %415 = arith.maximumf %406, %414 : vector<32x256xf32>
    %c1_i32_162 = arith.constant 1 : i32
    %416 = tpu.dynamic_rotate %406 by %c1_i32_162 dim 1 : vector<32x256xf32>, i32 -> vector<32x256xf32>
    %cst_163 = arith.constant 0xFF800000 : f32
    %417 = vector.shape_cast %34 : vector<1x256xi1> to vector<1x256xi1>
    %418 = vector.broadcast %417 : vector<1x256xi1> to vector<32x256xi1>
    %419 = vector.broadcast %cst_163 : f32 to vector<32x256xf32>
    %420 = arith.select %418, %416, %419 : vector<32x256xi1>, vector<32x256xf32>
    %421 = arith.maximumf %415, %420 : vector<32x256xf32>
    %c255_i32_164 = arith.constant 255 : i32
    %422 = tpu.dynamic_rotate %406 by %c255_i32_164 dim 1 : vector<32x256xf32>, i32 -> vector<32x256xf32>
    %cst_165 = arith.constant 0xFF800000 : f32
    %423 = vector.shape_cast %43 : vector<1x256xi1> to vector<1x256xi1>
    %424 = vector.broadcast %423 : vector<1x256xi1> to vector<32x256xi1>
    %425 = vector.broadcast %cst_165 : f32 to vector<32x256xf32>
    %426 = arith.select %424, %422, %425 : vector<32x256xi1>, vector<32x256xf32>
    %427 = arith.maximumf %421, %426 : vector<32x256xf32>
    %c254_i32_166 = arith.constant 254 : i32
    %428 = tpu.dynamic_rotate %406 by %c254_i32_166 dim 1 : vector<32x256xf32>, i32 -> vector<32x256xf32>
    %cst_167 = arith.constant 0xFF800000 : f32
    %429 = vector.shape_cast %52 : vector<1x256xi1> to vector<1x256xi1>
    %430 = vector.broadcast %429 : vector<1x256xi1> to vector<32x256xi1>
    %431 = vector.broadcast %cst_167 : f32 to vector<32x256xf32>
    %432 = arith.select %430, %428, %431 : vector<32x256xi1>, vector<32x256xf32>
    %433 = arith.maximumf %427, %432 : vector<32x256xf32>
    %c32_i32_168 = arith.constant 32 : i32
    %434 = tpu.dynamic_rotate %433 by %c32_i32_168 dim 1 : vector<32x256xf32>, i32 -> vector<32x256xf32>
    %cst_169 = arith.constant 0xFF800000 : f32
    %435 = vector.shape_cast %61 : vector<1x256xi1> to vector<1x256xi1>
    %436 = vector.broadcast %435 : vector<1x256xi1> to vector<32x256xi1>
    %437 = vector.broadcast %cst_169 : f32 to vector<32x256xf32>
    %438 = arith.select %436, %434, %437 : vector<32x256xi1>, vector<32x256xf32>
    %439 = arith.maximumf %433, %438 : vector<32x256xf32>
    %c16_i32_170 = arith.constant 16 : i32
    %440 = tpu.dynamic_rotate %433 by %c16_i32_170 dim 1 : vector<32x256xf32>, i32 -> vector<32x256xf32>
    %cst_171 = arith.constant 0xFF800000 : f32
    %441 = vector.shape_cast %70 : vector<1x256xi1> to vector<1x256xi1>
    %442 = vector.broadcast %441 : vector<1x256xi1> to vector<32x256xi1>
    %443 = vector.broadcast %cst_171 : f32 to vector<32x256xf32>
    %444 = arith.select %442, %440, %443 : vector<32x256xi1>, vector<32x256xf32>
    %445 = arith.maximumf %439, %444 : vector<32x256xf32>
    %c240_i32_172 = arith.constant 240 : i32
    %446 = tpu.dynamic_rotate %433 by %c240_i32_172 dim 1 : vector<32x256xf32>, i32 -> vector<32x256xf32>
    %cst_173 = arith.constant 0xFF800000 : f32
    %447 = vector.shape_cast %79 : vector<1x256xi1> to vector<1x256xi1>
    %448 = vector.broadcast %447 : vector<1x256xi1> to vector<32x256xi1>
    %449 = vector.broadcast %cst_173 : f32 to vector<32x256xf32>
    %450 = arith.select %448, %446, %449 : vector<32x256xi1>, vector<32x256xf32>
    %451 = arith.maximumf %445, %450 : vector<32x256xf32>
    %c224_i32_174 = arith.constant 224 : i32
    %452 = tpu.dynamic_rotate %433 by %c224_i32_174 dim 1 : vector<32x256xf32>, i32 -> vector<32x256xf32>
    %cst_175 = arith.constant 0xFF800000 : f32
    %453 = vector.shape_cast %88 : vector<1x256xi1> to vector<1x256xi1>
    %454 = vector.broadcast %453 : vector<1x256xi1> to vector<32x256xi1>
    %455 = vector.broadcast %cst_175 : f32 to vector<32x256xf32>
    %456 = arith.select %454, %452, %455 : vector<32x256xi1>, vector<32x256xf32>
    %457 = arith.maximumf %451, %456 : vector<32x256xf32>
    %c2_176 = arith.constant 2 : index
    %c0_177 = arith.constant 0 : index
    %c0_178 = arith.constant 0 : index
    %c0_179 = arith.constant 0 : index
    %458 = vector.load %arg3[%c2_176, %c0_177, %c0_178, %c0_179] : memref<4x4x32x256xf32, #tpu.memory_space<vmem>>, vector<1x1x32x256xf32>
    %459 = vector.shape_cast %458 : vector<1x1x32x256xf32> to vector<32x256xf32>
    %460 = vector.shape_cast %457 : vector<32x256xf32> to vector<1x1x32x256xf32>
    tpu.vector_store %arg3[%c2_176, %c0_177, %c0_178, %c0_179], %460 {strides = array<i32>} : memref<4x4x32x256xf32, #tpu.memory_space<vmem>>, vector<1x1x32x256xf32>,
    %c2_i32_180 = arith.constant 2 : i32
    %461 = tpu.dynamic_rotate %457 by %c2_i32_180 dim 1 : vector<32x256xf32>, i32 -> vector<32x256xf32>
    %cst_181 = arith.constant 0xFF800000 : f32
    %462 = vector.shape_cast %25 : vector<1x256xi1> to vector<1x256xi1>
    %463 = vector.broadcast %462 : vector<1x256xi1> to vector<32x256xi1>
    %464 = vector.broadcast %cst_181 : f32 to vector<32x256xf32>
    %465 = arith.select %463, %461, %464 : vector<32x256xi1>, vector<32x256xf32>
    %466 = arith.maximumf %457, %465 : vector<32x256xf32>
    %c1_i32_182 = arith.constant 1 : i32
    %467 = tpu.dynamic_rotate %457 by %c1_i32_182 dim 1 : vector<32x256xf32>, i32 -> vector<32x256xf32>
    %cst_183 = arith.constant 0xFF800000 : f32
    %468 = vector.shape_cast %34 : vector<1x256xi1> to vector<1x256xi1>
    %469 = vector.broadcast %468 : vector<1x256xi1> to vector<32x256xi1>
    %470 = vector.broadcast %cst_183 : f32 to vector<32x256xf32>
    %471 = arith.select %469, %467, %470 : vector<32x256xi1>, vector<32x256xf32>
    %472 = arith.maximumf %466, %471 : vector<32x256xf32>
    %c255_i32_184 = arith.constant 255 : i32
    %473 = tpu.dynamic_rotate %457 by %c255_i32_184 dim 1 : vector<32x256xf32>, i32 -> vector<32x256xf32>
    %cst_185 = arith.constant 0xFF800000 : f32
    %474 = vector.shape_cast %43 : vector<1x256xi1> to vector<1x256xi1>
    %475 = vector.broadcast %474 : vector<1x256xi1> to vector<32x256xi1>
    %476 = vector.broadcast %cst_185 : f32 to vector<32x256xf32>
    %477 = arith.select %475, %473, %476 : vector<32x256xi1>, vector<32x256xf32>
    %478 = arith.maximumf %472, %477 : vector<32x256xf32>
    %c254_i32_186 = arith.constant 254 : i32
    %479 = tpu.dynamic_rotate %457 by %c254_i32_186 dim 1 : vector<32x256xf32>, i32 -> vector<32x256xf32>
    %cst_187 = arith.constant 0xFF800000 : f32
    %480 = vector.shape_cast %52 : vector<1x256xi1> to vector<1x256xi1>
    %481 = vector.broadcast %480 : vector<1x256xi1> to vector<32x256xi1>
    %482 = vector.broadcast %cst_187 : f32 to vector<32x256xf32>
    %483 = arith.select %481, %479, %482 : vector<32x256xi1>, vector<32x256xf32>
    %484 = arith.maximumf %478, %483 : vector<32x256xf32>
    %c32_i32_188 = arith.constant 32 : i32
    %485 = tpu.dynamic_rotate %484 by %c32_i32_188 dim 1 : vector<32x256xf32>, i32 -> vector<32x256xf32>
    %cst_189 = arith.constant 0xFF800000 : f32
    %486 = vector.shape_cast %61 : vector<1x256xi1> to vector<1x256xi1>
    %487 = vector.broadcast %486 : vector<1x256xi1> to vector<32x256xi1>
    %488 = vector.broadcast %cst_189 : f32 to vector<32x256xf32>
    %489 = arith.select %487, %485, %488 : vector<32x256xi1>, vector<32x256xf32>
    %490 = arith.maximumf %484, %489 : vector<32x256xf32>
    %c16_i32_190 = arith.constant 16 : i32
    %491 = tpu.dynamic_rotate %484 by %c16_i32_190 dim 1 : vector<32x256xf32>, i32 -> vector<32x256xf32>
    %cst_191 = arith.constant 0xFF800000 : f32
    %492 = vector.shape_cast %70 : vector<1x256xi1> to vector<1x256xi1>
    %493 = vector.broadcast %492 : vector<1x256xi1> to vector<32x256xi1>
    %494 = vector.broadcast %cst_191 : f32 to vector<32x256xf32>
    %495 = arith.select %493, %491, %494 : vector<32x256xi1>, vector<32x256xf32>
    %496 = arith.maximumf %490, %495 : vector<32x256xf32>
    %c240_i32_192 = arith.constant 240 : i32
    %497 = tpu.dynamic_rotate %484 by %c240_i32_192 dim 1 : vector<32x256xf32>, i32 -> vector<32x256xf32>
    %cst_193 = arith.constant 0xFF800000 : f32
    %498 = vector.shape_cast %79 : vector<1x256xi1> to vector<1x256xi1>
    %499 = vector.broadcast %498 : vector<1x256xi1> to vector<32x256xi1>
    %500 = vector.broadcast %cst_193 : f32 to vector<32x256xf32>
    %501 = arith.select %499, %497, %500 : vector<32x256xi1>, vector<32x256xf32>
    %502 = arith.maximumf %496, %501 : vector<32x256xf32>
    %c224_i32_194 = arith.constant 224 : i32
    %503 = tpu.dynamic_rotate %484 by %c224_i32_194 dim 1 : vector<32x256xf32>, i32 -> vector<32x256xf32>
    %cst_195 = arith.constant 0xFF800000 : f32
    %504 = vector.shape_cast %88 : vector<1x256xi1> to vector<1x256xi1>
    %505 = vector.broadcast %504 : vector<1x256xi1> to vector<32x256xi1>
    %506 = vector.broadcast %cst_195 : f32 to vector<32x256xf32>
    %507 = arith.select %505, %503, %506 : vector<32x256xi1>, vector<32x256xf32>
    %508 = arith.maximumf %502, %507 : vector<32x256xf32>
    %c2_196 = arith.constant 2 : index
    %c1_197 = arith.constant 1 : index
    %c0_198 = arith.constant 0 : index
    %c0_199 = arith.constant 0 : index
    %509 = vector.load %arg3[%c2_196, %c1_197, %c0_198, %c0_199] : memref<4x4x32x256xf32, #tpu.memory_space<vmem>>, vector<1x1x32x256xf32>
    %510 = vector.shape_cast %509 : vector<1x1x32x256xf32> to vector<32x256xf32>
    %511 = vector.shape_cast %508 : vector<32x256xf32> to vector<1x1x32x256xf32>
    tpu.vector_store %arg3[%c2_196, %c1_197, %c0_198, %c0_199], %511 {strides = array<i32>} : memref<4x4x32x256xf32, #tpu.memory_space<vmem>>, vector<1x1x32x256xf32>,
    %c2_i32_200 = arith.constant 2 : i32
    %512 = tpu.dynamic_rotate %508 by %c2_i32_200 dim 1 : vector<32x256xf32>, i32 -> vector<32x256xf32>
    %cst_201 = arith.constant 0xFF800000 : f32
    %513 = vector.shape_cast %25 : vector<1x256xi1> to vector<1x256xi1>
    %514 = vector.broadcast %513 : vector<1x256xi1> to vector<32x256xi1>
    %515 = vector.broadcast %cst_201 : f32 to vector<32x256xf32>
    %516 = arith.select %514, %512, %515 : vector<32x256xi1>, vector<32x256xf32>
    %517 = arith.maximumf %508, %516 : vector<32x256xf32>
    %c1_i32_202 = arith.constant 1 : i32
    %518 = tpu.dynamic_rotate %508 by %c1_i32_202 dim 1 : vector<32x256xf32>, i32 -> vector<32x256xf32>
    %cst_203 = arith.constant 0xFF800000 : f32
    %519 = vector.shape_cast %34 : vector<1x256xi1> to vector<1x256xi1>
    %520 = vector.broadcast %519 : vector<1x256xi1> to vector<32x256xi1>
    %521 = vector.broadcast %cst_203 : f32 to vector<32x256xf32>
    %522 = arith.select %520, %518, %521 : vector<32x256xi1>, vector<32x256xf32>
    %523 = arith.maximumf %517, %522 : vector<32x256xf32>
    %c255_i32_204 = arith.constant 255 : i32
    %524 = tpu.dynamic_rotate %508 by %c255_i32_204 dim 1 : vector<32x256xf32>, i32 -> vector<32x256xf32>
    %cst_205 = arith.constant 0xFF800000 : f32
    %525 = vector.shape_cast %43 : vector<1x256xi1> to vector<1x256xi1>
    %526 = vector.broadcast %525 : vector<1x256xi1> to vector<32x256xi1>
    %527 = vector.broadcast %cst_205 : f32 to vector<32x256xf32>
    %528 = arith.select %526, %524, %527 : vector<32x256xi1>, vector<32x256xf32>
    %529 = arith.maximumf %523, %528 : vector<32x256xf32>
    %c254_i32_206 = arith.constant 254 : i32
    %530 = tpu.dynamic_rotate %508 by %c254_i32_206 dim 1 : vector<32x256xf32>, i32 -> vector<32x256xf32>
    %cst_207 = arith.constant 0xFF800000 : f32
    %531 = vector.shape_cast %52 : vector<1x256xi1> to vector<1x256xi1>
    %532 = vector.broadcast %531 : vector<1x256xi1> to vector<32x256xi1>
    %533 = vector.broadcast %cst_207 : f32 to vector<32x256xf32>
    %534 = arith.select %532, %530, %533 : vector<32x256xi1>, vector<32x256xf32>
    %535 = arith.maximumf %529, %534 : vector<32x256xf32>
    %c32_i32_208 = arith.constant 32 : i32
    %536 = tpu.dynamic_rotate %535 by %c32_i32_208 dim 1 : vector<32x256xf32>, i32 -> vector<32x256xf32>
    %cst_209 = arith.constant 0xFF800000 : f32
    %537 = vector.shape_cast %61 : vector<1x256xi1> to vector<1x256xi1>
    %538 = vector.broadcast %537 : vector<1x256xi1> to vector<32x256xi1>
    %539 = vector.broadcast %cst_209 : f32 to vector<32x256xf32>
    %540 = arith.select %538, %536, %539 : vector<32x256xi1>, vector<32x256xf32>
    %541 = arith.maximumf %535, %540 : vector<32x256xf32>
    %c16_i32_210 = arith.constant 16 : i32
    %542 = tpu.dynamic_rotate %535 by %c16_i32_210 dim 1 : vector<32x256xf32>, i32 -> vector<32x256xf32>
    %cst_211 = arith.constant 0xFF800000 : f32
    %543 = vector.shape_cast %70 : vector<1x256xi1> to vector<1x256xi1>
    %544 = vector.broadcast %543 : vector<1x256xi1> to vector<32x256xi1>
    %545 = vector.broadcast %cst_211 : f32 to vector<32x256xf32>
    %546 = arith.select %544, %542, %545 : vector<32x256xi1>, vector<32x256xf32>
    %547 = arith.maximumf %541, %546 : vector<32x256xf32>
    %c240_i32_212 = arith.constant 240 : i32
    %548 = tpu.dynamic_rotate %535 by %c240_i32_212 dim 1 : vector<32x256xf32>, i32 -> vector<32x256xf32>
    %cst_213 = arith.constant 0xFF800000 : f32
    %549 = vector.shape_cast %79 : vector<1x256xi1> to vector<1x256xi1>
    %550 = vector.broadcast %549 : vector<1x256xi1> to vector<32x256xi1>
    %551 = vector.broadcast %cst_213 : f32 to vector<32x256xf32>
    %552 = arith.select %550, %548, %551 : vector<32x256xi1>, vector<32x256xf32>
    %553 = arith.maximumf %547, %552 : vector<32x256xf32>
    %c224_i32_214 = arith.constant 224 : i32
    %554 = tpu.dynamic_rotate %535 by %c224_i32_214 dim 1 : vector<32x256xf32>, i32 -> vector<32x256xf32>
    %cst_215 = arith.constant 0xFF800000 : f32
    %555 = vector.shape_cast %88 : vector<1x256xi1> to vector<1x256xi1>
    %556 = vector.broadcast %555 : vector<1x256xi1> to vector<32x256xi1>
    %557 = vector.broadcast %cst_215 : f32 to vector<32x256xf32>
    %558 = arith.select %556, %554, %557 : vector<32x256xi1>, vector<32x256xf32>
    %559 = arith.maximumf %553, %558 : vector<32x256xf32>
    %c2_216 = arith.constant 2 : index
    %c2_217 = arith.constant 2 : index
    %c0_218 = arith.constant 0 : index
    %c0_219 = arith.constant 0 : index
    %560 = vector.load %arg3[%c2_216, %c2_217, %c0_218, %c0_219] : memref<4x4x32x256xf32, #tpu.memory_space<vmem>>, vector<1x1x32x256xf32>
    %561 = vector.shape_cast %560 : vector<1x1x32x256xf32> to vector<32x256xf32>
    %562 = vector.shape_cast %559 : vector<32x256xf32> to vector<1x1x32x256xf32>
    tpu.vector_store %arg3[%c2_216, %c2_217, %c0_218, %c0_219], %562 {strides = array<i32>} : memref<4x4x32x256xf32, #tpu.memory_space<vmem>>, vector<1x1x32x256xf32>,
    %c3_220 = arith.constant 3 : index
    %c0_221 = arith.constant 0 : index
    %c0_222 = arith.constant 0 : index
    %563 = vector.load %arg2[%c3_220, %c0_221, %c0_222] : memref<4x32x256xf32, #tpu.memory_space<vmem>>, vector<1x32x256xf32>
    %564 = vector.shape_cast %563 : vector<1x32x256xf32> to vector<32x256xf32>
    %c3_223 = arith.constant 3 : index
    %c3_224 = arith.constant 3 : index
    %c0_225 = arith.constant 0 : index
    %c0_226 = arith.constant 0 : index
    %565 = vector.load %arg3[%c3_223, %c3_224, %c0_225, %c0_226] : memref<4x4x32x256xf32, #tpu.memory_space<vmem>>, vector<1x1x32x256xf32>
    %566 = vector.shape_cast %565 : vector<1x1x32x256xf32> to vector<32x256xf32>
    %567 = vector.shape_cast %564 : vector<32x256xf32> to vector<1x1x32x256xf32>
    tpu.vector_store %arg3[%c3_223, %c3_224, %c0_225, %c0_226], %567 {strides = array<i32>} : memref<4x4x32x256xf32, #tpu.memory_space<vmem>>, vector<1x1x32x256xf32>,
    %c2_i32_227 = arith.constant 2 : i32
    %568 = tpu.dynamic_rotate %564 by %c2_i32_227 dim 1 : vector<32x256xf32>, i32 -> vector<32x256xf32>
    %cst_228 = arith.constant 0xFF800000 : f32
    %569 = vector.shape_cast %25 : vector<1x256xi1> to vector<1x256xi1>
    %570 = vector.broadcast %569 : vector<1x256xi1> to vector<32x256xi1>
    %571 = vector.broadcast %cst_228 : f32 to vector<32x256xf32>
    %572 = arith.select %570, %568, %571 : vector<32x256xi1>, vector<32x256xf32>
    %573 = arith.maximumf %564, %572 : vector<32x256xf32>
    %c1_i32_229 = arith.constant 1 : i32
    %574 = tpu.dynamic_rotate %564 by %c1_i32_229 dim 1 : vector<32x256xf32>, i32 -> vector<32x256xf32>
    %cst_230 = arith.constant 0xFF800000 : f32
    %575 = vector.shape_cast %34 : vector<1x256xi1> to vector<1x256xi1>
    %576 = vector.broadcast %575 : vector<1x256xi1> to vector<32x256xi1>
    %577 = vector.broadcast %cst_230 : f32 to vector<32x256xf32>
    %578 = arith.select %576, %574, %577 : vector<32x256xi1>, vector<32x256xf32>
    %579 = arith.maximumf %573, %578 : vector<32x256xf32>
    %c255_i32_231 = arith.constant 255 : i32
    %580 = tpu.dynamic_rotate %564 by %c255_i32_231 dim 1 : vector<32x256xf32>, i32 -> vector<32x256xf32>
    %cst_232 = arith.constant 0xFF800000 : f32
    %581 = vector.shape_cast %43 : vector<1x256xi1> to vector<1x256xi1>
    %582 = vector.broadcast %581 : vector<1x256xi1> to vector<32x256xi1>
    %583 = vector.broadcast %cst_232 : f32 to vector<32x256xf32>
    %584 = arith.select %582, %580, %583 : vector<32x256xi1>, vector<32x256xf32>
    %585 = arith.maximumf %579, %584 : vector<32x256xf32>
    %c254_i32_233 = arith.constant 254 : i32
    %586 = tpu.dynamic_rotate %564 by %c254_i32_233 dim 1 : vector<32x256xf32>, i32 -> vector<32x256xf32>
    %cst_234 = arith.constant 0xFF800000 : f32
    %587 = vector.shape_cast %52 : vector<1x256xi1> to vector<1x256xi1>
    %588 = vector.broadcast %587 : vector<1x256xi1> to vector<32x256xi1>
    %589 = vector.broadcast %cst_234 : f32 to vector<32x256xf32>
    %590 = arith.select %588, %586, %589 : vector<32x256xi1>, vector<32x256xf32>
    %591 = arith.maximumf %585, %590 : vector<32x256xf32>
    %c32_i32_235 = arith.constant 32 : i32
    %592 = tpu.dynamic_rotate %591 by %c32_i32_235 dim 1 : vector<32x256xf32>, i32 -> vector<32x256xf32>
    %cst_236 = arith.constant 0xFF800000 : f32
    %593 = vector.shape_cast %61 : vector<1x256xi1> to vector<1x256xi1>
    %594 = vector.broadcast %593 : vector<1x256xi1> to vector<32x256xi1>
    %595 = vector.broadcast %cst_236 : f32 to vector<32x256xf32>
    %596 = arith.select %594, %592, %595 : vector<32x256xi1>, vector<32x256xf32>
    %597 = arith.maximumf %591, %596 : vector<32x256xf32>
    %c16_i32_237 = arith.constant 16 : i32
    %598 = tpu.dynamic_rotate %591 by %c16_i32_237 dim 1 : vector<32x256xf32>, i32 -> vector<32x256xf32>
    %cst_238 = arith.constant 0xFF800000 : f32
    %599 = vector.shape_cast %70 : vector<1x256xi1> to vector<1x256xi1>
    %600 = vector.broadcast %599 : vector<1x256xi1> to vector<32x256xi1>
    %601 = vector.broadcast %cst_238 : f32 to vector<32x256xf32>
    %602 = arith.select %600, %598, %601 : vector<32x256xi1>, vector<32x256xf32>
    %603 = arith.maximumf %597, %602 : vector<32x256xf32>
    %c240_i32_239 = arith.constant 240 : i32
    %604 = tpu.dynamic_rotate %591 by %c240_i32_239 dim 1 : vector<32x256xf32>, i32 -> vector<32x256xf32>
    %cst_240 = arith.constant 0xFF800000 : f32
    %605 = vector.shape_cast %79 : vector<1x256xi1> to vector<1x256xi1>
    %606 = vector.broadcast %605 : vector<1x256xi1> to vector<32x256xi1>
    %607 = vector.broadcast %cst_240 : f32 to vector<32x256xf32>
    %608 = arith.select %606, %604, %607 : vector<32x256xi1>, vector<32x256xf32>
    %609 = arith.maximumf %603, %608 : vector<32x256xf32>
    %c224_i32_241 = arith.constant 224 : i32
    %610 = tpu.dynamic_rotate %591 by %c224_i32_241 dim 1 : vector<32x256xf32>, i32 -> vector<32x256xf32>
    %cst_242 = arith.constant 0xFF800000 : f32
    %611 = vector.shape_cast %88 : vector<1x256xi1> to vector<1x256xi1>
    %612 = vector.broadcast %611 : vector<1x256xi1> to vector<32x256xi1>
    %613 = vector.broadcast %cst_242 : f32 to vector<32x256xf32>
    %614 = arith.select %612, %610, %613 : vector<32x256xi1>, vector<32x256xf32>
    %615 = arith.maximumf %609, %614 : vector<32x256xf32>
    %c3_243 = arith.constant 3 : index
    %c0_244 = arith.constant 0 : index
    %c0_245 = arith.constant 0 : index
    %c0_246 = arith.constant 0 : index
    %616 = vector.load %arg3[%c3_243, %c0_244, %c0_245, %c0_246] : memref<4x4x32x256xf32, #tpu.memory_space<vmem>>, vector<1x1x32x256xf32>
    %617 = vector.shape_cast %616 : vector<1x1x32x256xf32> to vector<32x256xf32>
    %618 = vector.shape_cast %615 : vector<32x256xf32> to vector<1x1x32x256xf32>
    tpu.vector_store %arg3[%c3_243, %c0_244, %c0_245, %c0_246], %618 {strides = array<i32>} : memref<4x4x32x256xf32, #tpu.memory_space<vmem>>, vector<1x1x32x256xf32>,
    %c2_i32_247 = arith.constant 2 : i32
    %619 = tpu.dynamic_rotate %615 by %c2_i32_247 dim 1 : vector<32x256xf32>, i32 -> vector<32x256xf32>
    %cst_248 = arith.constant 0xFF800000 : f32
    %620 = vector.shape_cast %25 : vector<1x256xi1> to vector<1x256xi1>
    %621 = vector.broadcast %620 : vector<1x256xi1> to vector<32x256xi1>
    %622 = vector.broadcast %cst_248 : f32 to vector<32x256xf32>
    %623 = arith.select %621, %619, %622 : vector<32x256xi1>, vector<32x256xf32>
    %624 = arith.maximumf %615, %623 : vector<32x256xf32>
    %c1_i32_249 = arith.constant 1 : i32
    %625 = tpu.dynamic_rotate %615 by %c1_i32_249 dim 1 : vector<32x256xf32>, i32 -> vector<32x256xf32>
    %cst_250 = arith.constant 0xFF800000 : f32
    %626 = vector.shape_cast %34 : vector<1x256xi1> to vector<1x256xi1>
    %627 = vector.broadcast %626 : vector<1x256xi1> to vector<32x256xi1>
    %628 = vector.broadcast %cst_250 : f32 to vector<32x256xf32>
    %629 = arith.select %627, %625, %628 : vector<32x256xi1>, vector<32x256xf32>
    %630 = arith.maximumf %624, %629 : vector<32x256xf32>
    %c255_i32_251 = arith.constant 255 : i32
    %631 = tpu.dynamic_rotate %615 by %c255_i32_251 dim 1 : vector<32x256xf32>, i32 -> vector<32x256xf32>
    %cst_252 = arith.constant 0xFF800000 : f32
    %632 = vector.shape_cast %43 : vector<1x256xi1> to vector<1x256xi1>
    %633 = vector.broadcast %632 : vector<1x256xi1> to vector<32x256xi1>
    %634 = vector.broadcast %cst_252 : f32 to vector<32x256xf32>
    %635 = arith.select %633, %631, %634 : vector<32x256xi1>, vector<32x256xf32>
    %636 = arith.maximumf %630, %635 : vector<32x256xf32>
    %c254_i32_253 = arith.constant 254 : i32
    %637 = tpu.dynamic_rotate %615 by %c254_i32_253 dim 1 : vector<32x256xf32>, i32 -> vector<32x256xf32>
    %cst_254 = arith.constant 0xFF800000 : f32
    %638 = vector.shape_cast %52 : vector<1x256xi1> to vector<1x256xi1>
    %639 = vector.broadcast %638 : vector<1x256xi1> to vector<32x256xi1>
    %640 = vector.broadcast %cst_254 : f32 to vector<32x256xf32>
    %641 = arith.select %639, %637, %640 : vector<32x256xi1>, vector<32x256xf32>
    %642 = arith.maximumf %636, %641 : vector<32x256xf32>
    %c32_i32_255 = arith.constant 32 : i32
    %643 = tpu.dynamic_rotate %642 by %c32_i32_255 dim 1 : vector<32x256xf32>, i32 -> vector<32x256xf32>
    %cst_256 = arith.constant 0xFF800000 : f32
    %644 = vector.shape_cast %61 : vector<1x256xi1> to vector<1x256xi1>
    %645 = vector.broadcast %644 : vector<1x256xi1> to vector<32x256xi1>
    %646 = vector.broadcast %cst_256 : f32 to vector<32x256xf32>
    %647 = arith.select %645, %643, %646 : vector<32x256xi1>, vector<32x256xf32>
    %648 = arith.maximumf %642, %647 : vector<32x256xf32>
    %c16_i32_257 = arith.constant 16 : i32
    %649 = tpu.dynamic_rotate %642 by %c16_i32_257 dim 1 : vector<32x256xf32>, i32 -> vector<32x256xf32>
    %cst_258 = arith.constant 0xFF800000 : f32
    %650 = vector.shape_cast %70 : vector<1x256xi1> to vector<1x256xi1>
    %651 = vector.broadcast %650 : vector<1x256xi1> to vector<32x256xi1>
    %652 = vector.broadcast %cst_258 : f32 to vector<32x256xf32>
    %653 = arith.select %651, %649, %652 : vector<32x256xi1>, vector<32x256xf32>
    %654 = arith.maximumf %648, %653 : vector<32x256xf32>
    %c240_i32_259 = arith.constant 240 : i32
    %655 = tpu.dynamic_rotate %642 by %c240_i32_259 dim 1 : vector<32x256xf32>, i32 -> vector<32x256xf32>
    %cst_260 = arith.constant 0xFF800000 : f32
    %656 = vector.shape_cast %79 : vector<1x256xi1> to vector<1x256xi1>
    %657 = vector.broadcast %656 : vector<1x256xi1> to vector<32x256xi1>
    %658 = vector.broadcast %cst_260 : f32 to vector<32x256xf32>
    %659 = arith.select %657, %655, %658 : vector<32x256xi1>, vector<32x256xf32>
    %660 = arith.maximumf %654, %659 : vector<32x256xf32>
    %c224_i32_261 = arith.constant 224 : i32
    %661 = tpu.dynamic_rotate %642 by %c224_i32_261 dim 1 : vector<32x256xf32>, i32 -> vector<32x256xf32>
    %cst_262 = arith.constant 0xFF800000 : f32
    %662 = vector.shape_cast %88 : vector<1x256xi1> to vector<1x256xi1>
    %663 = vector.broadcast %662 : vector<1x256xi1> to vector<32x256xi1>
    %664 = vector.broadcast %cst_262 : f32 to vector<32x256xf32>
    %665 = arith.select %663, %661, %664 : vector<32x256xi1>, vector<32x256xf32>
    %666 = arith.maximumf %660, %665 : vector<32x256xf32>
    %c3_263 = arith.constant 3 : index
    %c1_264 = arith.constant 1 : index
    %c0_265 = arith.constant 0 : index
    %c0_266 = arith.constant 0 : index
    %667 = vector.load %arg3[%c3_263, %c1_264, %c0_265, %c0_266] : memref<4x4x32x256xf32, #tpu.memory_space<vmem>>, vector<1x1x32x256xf32>
    %668 = vector.shape_cast %667 : vector<1x1x32x256xf32> to vector<32x256xf32>
    %669 = vector.shape_cast %666 : vector<32x256xf32> to vector<1x1x32x256xf32>
    tpu.vector_store %arg3[%c3_263, %c1_264, %c0_265, %c0_266], %669 {strides = array<i32>} : memref<4x4x32x256xf32, #tpu.memory_space<vmem>>, vector<1x1x32x256xf32>,
    %c2_i32_267 = arith.constant 2 : i32
    %670 = tpu.dynamic_rotate %666 by %c2_i32_267 dim 1 : vector<32x256xf32>, i32 -> vector<32x256xf32>
    %cst_268 = arith.constant 0xFF800000 : f32
    %671 = vector.shape_cast %25 : vector<1x256xi1> to vector<1x256xi1>
    %672 = vector.broadcast %671 : vector<1x256xi1> to vector<32x256xi1>
    %673 = vector.broadcast %cst_268 : f32 to vector<32x256xf32>
    %674 = arith.select %672, %670, %673 : vector<32x256xi1>, vector<32x256xf32>
    %675 = arith.maximumf %666, %674 : vector<32x256xf32>
    %c1_i32_269 = arith.constant 1 : i32
    %676 = tpu.dynamic_rotate %666 by %c1_i32_269 dim 1 : vector<32x256xf32>, i32 -> vector<32x256xf32>
    %cst_270 = arith.constant 0xFF800000 : f32
    %677 = vector.shape_cast %34 : vector<1x256xi1> to vector<1x256xi1>
    %678 = vector.broadcast %677 : vector<1x256xi1> to vector<32x256xi1>
    %679 = vector.broadcast %cst_270 : f32 to vector<32x256xf32>
    %680 = arith.select %678, %676, %679 : vector<32x256xi1>, vector<32x256xf32>
    %681 = arith.maximumf %675, %680 : vector<32x256xf32>
    %c255_i32_271 = arith.constant 255 : i32
    %682 = tpu.dynamic_rotate %666 by %c255_i32_271 dim 1 : vector<32x256xf32>, i32 -> vector<32x256xf32>
    %cst_272 = arith.constant 0xFF800000 : f32
    %683 = vector.shape_cast %43 : vector<1x256xi1> to vector<1x256xi1>
    %684 = vector.broadcast %683 : vector<1x256xi1> to vector<32x256xi1>
    %685 = vector.broadcast %cst_272 : f32 to vector<32x256xf32>
    %686 = arith.select %684, %682, %685 : vector<32x256xi1>, vector<32x256xf32>
    %687 = arith.maximumf %681, %686 : vector<32x256xf32>
    %c254_i32_273 = arith.constant 254 : i32
    %688 = tpu.dynamic_rotate %666 by %c254_i32_273 dim 1 : vector<32x256xf32>, i32 -> vector<32x256xf32>
    %cst_274 = arith.constant 0xFF800000 : f32
    %689 = vector.shape_cast %52 : vector<1x256xi1> to vector<1x256xi1>
    %690 = vector.broadcast %689 : vector<1x256xi1> to vector<32x256xi1>
    %691 = vector.broadcast %cst_274 : f32 to vector<32x256xf32>
    %692 = arith.select %690, %688, %691 : vector<32x256xi1>, vector<32x256xf32>
    %693 = arith.maximumf %687, %692 : vector<32x256xf32>
    %c32_i32_275 = arith.constant 32 : i32
    %694 = tpu.dynamic_rotate %693 by %c32_i32_275 dim 1 : vector<32x256xf32>, i32 -> vector<32x256xf32>
    %cst_276 = arith.constant 0xFF800000 : f32
    %695 = vector.shape_cast %61 : vector<1x256xi1> to vector<1x256xi1>
    %696 = vector.broadcast %695 : vector<1x256xi1> to vector<32x256xi1>
    %697 = vector.broadcast %cst_276 : f32 to vector<32x256xf32>
    %698 = arith.select %696, %694, %697 : vector<32x256xi1>, vector<32x256xf32>
    %699 = arith.maximumf %693, %698 : vector<32x256xf32>
    %c16_i32_277 = arith.constant 16 : i32
    %700 = tpu.dynamic_rotate %693 by %c16_i32_277 dim 1 : vector<32x256xf32>, i32 -> vector<32x256xf32>
    %cst_278 = arith.constant 0xFF800000 : f32
    %701 = vector.shape_cast %70 : vector<1x256xi1> to vector<1x256xi1>
    %702 = vector.broadcast %701 : vector<1x256xi1> to vector<32x256xi1>
    %703 = vector.broadcast %cst_278 : f32 to vector<32x256xf32>
    %704 = arith.select %702, %700, %703 : vector<32x256xi1>, vector<32x256xf32>
    %705 = arith.maximumf %699, %704 : vector<32x256xf32>
    %c240_i32_279 = arith.constant 240 : i32
    %706 = tpu.dynamic_rotate %693 by %c240_i32_279 dim 1 : vector<32x256xf32>, i32 -> vector<32x256xf32>
    %cst_280 = arith.constant 0xFF800000 : f32
    %707 = vector.shape_cast %79 : vector<1x256xi1> to vector<1x256xi1>
    %708 = vector.broadcast %707 : vector<1x256xi1> to vector<32x256xi1>
    %709 = vector.broadcast %cst_280 : f32 to vector<32x256xf32>
    %710 = arith.select %708, %706, %709 : vector<32x256xi1>, vector<32x256xf32>
    %711 = arith.maximumf %705, %710 : vector<32x256xf32>
    %c224_i32_281 = arith.constant 224 : i32
    %712 = tpu.dynamic_rotate %693 by %c224_i32_281 dim 1 : vector<32x256xf32>, i32 -> vector<32x256xf32>
    %cst_282 = arith.constant 0xFF800000 : f32
    %713 = vector.shape_cast %88 : vector<1x256xi1> to vector<1x256xi1>
    %714 = vector.broadcast %713 : vector<1x256xi1> to vector<32x256xi1>
    %715 = vector.broadcast %cst_282 : f32 to vector<32x256xf32>
    %716 = arith.select %714, %712, %715 : vector<32x256xi1>, vector<32x256xf32>
    %717 = arith.maximumf %711, %716 : vector<32x256xf32>
    %c3_283 = arith.constant 3 : index
    %c2_284 = arith.constant 2 : index
    %c0_285 = arith.constant 0 : index
    %c0_286 = arith.constant 0 : index
    %718 = vector.load %arg3[%c3_283, %c2_284, %c0_285, %c0_286] : memref<4x4x32x256xf32, #tpu.memory_space<vmem>>, vector<1x1x32x256xf32>
    %719 = vector.shape_cast %718 : vector<1x1x32x256xf32> to vector<32x256xf32>
    %720 = vector.shape_cast %717 : vector<32x256xf32> to vector<1x1x32x256xf32>
    tpu.vector_store %arg3[%c3_283, %c2_284, %c0_285, %c0_286], %720 {strides = array<i32>} : memref<4x4x32x256xf32, #tpu.memory_space<vmem>>, vector<1x1x32x256xf32>,
    return
  }
  func.func @transform_0(%arg0: i32, %arg1: i32) -> (i32, i32, i32) {
    %c0_i32 = arith.constant 0 : i32
    %c0_i32_0 = arith.constant 0 : i32
    return %arg0, %arg1, %c0_i32 : i32, i32, i32
  }
  func.func @transform_1(%arg0: i32, %arg1: i32) -> (i32, i32, i32, i32) {
    %c0_i32 = arith.constant 0 : i32
    %c0_i32_0 = arith.constant 0 : i32
    %c0_i32_1 = arith.constant 0 : i32
    return %arg0, %c0_i32, %arg1, %c0_i32_0 : i32, i32, i32, i32
  }
}

</mosaic_0001>

<bundles_post_ra>
// kernel: sppf_forward.1
= control target key start
LH: loop header
LB: loop body
LE: loop exit
PB: predicated region body
PF: predicated region fallthrough
CT: control target
= control target key end

     0   :  { %s4654_s6 = smov 0   ;;  %s4656_s7 = smov 0   ;;  %s11292_s0 = inlined_call_operand.vmem [shape: f32[8,32,256], index: 0, kind: input, shape index: {}]   ;;  %s11293_s1 = inlined_call_operand.vmem [shape: f32[8,4,32,256], index: 1, kind: output, shape index: {}]  }
   0x1   :  { %s4658_s8 = smov 0  }
   0x2 LB: > { %s23_s9 = sadd.s32 1, %s4630_s7  ;;  %p4421_p0 = scmp.ge.s32.totalorder %s4634_s8, 1  ;;  %s4634_s8 = sphi %s4658_s8, %s11_s8   ;;  %s4630_s7 = sphi %s4656_s7, %s11908_s7   ;;  %s4626_s6 = sphi %s4654_s6, %s11907_s6  }
   0x3   : > { %p25_p1 = scmp.ge.s32.totalorder %s23_s9, 2  ;;  %p111_p2 = scmp.lt.s32.totalorder %s4634_s8, 3 }
   0x5   : > { %s11910_s9 = smov (%p25_p1, %s23_s9), 0  ;;  %p112_p3 = pnand %p4421_p0, %p111_p2 }
   0x7   : > { %115 = sbr.rel (%p112_p3) target bundleno = 4084 (0xff4), region = 24 }
   0xc   : > { %s4422_s10 = sshll.u32 %s4626_s6, 2  ;;  %s4636_s19 = smov 2   ;;  %v169_v28 = vlaneseq }
   0xd   : > { %p145_p4 = scmp.lt.s32.totalorder %s4422_s10, 7  ;;  %s4637_s20 = smov 1  }
   0xe   : > { %s4638_s21 = smov 127   ;;  %s4639_s22 = smov 126   ;;  %v4812_v29 = vand.u32 127, %v169_v28 }
   0xf   : > { %s11912_s10 = smov (!%p145_p4, %s4422_s10), 7  ;;  %s4640_s23 = smov 32  }
  0x10   : > { %s4574_s11 = sshll.u32 %s11912_s10, 6  ;;  %s4575_s12 = sshll.u32 %s11912_s10, 8  ;;  %v176_v32 = vand.u32 15, %v4812_v29  ;;  %v4820_v33 = vadd.s32 128, %v4812_v29  ;;  %vm11343_vm0 = vcmp.lt.s32.totalorder %v4812_v29, 2  ;;  %vm11342_vm1 = vcmp.lt.s32.totalorder %v4812_v29, 1 }
  0x11   : > { %s4675_s15 = scalar_lea.vmem %s11292_s0, %s4574_s11  ;;  %s4680_s18 = scalar_lea.vmem %s11293_s1, %s4575_s12  ;;  %vm383_vm3 = vcmp.lt.s32.totalorder %v4812_v29, 127  ;;  %vm428_vm6 = vcmp.lt.s32.totalorder %v4812_v29, 126  ;;  %vm473_vm12 = vcmp.lt.s32.totalorder %v4812_v29, 32  ;;  %vm518_vm13 = vcmp.lt.s32.totalorder %v4812_v29, 16 }
  0x12   : > { %v4683_v0 = vld [vmem:[%s4675_s15 + $0x20] sm:$0xff]  ;;  %v4697_v2 = vld [vmem:[%s4675_s15 + $0x30] sm:$0xff]  ;;  %v4700_v3 = vld [vmem:[%s4675_s15 + $0x8] sm:$0xff]  ;;  %v4824_v35 = vadd.s32 4294967294, %v176_v32  ;;  %v183_v36 = vand.u32 15, %v4820_v33  ;;  %v4832_v38 = vadd.s32 4294967295, %v176_v32 }
  0x13   : > { %v4686_v1 = vld [vmem:[%s4675_s15] sm:$0xff]  ;;  %281 = vrot.lane.b32.xlu1 %v4683_v0, %s4636_s19  ;;  %4432 = vst [vmem:[%s4680_s18 + $0xe0] sm:$0xff] %v4683_v0  ;;  %v4705_v4 = vld [vmem:[%s4675_s15 + $0x10] sm:$0xff]  ;;  %v4844_v42 = vadd.s32 1, %v176_v32  ;;  %v4856_v46 = vadd.s32 2, %v176_v32  ;;  %s4641_s24 = smov 16  }
  0x14   : > { %277 = vrot.lane.b32.xlu0 %v4686_v1, %s4636_s19  ;;  %4428 = vst [vmem:[%s4680_s18 + $0xc0] sm:$0xff] %v4686_v1  ;;  %285 = vrot.lane.b32.xlu2 %v4700_v3, %s4636_s19  ;;  %v4712_v5 = vld [vmem:[%s4675_s15 + $0x38] sm:$0xff]  ;;  %vm11313_vm2 = vcmp.ge.s32.totalorder %v4824_v35, 0  ;;  %v4849_v44 = vadd.s32 4294967294, %v183_v36  ;;  %vm11314_vm4 = vcmp.ge.s32.totalorder %v4832_v38, 0  ;;  %v4858_v47 = vadd.s32 4294967295, %v183_v36 }
  0x15   : > { %4434 = vst [vmem:[%s4680_s18 + $0xf0] sm:$0xff] %v4697_v2  ;;  %v4719_v6 = vld [vmem:[%s4675_s15 + $0x28] sm:$0xff]  ;;  %v4724_v7 = vld [vmem:[%s4675_s15 + $0x18] sm:$0xff]  ;;  %vm11316_vm5 = vcmp.lt.s32.totalorder %v4844_v42, 16  ;;  %v4866_v51 = vadd.s32 1, %v183_v36  ;;  %vm11297_vm8 = vcmp.lt.s32.totalorder %v4856_v46, 16 }
  0x16   : > { %4430 = vst [vmem:[%s4680_s18 + $0xd0] sm:$0xff] %v4705_v4  ;;  %vm11315_vm7 = vcmp.ge.s32.totalorder %v4849_v44, 0  ;;  %vm11296_vm9 = vcmp.ge.s32.totalorder %v4858_v47, 0  ;;  %s4642_s25 = smov 112   ;;  %s4643_s26 = smov 96  }
  0x17   : > { %4435 = vst [vmem:[%s4680_s18 + $0xf8] sm:$0xff] %v4712_v5  ;;  %vm11295_vm10 = vcmp.lt.s32.totalorder %v4866_v51, 16 }
  0x18   : > { %4429 = vst [vmem:[%s4680_s18 + $0xc8] sm:$0xff] %v4700_v3 }
  0x19   : > { %4433 = vst [vmem:[%s4680_s18 + $0xe8] sm:$0xff] %v4719_v6 }
  0x1a   : > { %4431 = vst [vmem:[%s4680_s18 + $0xd8] sm:$0xff] %v4724_v7 }
  0x1b   : > { %283 = vrot.lane.b32.xlu1 %v4697_v2, %s4636_s19  ;;  %11372 = vst [vmem:[#allocation2_spill] sm:$0xff] %v4824_v35 }
  0x1c   : > { %279 = vrot.lane.b32.xlu0 %v4705_v4, %s4636_s19  ;;  %287 = vrot.lane.b32.xlu2 %v4724_v7, %s4636_s19  ;;  %11373 = vst [vmem:[#allocation3_spill] sm:$0xff] %v4832_v38 }
  0x1d   : > { %11374 = vst [vmem:[#allocation4_spill] sm:$0xff] %v4844_v42 }
  0x1e   : > { %11375 = vst [vmem:[#allocation5_spill] sm:$0xff] %v4849_v44 }
  0x1f   : > { %11376 = vst [vmem:[#allocation6_spill] sm:$0xff] %v4856_v46 }
  0x20   : > { %11377 = vst [vmem:[#allocation7_spill] sm:$0xff] %v4858_v47 }
  0x21   : > { %11378 = vst [vmem:[#allocation8_spill] sm:$0xff] %v4866_v51 }
  0x23   : > { %291 = vrot.lane.b32.xlu1 %v4712_v5, %s4636_s19 }
  0x24   : > { %289 = vrot.lane.b32.xlu0 %v4719_v6, %s4636_s19  ;;  %322 = vrot.lane.b32.xlu2 %v4686_v1, %s4637_s20 }
  0x2b   : > { %326 = vrot.lane.b32.xlu1 %v4683_v0, %s4637_s20 }
  0x2c   : > { %324 = vrot.lane.b32.xlu0 %v4705_v4, %s4637_s20  ;;  %328 = vrot.lane.b32.xlu2 %v4697_v2, %s4637_s20 }
  0x33   : > { %332 = vrot.lane.b32.xlu1 %v4724_v7, %s4637_s20 }
  0x34   : > { %330 = vrot.lane.b32.xlu0 %v4700_v3, %s4637_s20  ;;  %334 = vrot.lane.b32.xlu2 %v4719_v6, %s4637_s20 }
  0x3b   : > { %367 = vrot.lane.b32.xlu1 %v4686_v1, %s4638_s21 }
  0x3c   : > { %336 = vrot.lane.b32.xlu0 %v4712_v5, %s4637_s20  ;;  %369 = vrot.lane.b32.xlu2 %v4705_v4, %s4638_s21 }
  0x43   : > { %373 = vrot.lane.b32.xlu1 %v4697_v2, %s4638_s21 }
  0x44   : > { %371 = vrot.lane.b32.xlu0 %v4683_v0, %s4638_s21  ;;  %375 = vrot.lane.b32.xlu2 %v4700_v3, %s4638_s21 }
  0x4b   : > { %379 = vrot.lane.b32.xlu1 %v4719_v6, %s4638_s21 }
  0x4c   : > { %377 = vrot.lane.b32.xlu0 %v4724_v7, %s4638_s21  ;;  %381 = vrot.lane.b32.xlu2 %v4712_v5, %s4638_s21 }
  0x53   : > { %414 = vrot.lane.b32.xlu1 %v4705_v4, %s4639_s22 }
  0x54   : > { %412 = vrot.lane.b32.xlu0 %v4686_v1, %s4639_s22  ;;  %416 = vrot.lane.b32.xlu2 %v4683_v0, %s4639_s22 }
  0x5b   : > { %420 = vrot.lane.b32.xlu1 %v4700_v3, %s4639_s22 }
  0x5c   : > { %418 = vrot.lane.b32.xlu0 %v4697_v2, %s4639_s22  ;;  %422 = vrot.lane.b32.xlu2 %v4724_v7, %s4639_s22 }
  0x63   : > { %426 = vrot.lane.b32.xlu1 %v4712_v5, %s4639_s22 }
  0x64   : > { %424 = vrot.lane.b32.xlu0 %v4719_v6, %s4639_s22 }
  0x6e   : > { %v286_v8 = vpop.permute.xlu2 %285 }
  0x76   : > { %v4786_v9 = vpop.permute.xlu2 %287 }
  0x7e   : > { %v323_v10 = vpop.permute.xlu2 %322 }
  0x85   : > { %v4788_v11 = vpop.permute.xlu1 %281 }
  0x86   : > { %v278_v12 = vpop.permute.xlu0 %277  ;;  %v4790_v13 = vpop.permute.xlu2 %328 }
  0x87   : > { %v298_v49 = vsel %vm11343_vm0, %v286_v8, %v278_v12  ;;  %v294_v54 = vsel %vm11343_vm0, %v278_v12, %v286_v8 }
  0x88   : > { %v306_v56 = vsel %vm11313_vm2, %v298_v49, -inf  ;;  %v307_v63 = vsel %vm11315_vm7, %v294_v54, -inf }
  0x8d   : > { %v4792_v14 = vpop.permute.xlu1 %283 }
  0x8e   : > { %v4794_v15 = vpop.permute.xlu0 %279  ;;  %v4796_v16 = vpop.permute.xlu2 %334 }
  0x8f   : > { %v299_v37 = vsel %vm11343_vm0, %v4786_v9, %v4794_v15 }
  0x90   : > { %v308_v43 = vsel %vm11313_vm2, %v299_v37, -inf }
  0x91   : > { %v316_v50 = vmax.f32 %v4705_v4, %v308_v43  ;;  %v315_v43 = vmax.f32 %v4700_v3, %v307_v63 }
  0x95   : > { %v292_v17 = vpop.permute.xlu1 %291 }
  0x96   : > { %v4798_v18 = vpop.permute.xlu0 %289  ;;  %v4800_v19 = vpop.permute.xlu2 %369  ;;  %v297_v4 = vsel %vm11343_vm0, %v4792_v14, %v292_v17 }
  0x97   : > { %v300_v32 = vsel %vm11343_vm0, %v4798_v18, %v4788_v11  ;;  %v313_v3 = vsel %vm11315_vm7, %v297_v4, -inf }
  0x9d   : > { %v4802_v20 = vpop.permute.xlu1 %326 }
  0x9e   : > { %v4804_v21 = vpop.permute.xlu0 %324  ;;  %v376_v22 = vpop.permute.xlu2 %375 }
  0xa5   : > { %v4806_v23 = vpop.permute.xlu1 %332 }
  0xa6   : > { %v331_v24 = vpop.permute.xlu0 %330  ;;  %v4810_v27 = vpop.permute.xlu2 %381  ;;  %v344_v41 = vsel %vm11342_vm1, %v4806_v23, %v4804_v21 }
  0xa7   : > { %v353_v48 = vsel %vm11314_vm4, %v344_v41, -inf  ;;  %v339_v59 = vsel %vm11342_vm1, %v323_v10, %v331_v24  ;;  %v343_v60 = vsel %vm11342_vm1, %v331_v24, %v323_v10  ;;  %v301_v10 = vsel %vm11343_vm0, %v292_v17, %v4792_v14 }
  0xa8   : > { %v361_v55 = vmax.f32 %v316_v50, %v353_v48  ;;  %v351_v37 = vsel %vm11314_vm4, %v343_v60, -inf  ;;  %v352_v41 = vsel %vm11296_vm9, %v339_v59, -inf  ;;  %v4915_v14 = vadd.s32 2, %v183_v36 }
  0xa9   : > { %v314_v17 = vmax.f32 %v4686_v1, %v306_v56  ;;  %v360_v49 = vmax.f32 %v315_v43, %v352_v41  ;;  %v345_v50 = vsel %vm11342_vm1, %v4796_v16, %v4802_v20  ;;  %v341_v43 = vsel %vm11342_vm1, %v4802_v20, %v4796_v16 }
  0xaa   : > { %11379 = vst [vmem:[#allocation9_spill] sm:$0xff] %v4915_v14  ;;  %vm11294_vm11 = vcmp.lt.s32.totalorder %v4915_v14, 16  ;;  %v340_v16 = vsel %vm11342_vm1, %v4804_v21, %v4806_v23  ;;  %v356_v21 = vsel %vm11296_vm9, %v341_v43, -inf }
  0xab   : > { %v359_v48 = vmax.f32 %v314_v17, %v351_v37  ;;  %v296_v37 = vsel %vm11343_vm0, %v4788_v11, %v4798_v18 }
  0xac   : > { %v311_v18 = vsel %vm11315_vm7, %v296_v37, -inf }
  0xad   : > { %v368_v25 = vpop.permute.xlu1 %367 }
  0xae   : > { %v4808_v26 = vpop.permute.xlu0 %336  ;;  %v4822_v34 = vpop.permute.xlu2 %416  ;;  %v384_v12 = vsel %vm383_vm3, %v368_v25, %v376_v22  ;;  %v388_v24 = vsel %vm383_vm3, %v376_v22, %v368_v25  ;;  %v312_v25 = vsel %vm11313_vm2, %v301_v10, -inf }
  0xaf   : > { %v346_v22 = vsel %vm11342_vm1, %v4808_v26, %v4790_v13  ;;  %v396_v36 = vsel %vm11316_vm5, %v384_v12, -inf  ;;  %v397_v1 = vsel %vm11295_vm10, %v388_v24, -inf  ;;  %v321_v24 = vmax.f32 %v4712_v5, %v313_v3 }
  0xb0   : > { %v357_v54 = vsel %vm11314_vm4, %v346_v22, -inf  ;;  %v404_v59 = vmax.f32 %v359_v48, %v396_v36  ;;  %v405_v60 = vmax.f32 %v360_v49, %v397_v1 }
  0xb5   : > { %v4814_v30 = vpop.permute.xlu1 %373 }
  0xb6   : > { %v4816_v31 = vpop.permute.xlu0 %371  ;;  %v4871_v53 = vpop.permute.xlu2 %422 }
  0xbd   : > { %v4835_v39 = vpop.permute.xlu1 %379 }
  0xbe   : > { %v4837_v40 = vpop.permute.xlu0 %377 }
  0xbf   : > { %v385_v45 = vsel %vm383_vm3, %v4800_v19, %v4837_v40  ;;  %v389_v23 = vsel %vm383_vm3, %v4837_v40, %v4800_v19 }
  0xc0   : > { %v398_v52 = vsel %vm11316_vm5, %v385_v45, -inf  ;;  %v310_v45 = vsel %vm11313_vm2, %v300_v32, -inf  ;;  %v355_v32 = vsel %vm11314_vm4, %v345_v50, -inf  ;;  %v399_v40 = vsel %vm11295_vm10, %v389_v23, -inf }
  0xc1   : > { %v406_v61 = vmax.f32 %v361_v55, %v398_v52  ;;  %v342_v52 = vsel %vm11342_vm1, %v4790_v13, %v4808_v26  ;;  %v387_v13 = vsel %vm383_vm3, %v4814_v30, %v4810_v27  ;;  %v391_v26 = vsel %vm383_vm3, %v4810_v27, %v4814_v30 }
  0xc2   : > { %v295_v27 = vsel %vm11343_vm0, %v4794_v15, %v4786_v9  ;;  %v320_v30 = vmax.f32 %v4697_v2, %v312_v25  ;;  %v318_v41 = vmax.f32 %v4683_v0, %v310_v45  ;;  %v402_v17 = vsel %vm11316_vm5, %v387_v13, -inf }
  0xc3   : > { %v403_v9 = vsel %vm11295_vm10, %v391_v26, -inf  ;;  %v309_v0 = vsel %vm11315_vm7, %v295_v27, -inf }
  0xc4   : > { %v365_v2 = vmax.f32 %v320_v30, %v357_v54  ;;  %v363_v11 = vmax.f32 %v318_v41, %v355_v32  ;;  %v390_v54 = vsel %vm383_vm3, %v4835_v39, %v4816_v31 }
  0xc5   : > { %v4880_v57 = vpop.permute.xlu1 %414  ;;  %v401_v19 = vsel %vm11295_vm10, %v390_v54, -inf }
  0xc6   : > { %v413_v58 = vpop.permute.xlu0 %412  ;;  %v430_v62 = vsel %vm428_vm6, %v4880_v57, %v4871_v53  ;;  %v410_v22 = vmax.f32 %v365_v2, %v402_v17 }
  0xc7   : > { %v443_v8 = vsel %vm11297_vm8, %v430_v62, -inf }
  0xc8   : > { %v4905_v28 = vmax.f32 %v406_v61, %v443_v8  ;;  %v358_v8 = vsel %vm11296_vm9, %v342_v52, -inf }
  0xc9   : > { %v366_v5 = vmax.f32 %v321_v24, %v358_v8 }
  0xca   : > { %459 = vrot.lane.b32.xlu0 %v4905_v28, %s4640_s23 }
  0xcb   : > { %v411_v25 = vmax.f32 %v366_v5, %v403_v9 }
  0xcd   : > { %v421_v55 = vpop.permute.xlu1 %420 }
  0xce   : > { %v419_v56 = vpop.permute.xlu0 %418  ;;  %v429_v61 = vsel %vm428_vm6, %v413_v58, %v421_v55  ;;  %v433_v62 = vsel %vm428_vm6, %v421_v55, %v413_v58  ;;  %v386_v58 = vsel %vm383_vm3, %v4816_v31, %v4835_v39  ;;  %v317_v39 = vmax.f32 %v4724_v7, %v309_v0  ;;  %v5130_v0 = vld [vmem:[%s4675_s15 + $0x60] sm:$0xff] }
  0xcf   : > { %v441_v63 = vsel %vm11297_vm8, %v429_v61, -inf  ;;  %v442_v4 = vsel %vm11294_vm11, %v433_v62, -inf  ;;  %v400_v15 = vsel %vm11316_vm5, %v386_v58, -inf  ;;  %v354_v61 = vsel %vm11296_vm9, %v340_v16, -inf  ;;  %4464 = vst [vmem:[%s4680_s18 + $0x1e0] sm:$0xff] %v5130_v0 }
  0xd0   : > { %v4968_v10 = vmax.f32 %v404_v59, %v441_v63  ;;  %v4970_v12 = vmax.f32 %v405_v60, %v442_v4  ;;  %v408_v3 = vmax.f32 %v363_v11, %v400_v15  ;;  %v319_v60 = vmax.f32 %v4719_v6, %v311_v18 }
  0xd1   : > { %v434_v6 = vsel %vm428_vm6, %v4871_v53, %v4880_v57  ;;  %v362_v62 = vmax.f32 %v317_v39, %v354_v61  ;;  %v5167_v16 = vadd.s32 4294967280, %v4812_v29  ;;  %vm608_vm9 = vcmp.lt.s32.totalorder %v4812_v29, 96 }
  0xd2   : > { %465 = vrot.lane.b32.xlu0 %v4970_v12, %s4640_s23  ;;  %457 = vrot.lane.b32.xlu2 %v4968_v10, %s4640_s23  ;;  %v444_v26 = vsel %vm11294_vm11, %v434_v6, -inf }
  0xd3   : > { %v407_v63 = vmax.f32 %v362_v62, %v399_v40  ;;  %11381 = vst [vmem:[#allocation11_spill] sm:$0xff] %v5167_v16  ;;  %vm238_vm15 = vcmp.ge.s32.totalorder %v5167_v16, 0 }
  0xd5   : > { %v427_v36 = vpop.permute.xlu1 %426  ;;  %v5063_v8 = vmax.f32 %v407_v63, %v444_v26 }
  0xd6   : > { %v425_v1 = vpop.permute.xlu0 %424  ;;  %v432_v45 = vsel %vm428_vm6, %v419_v56, %v427_v36  ;;  %v436_v48 = vsel %vm428_vm6, %v427_v36, %v419_v56 }
  0xd7   : > { %v431_v49 = vsel %vm428_vm6, %v4822_v34, %v425_v1  ;;  %v447_v20 = vsel %vm11297_vm8, %v432_v45, -inf  ;;  %v448_v50 = vsel %vm11294_vm11, %v436_v48, -inf  ;;  %v435_v31 = vsel %vm428_vm6, %v425_v1, %v4822_v34 }
  0xd8   : > { %v445_v52 = vsel %vm11297_vm8, %v431_v49, -inf  ;;  %v5024_v55 = vmax.f32 %v410_v22, %v447_v20  ;;  %v5026_v56 = vmax.f32 %v411_v25, %v448_v50  ;;  %v364_v34 = vmax.f32 %v319_v60, %v356_v21  ;;  %v5141_v22 = vld [vmem:[%s4675_s15 + $0x50] sm:$0xff] }
  0xd9   : > { %v5028_v59 = vmax.f32 %v408_v3, %v445_v52  ;;  %v446_v13 = vsel %vm11294_vm11, %v435_v31, -inf  ;;  %4462 = vst [vmem:[%s4680_s18 + $0x1d0] sm:$0xff] %v5141_v22  ;;  %v5154_v3 = vld [vmem:[%s4675_s15 + $0x40] sm:$0xff]  ;;  %v5163_v49 = vadd.s32 4294967264, %v4812_v29  ;;  %v5183_v60 = vadd.s32 16, %v4820_v33 }
  0xda   : > { %471 = vrot.lane.b32.xlu0 %v5026_v56, %s4640_s23  ;;  %463 = vrot.lane.b32.xlu2 %v5024_v55, %s4640_s23  ;;  %v409_v7 = vmax.f32 %v364_v34, %v401_v19  ;;  %4460 = vst [vmem:[%s4680_s18 + $0x1c0] sm:$0xff] %v5154_v3  ;;  %vm563_vm11 = vcmp.lt.s32.totalorder %v4812_v29, 112  ;;  %v5191_v19 = vadd.s32 32, %v4820_v33 }
  0xdb   : > { %461 = vrot.lane.b32.xlu1 %v5028_v59, %s4640_s23  ;;  %11380 = vst [vmem:[#allocation10_spill] sm:$0xff] %v5163_v49  ;;  %vm230_vm14 = vcmp.ge.s32.totalorder %v5163_v49, 0  ;;  %vm249_vm10 = vcmp.lt.s32.totalorder %v5183_v60, 256 }
  0xdc   : > { %v5061_v4 = vmax.f32 %v409_v7, %v446_v13  ;;  %11382 = vst [vmem:[#allocation12_spill] sm:$0xff] %v5183_v60  ;;  %vm257_vm8 = vcmp.lt.s32.totalorder %v5191_v19, 256 }
  0xdd   : > { %11383 = vst [vmem:[#allocation13_spill] sm:$0xff] %v5191_v19 }
  0xe2   : > { %469 = vrot.lane.b32.xlu2 %v5061_v4, %s4640_s23  ;;  %506 = vrot.lane.b32.xlu0 %v5028_v59, %s4641_s24 }
  0xe3   : > { %467 = vrot.lane.b32.xlu1 %v5063_v8, %s4640_s23 }
  0xea   : > { %504 = vrot.lane.b32.xlu2 %v4905_v28, %s4641_s24  ;;  %512 = vrot.lane.b32.xlu0 %v5063_v8, %s4641_s24 }
  0xeb   : > { %502 = vrot.lane.b32.xlu1 %v4968_v10, %s4641_s24 }
  0xf2   : > { %510 = vrot.lane.b32.xlu2 %v4970_v12, %s4641_s24  ;;  %547 = vrot.lane.b32.xlu0 %v4968_v10, %s4642_s25 }
  0xf3   : > { %508 = vrot.lane.b32.xlu1 %v5024_v55, %s4641_s24 }
  0xfa   : > { %516 = vrot.lane.b32.xlu2 %v5026_v56, %s4641_s24  ;;  %553 = vrot.lane.b32.xlu0 %v5024_v55, %s4642_s25 }
  0xfb   : > { %514 = vrot.lane.b32.xlu1 %v5061_v4, %s4641_s24 }
 0x102   : > { %551 = vrot.lane.b32.xlu2 %v5028_v59, %s4642_s25  ;;  %559 = vrot.lane.b32.xlu0 %v5061_v4, %s4642_s25 }
 0x103   : > { %549 = vrot.lane.b32.xlu1 %v4905_v28, %s4642_s25 }
 0x10a   : > { %557 = vrot.lane.b32.xlu2 %v5063_v8, %s4642_s25  ;;  %594 = vrot.lane.b32.xlu0 %v4905_v28, %s4643_s26 }
 0x10b   : > { %555 = vrot.lane.b32.xlu1 %v4970_v12, %s4642_s25 }
 0x112   : > { %592 = vrot.lane.b32.xlu2 %v4968_v10, %s4643_s26  ;;  %600 = vrot.lane.b32.xlu0 %v4970_v12, %s4643_s26 }
 0x113   : > { %561 = vrot.lane.b32.xlu1 %v5026_v56, %s4642_s25 }
 0x11a   : > { %598 = vrot.lane.b32.xlu2 %v5024_v55, %s4643_s26  ;;  %606 = vrot.lane.b32.xlu0 %v5026_v56, %s4643_s26 }
 0x11b   : > { %596 = vrot.lane.b32.xlu1 %v5028_v59, %s4643_s26 }
 0x122   : > { %604 = vrot.lane.b32.xlu2 %v5061_v4, %s4643_s26  ;;  %1321 = vrot.lane.b32.xlu0 %v5154_v3, %s4636_s19 }
 0x123   : > { %602 = vrot.lane.b32.xlu1 %v5063_v8, %s4643_s26 }
 0x12a   : > { %1325 = vrot.lane.b32.xlu2 %v5130_v0, %s4636_s19 }
 0x12b   : > { %1323 = vrot.lane.b32.xlu1 %v5141_v22, %s4636_s19 }
 0x12c   : > { %v458_v53 = vpop.permute.xlu2 %457 }
 0x134   : > { %v464_v57 = vpop.permute.xlu2 %463 }
 0x13c   : > { %v5117_v58 = vpop.permute.xlu0 %459  ;;  %v470_v27 = vpop.permute.xlu2 %469 }
 0x144   : > { %v466_v30 = vpop.permute.xlu0 %465  ;;  %v5119_v24 = vpop.permute.xlu2 %504 }
 0x145   : > { %v478_v50 = vsel %vm473_vm12, %v466_v30, %v458_v53  ;;  %v474_v21 = vsel %vm473_vm12, %v458_v53, %v466_v30 }
 0x146   : > { %v486_v23 = vsel %vm230_vm14, %v478_v50, -inf  ;;  %v495_v34 = vmax.f32 %v4970_v12, %v474_v21 }
 0x147   : > { %v494_v6 = vmax.f32 %v4968_v10, %v486_v23 }
 0x14c   : > { %v472_v32 = vpop.permute.xlu0 %471  ;;  %v511_v41 = vpop.permute.xlu2 %510 }
 0x14d   : > { %v462_v37 = vpop.permute.xlu1 %461  ;;  %v477_v62 = vsel %vm473_vm12, %v464_v57, %v472_v32  ;;  %v481_v13 = vsel %vm473_vm12, %v472_v32, %v464_v57 }
 0x14e   : > { %v480_v33 = vsel %vm473_vm12, %v470_v27, %v462_v37  ;;  %v476_v26 = vsel %vm473_vm12, %v462_v37, %v470_v27  ;;  %v492_v30 = vsel %vm230_vm14, %v481_v13, -inf  ;;  %v501_v32 = vmax.f32 %v5026_v56, %v477_v62 }
 0x14f   : > { %v499_v56 = vmax.f32 %v5061_v4, %v476_v26 }
 0x154   : > { %v5121_v17 = vpop.permute.xlu0 %506  ;;  %v5125_v2 = vpop.permute.xlu2 %516 }
 0x155   : > { %v5123_v9 = vpop.permute.xlu1 %467 }
 0x15c   : > { %v5127_v5 = vpop.permute.xlu0 %512  ;;  %v5136_v18 = vpop.permute.xlu2 %551 }
 0x15d   : > { %v503_v15 = vpop.permute.xlu1 %502 }
 0x15e   : > { %v523_v52 = vsel %vm518_vm13, %v511_v41, %v503_v15  ;;  %v519_v40 = vsel %vm518_vm13, %v503_v15, %v511_v41  ;;  %v490_v15 = vsel %vm230_vm14, %v480_v33, -inf }
 0x15f   : > { %v531_v31 = vsel %vm238_vm15, %v523_v52, -inf  ;;  %v540_v63 = vmax.f32 %v495_v34, %v519_v40  ;;  %v498_v34 = vmax.f32 %v5028_v59, %v490_v15  ;;  %v500_v40 = vmax.f32 %v5024_v55, %v492_v30 }
 0x160   : > { %v539_v10 = vmax.f32 %v494_v6, %v531_v31 }
 0x164   : > { %v548_v11 = vpop.permute.xlu0 %547  ;;  %v5151_v1 = vpop.permute.xlu2 %557 }
 0x165   : > { %v5138_v43 = vpop.permute.xlu1 %508 }
 0x166   : > { %v526_v53 = vsel %vm518_vm13, %v5125_v2, %v5138_v43  ;;  %v522_v62 = vsel %vm518_vm13, %v5138_v43, %v5125_v2 }
 0x167   : > { %v537_v23 = vsel %vm238_vm15, %v526_v53, -inf  ;;  %v546_v33 = vmax.f32 %v501_v32, %v522_v62 }
 0x16c   : > { %v5147_v25 = vpop.permute.xlu0 %553  ;;  %v593_v20 = vpop.permute.xlu2 %592 }
 0x16d   : > { %v5149_v36 = vpop.permute.xlu1 %514 }
 0x16e   : > { %v525_v41 = vsel %vm518_vm13, %v5149_v36, %v5121_v17  ;;  %v521_v13 = vsel %vm518_vm13, %v5121_v17, %v5149_v36  ;;  %v545_v17 = vmax.f32 %v500_v40, %v537_v23 }
 0x174   : > { %v560_v45 = vpop.permute.xlu0 %559  ;;  %v599_v57 = vpop.permute.xlu2 %598 }
 0x175   : > { %v5160_v48 = vpop.permute.xlu1 %549  ;;  %v570_v6 = vsel %vm563_vm11, %v560_v45, %v5136_v18  ;;  %v566_v55 = vsel %vm563_vm11, %v5136_v18, %v560_v45 }
 0x176   : > { %v581_v43 = vsel %vm249_vm10, %v570_v6, -inf }
 0x17c   : > { %v5176_v54 = vpop.permute.xlu0 %594  ;;  %v605_v53 = vpop.permute.xlu2 %604 }
 0x17d   : > { %v556_v61 = vpop.permute.xlu1 %555 }
 0x17e   : > { %v568_v39 = vsel %vm563_vm11, %v556_v61, %v548_v11  ;;  %v564_v7 = vsel %vm563_vm11, %v548_v11, %v556_v61 }
 0x17f   : > { %v577_v12 = vsel %vm249_vm10, %v568_v39, -inf  ;;  %v584_v27 = vmax.f32 %v539_v10, %v564_v7  ;;  %v535_v39 = vsel %vm238_vm15, %v525_v41, -inf  ;;  %v479_v7 = vsel %vm473_vm12, %v5123_v9, %v5117_v58 }
 0x180   : > { %v585_v11 = vmax.f32 %v540_v63, %v577_v12  ;;  %v543_v2 = vmax.f32 %v498_v34, %v535_v39  ;;  %v544_v10 = vmax.f32 %v499_v56, %v521_v13  ;;  %v488_v18 = vsel %vm230_vm14, %v479_v7, -inf }
 0x182   : > { %v588_v45 = vmax.f32 %v543_v2, %v566_v55  ;;  %v589_v63 = vmax.f32 %v544_v10, %v581_v43  ;;  %v5394_v55 = vld [vmem:[%s4675_s15 + $0x70] sm:$0xff]  ;;  %v5419_v2 = vld [vmem:[%s4675_s15 + $0x78] sm:$0xff] }
 0x183   : > { %11385 = vst [vmem:[#allocation15_spill] sm:$0xff] %v5394_v55 }
 0x184   : > { %v601_v37 = vpop.permute.xlu0 %600  ;;  %4466 = vst [vmem:[%s4680_s18 + $0x1f0] sm:$0xff] %v5394_v55  ;;  %v5431_v43 = vpop.permute.xlu2 %1325 }
 0x185   : > { %v562_v50 = vpop.permute.xlu1 %561  ;;  %v609_v52 = vsel %vm608_vm9, %v593_v20, %v601_v37  ;;  %v613_v21 = vsel %vm608_vm9, %v601_v37, %v593_v20  ;;  %4467 = vst [vmem:[%s4680_s18 + $0x1f8] sm:$0xff] %v5419_v2 }
 0x186   : > { %v622_v61 = vsel %vm257_vm8, %v613_v21, -inf  ;;  %v5234_v31 = vmax.f32 %v584_v27, %v609_v52  ;;  %v571_v4 = vsel %vm563_vm11, %v562_v50, %v5147_v25  ;;  %v567_v59 = vsel %vm563_vm11, %v5147_v25, %v562_v50  ;;  %11387 = vst [vmem:[#allocation17_spill] sm:$0xff] %v5431_v43 }
 0x187   : > { %v5244_v20 = vmax.f32 %v585_v11, %v622_v61  ;;  %v583_v36 = vsel %vm249_vm10, %v571_v4, -inf  ;;  %v524_v25 = vsel %vm518_vm13, %v5127_v5, %v5119_v24  ;;  %v590_v12 = vmax.f32 %v545_v17, %v567_v59  ;;  %v5403_v59 = vld [vmem:[%s4675_s15 + $0x48] sm:$0xff] }
 0x188   : > { %637 = vst [vmem:[%s4680_s18] sm:$0xff] %v5234_v31  ;;  %v591_v30 = vmax.f32 %v546_v33, %v583_v36  ;;  %v475_v52 = vsel %vm473_vm12, %v5117_v58, %v5123_v9  ;;  %v533_v23 = vsel %vm238_vm15, %v524_v25, -inf  ;;  %v569_v61 = vsel %vm563_vm11, %v5151_v1, %v5160_v48  ;;  %v5410_v17 = vld [vmem:[%s4675_s15 + $0x68] sm:$0xff] }
 0x189   : > { %638 = vst [vmem:[%s4680_s18 + $0x8] sm:$0xff] %v5244_v20  ;;  %653 = vrot.lane.b32.xlu2 %v5244_v20, %s4636_s19  ;;  %v496_v58 = vmax.f32 %v4905_v28, %v488_v18  ;;  %v520_v9 = vsel %vm518_vm13, %v5119_v24, %v5127_v5  ;;  %v497_v6 = vmax.f32 %v5063_v8, %v475_v52  ;;  %v579_v24 = vsel %vm249_vm10, %v569_v61, -inf }
 0x18a   : > { %v565_v4 = vsel %vm563_vm11, %v5160_v48, %v5151_v1  ;;  %4461 = vst [vmem:[%s4680_s18 + $0x1c8] sm:$0xff] %v5403_v59 }
 0x18b   : > { %v541_v28 = vmax.f32 %v496_v58, %v533_v23  ;;  %v542_v5 = vmax.f32 %v497_v6, %v520_v9  ;;  %11386 = vst [vmem:[#allocation16_spill] sm:$0xff] %v5410_v17 }
 0x18c   : > { %v607_v26 = vpop.permute.xlu0 %606  ;;  %4465 = vst [vmem:[%s4680_s18 + $0x1e8] sm:$0xff] %v5410_v17 }
 0x18d   : > { %v597_v41 = vpop.permute.xlu1 %596  ;;  %v612_v32 = vsel %vm608_vm9, %v599_v57, %v607_v26  ;;  %v616_v27 = vsel %vm608_vm9, %v607_v26, %v599_v57  ;;  %v586_v8 = vmax.f32 %v541_v28, %v565_v4  ;;  %v587_v40 = vmax.f32 %v542_v5, %v579_v24 }
 0x18e   : > { %v611_v37 = vsel %vm608_vm9, %v597_v41, %v605_v53  ;;  %v615_v15 = vsel %vm608_vm9, %v605_v53, %v597_v41  ;;  %v628_v11 = vsel %vm257_vm8, %v616_v27, -inf  ;;  %v5292_v50 = vmax.f32 %v590_v12, %v612_v32 }
 0x18f   : > { %v626_v57 = vsel %vm257_vm8, %v615_v15, -inf  ;;  %v5300_v21 = vmax.f32 %v588_v45, %v611_v37  ;;  %v5302_v56 = vmax.f32 %v591_v30, %v628_v11 }
 0x190   : > { %v5310_v39 = vmax.f32 %v589_v63, %v626_v57  ;;  %643 = vst [vmem:[%s4680_s18 + $0x30] sm:$0xff] %v5292_v50 }
 0x191   : > { %641 = vst [vmem:[%s4680_s18 + $0x20] sm:$0xff] %v5300_v21  ;;  %659 = vrot.lane.b32.xlu2 %v5302_v56, %s4636_s19 }
 0x192   : > { %642 = vst [vmem:[%s4680_s18 + $0x28] sm:$0xff] %v5310_v39  ;;  %657 = vrot.lane.b32.xlu1 %v5310_v39, %s4636_s19 }
 0x193   : > { %644 = vst [vmem:[%s4680_s18 + $0x38] sm:$0xff] %v5302_v56 }
 0x194   : > { %v5467_v25 = vpop.permute.xlu0 %1321 }
 0x195   : > { %v603_v34 = vpop.permute.xlu1 %602  ;;  %11389 = vst [vmem:[#allocation19_spill] sm:$0xff] %v5467_v25 }
 0x196   : > { %v610_v1 = vsel %vm608_vm9, %v5176_v54, %v603_v34  ;;  %v614_v48 = vsel %vm608_vm9, %v603_v34, %v5176_v54  ;;  %v5383_v54 = vld [vmem:[%s4675_s15 + $0x58] sm:$0xff] }
 0x197   : > { %v624_v62 = vsel %vm257_vm8, %v614_v48, -inf  ;;  %v5344_v13 = vmax.f32 %v586_v8, %v610_v1  ;;  %11384 = vst [vmem:[#allocation14_spill] sm:$0xff] %v5383_v54 }
 0x198   : > { %v5346_v7 = vmax.f32 %v587_v40, %v624_v62  ;;  %4463 = vst [vmem:[%s4680_s18 + $0x1d8] sm:$0xff] %v5383_v54 }
 0x199   : > { %639 = vst [vmem:[%s4680_s18 + $0x10] sm:$0xff] %v5344_v13 }
 0x19a   : > { %640 = vst [vmem:[%s4680_s18 + $0x18] sm:$0xff] %v5346_v7  ;;  %655 = vrot.lane.b32.xlu0 %v5346_v7, %s4636_s19  ;;  %693 = vrot.lane.b32.xlu1 %v5244_v20, %s4637_s20 }
 0x19b   : > { %695 = vrot.lane.b32.xlu2 %v5346_v7, %s4637_s20 }
 0x19d   : > { %v5459_v18 = vpop.permute.xlu1 %1323 }
 0x19e   : > { %11388 = vst [vmem:[#allocation18_spill] sm:$0xff] %v5459_v18 }
 0x1a2   : > { %697 = vrot.lane.b32.xlu0 %v5310_v39, %s4637_s20  ;;  %699 = vrot.lane.b32.xlu1 %v5302_v56, %s4637_s20 }
 0x1a3   : > { %737 = vrot.lane.b32.xlu2 %v5310_v39, %s4638_s21 }
 0x1aa   : > { %733 = vrot.lane.b32.xlu0 %v5244_v20, %s4638_s21  ;;  %735 = vrot.lane.b32.xlu1 %v5346_v7, %s4638_s21 }
 0x1ab   : > { %773 = vrot.lane.b32.xlu2 %v5244_v20, %s4639_s22 }
 0x1b2   : > { %739 = vrot.lane.b32.xlu0 %v5302_v56, %s4638_s21  ;;  %777 = vrot.lane.b32.xlu1 %v5310_v39, %s4639_s22 }
 0x1b3   : > { %779 = vrot.lane.b32.xlu2 %v5302_v56, %s4639_s22 }
 0x1ba   : > { %775 = vrot.lane.b32.xlu0 %v5346_v7, %s4639_s22  ;;  %645 = vrot.lane.b32.xlu1 %v5234_v31, %s4636_s19 }
 0x1bb   : > { %647 = vrot.lane.b32.xlu2 %v5344_v13, %s4636_s19 }
 0x1c2   : > { %649 = vrot.lane.b32.xlu0 %v5300_v21, %s4636_s19  ;;  %651 = vrot.lane.b32.xlu1 %v5292_v50, %s4636_s19 }
 0x1c3   : > { %689 = vrot.lane.b32.xlu2 %v5300_v21, %s4637_s20 }
 0x1ca   : > { %685 = vrot.lane.b32.xlu0 %v5234_v31, %s4637_s20  ;;  %687 = vrot.lane.b32.xlu1 %v5344_v13, %s4637_s20 }
 0x1cb   : > { %725 = vrot.lane.b32.xlu2 %v5234_v31, %s4638_s21 }
 0x1d2   : > { %691 = vrot.lane.b32.xlu0 %v5292_v50, %s4637_s20  ;;  %729 = vrot.lane.b32.xlu1 %v5300_v21, %s4638_s21 }
 0x1d3   : > { %731 = vrot.lane.b32.xlu2 %v5292_v50, %s4638_s21 }
 0x1da   : > { %727 = vrot.lane.b32.xlu0 %v5344_v13, %s4638_s21  ;;  %765 = vrot.lane.b32.xlu1 %v5234_v31, %s4639_s22 }
 0x1db   : > { %767 = vrot.lane.b32.xlu2 %v5344_v13, %s4639_s22 }
 0x1e2   : > { %769 = vrot.lane.b32.xlu0 %v5300_v21, %s4639_s22  ;;  %771 = vrot.lane.b32.xlu1 %v5292_v50, %s4639_s22 }
 0x1e3   : > { %1331 = vrot.lane.b32.xlu2 %v5383_v54, %s4636_s19  ;;  %v654_v36 = vpop.permute.xlu2 %653 }
 0x1ea   : > { %1327 = vrot.lane.b32.xlu0 %v5394_v55, %s4636_s19  ;;  %1329 = vrot.lane.b32.xlu1 %v5403_v59, %s4636_s19 }
 0x1eb   : > { %1361 = vrot.lane.b32.xlu2 %v5154_v3, %s4637_s20  ;;  %v5445_v33 = vpop.permute.xlu2 %659 }
 0x1f2   : > { %1333 = vrot.lane.b32.xlu0 %v5410_v17, %s4636_s19  ;;  %1335 = vrot.lane.b32.xlu1 %v5419_v2, %s4636_s19 }
 0x1f3   : > { %1367 = vrot.lane.b32.xlu2 %v5394_v55, %s4637_s20 }
 0x1f5   : > { %v5453_v10 = vpop.permute.xlu2 %695 }
 0x1fa   : > { %1363 = vrot.lane.b32.xlu0 %v5141_v22, %s4637_s20  ;;  %1365 = vrot.lane.b32.xlu1 %v5130_v0, %s4637_s20 }
 0x1fb   : > { %1373 = vrot.lane.b32.xlu2 %v5410_v17, %s4637_s20 }
 0x1fd   : > { %v5469_v45 = vpop.permute.xlu2 %737 }
 0x202   : > { %1369 = vrot.lane.b32.xlu0 %v5403_v59, %s4637_s20  ;;  %1371 = vrot.lane.b32.xlu1 %v5383_v54, %s4637_s20 }
 0x204   : > { %v658_v12 = vpop.permute.xlu1 %657 }
 0x205   : > { %v5471_v53 = vpop.permute.xlu2 %773 }
 0x20c   : > { %v694_v26 = vpop.permute.xlu1 %693  ;;  %v656_v63 = vpop.permute.xlu0 %655 }
 0x20d   : > { %v5477_v32 = vpop.permute.xlu2 %779 }
 0x214   : > { %v5473_v30 = vpop.permute.xlu1 %699  ;;  %v5475_v41 = vpop.permute.xlu0 %697 }
 0x215   : > { %v648_v15 = vpop.permute.xlu2 %647 }
 0x216   : > { %v666_v34 = vsel %vm11343_vm0, %v656_v63, %v648_v15  ;;  %v662_v62 = vsel %vm11343_vm0, %v648_v15, %v656_v63 }
 0x217   : > { %v671_v25 = vsel %vm11313_vm2, %v666_v34, -inf  ;;  %v5528_v34 = vsel %vm11315_vm7, %v662_v62, -inf }
 0x218   : > { %v679_v49 = vmax.f32 %v5344_v13, %v671_v25 }
 0x21c   : > { %v5479_v27 = vpop.permute.xlu1 %735  ;;  %v734_v37 = vpop.permute.xlu0 %733 }
 0x21d   : > { %v5485_v57 = vpop.permute.xlu2 %689 }
 0x224   : > { %v5481_v11 = vpop.permute.xlu1 %777  ;;  %v5483_v52 = vpop.permute.xlu0 %739 }
 0x225   : > { %v726_v6 = vpop.permute.xlu2 %725 }
 0x226   : > { %v741_v15 = vsel %vm383_vm3, %v726_v6, %v734_v37 }
 0x227   : > { %v749_v62 = vsel %vm11316_vm5, %v741_v15, -inf }
 0x22c   : > { %v646_v23 = vpop.permute.xlu1 %645  ;;  %v5487_v61 = vpop.permute.xlu0 %775 }
 0x22d   : > { %v5491_v24 = vpop.permute.xlu2 %731  ;;  %v665_v5 = vsel %vm11343_vm0, %v654_v36, %v646_v23 }
 0x22e   : > { %v669_v40 = vsel %vm11313_vm2, %v665_v5, -inf  ;;  %v707_v5 = vsel %vm11342_vm1, %v5475_v41, %v5485_v57 }
 0x22f   : > { %v677_v19 = vmax.f32 %v5234_v31, %v669_v40  ;;  %v713_v17 = vsel %vm11314_vm4, %v707_v5, -inf }
 0x234   : > { %v652_v58 = vpop.permute.xlu1 %651  ;;  %v650_v9 = vpop.permute.xlu0 %649 }
 0x235   : > { %v667_v43 = vsel %vm11343_vm0, %v658_v12, %v650_v9  ;;  %v5530_v60 = vpop.permute.xlu2 %767  ;;  %v668_v31 = vsel %vm11343_vm0, %v5445_v33, %v652_v58 }
 0x236   : > { %v673_v40 = vsel %vm11313_vm2, %v667_v43, -inf  ;;  %v782_v43 = vsel %vm428_vm6, %v5530_v60, %v5487_v61 }
 0x237   : > { %v681_v25 = vmax.f32 %v5300_v21, %v673_v40 }
 0x23c   : > { %v5489_v4 = vpop.permute.xlu1 %687  ;;  %v686_v28 = vpop.permute.xlu0 %685 }
 0x23d   : > { %v705_v8 = vsel %vm11342_vm1, %v694_v26, %v686_v28  ;;  %v706_v63 = vsel %vm11342_vm1, %v5453_v10, %v5489_v4 }
 0x23e   : > { %v709_v18 = vsel %vm11314_vm4, %v705_v8, -inf  ;;  %v661_v8 = vsel %vm11343_vm0, %v646_v23, %v654_v36  ;;  %v745_v36 = vsel %vm383_vm3, %v734_v37, %v726_v6  ;;  %v711_v23 = vsel %vm11314_vm4, %v706_v63, -inf }
 0x23f   : > { %v717_v16 = vmax.f32 %v677_v19, %v709_v18  ;;  %v670_v54 = vsel %vm11315_vm7, %v661_v8, -inf  ;;  %v663_v19 = vsel %vm11343_vm0, %v650_v9, %v658_v12  ;;  %v675_v18 = vsel %vm11313_vm2, %v668_v31, -inf }
 0x240   : > { %v701_v37 = vsel %vm11342_vm1, %v686_v28, %v694_v26  ;;  %v719_v9 = vmax.f32 %v679_v49, %v711_v23  ;;  %vm11390_vm2 = vcmp.lt.s32.totalorder %v4856_v46, 16  ;;  %v744_v28 = vsel %vm383_vm3, %v5491_v24, %v5483_v52 }
 0x241   : > { %v757_v5 = vmax.f32 %v717_v16, %v749_v62  ;;  %v683_v8 = vmax.f32 %v5292_v50, %v675_v18  ;;  %v678_v23 = vmax.f32 %v5244_v20, %v670_v54  ;;  %v680_v20 = vmax.f32 %v5346_v7, %v5528_v34 }
 0x242   : > { %v703_v54 = vsel %vm11342_vm1, %v5485_v57, %v5475_v41 }
 0x244   : > { %v5501_v1 = vpop.permute.xlu1 %729  ;;  %v5503_v48 = vpop.permute.xlu0 %691 }
 0x245   : > { %v708_v13 = vsel %vm11342_vm1, %v5473_v30, %v5503_v48  ;;  %v743_v21 = vsel %vm383_vm3, %v5501_v1, %v5469_v45  ;;  %v704_v34 = vsel %vm11342_vm1, %v5503_v48, %v5473_v30 }
 0x246   : > { %v715_v26 = vsel %vm11314_vm4, %v708_v13, -inf  ;;  %vm11391_vm4 = vmmov %vm11390_vm2  ;;  %v664_v13 = vsel %vm11343_vm0, %v652_v58, %v5445_v33  ;;  %v753_v50 = vsel %vm11316_vm5, %v743_v21, -inf  ;;  %v721_v58 = vmax.f32 %v681_v25, %v713_v17 }
 0x247   : > { %v791_v62 = vsel %vm11391_vm4, %v782_v43, -inf  ;;  %v723_v18 = vmax.f32 %v683_v8, %v715_v26  ;;  %vm11393_vm4 = vcmp.lt.s32.totalorder %v4866_v51, 16  ;;  %v702_v43 = vsel %vm11342_vm1, %v5489_v4, %v5453_v10 }
 0x248   : > { %v750_v33 = vsel %vm11393_vm4, %v745_v36, -inf  ;;  %v676_v41 = vsel %vm11315_vm7, %v664_v13, -inf  ;;  %v761_v57 = vmax.f32 %v721_v58, %v753_v50  ;;  %vm11394_vm4 = vcmp.lt.s32.totalorder %v4915_v14, 16 }
 0x24c   : > { %v766_v6 = vpop.permute.xlu1 %765  ;;  %v728_v12 = vpop.permute.xlu0 %727 }
 0x24d   : > { %v781_v63 = vsel %vm428_vm6, %v766_v6, %v5471_v53  ;;  %v742_v15 = vsel %vm383_vm3, %v728_v12, %v5479_v27  ;;  %v785_v7 = vsel %vm428_vm6, %v5471_v53, %v766_v6  ;;  %v746_v53 = vsel %vm383_vm3, %v5479_v27, %v728_v12 }
 0x24e   : > { %v789_v49 = vsel %vm11390_vm2, %v781_v63, -inf  ;;  %v751_v16 = vsel %vm11316_vm5, %v742_v15, -inf  ;;  %vm11392_vm2 = vcmp.ge.s32.totalorder %v4858_v47, 0  ;;  %v674_v15 = vsel %vm11315_vm7, %v663_v19, -inf }
 0x24f   : > { %v5584_v31 = vmax.f32 %v757_v5, %v789_v49  ;;  %v759_v40 = vmax.f32 %v719_v9, %v751_v16  ;;  %v710_v63 = vsel %vm11392_vm2, %v701_v37, -inf  ;;  %v755_v19 = vsel %vm11316_vm5, %v744_v28, -inf }
 0x250   : > { %v718_v37 = vmax.f32 %v678_v23, %v710_v63  ;;  %v682_v17 = vmax.f32 %v5310_v39, %v674_v15  ;;  %v763_v36 = vmax.f32 %v723_v18, %v755_v19  ;;  %v712_v6 = vsel %vm11392_vm2, %v702_v43, -inf }
 0x251   : > { %v5598_v9 = vmax.f32 %v759_v40, %v791_v62  ;;  %805 = vrot.lane.b32.xlu0 %v5584_v31, %s4640_s23  ;;  %v790_v30 = vsel %vm11394_vm4, %v785_v7, -inf  ;;  %vm11395_vm7 = vcmp.lt.s32.totalorder %v4856_v46, 16  ;;  %v747_v12 = vsel %vm383_vm3, %v5469_v45, %v5501_v1 }
 0x252   : > { %vm11396_vm5 = vmmov %vm11395_vm7  ;;  %v758_v5 = vmax.f32 %v718_v37, %v750_v33  ;;  %v684_v49 = vmax.f32 %v5302_v56, %v676_v41  ;;  %v716_v16 = vsel %vm11392_vm2, %v704_v34, -inf  ;;  %v720_v8 = vmax.f32 %v680_v20, %v712_v6  ;;  %v5734_v33 = vpop.permute.xlu2 %1331 }
 0x253   : > { %807 = vrot.lane.b32.xlu1 %v5598_v9, %s4640_s23  ;;  %v748_v1 = vsel %vm383_vm3, %v5483_v52, %v5491_v24  ;;  %v786_v23 = vsel %vm428_vm6, %v5487_v61, %v5530_v60 }
 0x254   : > { %v772_v10 = vpop.permute.xlu1 %771  ;;  %v770_v4 = vpop.permute.xlu0 %769  ;;  %v5658_v40 = vmax.f32 %v758_v5, %v790_v30  ;;  %v724_v13 = vmax.f32 %v684_v49, %v716_v16 }
 0x255   : > { %v784_v25 = vsel %vm428_vm6, %v772_v10, %v5477_v32  ;;  %v783_v39 = vsel %vm428_vm6, %v770_v4, %v5481_v11  ;;  %v787_v45 = vsel %vm428_vm6, %v5481_v11, %v770_v4  ;;  %v788_v15 = vsel %vm428_vm6, %v5477_v32, %v772_v10  ;;  %v11410_v4 = vld [vmem:[#allocation14_spill] sm:$0xff] }
 0x256   : > { %v795_v48 = vsel %vm11395_vm7, %v784_v25, -inf  ;;  %v793_v27 = vsel %vm11396_vm5, %v783_v39, -inf  ;;  %vm11397_vm7 = vcmp.lt.s32.totalorder %v4866_v51, 16  ;;  %vm11398_vm5 = vmmov %vm11392_vm2  ;;  %vm11400_vm2 = vcmp.lt.s32.totalorder %v4915_v14, 16 }
 0x257   : > { %v5649_v21 = vmax.f32 %v763_v36, %v795_v48  ;;  %v5651_v26 = vmax.f32 %v761_v57, %v793_v27  ;;  %v752_v28 = vsel %vm11397_vm7, %v746_v53, -inf  ;;  %v714_v56 = vsel %vm11398_vm5, %v703_v54, -inf  ;;  %vm11399_vm4 = vmmov %vm11397_vm7  ;;  %v11411_v36 = vld [vmem:[#allocation16_spill] sm:$0xff] }
 0x258   : > { %v754_v11 = vsel %vm11399_vm4, %v747_v12, -inf  ;;  %v722_v62 = vmax.f32 %v682_v17, %v714_v56  ;;  %v760_v63 = vmax.f32 %v720_v8, %v752_v28  ;;  %v794_v52 = vsel %vm11400_vm2, %v787_v45, -inf  ;;  %vm11401_vm7 = vmmov %vm11399_vm4 }
 0x259   : > { %811 = vrot.lane.b32.xlu0 %v5649_v21, %s4640_s23  ;;  %809 = vrot.lane.b32.xlu2 %v5651_v26, %s4640_s23  ;;  %v756_v60 = vsel %vm11401_vm7, %v748_v1, -inf  ;;  %vm11402_vm5 = vmmov %vm11400_vm2  ;;  %vm11424_vm7 = vcmp.ge.s32.totalorder %v4832_v38, 0 }
 0x25a   : > { %v762_v24 = vmax.f32 %v722_v62, %v754_v11  ;;  %v792_v61 = vsel %vm11402_vm5, %v786_v23, -inf  ;;  %vm11403_vm4 = vmmov %vm11400_vm2  ;;  %v764_v20 = vmax.f32 %v724_v13, %v756_v60  ;;  %v5742_v58 = vpop.permute.xlu2 %1361  ;;  %vm11423_vm2 = vcmp.ge.s32.totalorder %v4824_v35, 0 }
 0x25b   : > { %813 = vrot.lane.b32.xlu1 %v5658_v40, %s4640_s23  ;;  %v796_v50 = vsel %vm11403_vm4, %v788_v15, -inf  ;;  %v5692_v18 = vmax.f32 %v760_v63, %v792_v61  ;;  %vm11425_vm5 = vcmp.lt.s32.totalorder %v4844_v42, 16  ;;  %vm11426_vm4 = vcmp.lt.s32.totalorder %v4856_v46, 16 }
 0x25c   : > { %v5694_v32 = vmax.f32 %v762_v24, %v794_v52  ;;  %v5696_v54 = vmax.f32 %v764_v20, %v796_v50  ;;  %v5750_v19 = vpop.permute.xlu0 %1327  ;;  %v5752_v43 = vpop.permute.xlu1 %1329 }
 0x25d   : > { %11404 = vst [vmem:[#allocation20_spill] sm:$0xff] %v5750_v19 }
 0x261   : > { %817 = vrot.lane.b32.xlu0 %v5694_v32, %s4640_s23  ;;  %815 = vrot.lane.b32.xlu2 %v5692_v18, %s4640_s23 }
 0x262   : > { %v5754_v37 = vpop.permute.xlu2 %1367 }
 0x263   : > { %819 = vrot.lane.b32.xlu1 %v5696_v54, %s4640_s23  ;;  %11405 = vst [vmem:[#allocation21_spill] sm:$0xff] %v5754_v37 }
 0x264   : > { %v5762_v7 = vpop.permute.xlu0 %1333  ;;  %v5764_v41 = vpop.permute.xlu1 %1335 }
 0x265   : > { %11406 = vst [vmem:[#allocation22_spill] sm:$0xff] %v5762_v7 }
 0x266   : > { %11407 = vst [vmem:[#allocation23_spill] sm:$0xff] %v5764_v41 }
 0x269   : > { %847 = vrot.lane.b32.xlu0 %v5598_v9, %s4641_s24  ;;  %845 = vrot.lane.b32.xlu2 %v5584_v31, %s4641_s24 }
 0x26a   : > { %v5770_v17 = vpop.permute.xlu2 %1373  ;;  %v11442_v61 = vld [vmem:[#allocation21_spill] sm:$0xff] }
 0x26b   : > { %849 = vrot.lane.b32.xlu1 %v5651_v26, %s4641_s24  ;;  %11408 = vst [vmem:[#allocation24_spill] sm:$0xff] %v5770_v17 }
 0x26c   : > { %v5774_v57 = vpop.permute.xlu0 %1363  ;;  %v5780_v34 = vpop.permute.xlu1 %1365 }
 0x26d   : > { %11409 = vst [vmem:[#allocation25_spill] sm:$0xff] %v5780_v34 }
 0x271   : > { %853 = vrot.lane.b32.xlu0 %v5658_v40, %s4641_s24  ;;  %851 = vrot.lane.b32.xlu2 %v5649_v21, %s4641_s24 }
 0x273   : > { %855 = vrot.lane.b32.xlu1 %v5692_v18, %s4641_s24 }
 0x274   : > { %v5790_v53 = vpop.permute.xlu0 %1369  ;;  %v5794_v39 = vpop.permute.xlu1 %1371 }
 0x279   : > { %859 = vrot.lane.b32.xlu0 %v5696_v54, %s4641_s24  ;;  %857 = vrot.lane.b32.xlu2 %v5694_v32, %s4641_s24 }
 0x27b   : > { %885 = vrot.lane.b32.xlu1 %v5584_v31, %s4642_s25 }
 0x281   : > { %889 = vrot.lane.b32.xlu0 %v5651_v26, %s4642_s25  ;;  %887 = vrot.lane.b32.xlu2 %v5598_v9, %s4642_s25 }
 0x283   : > { %891 = vrot.lane.b32.xlu1 %v5649_v21, %s4642_s25 }
 0x289   : > { %895 = vrot.lane.b32.xlu0 %v5692_v18, %s4642_s25  ;;  %893 = vrot.lane.b32.xlu2 %v5658_v40, %s4642_s25 }
 0x28b   : > { %897 = vrot.lane.b32.xlu1 %v5694_v32, %s4642_s25 }
 0x291   : > { %925 = vrot.lane.b32.xlu0 %v5584_v31, %s4643_s26  ;;  %899 = vrot.lane.b32.xlu2 %v5696_v54, %s4642_s25 }
 0x293   : > { %927 = vrot.lane.b32.xlu1 %v5598_v9, %s4643_s26 }
 0x299   : > { %931 = vrot.lane.b32.xlu0 %v5649_v21, %s4643_s26  ;;  %929 = vrot.lane.b32.xlu2 %v5651_v26, %s4643_s26 }
 0x29b   : > { %933 = vrot.lane.b32.xlu1 %v5658_v40, %s4643_s26 }
 0x2a1   : > { %937 = vrot.lane.b32.xlu0 %v5694_v32, %s4643_s26  ;;  %935 = vrot.lane.b32.xlu2 %v5692_v18, %s4643_s26 }
 0x2a3   : > { %939 = vrot.lane.b32.xlu1 %v5696_v54, %s4643_s26 }
 0x2a9   : > { %1375 = vrot.lane.b32.xlu0 %v5419_v2, %s4637_s20  ;;  %1403 = vrot.lane.b32.xlu2 %v5141_v22, %s4638_s21 }
 0x2ab   : > { %1401 = vrot.lane.b32.xlu1 %v5154_v3, %s4638_s21 }
 0x2b1   : > { %1405 = vrot.lane.b32.xlu0 %v5130_v0, %s4638_s21  ;;  %1409 = vrot.lane.b32.xlu2 %v5403_v59, %s4638_s21 }
 0x2b3   : > { %1407 = vrot.lane.b32.xlu1 %v5394_v55, %s4638_s21  ;;  %v5784_v10 = vpop.permute.xlu2 %809 }
 0x2b9   : > { %1411 = vrot.lane.b32.xlu0 %v11410_v4, %s4638_s21  ;;  %1415 = vrot.lane.b32.xlu2 %v5419_v2, %s4638_s21 }
 0x2bb   : > { %1413 = vrot.lane.b32.xlu1 %v11411_v36, %s4638_s21  ;;  %v816_v25 = vpop.permute.xlu2 %815 }
 0x2c1   : > { %1441 = vrot.lane.b32.xlu0 %v5154_v3, %s4639_s22  ;;  %1445 = vrot.lane.b32.xlu2 %v5130_v0, %s4639_s22 }
 0x2c3   : > { %1443 = vrot.lane.b32.xlu1 %v5141_v22, %s4639_s22  ;;  %v846_v6 = vpop.permute.xlu2 %845  ;;  %v806_v30 = vpop.permute.xlu0 %805 }
 0x2c5   : > { %v808_v48 = vpop.permute.xlu1 %807 }
 0x2c6   : > { %v826_v63 = vsel %vm473_vm12, %v816_v25, %v808_v48  ;;  %v822_v20 = vsel %vm473_vm12, %v808_v48, %v816_v25 }
 0x2c7   : > { %v831_v50 = vsel %vm230_vm14, %v826_v63, -inf  ;;  %v840_v37 = vmax.f32 %v5692_v18, %v822_v20 }
 0x2c8   : > { %v839_v7 = vmax.f32 %v5598_v9, %v831_v50 }
 0x2c9   : > { %1451 = vrot.lane.b32.xlu2 %v11410_v4, %s4639_s22  ;;  %1447 = vrot.lane.b32.xlu0 %v5394_v55, %s4639_s22 }
 0x2cb   : > { %1449 = vrot.lane.b32.xlu1 %v5403_v59, %s4639_s22  ;;  %v5808_v27 = vpop.permute.xlu2 %851  ;;  %v5810_v3 = vpop.permute.xlu0 %811 }
 0x2cd   : > { %v814_v0 = vpop.permute.xlu1 %813 }
 0x2ce   : > { %v825_v19 = vsel %vm473_vm12, %v814_v0, %v806_v30  ;;  %v821_v9 = vsel %vm473_vm12, %v806_v30, %v814_v0 }
 0x2cf   : > { %v838_v0 = vmax.f32 %v5658_v40, %v821_v9 }
 0x2d3   : > { %v5812_v12 = vpop.permute.xlu2 %857  ;;  %v818_v22 = vpop.permute.xlu0 %817 }
 0x2d5   : > { %v5814_v5 = vpop.permute.xlu1 %819 }
 0x2d6   : > { %v828_v9 = vsel %vm473_vm12, %v5814_v5, %v5810_v3 }
 0x2db   : > { %v848_v49 = vpop.permute.xlu0 %847  ;;  %v888_v16 = vpop.permute.xlu2 %887 }
 0x2dd   : > { %v5816_v28 = vpop.permute.xlu1 %849 }
 0x2e3   : > { %v854_v8 = vpop.permute.xlu0 %853  ;;  %v894_v56 = vpop.permute.xlu2 %893 }
 0x2e4   : > { %v865_v18 = vsel %vm518_vm13, %v854_v8, %v846_v6  ;;  %v861_v40 = vsel %vm518_vm13, %v846_v6, %v854_v8 }
 0x2e5   : > { %v856_v45 = vpop.permute.xlu1 %855 }
 0x2e6   : > { %v866_v24 = vsel %vm518_vm13, %v856_v45, %v848_v49  ;;  %v862_v55 = vsel %vm518_vm13, %v848_v49, %v856_v45  ;;  %v829_v49 = vsel %vm230_vm14, %v825_v19, -inf }
 0x2e7   : > { %v871_v34 = vsel %vm238_vm15, %v866_v24, -inf  ;;  %v880_v14 = vmax.f32 %v840_v37, %v862_v55 }
 0x2e8   : > { %v879_v25 = vmax.f32 %v839_v7, %v871_v34  ;;  %v827_v7 = vsel %vm473_vm12, %v818_v22, %v5784_v10 }
 0x2eb   : > { %v5818_v1 = vpop.permute.xlu0 %859  ;;  %v5820_v11 = vpop.permute.xlu2 %899 }
 0x2ed   : > { %v886_v23 = vpop.permute.xlu1 %885 }
 0x2f3   : > { %v5822_v62 = vpop.permute.xlu0 %889  ;;  %v5828_v15 = vpop.permute.xlu2 %929 }
 0x2f5   : > { %v5824_v13 = vpop.permute.xlu1 %891 }
 0x2fb   : > { %v896_v52 = vpop.permute.xlu0 %895  ;;  %v936_v45 = vpop.permute.xlu2 %935 }
 0x2fc   : > { %v906_v17 = vsel %vm563_vm11, %v896_v52, %v888_v16  ;;  %v902_v63 = vsel %vm563_vm11, %v888_v16, %v896_v52  ;;  %v869_v16 = vsel %vm238_vm15, %v865_v18, -inf }
 0x2fd   : > { %v898_v60 = vpop.permute.xlu1 %897  ;;  %v912_v24 = vsel %vm249_vm10, %v906_v17, -inf  ;;  %v919_v50 = vmax.f32 %v879_v25, %v902_v63  ;;  %v837_v63 = vmax.f32 %v5584_v31, %v829_v49  ;;  %v823_v25 = vsel %vm473_vm12, %v5784_v10, %v818_v22 }
 0x2fe   : > { %v920_v17 = vmax.f32 %v880_v14, %v912_v24  ;;  %v905_v14 = vsel %vm563_vm11, %v894_v56, %v886_v23  ;;  %v833_v24 = vsel %vm230_vm14, %v827_v7, -inf  ;;  %v867_v31 = vsel %vm518_vm13, %v5812_v12, %v5816_v28 }
 0x2ff   : > { %v901_v10 = vsel %vm563_vm11, %v886_v23, %v894_v56  ;;  %v877_v6 = vmax.f32 %v837_v63, %v869_v16  ;;  %v910_v22 = vsel %vm249_vm10, %v905_v14, -inf  ;;  %v841_v49 = vmax.f32 %v5651_v26, %v833_v24 }
 0x300   : > { %v842_v18 = vmax.f32 %v5694_v32, %v823_v25  ;;  %v873_v56 = vsel %vm238_vm15, %v867_v31, -inf  ;;  %v868_v23 = vsel %vm518_vm13, %v5818_v1, %v5808_v27  ;;  %v907_v26 = vsel %vm563_vm11, %v898_v60, %v5822_v62 }
 0x301   : > { %v875_v14 = vsel %vm238_vm15, %v868_v23, -inf  ;;  %v864_v63 = vsel %vm518_vm13, %v5808_v27, %v5818_v1  ;;  %v914_v25 = vsel %vm249_vm10, %v907_v26, -inf }
 0x303   : > { %v926_v41 = vpop.permute.xlu0 %925 }
 0x305   : > { %v928_v20 = vpop.permute.xlu1 %927 }
 0x306   : > { %v942_v55 = vsel %vm608_vm9, %v928_v20, %v936_v45  ;;  %v946_v37 = vsel %vm608_vm9, %v936_v45, %v928_v20  ;;  %v878_v45 = vmax.f32 %v838_v0, %v861_v40  ;;  %v917_v20 = vmax.f32 %v877_v6, %v901_v10 }
 0x307   : > { %v952_v34 = vsel %vm257_vm8, %v946_v37, -inf  ;;  %v5865_v30 = vmax.f32 %v919_v50, %v942_v55  ;;  %v835_v50 = vsel %vm230_vm14, %v828_v9, -inf  ;;  %v824_v37 = vsel %vm473_vm12, %v5810_v3, %v5814_v5 }
 0x308   : > { %v5872_v52 = vmax.f32 %v920_v17, %v952_v34  ;;  %v918_v17 = vmax.f32 %v878_v45, %v910_v22  ;;  %v863_v34 = vsel %vm518_vm13, %v5816_v28, %v5812_v12  ;;  %v903_v3 = vsel %vm563_vm11, %v5822_v62, %v898_v60 }
 0x309   : > { %11416 = vst [vmem:[#allocation14_spill] sm:$0xff] %v5865_v30  ;;  %v843_v12 = vmax.f32 %v5649_v21, %v835_v50  ;;  %v881_v28 = vmax.f32 %v841_v49, %v873_v56  ;;  %v844_v24 = vmax.f32 %v5696_v54, %v824_v37  ;;  %v882_v40 = vmax.f32 %v842_v18, %v863_v34 }
 0x30a   : > { %4438 = vst [vmem:[%s4680_s18 + $0x50] sm:$0xff] %v5865_v30  ;;  %984 = vrot.lane.b32.xlu1 %v5872_v52, %s4636_s19  ;;  %v904_v62 = vsel %vm563_vm11, %v5824_v13, %v5820_v11 }
 0x30b   : > { %4439 = vst [vmem:[%s4680_s18 + $0x58] sm:$0xff] %v5872_v52  ;;  %v932_v8 = vpop.permute.xlu0 %931  ;;  %v883_v21 = vmax.f32 %v843_v12, %v875_v14  ;;  %v921_v1 = vmax.f32 %v881_v28, %v903_v3  ;;  %v884_v54 = vmax.f32 %v844_v24, %v864_v63  ;;  %v922_v9 = vmax.f32 %v882_v40, %v914_v25  ;;  %v11422_v14 = vld [vmem:[#allocation19_spill] sm:$0xff] }
 0x30c   : > { %v1381_v3 = vsel %vm11342_vm1, %v5790_v53, %v5742_v58 }
 0x30d   : > { %v934_v7 = vpop.permute.xlu1 %933  ;;  %v1385_v40 = vsel %vm11424_vm7, %v1381_v3, -inf }
 0x30e   : > { %v941_v32 = vsel %vm608_vm9, %v926_v41, %v934_v7  ;;  %v945_v55 = vsel %vm608_vm9, %v934_v7, %v926_v41  ;;  %v908_v41 = vsel %vm563_vm11, %v5820_v11, %v5824_v13  ;;  %v923_v13 = vmax.f32 %v883_v21, %v904_v62  ;;  %v4608_v62 = vld [vmem:[%s4680_s18 + $0x1c0] sm:$0xff] }
 0x30f   : > { %v950_v0 = vsel %vm257_vm8, %v945_v55, -inf  ;;  %v5927_v16 = vmax.f32 %v917_v20, %v941_v32  ;;  %v916_v27 = vsel %vm249_vm10, %v908_v41, -inf  ;;  %v6022_v20 = vpop.permute.xlu2 %1403  ;;  %v1341_v41 = vsel %vm11343_vm0, %v5752_v43, %v11422_v14 }
 0x310   : > { %v5938_v5 = vmax.f32 %v918_v17, %v950_v0  ;;  %v924_v49 = vmax.f32 %v884_v54, %v916_v27  ;;  %v1345_v28 = vsel %vm11423_vm2, %v1341_v41, -inf }
 0x311   : > { %11417 = vst [vmem:[#allocation16_spill] sm:$0xff] %v5927_v16  ;;  %v1353_v21 = vmax.f32 %v4608_v62, %v1345_v28 }
 0x312   : > { %11418 = vst [vmem:[#allocation26_spill] sm:$0xff] %v5938_v5  ;;  %982 = vrot.lane.b32.xlu0 %v5938_v5, %s4636_s19 }
 0x313   : > { %4436 = vst [vmem:[%s4680_s18 + $0x40] sm:$0xff] %v5927_v16  ;;  %v938_v60 = vpop.permute.xlu0 %937 }
 0x314   : > { %4437 = vst [vmem:[%s4680_s18 + $0x48] sm:$0xff] %v5938_v5  ;;  %v943_v31 = vsel %vm608_vm9, %v5828_v15, %v938_v60  ;;  %v947_v11 = vsel %vm608_vm9, %v938_v60, %v5828_v15  ;;  %v1393_v60 = vmax.f32 %v1353_v21, %v1385_v40  ;;  %v1377_v21 = vsel %vm11342_vm1, %v5742_v58, %v5790_v53 }
 0x315   : > { %v954_v10 = vsel %vm257_vm8, %v947_v11, -inf  ;;  %v5968_v6 = vmax.f32 %v921_v1, %v943_v31  ;;  %v940_v22 = vpop.permute.xlu1 %939 }
 0x316   : > { %v5970_v18 = vmax.f32 %v922_v9, %v954_v10  ;;  %v944_v45 = vsel %vm608_vm9, %v932_v8, %v940_v22  ;;  %v948_v50 = vsel %vm608_vm9, %v940_v22, %v932_v8  ;;  %v11427_v9 = vld [vmem:[#allocation18_spill] sm:$0xff] }
 0x317   : > { %4440 = vst [vmem:[%s4680_s18 + $0x60] sm:$0xff] %v5968_v6  ;;  %v956_v15 = vsel %vm257_vm8, %v948_v50, -inf  ;;  %v5980_v56 = vmax.f32 %v923_v13, %v944_v45  ;;  %v1410_v26 = vpop.permute.xlu2 %1409  ;;  %v1342_v31 = vsel %vm11343_vm0, %v5734_v33, %v11427_v9  ;;  %v1382_v13 = vsel %vm11342_vm1, %v5794_v39, %v5774_v57 }
 0x318   : > { %11419 = vst [vmem:[#allocation27_spill] sm:$0xff] %v5970_v18  ;;  %v5984_v23 = vmax.f32 %v924_v49, %v956_v15  ;;  %1026 = vrot.lane.b32.xlu1 %v5970_v18, %s4637_s20  ;;  %986 = vrot.lane.b32.xlu2 %v5970_v18, %s4636_s19  ;;  %v1347_v22 = vsel %vm11423_vm2, %v1342_v31, -inf  ;;  %v1387_v50 = vsel %vm11424_vm7, %v1382_v13, -inf  ;;  %v4609_v15 = vld [vmem:[%s4680_s18 + $0x1d0] sm:$0xff]  ;;  %vm11428_vm2 = vcmp.ge.s32.totalorder %v4849_v44, 0 }
 0x319   : > { %11420 = vst [vmem:[#allocation28_spill] sm:$0xff] %v5980_v56  ;;  %v1355_v41 = vmax.f32 %v4609_v15, %v1347_v22  ;;  %vm11430_vm7 = vcmp.ge.s32.totalorder %v4858_v47, 0 }
 0x31a   : > { %4441 = vst [vmem:[%s4680_s18 + $0x68] sm:$0xff] %v5970_v18  ;;  %988 = vrot.lane.b32.xlu0 %v5984_v23, %s4636_s19 }
 0x31b   : > { %11421 = vst [vmem:[#allocation29_spill] sm:$0xff] %v5984_v23  ;;  %v6030_v17 = vpop.permute.xlu0 %1375  ;;  %v1395_v40 = vmax.f32 %v1355_v41, %v1387_v50 }
 0x31c   : > { %4442 = vst [vmem:[%s4680_s18 + $0x70] sm:$0xff] %v5980_v56 }
 0x31d   : > { %4443 = vst [vmem:[%s4680_s18 + $0x78] sm:$0xff] %v5984_v23  ;;  %v6014_v8 = vpop.permute.xlu1 %1401 }
 0x31e   : > { %v1417_v24 = vsel %vm383_vm3, %v6014_v8, %v1410_v26 }
 0x31f   : > { %v6048_v37 = vpop.permute.xlu2 %1415  ;;  %v1425_v1 = vsel %vm11425_vm5, %v1417_v24, -inf  ;;  %v1337_v24 = vsel %vm11343_vm0, %v11422_v14, %v5752_v43  ;;  %v1386_v43 = vsel %vm11430_vm7, %v1377_v21, -inf  ;;  %vm11444_vm7 = vcmp.ge.s32.totalorder %v4849_v44, 0 }
 0x320   : > { %1062 = vrot.lane.b32.xlu1 %v5938_v5, %s4638_s21  ;;  %1022 = vrot.lane.b32.xlu2 %v5938_v5, %s4637_s20  ;;  %v1433_v11 = vmax.f32 %v1393_v60, %v1425_v1  ;;  %v1346_v1 = vsel %vm11428_vm2, %v1337_v24, -inf  ;;  %v1421_v60 = vsel %vm383_vm3, %v1410_v26, %v6014_v8  ;;  %v11432_v26 = vld [vmem:[#allocation9_spill] sm:$0xff]  ;;  %vm11443_vm2 = vcmp.ge.s32.totalorder %v4824_v35, 0 }
 0x321   : > { %v1354_v14 = vmax.f32 %v5403_v59, %v1346_v1 }
 0x322   : > { %1024 = vrot.lane.b32.xlu0 %v5872_v52, %s4637_s20 }
 0x323   : > { %v6042_v55 = vpop.permute.xlu0 %1405  ;;  %v1394_v8 = vmax.f32 %v1354_v14, %v1386_v43 }
 0x325   : > { %v6024_v7 = vpop.permute.xlu1 %1407 }
 0x327   : > { %v6070_v12 = vpop.permute.xlu2 %1445 }
 0x328   : > { %1068 = vrot.lane.b32.xlu1 %v5984_v23, %s4638_s21  ;;  %1028 = vrot.lane.b32.xlu2 %v5984_v23, %s4637_s20 }
 0x32a   : > { %1066 = vrot.lane.b32.xlu0 %v5970_v18, %s4638_s21 }
 0x32b   : > { %v6054_v0 = vpop.permute.xlu0 %1411 }
 0x32c   : > { %v1418_v45 = vsel %vm383_vm3, %v6022_v20, %v6054_v0 }
 0x32d   : > { %v6038_v32 = vpop.permute.xlu1 %1413  ;;  %v1427_v28 = vsel %vm11425_vm5, %v1418_v45, -inf  ;;  %vm11431_vm5 = vcmp.lt.s32.totalorder %v4866_v51, 16 }
 0x32e   : > { %v1426_v53 = vsel %vm11431_vm5, %v1421_v60, -inf  ;;  %vm11445_vm5 = vcmp.ge.s32.totalorder %v4832_v38, 0 }
 0x32f   : > { %v6104_v49 = vpop.permute.xlu2 %1451 }
 0x330   : > { %1104 = vrot.lane.b32.xlu1 %v5872_v52, %s4639_s22  ;;  %1064 = vrot.lane.b32.xlu2 %v5872_v52, %s4638_s21 }
 0x332   : > { %1102 = vrot.lane.b32.xlu0 %v5938_v5, %s4639_s22 }
 0x333   : > { %v1442_v25 = vpop.permute.xlu0 %1441 }
 0x335   : > { %v6052_v34 = vpop.permute.xlu1 %1443 }
 0x336   : > { %v1458_v3 = vsel %vm428_vm6, %v6052_v34, %v6104_v49 }
 0x337   : > { %v1467_v62 = vsel %vm11426_vm4, %v1458_v3, -inf }
 0x338   : > { %1106 = vrot.lane.b32.xlu2 %v5970_v18, %s4639_s22  ;;  %978 = vrot.lane.b32.xlu1 %v5968_v6, %s4636_s19  ;;  %v1380_v18 = vsel %vm11342_vm1, %v11442_v61, %v6030_v17 }
 0x33a   : > { %1108 = vrot.lane.b32.xlu0 %v5984_v23, %s4639_s22  ;;  %v1384_v23 = vsel %vm11342_vm1, %v6030_v17, %v11442_v61  ;;  %v1424_v61 = vsel %vm383_vm3, %v6048_v37, %v6024_v7  ;;  %v11447_v17 = vld [vmem:[#allocation15_spill] sm:$0xff] }
 0x33b   : > { %v1448_v59 = vpop.permute.xlu0 %1447 }
 0x33d   : > { %v1450_v63 = vpop.permute.xlu1 %1449 }
 0x33e   : > { %v1457_v27 = vsel %vm428_vm6, %v1442_v25, %v1450_v63  ;;  %v1461_v58 = vsel %vm428_vm6, %v1450_v63, %v1442_v25 }
 0x33f   : > { %v1465_v54 = vsel %vm11426_vm4, %v1457_v27, -inf  ;;  %v1435_v27 = vmax.f32 %v1395_v40, %v1427_v28  ;;  %vm11433_vm4 = vcmp.lt.s32.totalorder %v11432_v26, 16 }
 0x340   : > { %974 = vrot.lane.b32.xlu2 %v5927_v16, %s4636_s19  ;;  %1014 = vrot.lane.b32.xlu1 %v5927_v16, %s4637_s20  ;;  %v6100_v10 = vmax.f32 %v1433_v11, %v1465_v54  ;;  %v1466_v31 = vsel %vm11433_vm4, %v1461_v58, -inf  ;;  %v1434_v11 = vmax.f32 %v1394_v8, %v1426_v53  ;;  %vm11446_vm4 = vcmp.ge.s32.totalorder %v4858_v47, 0 }
 0x341   : > { %v6138_v54 = vmax.f32 %v1435_v27, %v1467_v62 }
 0x342   : > { %976 = vrot.lane.b32.xlu0 %v5865_v30, %s4636_s19  ;;  %v6153_v13 = vmax.f32 %v1434_v11, %v1466_v31  ;;  %v11440_v31 = vld [vmem:[#allocation23_spill] sm:$0xff]  ;;  %v11441_v11 = vld [vmem:[#allocation20_spill] sm:$0xff] }
 0x343   : > { %11429 = vst [vmem:[#allocation19_spill] sm:$0xff] %v6138_v54  ;;  %v1340_v19 = vsel %vm11343_vm0, %v11441_v11, %v11440_v31  ;;  %v1344_v48 = vsel %vm11343_vm0, %v11440_v31, %v11441_v11  ;;  %v1420_v11 = vsel %vm383_vm3, %v6024_v7, %v6048_v37 }
 0x348   : > { %980 = vrot.lane.b32.xlu2 %v5980_v56, %s4636_s19  ;;  %1020 = vrot.lane.b32.xlu1 %v5980_v56, %s4637_s20 }
 0x34a   : > { %1018 = vrot.lane.b32.xlu0 %v5968_v6, %s4637_s20 }
 0x350   : > { %1016 = vrot.lane.b32.xlu2 %v5865_v30, %s4637_s20  ;;  %1056 = vrot.lane.b32.xlu1 %v5865_v30, %s4638_s21 }
 0x352   : > { %1054 = vrot.lane.b32.xlu0 %v5927_v16, %s4638_s21 }
 0x358   : > { %1058 = vrot.lane.b32.xlu2 %v5968_v6, %s4638_s21  ;;  %1455 = vrot.lane.b32.xlu1 %v5419_v2, %s4639_s22 }
 0x35a   : > { %1060 = vrot.lane.b32.xlu0 %v5980_v56, %s4638_s21 }
 0x360   : > { %1094 = vrot.lane.b32.xlu2 %v5927_v16, %s4639_s22  ;;  %1098 = vrot.lane.b32.xlu1 %v5968_v6, %s4639_s22 }
 0x362   : > { %1096 = vrot.lane.b32.xlu0 %v5865_v30, %s4639_s22 }
 0x368   : > { %1481 = vrot.lane.b32.xlu2 %v6100_v10, %s4640_s23 }
 0x36a   : > { %1453 = vrot.lane.b32.xlu0 %v11411_v36, %s4639_s22 }
 0x370   : > { %1100 = vrot.lane.b32.xlu2 %v5980_v56, %s4639_s22  ;;  %v1352_v56 = vsel %vm11444_vm7, %v1340_v19, -inf  ;;  %v1392_v19 = vsel %vm11446_vm4, %v1380_v18, -inf  ;;  %vm11449_vm7 = vcmp.lt.s32.totalorder %v4866_v51, 16  ;;  %vm11451_vm4 = vcmp.lt.s32.totalorder %v11432_v26, 16 }
 0x372   : > { %1483 = vrot.lane.b32.xlu0 %v6138_v54, %s4640_s23  ;;  %v6165_v50 = vpop.permute.xlu2 %986 }
 0x37a   : > { %1489 = vrot.lane.b32.xlu0 %v6153_v13, %s4640_s23  ;;  %v6173_v28 = vpop.permute.xlu2 %1022 }
 0x37c   : > { %v6157_v22 = vpop.permute.xlu1 %984 }
 0x382   : > { %v6181_v21 = vpop.permute.xlu2 %1028 }
 0x383   : > { %11437 = vst [vmem:[#allocation32_spill] sm:$0xff] %v6181_v21  ;;  %v1360_v21 = vmax.f32 %v5419_v2, %v1352_v56 }
 0x384   : > { %v6159_v63 = vpop.permute.xlu0 %982 }
 0x385   : > { %v1400_v30 = vmax.f32 %v1360_v21, %v1392_v19 }
 0x38a   : > { %v6161_v25 = vpop.permute.xlu1 %1026  ;;  %v6187_v60 = vpop.permute.xlu2 %1064 }
 0x38c   : > { %v6163_v45 = vpop.permute.xlu0 %988 }
 0x38d   : > { %11434 = vst [vmem:[#allocation18_spill] sm:$0xff] %v6163_v45 }
 0x392   : > { %v6167_v15 = vpop.permute.xlu1 %1062  ;;  %v6193_v58 = vpop.permute.xlu2 %1106 }
 0x394   : > { %v6169_v41 = vpop.permute.xlu0 %1024 }
 0x39a   : > { %v6171_v3 = vpop.permute.xlu1 %1068  ;;  %v6221_v5 = vpop.permute.xlu2 %974 }
 0x39b   : > { %11435 = vst [vmem:[#allocation30_spill] sm:$0xff] %v6171_v3 }
 0x39c   : > { %v6175_v24 = vpop.permute.xlu0 %1066 }
 0x3a2   : > { %v6177_v40 = vpop.permute.xlu1 %1104 }
 0x3a4   : > { %v6179_v62 = vpop.permute.xlu0 %1102 }
 0x3a5   : > { %11436 = vst [vmem:[#allocation31_spill] sm:$0xff] %v6179_v62  ;;  %v1432_v62 = vsel %vm11449_vm7, %v1424_v61, -inf  ;;  %v11455_v61 = vld [vmem:[#allocation25_spill] sm:$0xff]  ;;  %vm11457_vm7 = vcmp.ge.s32.totalorder %v4849_v44, 0 }
 0x3a6   : > { %v1440_v37 = vmax.f32 %v1400_v30, %v1432_v62  ;;  %v6257_v30 = vpop.permute.xlu2 %980 }
 0x3aa   : > { %v6183_v27 = vpop.permute.xlu1 %978 }
 0x3ac   : > { %v6185_v1 = vpop.permute.xlu0 %1108 }
 0x3ad   : > { %11438 = vst [vmem:[#allocation33_spill] sm:$0xff] %v6185_v1  ;;  %v1351_v1 = vsel %vm11443_vm2, %v1344_v48, -inf  ;;  %v1391_v48 = vsel %vm11445_vm5, %v1384_v23, -inf  ;;  %vm11448_vm2 = vcmp.lt.s32.totalorder %v4844_v42, 16  ;;  %vm11450_vm5 = vcmp.lt.s32.totalorder %v4856_v46, 16 }
 0x3ae   : > { %v1359_v3 = vmax.f32 %v11447_v17, %v1351_v1 }
 0x3b0   : > { %v1399_v45 = vmax.f32 %v1359_v3, %v1391_v48 }
 0x3b2   : > { %v6189_v43 = vpop.permute.xlu1 %1014 }
 0x3b4   : > { %v6191_v14 = vpop.permute.xlu0 %976 }
 0x3ba   : > { %v6195_v53 = vpop.permute.xlu1 %1020 }
 0x3bb   : > { %11439 = vst [vmem:[#allocation34_spill] sm:$0xff] %v6195_v53  ;;  %v1431_v53 = vsel %vm11448_vm2, %v1420_v11, -inf  ;;  %vm11456_vm2 = vcmp.ge.s32.totalorder %v4824_v35, 0 }
 0x3bc   : > { %v6197_v8 = vpop.permute.xlu0 %1018  ;;  %v1439_v7 = vmax.f32 %v1399_v45, %v1431_v53  ;;  %v11454_v53 = vld [vmem:[#allocation24_spill] sm:$0xff] }
 0x3bd   : > { %v1379_v48 = vsel %vm11342_vm1, %v11455_v61, %v11454_v53  ;;  %v1383_v19 = vsel %vm11342_vm1, %v11454_v53, %v11455_v61 }
 0x3c2   : > { %v6207_v4 = vpop.permute.xlu1 %1056 }
 0x3c4   : > { %v6223_v31 = vpop.permute.xlu0 %1054 }
 0x3ca   : > { %v1456_v16 = vpop.permute.xlu1 %1455 }
 0x3cb   : > { %v1460_v23 = vsel %vm428_vm6, %v1448_v59, %v1456_v16  ;;  %v1464_v18 = vsel %vm428_vm6, %v1456_v16, %v1448_v59  ;;  %v11452_v16 = vld [vmem:[#allocation22_spill] sm:$0xff]  ;;  %v11453_v59 = vld [vmem:[#allocation17_spill] sm:$0xff] }
 0x3cc   : > { %v1471_v2 = vsel %vm11450_vm5, %v1460_v23, -inf  ;;  %v1472_v56 = vsel %vm11451_vm4, %v1464_v18, -inf  ;;  %v6251_v1 = vpop.permute.xlu0 %1060  ;;  %v1339_v45 = vsel %vm11343_vm0, %v11453_v59, %v11452_v16  ;;  %v1343_v62 = vsel %vm11343_vm0, %v11452_v16, %v11453_v59  ;;  %v4610_v16 = vld [vmem:[%s4680_s18 + $0x1e0] sm:$0xff] }
 0x3cd   : > { %v6253_v11 = vmax.f32 %v1439_v7, %v1471_v2  ;;  %v6255_v3 = vmax.f32 %v1440_v37, %v1472_v56  ;;  %v1349_v17 = vsel %vm11456_vm2, %v1343_v62, -inf  ;;  %v1350_v7 = vsel %vm11457_vm7, %v1339_v45, -inf  ;;  %v6297_v56 = vpop.permute.xlu2 %1016 }
 0x3ce   : > { %v1419_v37 = vsel %vm383_vm3, %v6042_v55, %v6038_v32  ;;  %v1423_v23 = vsel %vm383_vm3, %v6038_v32, %v6042_v55  ;;  %vm11458_vm5 = vcmp.ge.s32.totalorder %v4832_v38, 0  ;;  %vm11459_vm4 = vcmp.ge.s32.totalorder %v4858_v47, 0 }
 0x3cf   : > { %1495 = vrot.lane.b32.xlu0 %v6255_v3, %s4640_s23  ;;  %1487 = vrot.lane.b32.xlu2 %v6253_v11, %s4640_s23  ;;  %v1389_v18 = vsel %vm11458_vm5, %v1383_v19, -inf  ;;  %v1390_v2 = vsel %vm11459_vm4, %v1379_v48, -inf  ;;  %v1357_v59 = vmax.f32 %v4610_v16, %v1349_v17  ;;  %v1358_v45 = vmax.f32 %v11411_v36, %v1350_v7 }
 0x3d0   : > { %vm11460_vm2 = vcmp.lt.s32.totalorder %v4844_v42, 16  ;;  %vm11461_vm7 = vcmp.lt.s32.totalorder %v4866_v51, 16  ;;  %v1338_v32 = vsel %vm11343_vm0, %v11427_v9, %v5734_v33  ;;  %v1378_v48 = vsel %vm11342_vm1, %v5774_v57, %v5794_v39 }
 0x3d1   : > { %v1429_v62 = vsel %vm11460_vm2, %v1419_v37, -inf  ;;  %v1430_v53 = vsel %vm11461_vm7, %v1423_v23, -inf  ;;  %v1397_v55 = vmax.f32 %v1357_v59, %v1389_v18  ;;  %v1398_v61 = vmax.f32 %v1358_v45, %v1390_v2  ;;  %v4611_v2 = vld [vmem:[%s4680_s18 + $0x1d8] sm:$0xff] }
 0x3d2   : > { %vm11462_vm5 = vcmp.ge.s32.totalorder %v4849_v44, 0  ;;  %vm11463_vm4 = vcmp.lt.s32.totalorder %v4856_v46, 16  ;;  %vm11464_vm2 = vcmp.lt.s32.totalorder %v11432_v26, 16  ;;  %v1422_v39 = vsel %vm383_vm3, %v6054_v0, %v6022_v20 }
 0x3d3   : > { %v1437_v19 = vmax.f32 %v1397_v55, %v1429_v62  ;;  %v1438_v17 = vmax.f32 %v1398_v61, %v1430_v53  ;;  %v1348_v33 = vsel %vm11462_vm5, %v1338_v32, -inf  ;;  %vm11467_vm7 = vcmp.ge.s32.totalorder %v4858_v47, 0  ;;  %v6364_v61 = vpop.permute.xlu1 %1098 }
 0x3d4   : > { %v6271_v21 = vpop.permute.xlu0 %1096  ;;  %v1356_v16 = vmax.f32 %v4611_v2, %v1348_v33  ;;  %v1462_v59 = vsel %vm428_vm6, %v6104_v49, %v6052_v34  ;;  %v996_v45 = vsel %vm11343_vm0, %v6165_v50, %v6183_v27  ;;  %vm11468_vm5 = vcmp.lt.s32.totalorder %v4866_v51, 16 }
 0x3d5   : > { %v1428_v20 = vsel %vm11468_vm5, %v1422_v39, -inf  ;;  %v6350_v0 = vpop.permute.xlu2 %1058  ;;  %v1036_v49 = vsel %vm11342_vm1, %v6161_v25, %v6197_v8  ;;  %vm11473_vm5 = vcmp.lt.s32.totalorder %v4844_v42, 16 }
 0x3dc   : > { %v1454_v36 = vpop.permute.xlu0 %1453 }
 0x3dd   : > { %v1459_v7 = vsel %vm428_vm6, %v6070_v12, %v1454_v36  ;;  %v1463_v37 = vsel %vm428_vm6, %v1454_v36, %v6070_v12  ;;  %v1388_v12 = vsel %vm11467_vm7, %v1378_v48, -inf  ;;  %vm11471_vm7 = vcmp.ge.s32.totalorder %v4832_v38, 0 }
 0x3de   : > { %v1469_v9 = vsel %vm11463_vm4, %v1459_v7, -inf  ;;  %v1470_v57 = vsel %vm11464_vm2, %v1463_v37, -inf  ;;  %v1396_v34 = vmax.f32 %v1356_v16, %v1388_v12  ;;  %vm11469_vm4 = vmmov %vm11464_vm2  ;;  %vm11470_vm2 = vcmp.ge.s32.totalorder %v4824_v35, 0 }
 0x3df   : > { %v6329_v23 = vmax.f32 %v1437_v19, %v1469_v9  ;;  %v6331_v18 = vmax.f32 %v1438_v17, %v1470_v57  ;;  %v1468_v62 = vsel %vm11469_vm4, %v1462_v59, -inf  ;;  %v1002_v53 = vsel %vm11470_vm2, %v996_v45, -inf  ;;  %v6391_v9 = vpop.permute.xlu2 %1094 }
 0x3e0   : > { %v1436_v32 = vmax.f32 %v1396_v34, %v1428_v20  ;;  %v1042_v55 = vsel %vm11471_vm7, %v1036_v49, -inf  ;;  %v1010_v36 = vmax.f32 %v5968_v6, %v1002_v53  ;;  %v1072_v19 = vsel %vm383_vm3, %v6350_v0, %v6175_v24 }
 0x3e1   : > { %11465 = vst [vmem:[#allocation23_spill] sm:$0xff] %v6329_v23  ;;  %1493 = vrot.lane.b32.xlu2 %v6331_v18, %s4640_s23  ;;  %1525 = vrot.lane.b32.xlu0 %v6329_v23, %s4641_s24  ;;  %v991_v17 = vsel %vm11343_vm0, %v6191_v14, %v6157_v22  ;;  %v1112_v37 = vsel %vm428_vm6, %v6364_v61, %v6193_v58  ;;  %v1082_v6 = vsel %vm11473_vm5, %v1072_v19, -inf  ;;  %vm11474_vm4 = vcmp.ge.s32.totalorder %v4849_v44, 0  ;;  %v11481_v19 = vld [vmem:[#allocation16_spill] sm:$0xff] }
 0x3e2   : > { %11466 = vst [vmem:[#allocation20_spill] sm:$0xff] %v6331_v18  ;;  %1485 = vrot.lane.b32.xlu1 %v6329_v23, %s4640_s23  ;;  %v6366_v48 = vmax.f32 %v1436_v32, %v1468_v62  ;;  %v1050_v7 = vmax.f32 %v1010_v36, %v1042_v55  ;;  %v1001_v33 = vsel %vm11474_vm4, %v991_v17, -inf  ;;  %vm11475_vm2 = vcmp.lt.s32.totalorder %v4856_v46, 16 }
 0x3e3   : > { %v1122_v57 = vsel %vm11475_vm2, %v1112_v37, -inf  ;;  %v1031_v12 = vsel %vm11342_vm1, %v6297_v56, %v6169_v41  ;;  %v1009_v2 = vmax.f32 %v5872_v52, %v1001_v33  ;;  %v1075_v16 = vsel %vm383_vm3, %v6187_v60, %v6207_v4  ;;  %v11483_v33 = vld [vmem:[#allocation14_spill] sm:$0xff] }
 0x3e4   : > { %11472 = vst [vmem:[#allocation21_spill] sm:$0xff] %v6366_v48  ;;  %v1090_v39 = vmax.f32 %v1050_v7, %v1082_v6  ;;  %v994_v45 = vsel %vm11343_vm0, %v6159_v63, %v6221_v5  ;;  %v995_v20 = vsel %vm11343_vm0, %v6157_v22, %v6191_v14  ;;  %v1115_v52 = vsel %vm428_vm6, %v6177_v40, %v6271_v21 }
 0x3e5   : > { %vm11476_vm7 = vcmp.ge.s32.totalorder %v4858_v47, 0  ;;  %vm11477_vm5 = vcmp.lt.s32.totalorder %v4866_v51, 16  ;;  %vm11478_vm4 = vcmp.ge.s32.totalorder %v4824_v35, 0  ;;  %v1034_v14 = vsel %vm11342_vm1, %v6173_v28, %v6189_v43 }
 0x3e6   : > { %v6404_v59 = vmax.f32 %v1090_v39, %v1122_v57  ;;  %v1041_v34 = vsel %vm11476_vm7, %v1031_v12, -inf  ;;  %v1081_v49 = vsel %vm11477_vm5, %v1075_v16, -inf  ;;  %v998_v22 = vsel %vm11478_vm4, %v994_v45, -inf  ;;  %vm11479_vm2 = vmmov %vm11478_vm4  ;;  %v11485_v45 = vld [vmem:[#allocation18_spill] sm:$0xff] }
 0x3e7   : > { %v1049_v62 = vmax.f32 %v1009_v2, %v1041_v34  ;;  %v1000_v53 = vsel %vm11479_vm2, %v995_v20, -inf  ;;  %vm11480_vm7 = vcmp.lt.s32.totalorder %v11432_v26, 16  ;;  %v1070_v36 = vsel %vm383_vm3, %v6223_v31, %v6167_v15  ;;  %v6445_v37 = vpop.permute.xlu2 %1481  ;;  %v11489_v20 = vld [vmem:[#allocation34_spill] sm:$0xff] }
 0x3e8   : > { %v1121_v32 = vsel %vm11480_vm7, %v1115_v52, -inf  ;;  %v1006_v17 = vmax.f32 %v11481_v19, %v998_v22  ;;  %vm11482_vm5 = vcmp.ge.s32.totalorder %v4832_v38, 0  ;;  %v1035_v6 = vsel %vm11342_vm1, %v6169_v41, %v6297_v56  ;;  %v11490_v52 = vld [vmem:[#allocation32_spill] sm:$0xff] }
 0x3e9   : > { %1523 = vrot.lane.b32.xlu2 %v6138_v54, %s4641_s24  ;;  %1531 = vrot.lane.b32.xlu0 %v6366_v48, %s4641_s24  ;;  %v1089_v55 = vmax.f32 %v1049_v62, %v1081_v49  ;;  %v1038_v7 = vsel %vm11482_vm5, %v1034_v14, -inf  ;;  %v1008_v57 = vmax.f32 %v11483_v33, %v1000_v53  ;;  %v1071_v39 = vsel %vm383_vm3, %v6207_v4, %v6187_v60  ;;  %vm11486_vm2 = vmmov %vm11482_vm5  ;;  %v11499_v33 = vld [vmem:[#allocation28_spill] sm:$0xff] }
 0x3ea   : > { %1491 = vrot.lane.b32.xlu1 %v6366_v48, %s4640_s23  ;;  %v990_v2 = vsel %vm11343_vm0, %v6221_v5, %v6159_v63  ;;  %vm11484_vm4 = vcmp.lt.s32.totalorder %v4844_v42, 16  ;;  %v997_v41 = vsel %vm11343_vm0, %v11485_v45, %v6257_v30  ;;  %v1046_v56 = vmax.f32 %v1006_v17, %v1038_v7  ;;  %v11498_v7 = vld [vmem:[#allocation26_spill] sm:$0xff] }
 0x3eb   : > { %v6456_v12 = vmax.f32 %v1089_v55, %v1121_v32  ;;  %v1078_v16 = vsel %vm11484_vm4, %v1070_v36, -inf  ;;  %v1111_v4 = vsel %vm428_vm6, %v6271_v21, %v6177_v40  ;;  %v1040_v5 = vsel %vm11486_vm2, %v1035_v6, -inf  ;;  %vm11487_vm7 = vmmov %vm11484_vm4  ;;  %v11488_v40 = vld [vmem:[#allocation31_spill] sm:$0xff]  ;;  %v11494_v32 = vld [vmem:[#allocation30_spill] sm:$0xff] }
 0x3ec   : > { %v1030_v63 = vsel %vm11342_vm1, %v6189_v43, %v6173_v28  ;;  %v1080_v60 = vsel %vm11487_vm7, %v1071_v39, -inf  ;;  %v1110_v21 = vsel %vm428_vm6, %v6391_v9, %v11488_v40  ;;  %v1037_v34 = vsel %vm11342_vm1, %v11490_v52, %v11489_v20 }
 0x3ed   : > { %v1048_v49 = vmax.f32 %v1008_v57, %v1040_v5  ;;  %v1086_v22 = vmax.f32 %v1046_v56, %v1078_v16  ;;  %vm11491_vm5 = vcmp.ge.s32.totalorder %v4849_v44, 0  ;;  %vm11492_vm4 = vcmp.ge.s32.totalorder %v4824_v35, 0 }
 0x3ee   : > { %v999_v28 = vsel %vm11491_vm5, %v990_v2, -inf  ;;  %v1004_v43 = vsel %vm11492_vm4, %v997_v41, -inf  ;;  %vm11493_vm2 = vcmp.lt.s32.totalorder %v4856_v46, 16  ;;  %v1074_v53 = vsel %vm383_vm3, %v6167_v15, %v6223_v31 }
 0x3ef   : > { %v1120_v14 = vsel %vm11493_vm2, %v1111_v4, -inf  ;;  %v1088_v62 = vmax.f32 %v1048_v49, %v1080_v60  ;;  %v1073_v55 = vsel %vm383_vm3, %v6251_v1, %v11494_v32  ;;  %vm11495_vm7 = vcmp.ge.s32.totalorder %v4858_v47, 0  ;;  %vm11496_vm5 = vmmov %vm11493_vm2  ;;  %v1101_v16 = vpop.permute.xlu2 %1100  ;;  %v11509_v49 = vld [vmem:[#allocation29_spill] sm:$0xff] }
 0x3f0   : > { %v1039_v36 = vsel %vm11495_vm7, %v1030_v63, -inf  ;;  %v1118_v19 = vsel %vm11496_vm5, %v1110_v21, -inf  ;;  %vm11497_vm4 = vcmp.ge.s32.totalorder %v4832_v38, 0  ;;  %v1007_v6 = vmax.f32 %v11498_v7, %v999_v28  ;;  %v11502_v63 = vld [vmem:[#allocation33_spill] sm:$0xff]  ;;  %v11510_v28 = vld [vmem:[#allocation27_spill] sm:$0xff] }
 0x3f1   : > { %1529 = vrot.lane.b32.xlu2 %v6153_v13, %s4641_s24  ;;  %1138 = vrot.lane.b32.xlu0 %v6404_v59, %s4640_s23  ;;  %v1044_v17 = vsel %vm11497_vm4, %v1037_v34, -inf  ;;  %v1012_v57 = vmax.f32 %v11499_v33, %v1004_v43  ;;  %v6516_v39 = vmax.f32 %v1086_v22, %v1118_v19  ;;  %v6518_v15 = vmax.f32 %v1088_v62, %v1120_v14 }
 0x3f2   : > { %1521 = vrot.lane.b32.xlu1 %v6100_v10, %s4641_s24  ;;  %v993_v31 = vsel %vm11343_vm0, %v6257_v30, %v11485_v45  ;;  %vm11500_vm2 = vcmp.lt.s32.totalorder %v4866_v51, 16  ;;  %vm11501_vm7 = vcmp.lt.s32.totalorder %v4844_v42, 16  ;;  %v992_v56 = vsel %vm11343_vm0, %v6183_v27, %v6165_v50 }
 0x3f3   : > { %v1079_v2 = vsel %vm11500_vm2, %v1074_v53, -inf  ;;  %v1084_v41 = vsel %vm11501_vm7, %v1073_v55, -inf  ;;  %v1047_v4 = vmax.f32 %v1007_v6, %v1039_v36  ;;  %v1052_v5 = vmax.f32 %v1012_v57, %v1044_v17  ;;  %v6636_v57 = vpop.permute.xlu0 %1483 }
 0x3f4   : > { %v1114_v30 = vsel %vm428_vm6, %v11488_v40, %v6391_v9  ;;  %v1033_v45 = vsel %vm11342_vm1, %v11489_v20, %v11490_v52  ;;  %v1032_v50 = vsel %vm11342_vm1, %v6197_v8, %v6161_v25  ;;  %v1113_v60 = vsel %vm428_vm6, %v1101_v16, %v11502_v63  ;;  %11515 = vst [vmem:[#allocation15_spill] sm:$0xff] %v6636_v57 }
 0x3f5   : > { %v1087_v27 = vmax.f32 %v1047_v4, %v1079_v2  ;;  %v1092_v21 = vmax.f32 %v1052_v5, %v1084_v41  ;;  %vm11503_vm5 = vcmp.ge.s32.totalorder %v4849_v44, 0  ;;  %v1077_v20 = vsel %vm383_vm3, %v11494_v32, %v6251_v1 }
 0x3f6   : > { %v1005_v9 = vsel %vm11503_vm5, %v993_v31, -inf  ;;  %vm11504_vm4 = vmmov %vm11503_vm5  ;;  %vm11505_vm2 = vcmp.lt.s32.totalorder %v11432_v26, 16  ;;  %vm11506_vm7 = vcmp.ge.s32.totalorder %v4858_v47, 0  ;;  %vm11508_vm0 = vcmp.lt.s32.totalorder %v4856_v46, 16 }
 0x3f7   : > { %v1003_v40 = vsel %vm11504_vm4, %v992_v56, -inf  ;;  %v1119_v25 = vsel %vm11505_vm2, %v1114_v30, -inf  ;;  %v1045_v8 = vsel %vm11506_vm7, %v1033_v45, -inf  ;;  %vm11507_vm1 = vmmov %vm11506_vm7  ;;  %v1124_v34 = vsel %vm11508_vm0, %v1113_v60, -inf }
 0x3f8   : > { %v1043_v52 = vsel %vm11507_vm1, %v1032_v50, -inf  ;;  %v1013_v22 = vmax.f32 %v11509_v49, %v1005_v9  ;;  %v1011_v43 = vmax.f32 %v11510_v28, %v1003_v40  ;;  %v6571_v14 = vmax.f32 %v1087_v27, %v1119_v25  ;;  %vm11513_vm1 = vmmov %vm11505_vm2 }
 0x3f9   : > { %1535 = vrot.lane.b32.xlu2 %v6255_v3, %s4641_s24  ;;  %1144 = vrot.lane.b32.xlu0 %v6456_v12, %s4640_s23  ;;  %v6573_v62 = vmax.f32 %v1092_v21, %v1124_v34  ;;  %v1076_v1 = vsel %vm383_vm3, %v6175_v24, %v6350_v0  ;;  %vm11511_vm5 = vcmp.lt.s32.totalorder %v4866_v51, 16  ;;  %v1116_v36 = vsel %vm428_vm6, %v6193_v58, %v6364_v61  ;;  %vm11514_vm4 = vmmov %vm11513_vm1 }
 0x3fa   : > { %1527 = vrot.lane.b32.xlu1 %v6253_v11, %s4641_s24  ;;  %v1085_v53 = vsel %vm11511_vm5, %v1077_v20, -inf  ;;  %v1053_v32 = vmax.f32 %v1013_v22, %v1045_v8  ;;  %v1051_v55 = vmax.f32 %v1011_v43, %v1043_v52  ;;  %v1117_v24 = vsel %vm428_vm6, %v11502_v63, %v1101_v16  ;;  %vm11512_vm0 = vmmov %vm11511_vm5 }
 0x3fb   : > { %v1083_v19 = vsel %vm11512_vm0, %v1076_v1, -inf  ;;  %v1123_v58 = vsel %vm11513_vm1, %v1116_v36, -inf  ;;  %v1125_v17 = vsel %vm11514_vm4, %v1117_v24, -inf  ;;  %v6652_v2 = vpop.permute.xlu0 %1489  ;;  %vm11533_vm2 = vcmp.lt.s32.totalorder %v4812_v29, 2 }
 0x3fc   : > { %v1093_v0 = vmax.f32 %v1053_v32, %v1085_v53  ;;  %v1091_v61 = vmax.f32 %v1051_v55, %v1083_v19  ;;  %vm11534_vm7 = vcmp.lt.s32.totalorder %v4812_v29, 1  ;;  %vm11541_vm4 = vmmov %vm11533_vm2 }
 0x3fe   : > { %v6600_v7 = vmax.f32 %v1093_v0, %v1125_v17  ;;  %v6602_v6 = vmax.f32 %v1091_v61, %v1123_v58 }
 0x401   : > { %1136 = vrot.lane.b32.xlu2 %v6518_v15, %s4640_s23  ;;  %1174 = vrot.lane.b32.xlu0 %v6516_v39, %s4641_s24 }
 0x402   : > { %1533 = vrot.lane.b32.xlu1 %v6331_v18, %s4641_s24 }
 0x409   : > { %1142 = vrot.lane.b32.xlu2 %v6571_v14, %s4640_s23  ;;  %1180 = vrot.lane.b32.xlu0 %v6573_v62, %s4641_s24 }
 0x40a   : > { %1134 = vrot.lane.b32.xlu1 %v6516_v39, %s4640_s23 }
 0x411   : > { %1148 = vrot.lane.b32.xlu2 %v6600_v7, %s4640_s23  ;;  %1186 = vrot.lane.b32.xlu0 %v6602_v6, %s4641_s24 }
 0x412   : > { %1140 = vrot.lane.b32.xlu1 %v6573_v62, %s4640_s23 }
 0x419   : > { %1178 = vrot.lane.b32.xlu2 %v6404_v59, %s4641_s24  ;;  %1216 = vrot.lane.b32.xlu0 %v6518_v15, %s4642_s25 }
 0x41a   : > { %1146 = vrot.lane.b32.xlu1 %v6602_v6, %s4640_s23 }
 0x421   : > { %1184 = vrot.lane.b32.xlu2 %v6456_v12, %s4641_s24  ;;  %1222 = vrot.lane.b32.xlu0 %v6571_v14, %s4642_s25 }
 0x422   : > { %1176 = vrot.lane.b32.xlu1 %v6518_v15, %s4641_s24 }
 0x429   : > { %1214 = vrot.lane.b32.xlu2 %v6516_v39, %s4642_s25  ;;  %1228 = vrot.lane.b32.xlu0 %v6600_v7, %s4642_s25  ;;  %v6634_v33 = vpop.permute.xlu2 %1487 }
 0x42a   : > { %1182 = vrot.lane.b32.xlu1 %v6571_v14, %s4641_s24 }
 0x431   : > { %1220 = vrot.lane.b32.xlu2 %v6573_v62, %s4642_s25  ;;  %1258 = vrot.lane.b32.xlu0 %v6404_v59, %s4643_s26 }
 0x432   : > { %1188 = vrot.lane.b32.xlu1 %v6600_v7, %s4641_s24 }
 0x439   : > { %1226 = vrot.lane.b32.xlu2 %v6602_v6, %s4642_s25  ;;  %1264 = vrot.lane.b32.xlu0 %v6456_v12, %s4643_s26 }
 0x43a   : > { %1218 = vrot.lane.b32.xlu1 %v6404_v59, %s4642_s25 }
 0x43b   : > { %v6644_v31 = vpop.permute.xlu2 %1493 }
 0x441   : > { %1256 = vrot.lane.b32.xlu2 %v6518_v15, %s4643_s26  ;;  %1561 = vrot.lane.b32.xlu0 %v6100_v10, %s4642_s25  ;;  %v6662_v41 = vpop.permute.xlu0 %1495 }
 0x442   : > { %1224 = vrot.lane.b32.xlu1 %v6456_v12, %s4642_s25 }
 0x443   : > { %v6654_v16 = vpop.permute.xlu2 %1523 }
 0x444   : > { %11516 = vst [vmem:[#allocation22_spill] sm:$0xff] %v6654_v16 }
 0x449   : > { %1262 = vrot.lane.b32.xlu2 %v6571_v14, %s4643_s26  ;;  %1567 = vrot.lane.b32.xlu0 %v6253_v11, %s4642_s25 }
 0x44a   : > { %1254 = vrot.lane.b32.xlu1 %v6516_v39, %s4643_s26 }
 0x44b   : > { %v6664_v56 = vpop.permute.xlu2 %1529 }
 0x451   : > { %1268 = vrot.lane.b32.xlu2 %v6600_v7, %s4643_s26  ;;  %1573 = vrot.lane.b32.xlu0 %v6331_v18, %s4642_s25 }
 0x452   : > { %1260 = vrot.lane.b32.xlu1 %v6573_v62, %s4643_s26 }
 0x453   : > { %v6672_v4 = vpop.permute.xlu2 %1535  ;;  %v6674_v5 = vpop.permute.xlu0 %1525 }
 0x454   : > { %v6676_v30 = vpop.permute.xlu1 %1485 }
 0x459   : > { %1565 = vrot.lane.b32.xlu2 %v6329_v23, %s4642_s25  ;;  %1603 = vrot.lane.b32.xlu0 %v6138_v54, %s4643_s26 }
 0x45a   : > { %1266 = vrot.lane.b32.xlu1 %v6602_v6, %s4643_s26 }
 0x45b   : > { %v1137_v45 = vpop.permute.xlu2 %1136  ;;  %v6684_v50 = vpop.permute.xlu0 %1531 }
 0x45c   : > { %11517 = vst [vmem:[#allocation17_spill] sm:$0xff] %v6684_v50  ;;  %v6686_v27 = vpop.permute.xlu1 %1491 }
 0x45d   : > { %11518 = vst [vmem:[#allocation24_spill] sm:$0xff] %v6686_v27 }
 0x461   : > { %1571 = vrot.lane.b32.xlu2 %v6366_v48, %s4642_s25  ;;  %1609 = vrot.lane.b32.xlu0 %v6153_v13, %s4643_s26 }
 0x462   : > { %1563 = vrot.lane.b32.xlu1 %v6138_v54, %s4642_s25 }
 0x463   : > { %v1143_v63 = vpop.permute.xlu2 %1142  ;;  %v6694_v60 = vpop.permute.xlu0 %1138 }
 0x464   : > { %v6696_v21 = vpop.permute.xlu1 %1521 }
 0x469   : > { %1601 = vrot.lane.b32.xlu2 %v6100_v10, %s4643_s26  ;;  %1615 = vrot.lane.b32.xlu0 %v6255_v3, %s4643_s26 }
 0x46a   : > { %1569 = vrot.lane.b32.xlu1 %v6153_v13, %s4642_s25 }
 0x46b   : > { %v6704_v9 = vpop.permute.xlu2 %1148  ;;  %v1145_v40 = vpop.permute.xlu0 %1144 }
 0x46c   : > { %v6706_v20 = vpop.permute.xlu1 %1527  ;;  %v1155_v47 = vsel %vm473_vm12, %v1145_v40, %v1137_v45  ;;  %v1151_v42 = vsel %vm473_vm12, %v1137_v45, %v1145_v40 }
 0x46d   : > { %v1160_v35 = vsel %vm230_vm14, %v1155_v47, -inf  ;;  %v1169_v57 = vmax.f32 %v6456_v12, %v1151_v42 }
 0x46e   : > { %v1168_v27 = vmax.f32 %v6518_v15, %v1160_v35 }
 0x471   : > { %1607 = vrot.lane.b32.xlu2 %v6253_v11, %s4643_s26 }
 0x472   : > { %1575 = vrot.lane.b32.xlu1 %v6255_v3, %s4642_s25 }
 0x473   : > { %v6712_v25 = vpop.permute.xlu2 %1178  ;;  %v1175_v8 = vpop.permute.xlu0 %1174 }
 0x474   : > { %v6714_v52 = vpop.permute.xlu1 %1533 }
 0x475   : > { %11519 = vst [vmem:[#allocation25_spill] sm:$0xff] %v6714_v52 }
 0x479   : > { %1613 = vrot.lane.b32.xlu2 %v6331_v18, %s4643_s26 }
 0x47a   : > { %1605 = vrot.lane.b32.xlu1 %v6329_v23, %s4643_s26 }
 0x47b   : > { %v6720_v34 = vpop.permute.xlu0 %1180  ;;  %v1185_v22 = vpop.permute.xlu2 %1184 }
 0x47c   : > { %v1135_v49 = vpop.permute.xlu1 %1134 }
 0x47d   : > { %v1154_v50 = vsel %vm473_vm12, %v1143_v63, %v1135_v49  ;;  %v1150_v23 = vsel %vm473_vm12, %v1135_v49, %v1143_v63 }
 0x47e   : > { %v1158_v47 = vsel %vm230_vm14, %v1154_v50, -inf }
 0x47f   : > { %v1166_v15 = vmax.f32 %v6516_v39, %v1158_v47 }
 0x482   : > { %1611 = vrot.lane.b32.xlu1 %v6366_v48, %s4643_s26 }
 0x483   : > { %v6724_v28 = vpop.permute.xlu0 %1186  ;;  %v1215_v1 = vpop.permute.xlu2 %1214 }
 0x484   : > { %v1141_v43 = vpop.permute.xlu1 %1140 }
 0x48b   : > { %v1217_v53 = vpop.permute.xlu0 %1216  ;;  %v6728_v55 = vpop.permute.xlu2 %1220 }
 0x48c   : > { %v6726_v32 = vpop.permute.xlu1 %1146 }
 0x493   : > { %v1223_v36 = vpop.permute.xlu0 %1222  ;;  %v6730_v0 = vpop.permute.xlu2 %1226 }
 0x494   : > { %v1177_v24 = vpop.permute.xlu1 %1176 }
 0x495   : > { %v1195_v46 = vsel %vm518_vm13, %v1185_v22, %v1177_v24  ;;  %v1191_v16 = vsel %vm518_vm13, %v1177_v24, %v1185_v22 }
 0x496   : > { %v1200_v18 = vsel %vm238_vm15, %v1195_v46, -inf  ;;  %v1209_v22 = vmax.f32 %v1169_v57, %v1191_v16 }
 0x497   : > { %v1208_v52 = vmax.f32 %v1168_v27, %v1200_v18  ;;  %v1167_v27 = vmax.f32 %v6571_v14, %v1150_v23  ;;  %v1230_v23 = vsel %vm563_vm11, %v1215_v1, %v1223_v36 }
 0x49b   : > { %v6732_v19 = vpop.permute.xlu0 %1228  ;;  %v1257_v26 = vpop.permute.xlu2 %1256 }
 0x49c   : > { %v1183_v58 = vpop.permute.xlu1 %1182 }
 0x49d   : > { %v1194_v45 = vsel %vm518_vm13, %v1183_v58, %v1175_v8  ;;  %v1190_v18 = vsel %vm518_vm13, %v1175_v8, %v1183_v58  ;;  %v1234_v58 = vsel %vm563_vm11, %v1223_v36, %v1215_v1 }
 0x49e   : > { %v1198_v46 = vsel %vm238_vm15, %v1194_v45, -inf }
 0x49f   : > { %v1206_v39 = vmax.f32 %v1166_v15, %v1198_v46  ;;  %v1239_v46 = vsel %vm249_vm10, %v1234_v58, -inf }
 0x4a3   : > { %v6734_v61 = vpop.permute.xlu0 %1258  ;;  %v1263_v48 = vpop.permute.xlu2 %1262 }
 0x4a4   : > { %v1189_v17 = vpop.permute.xlu1 %1188 }
 0x4ab   : > { %v1265_v51 = vpop.permute.xlu0 %1264 }
 0x4ac   : > { %v6738_v44 = vpop.permute.xlu1 %1218  ;;  %v1275_v35 = vsel %vm608_vm9, %v1265_v51, %v1257_v26  ;;  %v1271_v63 = vsel %vm608_vm9, %v1257_v26, %v1265_v51  ;;  %v1197_v51 = vsel %vm518_vm13, %v1189_v17, %v6720_v34 }
 0x4ad   : > { %v1281_v47 = vsel %vm257_vm8, %v1275_v35, -inf }
 0x4b3   : > { %v6758_v40 = vpop.permute.xlu0 %1561 }
 0x4b4   : > { %v1225_v24 = vpop.permute.xlu1 %1224 }
 0x4b5   : > { %v1231_v42 = vsel %vm563_vm11, %v1217_v53, %v1225_v24  ;;  %v1235_v12 = vsel %vm563_vm11, %v1225_v24, %v1217_v53  ;;  %v1157_v53 = vsel %vm473_vm12, %v6704_v9, %v1141_v43  ;;  %v1269_v24 = vpop.permute.xlu2 %1268 }
 0x4b6   : > { %v1241_v16 = vsel %vm249_vm10, %v1235_v12, -inf  ;;  %v1248_v50 = vmax.f32 %v1208_v52, %v1231_v42  ;;  %v1207_v52 = vmax.f32 %v1167_v27, %v1190_v18  ;;  %v1164_v26 = vsel %vm230_vm14, %v1157_v53, -inf }
 0x4b7   : > { %v1249_v49 = vmax.f32 %v1209_v22, %v1241_v16  ;;  %v1153_v22 = vsel %vm473_vm12, %v1141_v43, %v6704_v9  ;;  %v1246_v12 = vmax.f32 %v1206_v39, %v1230_v23  ;;  %v1204_v18 = vsel %vm238_vm15, %v1197_v51, -inf }
 0x4b8   : > { %v1288_v8 = vmax.f32 %v1248_v50, %v1271_v63  ;;  %v1247_v15 = vmax.f32 %v1207_v52, %v1239_v46  ;;  %v1172_v16 = vmax.f32 %v6573_v62, %v1164_v26  ;;  %v1193_v9 = vsel %vm518_vm13, %v6720_v34, %v1189_v17 }
 0x4b9   : > { %v1289_v42 = vmax.f32 %v1249_v49, %v1281_v47  ;;  %v1173_v27 = vmax.f32 %v6600_v7, %v1153_v22  ;;  %v1156_v49 = vsel %vm473_vm12, %v6726_v32, %v6694_v60  ;;  %v1233_v7 = vsel %vm563_vm11, %v6728_v55, %v6732_v19 }
 0x4ba   : > { %4446 = vst [vmem:[%s4680_s18 + $0x90] sm:$0xff] %v1288_v8  ;;  %v1212_v53 = vmax.f32 %v1172_v16, %v1204_v18  ;;  %v1162_v34 = vsel %vm230_vm14, %v1156_v49, -inf  ;;  %v1152_v39 = vsel %vm473_vm12, %v6694_v60, %v6726_v32  ;;  %v1196_v60 = vsel %vm518_vm13, %v6724_v28, %v6712_v25 }
 0x4bb   : > { %4447 = vst [vmem:[%s4680_s18 + $0x98] sm:$0xff] %v1289_v42  ;;  %v6794_v14 = vpop.permute.xlu0 %1567  ;;  %v1213_v62 = vmax.f32 %v1173_v27, %v1193_v9  ;;  %v1170_v32 = vmax.f32 %v6404_v59, %v1162_v34  ;;  %v1171_v23 = vmax.f32 %v6602_v6, %v1152_v39  ;;  %v1236_v22 = vsel %vm563_vm11, %v6730_v0, %v6738_v44 }
 0x4bc   : > { %v1255_v35 = vpop.permute.xlu1 %1254  ;;  %v1252_v58 = vmax.f32 %v1212_v53, %v1233_v7  ;;  %v1232_v59 = vsel %vm563_vm11, %v6738_v44, %v6730_v0  ;;  %v1192_v6 = vsel %vm518_vm13, %v6712_v25, %v6724_v28  ;;  %v1497_v49 = vsel %vm473_vm12, %v6445_v37, %v6652_v2 }
 0x4bd   : > { %v1270_v1 = vsel %vm608_vm9, %v1255_v35, %v1263_v48  ;;  %v1274_v36 = vsel %vm608_vm9, %v1263_v48, %v1255_v35  ;;  %v1237_v48 = vsel %vm563_vm11, %v6732_v19, %v6728_v55  ;;  %v6830_v17 = vpop.permute.xlu2 %1565  ;;  %v1537_v7 = vsel %vm518_vm13, %v6696_v21, %v6664_v56 }
 0x4be   : > { %v1279_v43 = vsel %vm257_vm8, %v1274_v36, -inf  ;;  %v1286_v50 = vmax.f32 %v1246_v12, %v1270_v1  ;;  %v1245_v47 = vsel %vm249_vm10, %v1237_v48, -inf  ;;  %v1243_v12 = vsel %vm249_vm10, %v1236_v22, -inf }
 0x4bf   : > { %v1287_v63 = vmax.f32 %v1247_v15, %v1279_v43  ;;  %v1253_v42 = vmax.f32 %v1213_v62, %v1245_v47  ;;  %v1211_v15 = vmax.f32 %v1171_v23, %v1192_v6  ;;  %v1514_v39 = vmax.f32 %v6153_v13, %v1497_v49 }
 0x4c0   : > { %4444 = vst [vmem:[%s4680_s18 + $0x80] sm:$0xff] %v1286_v50  ;;  %v1501_v50 = vsel %vm473_vm12, %v6652_v2, %v6445_v37  ;;  %v1504_v47 = vsel %vm473_vm12, %v6662_v41, %v6634_v33  ;;  %v1544_v13 = vsel %vm518_vm13, %v6672_v4, %v6706_v20 }
 0x4c1   : > { %4445 = vst [vmem:[%s4680_s18 + $0x88] sm:$0xff] %v1287_v63  ;;  %v1251_v36 = vmax.f32 %v1211_v15, %v1243_v12  ;;  %v1505_v63 = vsel %vm230_vm14, %v1501_v50, -inf  ;;  %v1551_v23 = vsel %vm238_vm15, %v1544_v13, -inf  ;;  %v11527_v50 = vld [vmem:[#allocation24_spill] sm:$0xff]  ;;  %v11529_v13 = vld [vmem:[#allocation19_spill] sm:$0xff] }
 0x4c2   : > { %v1513_v34 = vmax.f32 %v6100_v10, %v1505_v63 }
 0x4c3   : > { %v6838_v52 = vpop.permute.xlu0 %1573 }
 0x4c4   : > { %v1261_v8 = vpop.permute.xlu1 %1260 }
 0x4c5   : > { %v1273_v55 = vsel %vm608_vm9, %v1261_v8, %v1269_v24  ;;  %v1277_v19 = vsel %vm608_vm9, %v1269_v24, %v1261_v8  ;;  %v1202_v24 = vsel %vm238_vm15, %v1196_v60, -inf  ;;  %v6876_v16 = vpop.permute.xlu2 %1571  ;;  %v1554_v8 = vmax.f32 %v1514_v39, %v1537_v7 }
 0x4c6   : > { %v1285_v51 = vsel %vm257_vm8, %v1277_v19, -inf  ;;  %v1292_v26 = vmax.f32 %v1252_v58, %v1273_v55  ;;  %v1210_v35 = vmax.f32 %v1170_v32, %v1202_v24  ;;  %v1511_v55 = vsel %vm230_vm14, %v1504_v47, -inf }
 0x4c7   : > { %v1293_v46 = vmax.f32 %v1253_v42, %v1285_v51  ;;  %v1503_v32 = vsel %vm473_vm12, %v6644_v31, %v6676_v30 }
 0x4c8   : > { %4450 = vst [vmem:[%s4680_s18 + $0xb0] sm:$0xff] %v1292_v26  ;;  %v1250_v18 = vmax.f32 %v1210_v35, %v1232_v59  ;;  %v1509_v6 = vsel %vm230_vm14, %v1503_v32, -inf  ;;  %v11524_v35 = vld [vmem:[#allocation25_spill] sm:$0xff] }
 0x4c9   : > { %4451 = vst [vmem:[%s4680_s18 + $0xb8] sm:$0xff] %v1293_v46  ;;  %v1519_v46 = vmax.f32 %v6253_v11, %v1511_v55  ;;  %v1539_v63 = vsel %vm518_vm13, %v6674_v5, %v11524_v35  ;;  %v11531_v55 = vld [vmem:[#allocation17_spill] sm:$0xff] }
 0x4ca   : > { %v11532_v32 = vld [vmem:[#allocation21_spill] sm:$0xff] }
 0x4cb   : > { %v6880_v9 = vpop.permute.xlu0 %1603  ;;  %v1559_v11 = vmax.f32 %v1519_v46, %v1551_v23 }
 0x4cc   : > { %v1267_v1 = vpop.permute.xlu1 %1266 }
 0x4cd   : > { %v1272_v44 = vsel %vm608_vm9, %v6734_v61, %v1267_v1  ;;  %v1276_v0 = vsel %vm608_vm9, %v1267_v1, %v6734_v61  ;;  %v1541_v61 = vsel %vm518_vm13, %v6664_v56, %v6696_v21  ;;  %v1602_v53 = vpop.permute.xlu2 %1601  ;;  %v1499_v1 = vsel %vm473_vm12, %v6676_v30, %v6644_v31  ;;  %v11526_v30 = vld [vmem:[#allocation15_spill] sm:$0xff] }
 0x4ce   : > { %v1283_v25 = vsel %vm257_vm8, %v1276_v0, -inf  ;;  %v1290_v28 = vmax.f32 %v1250_v18, %v1272_v44  ;;  %v1545_v62 = vsel %vm238_vm15, %v1541_v61, -inf  ;;  %v1502_v61 = vsel %vm473_vm12, %v11527_v50, %v11526_v30 }
 0x4cf   : > { %v1291_v43 = vmax.f32 %v1251_v36, %v1283_v25  ;;  %v1553_v37 = vmax.f32 %v1513_v34, %v1545_v62  ;;  %v11525_v36 = vld [vmem:[#allocation23_spill] sm:$0xff]  ;;  %v1579_v34 = vsel %vm563_vm11, %v6830_v17, %v6838_v52 }
 0x4d0   : > { %4448 = vst [vmem:[%s4680_s18 + $0xa0] sm:$0xff] %v1290_v28  ;;  %v1517_v44 = vmax.f32 %v11525_v36, %v1509_v6 }
 0x4d1   : > { %4449 = vst [vmem:[%s4680_s18 + $0xa8] sm:$0xff] %v1291_v43 }
 0x4d3   : > { %v1610_v48 = vpop.permute.xlu0 %1609 }
 0x4d4   : > { %v6888_v27 = vpop.permute.xlu1 %1563  ;;  %v1621_v58 = vsel %vm608_vm9, %v1610_v48, %v1602_v53  ;;  %v1617_v19 = vsel %vm608_vm9, %v1602_v53, %v1610_v48  ;;  %v11528_v48 = vld [vmem:[#allocation20_spill] sm:$0xff] }
 0x4d5   : > { %v1626_v51 = vsel %vm257_vm8, %v1621_v58, -inf  ;;  %v1518_v62 = vmax.f32 %v11528_v48, %v1499_v1  ;;  %v1582_v23 = vsel %vm563_vm11, %v6876_v16, %v6888_v27 }
 0x4d6   : > { %v1588_v6 = vsel %vm249_vm10, %v1582_v23, -inf }
 0x4db   : > { %v1616_v24 = vpop.permute.xlu0 %1615 }
 0x4dc   : > { %v1570_v2 = vpop.permute.xlu1 %1569 }
 0x4dd   : > { %v1577_v10 = vsel %vm563_vm11, %v6758_v40, %v1570_v2  ;;  %v1581_v56 = vsel %vm563_vm11, %v1570_v2, %v6758_v40  ;;  %v1500_v40 = vsel %vm473_vm12, %v6634_v33, %v6662_v41  ;;  %v1540_v33 = vsel %vm518_vm13, %v6706_v20, %v6672_v4  ;;  %v1608_v41 = vpop.permute.xlu2 %1607 }
 0x4de   : > { %v1586_v21 = vsel %vm249_vm10, %v1581_v56, -inf  ;;  %v1593_v42 = vmax.f32 %v1553_v37, %v1577_v10  ;;  %v1520_v59 = vmax.f32 %v6255_v3, %v1500_v40  ;;  %v1543_v4 = vsel %vm518_vm13, %v11524_v35, %v6674_v5 }
 0x4df   : > { %v1594_v60 = vmax.f32 %v1554_v8, %v1586_v21  ;;  %v1624_v15 = vsel %vm608_vm9, %v1616_v24, %v1608_v41  ;;  %v1549_v28 = vsel %vm238_vm15, %v1543_v4, -inf  ;;  %v1620_v43 = vsel %vm608_vm9, %v1608_v41, %v1616_v24 }
 0x4e0   : > { %v6940_v26 = vmax.f32 %v1593_v42, %v1617_v19  ;;  %v1560_v12 = vmax.f32 %v1520_v59, %v1540_v33  ;;  %v1632_v49 = vsel %vm257_vm8, %v1624_v15, -inf  ;;  %v1557_v39 = vmax.f32 %v1517_v44, %v1549_v28  ;;  %v11530_v42 = vld [vmem:[#allocation22_spill] sm:$0xff] }
 0x4e1   : > { %v6944_v22 = vmax.f32 %v1594_v60, %v1626_v51  ;;  %v1507_v5 = vsel %vm230_vm14, %v1502_v61, -inf  ;;  %v1558_v37 = vmax.f32 %v1518_v62, %v1539_v63  ;;  %v1542_v19 = vsel %vm518_vm13, %v11531_v55, %v11530_v42 }
 0x4e2   : > { %4468 = vst [vmem:[%s4680_s18 + $0x100] sm:$0xff] %v6940_v26  ;;  %1650 = vrot.lane.b32.xlu1 %v6940_v26, %s4636_s19  ;;  %v1515_v21 = vmax.f32 %v11529_v13, %v1507_v5  ;;  %v1547_v33 = vsel %vm238_vm15, %v1542_v19, -inf  ;;  %v1578_v41 = vsel %vm563_vm11, %v6888_v27, %v6876_v16  ;;  %v1538_v24 = vsel %vm518_vm13, %v11530_v42, %v11531_v55  ;;  %v11537_v13 = vld [vmem:[#allocation3_spill] sm:$0xff]  ;;  %v11539_v55 = vld [vmem:[#allocation4_spill] sm:$0xff] }
 0x4e3   : > { %4469 = vst [vmem:[%s4680_s18 + $0x108] sm:$0xff] %v6944_v22  ;;  %vm11538_vm0 = vcmp.ge.s32.totalorder %v11537_v13, 0  ;;  %vm11540_vm1 = vcmp.lt.s32.totalorder %v11539_v55, 16 }
 0x4e4   : > { %v1576_v20 = vpop.permute.xlu1 %1575  ;;  %v1555_v59 = vmax.f32 %v1515_v21, %v1547_v33 }
 0x4e5   : > { %v1580_v3 = vsel %vm563_vm11, %v6794_v14, %v1576_v20  ;;  %v1584_v18 = vsel %vm563_vm11, %v1576_v20, %v6794_v14  ;;  %v1583_v14 = vsel %vm563_vm11, %v6838_v52, %v6830_v17  ;;  %v1498_v17 = vsel %vm473_vm12, %v11526_v30, %v11527_v50  ;;  %v1614_v2 = vpop.permute.xlu2 %1613 }
 0x4e6   : > { %v1592_v0 = vsel %vm249_vm10, %v1584_v18, -inf  ;;  %v1599_v25 = vmax.f32 %v1559_v11, %v1580_v3  ;;  %v1590_v47 = vsel %vm249_vm10, %v1583_v14, -inf  ;;  %v1597_v52 = vmax.f32 %v1557_v39, %v1579_v34 }
 0x4e7   : > { %v1600_v31 = vmax.f32 %v1560_v12, %v1592_v0  ;;  %v1598_v58 = vmax.f32 %v1558_v37, %v1590_v47  ;;  %v1516_v51 = vmax.f32 %v11532_v32, %v1498_v17  ;;  %v1595_v35 = vmax.f32 %v1555_v59, %v1578_v41 }
 0x4e8   : > { %v6997_v53 = vmax.f32 %v1599_v25, %v1620_v43 }
 0x4e9   : > { %v7004_v7 = vmax.f32 %v1600_v31, %v1632_v49  ;;  %v1556_v11 = vmax.f32 %v1516_v51, %v1538_v24 }
 0x4ea   : > { %4474 = vst [vmem:[%s4680_s18 + $0x130] sm:$0xff] %v6997_v53  ;;  %1656 = vrot.lane.b32.xlu1 %v6997_v53, %s4636_s19 }
 0x4eb   : > { %4475 = vst [vmem:[%s4680_s18 + $0x138] sm:$0xff] %v7004_v7  ;;  %v1596_v20 = vmax.f32 %v1556_v11, %v1588_v6  ;;  %v11543_v11 = vld [vmem:[#allocation6_spill] sm:$0xff] }
 0x4ec   : > { %v1606_v8 = vpop.permute.xlu1 %1605 }
 0x4ed   : > { %v1619_v10 = vsel %vm608_vm9, %v1606_v8, %v1614_v2  ;;  %v1623_v56 = vsel %vm608_vm9, %v1614_v2, %v1606_v8  ;;  %v11535_v8 = vld [vmem:[#allocation2_spill] sm:$0xff] }
 0x4ee   : > { %v1630_v60 = vsel %vm257_vm8, %v1623_v56, -inf  ;;  %v7031_v40 = vmax.f32 %v1597_v52, %v1619_v10  ;;  %vm11536_vm5 = vcmp.ge.s32.totalorder %v11535_v8, 0 }
 0x4ef   : > { %v7038_v46 = vmax.f32 %v1598_v58, %v1630_v60 }
 0x4f0   : > { %4472 = vst [vmem:[%s4680_s18 + $0x120] sm:$0xff] %v7031_v40  ;;  %1654 = vrot.lane.b32.xlu0 %v7031_v40, %s4636_s19 }
 0x4f1   : > { %4473 = vst [vmem:[%s4680_s18 + $0x128] sm:$0xff] %v7038_v46 }
 0x4f2   : > { %1662 = vrot.lane.b32.xlu1 %v7038_v46, %s4636_s19 }
 0x4f4   : > { %v1612_v4 = vpop.permute.xlu1 %1611 }
 0x4f5   : > { %v1618_v16 = vsel %vm608_vm9, %v6880_v9, %v1612_v4  ;;  %v1622_v27 = vsel %vm608_vm9, %v1612_v4, %v6880_v9 }
 0x4f6   : > { %v1628_v12 = vsel %vm257_vm8, %v1622_v27, -inf  ;;  %v7068_v15 = vmax.f32 %v1595_v35, %v1618_v16 }
 0x4f7   : > { %v7070_v3 = vmax.f32 %v1596_v20, %v1628_v12 }
 0x4f8   : > { %4470 = vst [vmem:[%s4680_s18 + $0x110] sm:$0xff] %v7068_v15  ;;  %1652 = vrot.lane.b32.xlu2 %v7068_v15, %s4636_s19 }
 0x4f9   : > { %4471 = vst [vmem:[%s4680_s18 + $0x118] sm:$0xff] %v7070_v3  ;;  %1660 = vrot.lane.b32.xlu0 %v7070_v3, %s4636_s19 }
 0x4fa   : > { %1692 = vrot.lane.b32.xlu1 %v7068_v15, %s4637_s20 }
 0x500   : > { %1658 = vrot.lane.b32.xlu2 %v6944_v22, %s4636_s19 }
 0x501   : > { %1690 = vrot.lane.b32.xlu0 %v6940_v26, %s4637_s20 }
 0x502   : > { %1698 = vrot.lane.b32.xlu1 %v6944_v22, %s4637_s20 }
 0x508   : > { %1664 = vrot.lane.b32.xlu2 %v7004_v7, %s4636_s19 }
 0x509   : > { %1696 = vrot.lane.b32.xlu0 %v6997_v53, %s4637_s20 }
 0x50a   : > { %1704 = vrot.lane.b32.xlu1 %v7004_v7, %s4637_s20 }
 0x510   : > { %1694 = vrot.lane.b32.xlu2 %v7031_v40, %s4637_s20 }
 0x511   : > { %1702 = vrot.lane.b32.xlu0 %v7038_v46, %s4637_s20 }
 0x512   : > { %1734 = vrot.lane.b32.xlu1 %v7031_v40, %s4638_s21 }
 0x518   : > { %1700 = vrot.lane.b32.xlu2 %v7070_v3, %s4637_s20 }
 0x519   : > { %1732 = vrot.lane.b32.xlu0 %v7068_v15, %s4638_s21 }
 0x51a   : > { %1740 = vrot.lane.b32.xlu1 %v7070_v3, %s4638_s21 }
 0x520   : > { %1730 = vrot.lane.b32.xlu2 %v6940_v26, %s4638_s21 }
 0x521   : > { %1738 = vrot.lane.b32.xlu0 %v6944_v22, %s4638_s21 }
 0x522   : > { %1770 = vrot.lane.b32.xlu1 %v6940_v26, %s4639_s22 }
 0x528   : > { %1736 = vrot.lane.b32.xlu2 %v6997_v53, %s4638_s21 }
 0x529   : > { %1744 = vrot.lane.b32.xlu0 %v7004_v7, %s4638_s21 }
 0x52a   : > { %1776 = vrot.lane.b32.xlu1 %v6997_v53, %s4639_s22 }
 0x530   : > { %1742 = vrot.lane.b32.xlu2 %v7038_v46, %s4638_s21 }
 0x531   : > { %1774 = vrot.lane.b32.xlu0 %v7031_v40, %s4639_s22 }
 0x532   : > { %1782 = vrot.lane.b32.xlu1 %v7038_v46, %s4639_s22 }
 0x538   : > { %1772 = vrot.lane.b32.xlu2 %v7068_v15, %s4639_s22 }
 0x539   : > { %1780 = vrot.lane.b32.xlu0 %v7070_v3, %s4639_s22 }
 0x540   : > { %1778 = vrot.lane.b32.xlu2 %v6944_v22, %s4639_s22 }
 0x548   : > { %1784 = vrot.lane.b32.xlu2 %v7004_v7, %s4639_s22 }
 0x552   : > { %v1653_v9 = vpop.permute.xlu2 %1652 }
 0x554   : > { %v7132_v18 = vpop.permute.xlu1 %1650 }
 0x55a   : > { %v7134_v1 = vpop.permute.xlu2 %1658 }
 0x55b   : > { %v1670_v37 = vsel %vm11533_vm2, %v7134_v1, %v7132_v18 }
 0x55c   : > { %v7136_v36 = vpop.permute.xlu1 %1656  ;;  %v1674_v58 = vsel %vm11536_vm5, %v1670_v37, -inf  ;;  %v11548_v37 = vld [vmem:[#allocation5_spill] sm:$0xff] }
 0x55d   : > { %v1682_v42 = vmax.f32 %v6940_v26, %v1674_v58 }
 0x562   : > { %v7138_v44 = vpop.permute.xlu2 %1664  ;;  %v1655_v0 = vpop.permute.xlu0 %1654 }
 0x563   : > { %v1673_v60 = vsel %vm11541_vm4, %v7138_v44, %v7136_v36  ;;  %vm11545_vm4 = vmmov %vm11534_vm7 }
 0x564   : > { %v1663_v25 = vpop.permute.xlu1 %1662  ;;  %v1680_v59 = vsel %vm11536_vm5, %v1673_v60, -inf }
 0x565   : > { %v1672_v23 = vsel %vm11533_vm2, %v1663_v25, %v1655_v0 }
 0x56a   : > { %v1695_v28 = vpop.permute.xlu2 %1694 }
 0x56b   : > { %v1661_v14 = vpop.permute.xlu0 %1660 }
 0x56c   : > { %v1693_v43 = vpop.permute.xlu1 %1692 }
 0x572   : > { %v1701_v31 = vpop.permute.xlu2 %1700 }
 0x573   : > { %v7140_v30 = vpop.permute.xlu0 %1690 }
 0x574   : > { %v7142_v50 = vpop.permute.xlu1 %1698 }
 0x575   : > { %v1710_v52 = vsel %vm11534_vm7, %v7142_v50, %v7140_v30 }
 0x576   : > { %v1714_v21 = vsel %vm11538_vm0, %v1710_v52, -inf  ;;  %vm11542_vm0 = vmmov %vm11533_vm2 }
 0x577   : > { %v1722_v32 = vmax.f32 %v1682_v42, %v1714_v21  ;;  %v1668_v6 = vsel %vm11542_vm0, %v1655_v0, %v1663_v25  ;;  %vm11546_vm2 = vmmov %vm11536_vm5  ;;  %v1688_v25 = vmax.f32 %v6997_v53, %v1680_v59  ;;  %vm11549_vm5 = vcmp.ge.s32.totalorder %v11548_v37, 0 }
 0x578   : > { %v1678_v12 = vsel %vm11546_vm2, %v1672_v23, -inf  ;;  %v1679_v52 = vsel %vm11549_vm5, %v1668_v6, -inf  ;;  %v1671_v58 = vsel %vm11542_vm0, %v1661_v14, %v1653_v9  ;;  %vm11552_vm2 = vmmov %vm11542_vm0  ;;  %vm11555_vm0 = vcmp.lt.s32.totalorder %v4812_v29, 1 }
 0x579   : > { %v1686_v53 = vmax.f32 %v7031_v40, %v1678_v12 }
 0x57a   : > { %v7144_v61 = vpop.permute.xlu2 %1730 }
 0x57b   : > { %v7146_v63 = vpop.permute.xlu0 %1696 }
 0x57c   : > { %v7148_v49 = vpop.permute.xlu1 %1704 }
 0x57d   : > { %v1713_v33 = vsel %vm11534_vm7, %v7148_v49, %v7146_v63  ;;  %vm11547_vm7 = vcmp.ge.s32.totalorder %v11537_v13, 0 }
 0x57e   : > { %v1720_v0 = vsel %vm11547_vm7, %v1713_v33, -inf }
 0x57f   : > { %v1728_v60 = vmax.f32 %v1688_v25, %v1720_v0  ;;  %v11560_v25 = vld [vmem:[#allocation7_spill] sm:$0xff] }
 0x582   : > { %v7150_v48 = vpop.permute.xlu2 %1736 }
 0x583   : > { %v1703_v62 = vpop.permute.xlu0 %1702 }
 0x584   : > { %v1735_v34 = vpop.permute.xlu1 %1734  ;;  %v1712_v20 = vsel %vm11545_vm4, %v1703_v62, %v1695_v28  ;;  %vm11551_vm4 = vcmp.lt.s32.totalorder %v11539_v55, 16 }
 0x585   : > { %vm11554_vm5 = vmmov %vm11551_vm4 }
 0x58a   : > { %v1743_v39 = vpop.permute.xlu2 %1742 }
 0x58b   : > { %v1733_v47 = vpop.permute.xlu0 %1732 }
 0x58c   : > { %v1741_v5 = vpop.permute.xlu1 %1740 }
 0x592   : > { %v7156_v17 = vpop.permute.xlu2 %1772 }
 0x593   : > { %v7162_v2 = vpop.permute.xlu0 %1738 }
 0x594   : > { %v7166_v10 = vpop.permute.xlu1 %1770  ;;  %v1746_v56 = vsel %vm383_vm3, %v7144_v61, %v7162_v2 }
 0x595   : > { %v1754_v19 = vsel %vm11540_vm1, %v1746_v56, -inf  ;;  %vm11544_vm1 = vcmp.lt.s32.totalorder %v11543_v11, 16  ;;  %v1748_v56 = vsel %vm383_vm3, %v1735_v34, %v1743_v39 }
 0x596   : > { %v1762_v26 = vmax.f32 %v1722_v32, %v1754_v19  ;;  %v1667_v19 = vsel %vm11552_vm2, %v1653_v9, %v1661_v14  ;;  %v1687_v32 = vmax.f32 %v7038_v46, %v1679_v52  ;;  %v1758_v33 = vsel %vm11554_vm5, %v1748_v56, -inf  ;;  %vm11558_vm2 = vmmov %vm11555_vm0 }
 0x597   : > { %vm11561_vm5 = vcmp.ge.s32.totalorder %v11560_v25, 0 }
 0x59a   : > { %v7181_v51 = vpop.permute.xlu2 %1778 }
 0x59b   : > { %v1786_v41 = vsel %vm428_vm6, %v7166_v10, %v7181_v51  ;;  %v7193_v24 = vpop.permute.xlu0 %1744 }
 0x59c   : > { %v1794_v35 = vsel %vm11544_vm1, %v1786_v41, -inf  ;;  %v7201_v4 = vpop.permute.xlu1 %1776  ;;  %v1749_v27 = vsel %vm383_vm3, %v7150_v48, %v7193_v24  ;;  %vm11550_vm1 = vmmov %vm11547_vm7  ;;  %vm11553_vm7 = vcmp.ge.s32.totalorder %v11535_v8, 0  ;;  %v1708_v41 = vsel %vm11555_vm0, %v1695_v28, %v1703_v62 }
 0x59d   : > { %v7205_v16 = vmax.f32 %v1762_v26, %v1794_v35  ;;  %v1718_v21 = vsel %vm11550_vm1, %v1712_v20, -inf  ;;  %v1760_v42 = vsel %vm11551_vm4, %v1749_v27, -inf  ;;  %v1676_v23 = vsel %vm11553_vm7, %v1671_v58, -inf  ;;  %vm11557_vm4 = vmmov %vm11555_vm0 }
 0x59e   : > { %v1726_v59 = vmax.f32 %v1686_v53, %v1718_v21  ;;  %v1768_v6 = vmax.f32 %v1728_v60, %v1760_v42  ;;  %vm11556_vm1 = vcmp.ge.s32.totalorder %v11548_v37, 0  ;;  %v1707_v14 = vsel %vm11557_vm4, %v1693_v43, %v1701_v31  ;;  %vm11564_vm4 = vmmov %vm11561_vm5 }
 0x59f   : > { %1810 = vrot.lane.b32.xlu0 %v7205_v16, %s4640_s23  ;;  %v1677_v46 = vsel %vm11556_vm1, %v1667_v19, -inf  ;;  %v1711_v35 = vsel %vm11558_vm2, %v1701_v31, %v1693_v43  ;;  %vm11559_vm7 = vcmp.lt.s32.totalorder %v11543_v11, 16  ;;  %v1752_v20 = vsel %vm383_vm3, %v1743_v39, %v1735_v34 }
 0x5a0   : > { %v1766_v27 = vmax.f32 %v1726_v59, %v1758_v33  ;;  %v1719_v52 = vsel %vm11561_vm5, %v1708_v41, -inf  ;;  %v1747_v58 = vsel %vm383_vm3, %v1733_v47, %v1741_v5  ;;  %v1751_v43 = vsel %vm383_vm3, %v1741_v5, %v1733_v47  ;;  %vm11562_vm0 = vmmov %vm11559_vm7  ;;  %v11565_v5 = vld [vmem:[#allocation8_spill] sm:$0xff]  ;;  %v11570_v41 = vld [vmem:[#allocation9_spill] sm:$0xff] }
 0x5a1   : > { %vm11563_vm1 = vcmp.ge.s32.totalorder %v11537_v13, 0  ;;  %v1717_v39 = vsel %vm11564_vm4, %v1707_v14, -inf  ;;  %v1684_v42 = vmax.f32 %v7068_v15, %v1676_v23  ;;  %v1685_v47 = vmax.f32 %v7070_v3, %v1677_v46 }
 0x5a2   : > { %v7236_v26 = vpop.permute.xlu2 %1784  ;;  %v1716_v34 = vsel %vm11563_vm1, %v1711_v35, -inf  ;;  %vm11566_vm2 = vcmp.lt.s32.totalorder %v11565_v5, 16  ;;  %v1727_v19 = vmax.f32 %v1687_v32, %v1719_v52  ;;  %vm11571_vm1 = vcmp.lt.s32.totalorder %v11570_v41, 16 }
 0x5a3   : > { %v1789_v40 = vsel %vm428_vm6, %v7201_v4, %v7236_v26  ;;  %v1775_v9 = vpop.permute.xlu0 %1774  ;;  %v1759_v53 = vsel %vm11566_vm2, %v1752_v20, -inf  ;;  %vm11568_vm5 = vmmov %vm11566_vm2  ;;  %v1724_v23 = vmax.f32 %v1684_v42, %v1716_v34  ;;  %v1725_v3 = vmax.f32 %v1685_v47, %v1717_v39 }
 0x5a4   : > { %v1800_v28 = vsel %vm11559_vm7, %v1789_v40, -inf  ;;  %v1783_v62 = vpop.permute.xlu1 %1782  ;;  %vm11567_vm7 = vcmp.lt.s32.totalorder %v11539_v55, 16  ;;  %v1757_v33 = vsel %vm11568_vm5, %v1751_v43, -inf  ;;  %vm11572_vm4 = vcmp.lt.s32.totalorder %v4812_v29, 1  ;;  %vm11575_vm5 = vmmov %vm11571_vm1 }
 0x5a5   : > { %v7254_v12 = vmax.f32 %v1768_v6, %v1800_v28  ;;  %v1788_v0 = vsel %vm428_vm6, %v1775_v9, %v1783_v62  ;;  %v1792_v56 = vsel %vm428_vm6, %v1783_v62, %v1775_v9  ;;  %v1756_v60 = vsel %vm11567_vm7, %v1747_v58, -inf }
 0x5a6   : > { %v1798_v31 = vsel %vm11562_vm0, %v1788_v0, -inf  ;;  %vm11569_vm0 = vcmp.lt.s32.totalorder %v4812_v29, 2  ;;  %v1799_v59 = vsel %vm11571_vm1, %v1792_v56, -inf  ;;  %v1706_v32 = vsel %vm11572_vm4, %v7140_v30, %v7142_v50 }
 0x5a7   : > { %v7272_v21 = vmax.f32 %v1766_v27, %v1798_v31  ;;  %1816 = vrot.lane.b32.xlu0 %v7254_v12, %s4640_s23  ;;  %v1666_v15 = vsel %vm11569_vm0, %v7132_v18, %v7134_v1  ;;  %v1767_v6 = vmax.f32 %v1727_v19, %v1759_v53  ;;  %v1764_v9 = vmax.f32 %v1724_v23, %v1756_v60 }
 0x5a8   : > { %v1765_v46 = vmax.f32 %v1725_v3, %v1757_v33  ;;  %vm11573_vm2 = vcmp.ge.s32.totalorder %v11548_v37, 0  ;;  %vm11574_vm7 = vcmp.lt.s32.totalorder %v11543_v11, 16  ;;  %v1750_v28 = vsel %vm383_vm3, %v7162_v2, %v7144_v61 }
 0x5a9   : > { %1814 = vrot.lane.b32.xlu2 %v7272_v21, %s4640_s23  ;;  %v1675_v1 = vsel %vm11573_vm2, %v1666_v15, -inf  ;;  %v7304_v35 = vmax.f32 %v1767_v6, %v1799_v59  ;;  %vm11576_vm0 = vcmp.ge.s32.totalorder %v11560_v25, 0  ;;  %v1790_v0 = vsel %vm428_vm6, %v7181_v51, %v7166_v10  ;;  %vm11579_vm2 = vmmov %vm11575_vm5 }
 0x5aa   : > { %v1683_v27 = vmax.f32 %v6944_v22, %v1675_v1  ;;  %vm11577_vm1 = vcmp.lt.s32.totalorder %v11565_v5, 16  ;;  %vm11578_vm4 = vcmp.lt.s32.totalorder %v4812_v29, 2  ;;  %v1795_v52 = vsel %vm11579_vm2, %v1790_v0, -inf }
 0x5ab   : > { %v1781_v40 = vpop.permute.xlu0 %1780  ;;  %v1755_v61 = vsel %vm11577_vm1, %v1750_v28, -inf  ;;  %v1669_v2 = vsel %vm11578_vm4, %v7136_v36, %v7138_v44  ;;  %v1753_v36 = vsel %vm383_vm3, %v7193_v24, %v7150_v48  ;;  %vm11582_vm4 = vmmov %vm11579_vm2  ;;  %vm11583_vm2 = vcmp.lt.s32.totalorder %v4812_v29, 2 }
 0x5ac   : > { %v1787_v14 = vsel %vm428_vm6, %v7156_v17, %v1781_v40  ;;  %v1791_v18 = vsel %vm428_vm6, %v1781_v40, %v7156_v17  ;;  %v1715_v17 = vsel %vm11576_vm0, %v1706_v32, -inf }
 0x5ad   : > { %v1796_v30 = vsel %vm11574_vm7, %v1787_v14, -inf  ;;  %v1797_v50 = vsel %vm11575_vm5, %v1791_v18, -inf  ;;  %v1723_v22 = vmax.f32 %v1683_v27, %v1715_v17  ;;  %vm11580_vm7 = vcmp.lt.s32.totalorder %v4812_v29, 1 }
 0x5ae   : > { %v7314_v62 = vmax.f32 %v1764_v9, %v1796_v30  ;;  %v7316_v20 = vmax.f32 %v1765_v46, %v1797_v50  ;;  %v1709_v10 = vsel %vm11580_vm7, %v7146_v63, %v7148_v49  ;;  %vm11581_vm5 = vcmp.ge.s32.totalorder %v11548_v37, 0 }
 0x5af   : > { %1822 = vrot.lane.b32.xlu0 %v7304_v35, %s4640_s23  ;;  %v1763_v51 = vmax.f32 %v1723_v22, %v1755_v61  ;;  %v1681_v58 = vsel %vm11581_vm5, %v1669_v2, -inf  ;;  %v1721_v44 = vsel %vm11576_vm0, %v1709_v10, -inf  ;;  %v1793_v63 = vsel %vm428_vm6, %v7236_v26, %v7201_v4 }
 0x5b0   : > { %1812 = vrot.lane.b32.xlu1 %v7314_v62, %s4640_s23  ;;  %v1689_v31 = vmax.f32 %v7004_v7, %v1681_v58  ;;  %v1761_v49 = vsel %vm11577_vm1, %v1753_v36, -inf  ;;  %v1801_v24 = vsel %vm11582_vm4, %v1793_v63, -inf  ;;  %vm11584_vm5 = vcmp.ge.s32.totalorder %v11535_v8, 0  ;;  %vm11586_vm1 = vmmov %vm11583_vm2 }
 0x5b1   : > { %1820 = vrot.lane.b32.xlu2 %v7316_v20, %s4640_s23  ;;  %v7345_v43 = vmax.f32 %v1763_v51, %v1795_v52  ;;  %vm11585_vm0 = vcmp.ge.s32.totalorder %v11537_v13, 0  ;;  %vm11587_vm4 = vmmov %vm11586_vm1 }
 0x5b2   : > { %v1729_v48 = vmax.f32 %v1689_v31, %v1721_v44 }
 0x5b4   : > { %v1769_v34 = vmax.f32 %v1729_v48, %v1761_v49 }
 0x5b6   : > { %v7368_v7 = vmax.f32 %v1769_v34, %v1801_v24 }
 0x5b7   : > { %1852 = vrot.lane.b32.xlu0 %v7314_v62, %s4641_s24 }
 0x5b8   : > { %1818 = vrot.lane.b32.xlu1 %v7345_v43, %s4640_s23 }
 0x5b9   : > { %1850 = vrot.lane.b32.xlu2 %v7205_v16, %s4641_s24 }
 0x5bf   : > { %1858 = vrot.lane.b32.xlu0 %v7345_v43, %s4641_s24 }
 0x5c0   : > { %1824 = vrot.lane.b32.xlu1 %v7368_v7, %s4640_s23 }
 0x5c1   : > { %1856 = vrot.lane.b32.xlu2 %v7254_v12, %s4641_s24 }
 0x5c7   : > { %1864 = vrot.lane.b32.xlu0 %v7368_v7, %s4641_s24 }
 0x5c8   : > { %1854 = vrot.lane.b32.xlu1 %v7272_v21, %s4641_s24 }
 0x5c9   : > { %1862 = vrot.lane.b32.xlu2 %v7304_v35, %s4641_s24 }
 0x5cf   : > { %1894 = vrot.lane.b32.xlu0 %v7272_v21, %s4642_s25 }
 0x5d0   : > { %1860 = vrot.lane.b32.xlu1 %v7316_v20, %s4641_s24 }
 0x5d1   : > { %1892 = vrot.lane.b32.xlu2 %v7314_v62, %s4642_s25 }
 0x5d7   : > { %1900 = vrot.lane.b32.xlu0 %v7316_v20, %s4642_s25 }
 0x5d8   : > { %1890 = vrot.lane.b32.xlu1 %v7205_v16, %s4642_s25 }
 0x5d9   : > { %1898 = vrot.lane.b32.xlu2 %v7345_v43, %s4642_s25 }
 0x5df   : > { %1930 = vrot.lane.b32.xlu0 %v7205_v16, %s4643_s26 }
 0x5e0   : > { %1896 = vrot.lane.b32.xlu1 %v7254_v12, %s4642_s25 }
 0x5e1   : > { %1904 = vrot.lane.b32.xlu2 %v7368_v7, %s4642_s25 }
 0x5e7   : > { %1936 = vrot.lane.b32.xlu0 %v7254_v12, %s4643_s26 }
 0x5e8   : > { %1902 = vrot.lane.b32.xlu1 %v7304_v35, %s4642_s25 }
 0x5e9   : > { %1934 = vrot.lane.b32.xlu2 %v7272_v21, %s4643_s26 }
 0x5ef   : > { %1942 = vrot.lane.b32.xlu0 %v7304_v35, %s4643_s26 }
 0x5f0   : > { %1932 = vrot.lane.b32.xlu1 %v7314_v62, %s4643_s26 }
 0x5f1   : > { %1940 = vrot.lane.b32.xlu2 %v7316_v20, %s4643_s26 }
 0x5f8   : > { %1938 = vrot.lane.b32.xlu1 %v7345_v43, %s4643_s26 }
 0x600   : > { %1944 = vrot.lane.b32.xlu1 %v7368_v7, %s4643_s26 }
 0x603   : > { %v1815_v4 = vpop.permute.xlu2 %1814 }
 0x60b   : > { %v1821_v39 = vpop.permute.xlu2 %1820 }
 0x611   : > { %v7416_v26 = vpop.permute.xlu0 %1810 }
 0x613   : > { %v7420_v42 = vpop.permute.xlu2 %1850 }
 0x619   : > { %v7418_v56 = vpop.permute.xlu0 %1816 }
 0x61b   : > { %v7422_v19 = vpop.permute.xlu2 %1856 }
 0x621   : > { %v1823_v47 = vpop.permute.xlu0 %1822 }
 0x622   : > { %v1813_v53 = vpop.permute.xlu1 %1812  ;;  %v1832_v28 = vsel %vm473_vm12, %v1823_v47, %v1815_v4  ;;  %v1828_v27 = vsel %vm473_vm12, %v1815_v4, %v1823_v47 }
 0x623   : > { %v1863_v15 = vpop.permute.xlu2 %1862  ;;  %v1831_v17 = vsel %vm473_vm12, %v1821_v39, %v1813_v53  ;;  %v1838_v52 = vsel %vm230_vm14, %v1832_v28, -inf  ;;  %v1847_v58 = vmax.f32 %v7304_v35, %v1828_v27  ;;  %v1827_v36 = vsel %vm473_vm12, %v1813_v53, %v1821_v39 }
 0x624   : > { %v1836_v10 = vsel %vm230_vm14, %v1831_v17, -inf  ;;  %v1846_v48 = vmax.f32 %v7272_v21, %v1838_v52  ;;  %v1845_v4 = vmax.f32 %v7316_v20, %v1827_v36 }
 0x625   : > { %v1844_v24 = vmax.f32 %v7314_v62, %v1836_v10 }
 0x629   : > { %v1853_v60 = vpop.permute.xlu0 %1852 }
 0x62a   : > { %v1819_v33 = vpop.permute.xlu1 %1818 }
 0x62b   : > { %v1893_v32 = vpop.permute.xlu2 %1892  ;;  %v1830_v39 = vsel %vm473_vm12, %v1819_v33, %v7416_v26 }
 0x631   : > { %v7424_v23 = vpop.permute.xlu0 %1858 }
 0x632   : > { %v7426_v3 = vpop.permute.xlu1 %1824 }
 0x633   : > { %v7430_v46 = vpop.permute.xlu2 %1898 }
 0x639   : > { %v7428_v59 = vpop.permute.xlu0 %1864 }
 0x63a   : > { %v1855_v6 = vpop.permute.xlu1 %1854 }
 0x63b   : > { %v7434_v1 = vpop.permute.xlu2 %1904  ;;  %v1872_v61 = vsel %vm518_vm13, %v1863_v15, %v1855_v6  ;;  %v1868_v35 = vsel %vm518_vm13, %v1855_v6, %v1863_v15 }
 0x63c   : > { %v1878_v44 = vsel %vm238_vm15, %v1872_v61, -inf  ;;  %v1887_v6 = vmax.f32 %v1847_v58, %v1868_v35 }
 0x63d   : > { %v1886_v53 = vmax.f32 %v1846_v48, %v1878_v44 }
 0x641   : > { %v1895_v40 = vpop.permute.xlu0 %1894 }
 0x642   : > { %v1861_v9 = vpop.permute.xlu1 %1860 }
 0x643   : > { %v1935_v0 = vpop.permute.xlu2 %1934  ;;  %v1871_v2 = vsel %vm518_vm13, %v1861_v9, %v1853_v60  ;;  %v1867_v34 = vsel %vm518_vm13, %v1853_v60, %v1861_v9  ;;  %v1834_v9 = vsel %vm230_vm14, %v1830_v39, -inf }
 0x644   : > { %v1876_v31 = vsel %vm238_vm15, %v1871_v2, -inf  ;;  %v1885_v20 = vmax.f32 %v1845_v4, %v1867_v34 }
 0x645   : > { %v1884_v62 = vmax.f32 %v1844_v24, %v1876_v31  ;;  %v1826_v31 = vsel %vm473_vm12, %v7416_v26, %v1819_v33  ;;  %v1842_v26 = vmax.f32 %v7205_v16, %v1834_v9  ;;  %v1866_v33 = vsel %vm518_vm13, %v7420_v42, %v7424_v23 }
 0x646   : > { %v1843_v34 = vmax.f32 %v7345_v43, %v1826_v31  ;;  %v1873_v43 = vsel %vm518_vm13, %v7428_v59, %v7422_v19 }
 0x648   : > { %v1883_v39 = vmax.f32 %v1843_v34, %v1866_v33 }
 0x649   : > { %v1901_v14 = vpop.permute.xlu0 %1900 }
 0x64a   : > { %v7432_v18 = vpop.permute.xlu1 %1890  ;;  %v1911_v63 = vsel %vm563_vm11, %v1901_v14, %v1893_v32  ;;  %v1907_v47 = vsel %vm563_vm11, %v1893_v32, %v1901_v14  ;;  %v1870_v32 = vsel %vm518_vm13, %v7424_v23, %v7420_v42  ;;  %v1833_v42 = vsel %vm473_vm12, %v7426_v3, %v7418_v56 }
 0x64b   : > { %v1917_v15 = vsel %vm249_vm10, %v1911_v63, -inf  ;;  %v1924_v14 = vmax.f32 %v1884_v62, %v1907_v47  ;;  %v1941_v27 = vpop.permute.xlu2 %1940  ;;  %v1874_v48 = vsel %vm238_vm15, %v1870_v32, -inf  ;;  %v1910_v24 = vsel %vm563_vm11, %v7430_v46, %v7432_v18 }
 0x64c   : > { %v1925_v17 = vmax.f32 %v1885_v20, %v1917_v15  ;;  %v1906_v4 = vsel %vm563_vm11, %v7432_v18, %v7430_v46  ;;  %v1882_v16 = vmax.f32 %v1842_v26, %v1874_v48  ;;  %v1915_v23 = vsel %vm249_vm10, %v1910_v24, -inf }
 0x64d   : > { %v1840_v47 = vsel %vm230_vm14, %v1833_v42, -inf  ;;  %v1829_v15 = vsel %vm473_vm12, %v7418_v56, %v7426_v3  ;;  %v1880_v20 = vsel %vm238_vm15, %v1873_v43, -inf  ;;  %v1869_v3 = vsel %vm518_vm13, %v7422_v19, %v7428_v59 }
 0x64e   : > { %v1922_v46 = vmax.f32 %v1882_v16, %v1906_v4  ;;  %v1848_v56 = vmax.f32 %v7254_v12, %v1840_v47 }
 0x650   : > { %v1888_v12 = vmax.f32 %v1848_v56, %v1880_v20 }
 0x651   : > { %v7436_v30 = vpop.permute.xlu0 %1930 }
 0x652   : > { %v7438_v50 = vpop.permute.xlu1 %1896 }
 0x653   : > { %v1913_v9 = vsel %vm563_vm11, %v7434_v1, %v7438_v50 }
 0x654   : > { %v1921_v19 = vsel %vm249_vm10, %v1913_v9, -inf }
 0x659   : > { %v7450_v22 = vpop.permute.xlu0 %1936 }
 0x65a   : > { %v1903_v51 = vpop.permute.xlu1 %1902 }
 0x65b   : > { %v1912_v49 = vsel %vm563_vm11, %v1903_v51, %v1895_v40  ;;  %v1908_v21 = vsel %vm563_vm11, %v1895_v40, %v1903_v51 }
 0x65c   : > { %v1919_v60 = vsel %vm249_vm10, %v1912_v49, -inf  ;;  %v1926_v40 = vmax.f32 %v1886_v53, %v1908_v21  ;;  %v1923_v21 = vmax.f32 %v1883_v39, %v1915_v23 }
 0x65d   : > { %v1927_v61 = vmax.f32 %v1887_v6, %v1919_v60 }
 0x661   : > { %v1943_v28 = vpop.permute.xlu0 %1942 }
 0x662   : > { %v1948_v2 = vsel %vm608_vm9, %v1935_v0, %v1943_v28  ;;  %v1952_v52 = vsel %vm608_vm9, %v1943_v28, %v1935_v0  ;;  %v1933_v10 = vpop.permute.xlu1 %1932 }
 0x663   : > { %v1959_v51 = vsel %vm257_vm8, %v1952_v52, -inf  ;;  %v7497_v58 = vmax.f32 %v1926_v40, %v1948_v2  ;;  %v1947_v36 = vsel %vm608_vm9, %v1933_v10, %v1941_v27  ;;  %v1951_v44 = vsel %vm608_vm9, %v1941_v27, %v1933_v10 }
 0x664   : > { %v7506_v63 = vmax.f32 %v1927_v61, %v1959_v51  ;;  %v1957_v0 = vsel %vm257_vm8, %v1951_v44, -inf  ;;  %v7510_v49 = vmax.f32 %v1924_v14, %v1947_v36  ;;  %v1909_v14 = vsel %vm563_vm11, %v7438_v50, %v7434_v1 }
 0x665   : > { %4480 = vst [vmem:[%s4680_s18 + $0x160] sm:$0xff] %v7497_v58  ;;  %v7520_v35 = vmax.f32 %v1925_v17, %v1957_v0  ;;  %1983 = vrot.lane.b32.xlu1 %v7497_v58, %s4636_s19  ;;  %v1928_v40 = vmax.f32 %v1888_v12, %v1909_v14 }
 0x666   : > { %4481 = vst [vmem:[%s4680_s18 + $0x168] sm:$0xff] %v7506_v63  ;;  %1981 = vrot.lane.b32.xlu0 %v7510_v49, %s4636_s19 }
 0x667   : > { %4478 = vst [vmem:[%s4680_s18 + $0x150] sm:$0xff] %v7510_v49 }
 0x668   : > { %4479 = vst [vmem:[%s4680_s18 + $0x158] sm:$0xff] %v7520_v35 }
 0x66a   : > { %v1939_v18 = vpop.permute.xlu1 %1938 }
 0x66b   : > { %v1946_v53 = vsel %vm608_vm9, %v7436_v30, %v1939_v18  ;;  %v1950_v62 = vsel %vm608_vm9, %v1939_v18, %v7436_v30  ;;  %v1849_v30 = vmax.f32 %v7368_v7, %v1829_v15 }
 0x66c   : > { %v1955_v60 = vsel %vm257_vm8, %v1950_v62, -inf  ;;  %v7566_v6 = vmax.f32 %v1922_v46, %v1946_v53 }
 0x66d   : > { %v7574_v32 = vmax.f32 %v1923_v21, %v1955_v60  ;;  %1989 = vrot.lane.b32.xlu1 %v7520_v35, %s4636_s19  ;;  %v1889_v59 = vmax.f32 %v1849_v30, %v1869_v3 }
 0x66e   : > { %4476 = vst [vmem:[%s4680_s18 + $0x140] sm:$0xff] %v7566_v6  ;;  %1979 = vrot.lane.b32.xlu2 %v7566_v6, %s4636_s19 }
 0x66f   : > { %4477 = vst [vmem:[%s4680_s18 + $0x148] sm:$0xff] %v7574_v32  ;;  %1987 = vrot.lane.b32.xlu0 %v7574_v32, %s4636_s19  ;;  %v1929_v7 = vmax.f32 %v1889_v59, %v1921_v19 }
 0x672   : > { %v1945_v28 = vpop.permute.xlu1 %1944 }
 0x673   : > { %v1949_v17 = vsel %vm608_vm9, %v7450_v22, %v1945_v28  ;;  %v1953_v1 = vsel %vm608_vm9, %v1945_v28, %v7450_v22 }
 0x674   : > { %v1961_v50 = vsel %vm257_vm8, %v1953_v1, -inf  ;;  %v7606_v27 = vmax.f32 %v1928_v40, %v1949_v17 }
 0x675   : > { %v7608_v61 = vmax.f32 %v1929_v7, %v1961_v50  ;;  %2019 = vrot.lane.b32.xlu1 %v7566_v6, %s4637_s20 }
 0x676   : > { %4482 = vst [vmem:[%s4680_s18 + $0x170] sm:$0xff] %v7606_v27  ;;  %1985 = vrot.lane.b32.xlu2 %v7606_v27, %s4636_s19 }
 0x677   : > { %4483 = vst [vmem:[%s4680_s18 + $0x178] sm:$0xff] %v7608_v61  ;;  %1993 = vrot.lane.b32.xlu0 %v7608_v61, %s4636_s19 }
 0x67d   : > { %2025 = vrot.lane.b32.xlu1 %v7606_v27, %s4637_s20 }
 0x67e   : > { %1991 = vrot.lane.b32.xlu2 %v7506_v63, %s4636_s19 }
 0x67f   : > { %2023 = vrot.lane.b32.xlu0 %v7497_v58, %s4637_s20 }
 0x685   : > { %2031 = vrot.lane.b32.xlu1 %v7506_v63, %s4637_s20 }
 0x686   : > { %2021 = vrot.lane.b32.xlu2 %v7510_v49, %s4637_s20 }
 0x687   : > { %2029 = vrot.lane.b32.xlu0 %v7520_v35, %s4637_s20 }
 0x68d   : > { %2061 = vrot.lane.b32.xlu1 %v7510_v49, %s4638_s21 }
 0x68e   : > { %2027 = vrot.lane.b32.xlu2 %v7574_v32, %s4637_s20 }
 0x68f   : > { %2059 = vrot.lane.b32.xlu0 %v7566_v6, %s4638_s21 }
 0x695   : > { %2067 = vrot.lane.b32.xlu1 %v7574_v32, %s4638_s21 }
 0x696   : > { %2033 = vrot.lane.b32.xlu2 %v7608_v61, %s4637_s20 }
 0x697   : > { %2065 = vrot.lane.b32.xlu0 %v7606_v27, %s4638_s21 }
 0x69d   : > { %2073 = vrot.lane.b32.xlu1 %v7608_v61, %s4638_s21 }
 0x69e   : > { %2063 = vrot.lane.b32.xlu2 %v7497_v58, %s4638_s21 }
 0x69f   : > { %2071 = vrot.lane.b32.xlu0 %v7506_v63, %s4638_s21 }
 0x6a5   : > { %2103 = vrot.lane.b32.xlu1 %v7497_v58, %s4639_s22 }
 0x6a6   : > { %2069 = vrot.lane.b32.xlu2 %v7520_v35, %s4638_s21 }
 0x6a7   : > { %2101 = vrot.lane.b32.xlu0 %v7510_v49, %s4639_s22 }
 0x6ad   : > { %2109 = vrot.lane.b32.xlu1 %v7520_v35, %s4639_s22 }
 0x6ae   : > { %2099 = vrot.lane.b32.xlu2 %v7566_v6, %s4639_s22 }
 0x6af   : > { %2107 = vrot.lane.b32.xlu0 %v7574_v32, %s4639_s22 }
 0x6b6   : > { %2105 = vrot.lane.b32.xlu2 %v7606_v27, %s4639_s22 }
 0x6b7   : > { %2113 = vrot.lane.b32.xlu0 %v7608_v61, %s4639_s22 }
 0x6be   : > { %2111 = vrot.lane.b32.xlu2 %v7506_v63, %s4639_s22 }
 0x6c8   : > { %v1980_v22 = vpop.permute.xlu2 %1979 }
 0x6d0   : > { %v7668_v2 = vpop.permute.xlu2 %1985 }
 0x6d7   : > { %v7670_v52 = vpop.permute.xlu1 %1983 }
 0x6d8   : > { %v7672_v10 = vpop.permute.xlu2 %1991  ;;  %v1982_v51 = vpop.permute.xlu0 %1981 }
 0x6d9   : > { %v2001_v21 = vsel %vm11583_vm2, %v7672_v10, %v7670_v52  ;;  %vm11588_vm2 = vcmp.lt.s32.totalorder %v11539_v55, 16 }
 0x6da   : > { %v2007_v20 = vsel %vm11584_vm5, %v2001_v21, -inf }
 0x6db   : > { %v2015_v3 = vmax.f32 %v7497_v58, %v2007_v20 }
 0x6df   : > { %v1990_v36 = vpop.permute.xlu1 %1989 }
 0x6e0   : > { %v2022_v44 = vpop.permute.xlu2 %2021  ;;  %v2000_v30 = vsel %vm11586_vm1, %v1990_v36, %v1982_v51  ;;  %v1996_v14 = vsel %vm11587_vm4, %v1982_v51, %v1990_v36  ;;  %vm11592_vm4 = vcmp.ge.s32.totalorder %v11548_v37, 0 }
 0x6e1   : > { %v1988_v31 = vpop.permute.xlu0 %1987  ;;  %v2005_v28 = vsel %vm11584_vm5, %v2000_v30, -inf  ;;  %v2006_v1 = vsel %vm11592_vm4, %v1996_v14, -inf  ;;  %vm11598_vm4 = vcmp.ge.s32.totalorder %v11560_v25, 0 }
 0x6e2   : > { %v2013_v14 = vmax.f32 %v7510_v49, %v2005_v28 }
 0x6e7   : > { %v2020_v0 = vpop.permute.xlu1 %2019 }
 0x6e8   : > { %v2028_v48 = vpop.permute.xlu2 %2027 }
 0x6e9   : > { %v7674_v24 = vpop.permute.xlu0 %1993 }
 0x6ef   : > { %v7676_v26 = vpop.permute.xlu1 %2025 }
 0x6f0   : > { %v7678_v33 = vpop.permute.xlu2 %2033 }
 0x6f1   : > { %v7680_v34 = vpop.permute.xlu0 %2023 }
 0x6f7   : > { %v7682_v4 = vpop.permute.xlu1 %2031 }
 0x6f8   : > { %v7684_v16 = vpop.permute.xlu2 %2063  ;;  %v2041_v15 = vsel %vm11580_vm7, %v7682_v4, %v7680_v34  ;;  %vm11589_vm7 = vmmov %vm11586_vm1 }
 0x6f9   : > { %v2030_v42 = vpop.permute.xlu0 %2029  ;;  %v2047_v56 = vsel %vm11585_vm0, %v2041_v15, -inf  ;;  %v1999_v19 = vsel %vm11589_vm7, %v1988_v31, %v1980_v22  ;;  %vm11590_vm0 = vcmp.lt.s32.totalorder %v4812_v29, 1  ;;  %vm11594_vm7 = vmmov %vm11584_vm5  ;;  %vm11595_vm5 = vcmp.lt.s32.totalorder %v11543_v11, 16 }
 0x6fa   : > { %v2055_v59 = vmax.f32 %v2015_v3, %v2047_v56  ;;  %v2036_v58 = vsel %vm11590_vm0, %v2022_v44, %v2030_v42  ;;  %vm11591_vm1 = vmmov %vm11590_vm0  ;;  %v2003_v15 = vsel %vm11594_vm7, %v1999_v19, -inf  ;;  %vm11600_vm7 = vcmp.lt.s32.totalorder %v11539_v55, 16 }
 0x6fb   : > { %v2040_v7 = vsel %vm11591_vm1, %v2030_v42, %v2022_v44  ;;  %vm11597_vm1 = vcmp.ge.s32.totalorder %v11537_v13, 0  ;;  %v2046_v3 = vsel %vm11598_vm4, %v2036_v58, -inf  ;;  %vm11604_vm4 = vcmp.lt.s32.totalorder %v4812_v29, 2 }
 0x6fc   : > { %v2045_v56 = vsel %vm11597_vm1, %v2040_v7, -inf }
 0x6ff   : > { %v2062_v23 = vpop.permute.xlu1 %2061 }
 0x700   : > { %v2070_v39 = vpop.permute.xlu2 %2069 }
 0x701   : > { %v2060_v43 = vpop.permute.xlu0 %2059  ;;  %v2076_v44 = vsel %vm383_vm3, %v2062_v23, %v2070_v39  ;;  %v2080_v42 = vsel %vm383_vm3, %v2070_v39, %v2062_v23 }
 0x707   : > { %v2068_v46 = vpop.permute.xlu1 %2067 }
 0x708   : > { %v7686_v18 = vpop.permute.xlu2 %2099  ;;  %v2075_v39 = vsel %vm383_vm3, %v2060_v43, %v2068_v46 }
 0x709   : > { %v7688_v47 = vpop.permute.xlu0 %2065 }
 0x70f   : > { %v7694_v53 = vpop.permute.xlu1 %2073 }
 0x710   : > { %v7696_v62 = vpop.permute.xlu2 %2105 }
 0x711   : > { %v7702_v60 = vpop.permute.xlu0 %2071 }
 0x712   : > { %v2077_v9 = vsel %vm383_vm3, %v7684_v16, %v7702_v60 }
 0x713   : > { %v2087_v12 = vsel %vm11588_vm2, %v2077_v9, -inf  ;;  %vm11593_vm2 = vmmov %vm11590_vm0  ;;  %vm11596_vm0 = vcmp.lt.s32.totalorder %v4812_v29, 2 }
 0x714   : > { %v2039_v50 = vsel %vm11593_vm2, %v2028_v48, %v2020_v0  ;;  %v2095_v51 = vmax.f32 %v2055_v59, %v2087_v12  ;;  %v1995_v9 = vsel %vm11596_vm0, %v1980_v22, %v1988_v31  ;;  %v2014_v12 = vmax.f32 %v7520_v35, %v2006_v1  ;;  %vm11599_vm2 = vmmov %vm11597_vm1 }
 0x715   : > { %v2043_v23 = vsel %vm11599_vm2, %v2039_v50, -inf  ;;  %v2011_v22 = vmax.f32 %v7566_v6, %v2003_v15  ;;  %v2085_v31 = vsel %vm11600_vm7, %v2076_v44, -inf  ;;  %vm11602_vm0 = vcmp.ge.s32.totalorder %v11548_v37, 0  ;;  %vm11605_vm2 = vmmov %vm11600_vm7 }
 0x716   : > { %v2004_v49 = vsel %vm11602_vm0, %v1995_v9, -inf  ;;  %v2053_v35 = vmax.f32 %v2013_v14, %v2045_v56  ;;  %v2054_v59 = vmax.f32 %v2014_v12, %v2046_v3  ;;  %vm11603_vm1 = vcmp.lt.s32.totalorder %v4812_v29, 1 }
 0x717   : > { %v7721_v40 = vpop.permute.xlu1 %2103  ;;  %v2035_v28 = vsel %vm11603_vm1, %v2020_v0, %v2028_v48  ;;  %v2051_v58 = vmax.f32 %v2011_v22, %v2043_v23  ;;  %v2002_v6 = vsel %vm11604_vm4, %v7674_v24, %v7668_v2  ;;  %v2083_v7 = vsel %vm11605_vm2, %v2075_v39, -inf  ;;  %vm11606_vm7 = vmmov %vm11603_vm1 }
 0x718   : > { %v7729_v17 = vpop.permute.xlu2 %2111  ;;  %v2093_v50 = vmax.f32 %v2053_v35, %v2085_v31  ;;  %v2042_v0 = vsel %vm11606_vm7, %v7678_v33, %v7676_v26  ;;  %v2079_v48 = vsel %vm383_vm3, %v2068_v46, %v2060_v43  ;;  %vm11608_vm0 = vcmp.lt.s32.totalorder %v11570_v41, 16 }
 0x719   : > { %v2117_v36 = vsel %vm428_vm6, %v7721_v40, %v7729_v17  ;;  %v2102_v21 = vpop.permute.xlu0 %2101  ;;  %v2091_v9 = vmax.f32 %v2051_v58, %v2083_v7  ;;  %vm11609_vm1 = vcmp.ge.s32.totalorder %v11560_v25, 0  ;;  %vm11610_vm4 = vcmp.ge.s32.totalorder %v11535_v8, 0 }
 0x71a   : > { %v2127_v20 = vsel %vm11595_vm5, %v2117_v36, -inf  ;;  %vm11601_vm5 = vcmp.lt.s32.totalorder %v11565_v5, 16  ;;  %v2044_v14 = vsel %vm11609_vm1, %v2035_v28, -inf  ;;  %v2009_v43 = vsel %vm11610_vm4, %v2002_v6, -inf }
 0x71b   : > { %v7753_v30 = vmax.f32 %v2095_v51, %v2127_v20  ;;  %v2086_v19 = vsel %vm11601_vm5, %v2080_v42, -inf  ;;  %vm11607_vm5 = vcmp.lt.s32.totalorder %v11543_v11, 16  ;;  %v2012_v12 = vmax.f32 %v7574_v32, %v2004_v49 }
 0x71c   : > { %v2094_v51 = vmax.f32 %v2054_v59, %v2086_v19  ;;  %vm11611_vm2 = vmmov %vm11607_vm5  ;;  %v2078_v23 = vsel %vm383_vm3, %v7688_v47, %v7694_v53  ;;  %vm11612_vm7 = vcmp.ge.s32.totalorder %v11537_v13, 0  ;;  %v2017_v49 = vmax.f32 %v7606_v27, %v2009_v43  ;;  %v7961_v43 = vld [vmem:[%s4675_s15 + $0x88] sm:$0xff] }
 0x71d   : > { %2143 = vrot.lane.b32.xlu0 %v7753_v30, %s4640_s23  ;;  %v2049_v31 = vsel %vm11612_vm7, %v2042_v0, -inf  ;;  %v2052_v19 = vmax.f32 %v2012_v12, %v2044_v14  ;;  %vm11615_vm1 = vcmp.lt.s32.totalorder %v11539_v55, 16  ;;  %vm11616_vm4 = vcmp.lt.s32.totalorder %v11570_v41, 16  ;;  %v7950_v14 = vld [vmem:[%s4675_s15 + $0x90] sm:$0xff]  ;;  %4501 = vst [vmem:[%s4680_s18 + $0x2c8] sm:$0xff] %v7961_v43  ;;  %v7977_v12 = vld [vmem:[%s4675_s15 + $0xb8] sm:$0xff] }
 0x71e   : > { %v2089_v35 = vsel %vm11615_vm1, %v2078_v23, -inf  ;;  %vm11618_vm7 = vcmp.lt.s32.totalorder %v4812_v29, 1  ;;  %v2057_v27 = vmax.f32 %v2017_v49, %v2049_v31  ;;  %4502 = vst [vmem:[%s4680_s18 + $0x2d0] sm:$0xff] %v7950_v14  ;;  %v7988_v23 = vld [vmem:[%s4675_s15 + $0x98] sm:$0xff] }
 0x71f   : > { %v2110_v1 = vpop.permute.xlu1 %2109  ;;  %11631 = vst [vmem:[#allocation18_spill] sm:$0xff] %v7977_v12 }
 0x720   : > { %v2116_v36 = vsel %vm428_vm6, %v2102_v21, %v2110_v1  ;;  %v2120_v15 = vsel %vm428_vm6, %v2110_v1, %v2102_v21  ;;  %4507 = vst [vmem:[%s4680_s18 + $0x2f8] sm:$0xff] %v7977_v12 }
 0x721   : > { %v2125_v44 = vsel %vm11607_vm5, %v2116_v36, -inf  ;;  %v2126_v42 = vsel %vm11608_vm0, %v2120_v15, -inf  ;;  %v2108_v20 = vpop.permute.xlu0 %2107  ;;  %vm11613_vm5 = vcmp.lt.s32.totalorder %v11565_v5, 16  ;;  %vm11614_vm0 = vcmp.lt.s32.totalorder %v4812_v29, 2  ;;  %4503 = vst [vmem:[%s4680_s18 + $0x2d8] sm:$0xff] %v7988_v23 }
 0x722   : > { %v7792_v56 = vmax.f32 %v2093_v50, %v2125_v44  ;;  %v7794_v3 = vmax.f32 %v2094_v51, %v2126_v42  ;;  %v2115_v21 = vsel %vm428_vm6, %v7686_v18, %v2108_v20  ;;  %v2119_v39 = vsel %vm428_vm6, %v2108_v20, %v7686_v18 }
 0x723   : > { %v2123_v46 = vsel %vm11611_vm2, %v2115_v21, -inf  ;;  %v2084_v32 = vsel %vm11613_vm5, %v2079_v48, -inf  ;;  %v1998_v18 = vsel %vm11614_vm0, %v7668_v2, %v7674_v24  ;;  %v2124_v59 = vsel %vm11616_vm4, %v2119_v39, -inf  ;;  %vm11617_vm2 = vmmov %vm11614_vm0  ;;  %v7939_v21 = vld [vmem:[%s4675_s15 + $0xa8] sm:$0xff] }
 0x724   : > { %v7813_v22 = vmax.f32 %v2091_v9, %v2123_v46  ;;  %2141 = vrot.lane.b32.xlu2 %v7792_v56, %s4640_s23  ;;  %v1997_v28 = vsel %vm11617_vm2, %v7670_v52, %v7672_v10  ;;  %v2038_v2 = vsel %vm11618_vm7, %v7676_v26, %v7678_v33  ;;  %v2092_v24 = vmax.f32 %v2052_v19, %v2084_v32  ;;  %vm11620_vm0 = vmmov %vm11618_vm7  ;;  %v7930_v9 = vld [vmem:[%s4675_s15 + $0xb0] sm:$0xff]  ;;  %v7972_v46 = vld [vmem:[%s4675_s15 + $0xa0] sm:$0xff] }
 0x725   : > { %2149 = vrot.lane.b32.xlu0 %v7794_v3, %s4640_s23  ;;  %vm11619_vm5 = vcmp.ge.s32.totalorder %v11548_v37, 0  ;;  %v2037_v6 = vsel %vm11620_vm0, %v7680_v34, %v7682_v4  ;;  %v2082_v52 = vsel %vm383_vm3, %v7694_v53, %v7688_v47  ;;  %v2097_v10 = vmax.f32 %v2057_v27, %v2089_v35  ;;  %11629 = vst [vmem:[#allocation16_spill] sm:$0xff] %v7930_v9 }
 0x726   : > { %2139 = vrot.lane.b32.xlu1 %v7813_v22, %s4640_s23  ;;  %v2010_v58 = vsel %vm11619_vm5, %v1998_v18, -inf  ;;  %v7852_v1 = vmax.f32 %v2092_v24, %v2124_v59  ;;  %vm11621_vm1 = vmmov %vm11619_vm5  ;;  %vm11622_vm4 = vcmp.ge.s32.totalorder %v11560_v25, 0  ;;  %vm11623_vm2 = vcmp.lt.s32.totalorder %v11543_v11, 16  ;;  %4506 = vst [vmem:[%s4680_s18 + $0x2f0] sm:$0xff] %v7930_v9 }
 0x727   : > { %v2008_v33 = vsel %vm11621_vm1, %v1997_v28, -inf  ;;  %v2050_v50 = vsel %vm11622_vm4, %v2038_v2, -inf  ;;  %v2018_v4 = vmax.f32 %v7608_v61, %v2010_v58  ;;  %v2081_v47 = vsel %vm383_vm3, %v7702_v60, %v7684_v16  ;;  %vm11624_vm7 = vmmov %vm11622_vm4  ;;  %11630 = vst [vmem:[#allocation14_spill] sm:$0xff] %v7939_v21 }
 0x728   : > { %v2048_v36 = vsel %vm11624_vm7, %v2037_v6, -inf  ;;  %vm11625_vm5 = vcmp.lt.s32.totalorder %v11565_v5, 16  ;;  %v2016_v16 = vmax.f32 %v7506_v63, %v2008_v33  ;;  %vm11627_vm1 = vcmp.lt.s32.totalorder %v11570_v41, 16  ;;  %4505 = vst [vmem:[%s4680_s18 + $0x2e8] sm:$0xff] %v7939_v21 }
 0x729   : > { %v2114_v7 = vpop.permute.xlu0 %2113  ;;  %v2090_v61 = vsel %vm11625_vm5, %v2082_v52, -inf  ;;  %v2058_v60 = vmax.f32 %v2018_v4, %v2050_v50  ;;  %vm11626_vm0 = vmmov %vm11625_vm5  ;;  %4504 = vst [vmem:[%s4680_s18 + $0x2e0] sm:$0xff] %v7972_v46  ;;  %vm11634_vm5 = vcmp.lt.s32.totalorder %v4812_v29, 1 }
 0x72a   : > { %v2118_v26 = vsel %vm428_vm6, %v7696_v62, %v2114_v7  ;;  %v2122_v53 = vsel %vm428_vm6, %v2114_v7, %v7696_v62  ;;  %v2121_v62 = vsel %vm428_vm6, %v7729_v17, %v7721_v40  ;;  %v2088_v15 = vsel %vm11626_vm0, %v2081_v47, -inf  ;;  %vm11628_vm4 = vmmov %vm11627_vm1  ;;  %v7919_v17 = vld [vmem:[%s4675_s15 + $0x80] sm:$0xff] }
 0x72b   : > { %v2129_v34 = vsel %vm11623_vm2, %v2118_v26, -inf  ;;  %v2130_v0 = vsel %vm11627_vm1, %v2122_v53, -inf  ;;  %v2056_v48 = vmax.f32 %v2016_v16, %v2048_v36  ;;  %v2098_v44 = vmax.f32 %v2058_v60, %v2090_v61  ;;  %4500 = vst [vmem:[%s4680_s18 + $0x2c0] sm:$0xff] %v7919_v17  ;;  %vm11636_vm1 = vmmov %vm11634_vm5 }
 0x72c   : > { %v7871_v51 = vmax.f32 %v2097_v10, %v2129_v34  ;;  %2147 = vrot.lane.b32.xlu2 %v7852_v1, %s4640_s23  ;;  %v2128_v63 = vsel %vm11628_vm4, %v2121_v62, -inf  ;;  %vm11632_vm2 = vcmp.lt.s32.totalorder %v4812_v29, 2  ;;  %vm11635_vm0 = vcmp.ge.s32.totalorder %v11535_v8, 0 }
 0x72d   : > { %2179 = vrot.lane.b32.xlu0 %v7813_v22, %s4641_s24  ;;  %v2096_v42 = vmax.f32 %v2056_v48, %v2088_v15  ;;  %v7894_v20 = vmax.f32 %v2098_v44, %v2130_v0  ;;  %vm11633_vm7 = vmmov %vm11632_vm2 }
 0x72e   : > { %2145 = vrot.lane.b32.xlu1 %v7871_v51, %s4640_s23  ;;  %vm11637_vm4 = vmmov %vm11635_vm0 }
 0x72f   : > { %v7896_v40 = vmax.f32 %v2096_v42, %v2128_v63 }
 0x734   : > { %2153 = vrot.lane.b32.xlu2 %v7894_v20, %s4640_s23 }
 0x735   : > { %2185 = vrot.lane.b32.xlu0 %v7871_v51, %s4641_s24 }
 0x736   : > { %2151 = vrot.lane.b32.xlu1 %v7896_v40, %s4640_s23 }
 0x73c   : > { %2183 = vrot.lane.b32.xlu2 %v7753_v30, %s4641_s24 }
 0x73d   : > { %2191 = vrot.lane.b32.xlu0 %v7896_v40, %s4641_s24 }
 0x73e   : > { %2181 = vrot.lane.b32.xlu1 %v7792_v56, %s4641_s24 }
 0x744   : > { %2189 = vrot.lane.b32.xlu2 %v7794_v3, %s4641_s24 }
 0x745   : > { %2221 = vrot.lane.b32.xlu0 %v7792_v56, %s4642_s25 }
 0x746   : > { %2187 = vrot.lane.b32.xlu1 %v7852_v1, %s4641_s24 }
 0x74c   : > { %2219 = vrot.lane.b32.xlu2 %v7813_v22, %s4642_s25 }
 0x74d   : > { %2227 = vrot.lane.b32.xlu0 %v7852_v1, %s4642_s25 }
 0x74e   : > { %2193 = vrot.lane.b32.xlu1 %v7894_v20, %s4641_s24 }
 0x754   : > { %2225 = vrot.lane.b32.xlu2 %v7871_v51, %s4642_s25 }
 0x755   : > { %2233 = vrot.lane.b32.xlu0 %v7894_v20, %s4642_s25 }
 0x756   : > { %2223 = vrot.lane.b32.xlu1 %v7753_v30, %s4642_s25 }
 0x75c   : > { %2231 = vrot.lane.b32.xlu2 %v7896_v40, %s4642_s25 }
 0x75d   : > { %2263 = vrot.lane.b32.xlu0 %v7753_v30, %s4643_s26 }
 0x75e   : > { %2229 = vrot.lane.b32.xlu1 %v7794_v3, %s4642_s25 }
 0x764   : > { %2261 = vrot.lane.b32.xlu2 %v7792_v56, %s4643_s26 }
 0x765   : > { %2269 = vrot.lane.b32.xlu0 %v7794_v3, %s4643_s26 }
 0x766   : > { %2259 = vrot.lane.b32.xlu1 %v7813_v22, %s4643_s26 }
 0x76c   : > { %2267 = vrot.lane.b32.xlu2 %v7852_v1, %s4643_s26 }
 0x76d   : > { %2326 = vrot.lane.b32.xlu0 %v7919_v17, %s4636_s19 }
 0x76e   : > { %2265 = vrot.lane.b32.xlu1 %v7871_v51, %s4643_s26 }
 0x774   : > { %2273 = vrot.lane.b32.xlu2 %v7894_v20, %s4643_s26 }
 0x775   : > { %2332 = vrot.lane.b32.xlu0 %v7930_v9, %s4636_s19 }
 0x776   : > { %2271 = vrot.lane.b32.xlu1 %v7896_v40, %s4643_s26 }
 0x77c   : > { %2330 = vrot.lane.b32.xlu2 %v7972_v46, %s4636_s19 }
 0x77d   : > { %2338 = vrot.lane.b32.xlu0 %v7939_v21, %s4636_s19 }
 0x77e   : > { %v2142_v39 = vpop.permute.xlu2 %2141  ;;  %2328 = vrot.lane.b32.xlu1 %v7950_v14, %s4636_s19 }
 0x784   : > { %2336 = vrot.lane.b32.xlu2 %v7988_v23, %s4636_s19 }
 0x785   : > { %2368 = vrot.lane.b32.xlu0 %v7950_v14, %s4637_s20 }
 0x786   : > { %v2148_v31 = vpop.permute.xlu2 %2147  ;;  %2334 = vrot.lane.b32.xlu1 %v7961_v43, %s4636_s19 }
 0x78c   : > { %2366 = vrot.lane.b32.xlu2 %v7919_v17, %s4637_s20 }
 0x78d   : > { %2374 = vrot.lane.b32.xlu0 %v7961_v43, %s4637_s20 }
 0x78e   : > { %v8008_v32 = vpop.permute.xlu2 %2153  ;;  %2340 = vrot.lane.b32.xlu1 %v7977_v12, %s4636_s19 }
 0x78f   : > { %v8012_v19 = vpop.permute.xlu0 %2143 }
 0x794   : > { %2372 = vrot.lane.b32.xlu2 %v7930_v9, %s4637_s20 }
 0x795   : > { %2380 = vrot.lane.b32.xlu0 %v7977_v12, %s4637_s20 }
 0x796   : > { %v8018_v18 = vpop.permute.xlu2 %2183  ;;  %2370 = vrot.lane.b32.xlu1 %v7972_v46, %s4637_s20 }
 0x797   : > { %v2150_v49 = vpop.permute.xlu0 %2149 }
 0x798   : > { %v2140_v35 = vpop.permute.xlu1 %2139  ;;  %v2160_v61 = vsel %vm473_vm12, %v2150_v49, %v2142_v39  ;;  %v2156_v60 = vsel %vm473_vm12, %v2142_v39, %v2150_v49 }
 0x799   : > { %v2159_v16 = vsel %vm473_vm12, %v2148_v31, %v2140_v35  ;;  %v2165_v44 = vsel %vm230_vm14, %v2160_v61, -inf  ;;  %v2174_v39 = vmax.f32 %v7794_v3, %v2156_v60  ;;  %v2155_v49 = vsel %vm473_vm12, %v2140_v35, %v2148_v31 }
 0x79a   : > { %v2163_v63 = vsel %vm230_vm14, %v2159_v16, -inf  ;;  %v2173_v16 = vmax.f32 %v7792_v56, %v2165_v44  ;;  %v2172_v35 = vmax.f32 %v7852_v1, %v2155_v49 }
 0x79b   : > { %v2171_v41 = vmax.f32 %v7813_v22, %v2163_v63 }
 0x79c   : > { %2378 = vrot.lane.b32.xlu2 %v7939_v21, %s4637_s20 }
 0x79d   : > { %2410 = vrot.lane.b32.xlu0 %v7972_v46, %s4638_s21 }
 0x79e   : > { %v2190_v59 = vpop.permute.xlu2 %2189  ;;  %2376 = vrot.lane.b32.xlu1 %v7988_v23, %s4637_s20 }
 0x79f   : > { %v2180_v28 = vpop.permute.xlu0 %2179 }
 0x7a0   : > { %v8028_v2 = vpop.permute.xlu1 %2145 }
 0x7a1   : > { %v2162_v60 = vsel %vm473_vm12, %v8008_v32, %v8028_v2 }
 0x7a2   : > { %v2169_v44 = vsel %vm230_vm14, %v2162_v60, -inf }
 0x7a4   : > { %2408 = vrot.lane.b32.xlu2 %v7950_v14, %s4638_s21 }
 0x7a5   : > { %2416 = vrot.lane.b32.xlu0 %v7988_v23, %s4638_s21 }
 0x7a6   : > { %v2220_v27 = vpop.permute.xlu2 %2219  ;;  %2406 = vrot.lane.b32.xlu1 %v7919_v17, %s4638_s21 }
 0x7a7   : > { %v8036_v24 = vpop.permute.xlu0 %2185 }
 0x7a8   : > { %v8038_v58 = vpop.permute.xlu1 %2151 }
 0x7ac   : > { %2414 = vrot.lane.b32.xlu2 %v7961_v43, %s4638_s21 }
 0x7ad   : > { %2446 = vrot.lane.b32.xlu0 %v7919_v17, %s4639_s22 }
 0x7ae   : > { %v8044_v6 = vpop.permute.xlu2 %2225  ;;  %2412 = vrot.lane.b32.xlu1 %v7930_v9, %s4638_s21 }
 0x7af   : > { %v8048_v7 = vpop.permute.xlu0 %2191 }
 0x7b0   : > { %v2182_v52 = vpop.permute.xlu1 %2181 }
 0x7b1   : > { %v2200_v15 = vsel %vm518_vm13, %v2190_v59, %v2182_v52  ;;  %v2196_v3 = vsel %vm518_vm13, %v2182_v52, %v2190_v59 }
 0x7b2   : > { %v2214_v1 = vmax.f32 %v2174_v39, %v2196_v3  ;;  %v2158_v3 = vsel %vm473_vm12, %v8028_v2, %v8008_v32 }
 0x7b3   : > { %v2178_v2 = vmax.f32 %v7894_v20, %v2158_v3  ;;  %v2201_v20 = vsel %vm518_vm13, %v8048_v7, %v8018_v18 }
 0x7b4   : > { %2420 = vrot.lane.b32.xlu2 %v7977_v12, %s4638_s21 }
 0x7b5   : > { %2452 = vrot.lane.b32.xlu0 %v7930_v9, %s4639_s22 }
 0x7b6   : > { %v8054_v10 = vpop.permute.xlu2 %2231  ;;  %2418 = vrot.lane.b32.xlu1 %v7939_v21, %s4638_s21 }
 0x7b7   : > { %v2222_v26 = vpop.permute.xlu0 %2221 }
 0x7b8   : > { %v2188_v33 = vpop.permute.xlu1 %2187 }
 0x7b9   : > { %v2199_v0 = vsel %vm518_vm13, %v2188_v33, %v2180_v28  ;;  %v2195_v31 = vsel %vm518_vm13, %v2180_v28, %v2188_v33 }
 0x7ba   : > { %v2212_v52 = vmax.f32 %v2172_v35, %v2195_v31 }
 0x7bc   : > { %2450 = vrot.lane.b32.xlu2 %v7972_v46, %s4639_s22 }
 0x7bd   : > { %2458 = vrot.lane.b32.xlu0 %v7939_v21, %s4639_s22  ;;  %v2205_v21 = vsel %vm238_vm15, %v2200_v15, -inf }
 0x7be   : > { %v2262_v50 = vpop.permute.xlu2 %2261  ;;  %2448 = vrot.lane.b32.xlu1 %v7950_v14, %s4639_s22  ;;  %v2213_v22 = vmax.f32 %v2173_v16, %v2205_v21 }
 0x7bf   : > { %v2228_v34 = vpop.permute.xlu0 %2227 }
 0x7c0   : > { %v2194_v4 = vpop.permute.xlu1 %2193  ;;  %v2239_v9 = vsel %vm563_vm11, %v2228_v34, %v2220_v27  ;;  %v2235_v15 = vsel %vm563_vm11, %v2220_v27, %v2228_v34 }
 0x7c1   : > { %v2244_v59 = vsel %vm249_vm10, %v2239_v9, -inf  ;;  %v2202_v27 = vsel %vm518_vm13, %v2194_v4, %v8036_v24  ;;  %v2198_v32 = vsel %vm518_vm13, %v8036_v24, %v2194_v4 }
 0x7c2   : > { %v2209_v60 = vsel %vm238_vm15, %v2202_v27, -inf  ;;  %v2218_v24 = vmax.f32 %v2178_v2, %v2198_v32  ;;  %v2157_v27 = vsel %vm473_vm12, %v8012_v19, %v8038_v58 }
 0x7c4   : > { %2456 = vrot.lane.b32.xlu2 %v7988_v23, %s4639_s22 }
 0x7c6   : > { %v2268_v47 = vpop.permute.xlu2 %2267  ;;  %2454 = vrot.lane.b32.xlu1 %v7961_v43, %s4639_s22 }
 0x7c7   : > { %v2234_v53 = vpop.permute.xlu0 %2233 }
 0x7c8   : > { %v8068_v36 = vpop.permute.xlu1 %2223 }
 0x7ce   : > { %v8076_v62 = vpop.permute.xlu2 %2273  ;;  %2460 = vrot.lane.b32.xlu1 %v7977_v12, %s4639_s22  ;;  %v2203_v12 = vsel %vm238_vm15, %v2199_v0, -inf }
 0x7cf   : > { %v8084_v48 = vpop.permute.xlu0 %2263  ;;  %v2211_v0 = vmax.f32 %v2171_v41, %v2203_v12  ;;  %v2252_v12 = vmax.f32 %v2212_v52, %v2244_v59 }
 0x7d0   : > { %v2230_v42 = vpop.permute.xlu1 %2229 }
 0x7d1   : > { %v2240_v61 = vsel %vm563_vm11, %v2230_v42, %v2222_v26  ;;  %v2236_v56 = vsel %vm563_vm11, %v2222_v26, %v2230_v42  ;;  %v2251_v63 = vmax.f32 %v2211_v0, %v2235_v15  ;;  %v2242_v15 = vsel %vm563_vm11, %v2234_v53, %v8044_v6 }
 0x7d2   : > { %v2246_v28 = vsel %vm249_vm10, %v2240_v61, -inf  ;;  %v2253_v21 = vmax.f32 %v2213_v22, %v2236_v56  ;;  %v2177_v56 = vmax.f32 %v7871_v51, %v2169_v44  ;;  %v2238_v22 = vsel %vm563_vm11, %v8044_v6, %v2234_v53 }
 0x7d3   : > { %v2254_v9 = vmax.f32 %v2214_v1, %v2246_v28  ;;  %v2161_v0 = vsel %vm473_vm12, %v8038_v58, %v8012_v19  ;;  %v2250_v51 = vsel %vm249_vm10, %v2242_v15, -inf  ;;  %v2197_v19 = vsel %vm518_vm13, %v8018_v18, %v8048_v7 }
 0x7d4   : > { %v2217_v59 = vmax.f32 %v2177_v56, %v2209_v60  ;;  %v2167_v1 = vsel %vm230_vm14, %v2161_v0, -inf  ;;  %v2258_v52 = vmax.f32 %v2218_v24, %v2250_v51  ;;  %v2176_v58 = vmax.f32 %v7896_v40, %v2157_v27 }
 0x7d6   : > { %v8120_v33 = vpop.permute.xlu2 %2330  ;;  %v2257_v6 = vmax.f32 %v2217_v59, %v2238_v22 }
 0x7d7   : > { %v2270_v41 = vpop.permute.xlu0 %2269 }
 0x7d8   : > { %v2276_v26 = vsel %vm608_vm9, %v2262_v50, %v2270_v41  ;;  %v2280_v34 = vsel %vm608_vm9, %v2270_v41, %v2262_v50  ;;  %v2260_v42 = vpop.permute.xlu1 %2259 }
 0x7d9   : > { %v2286_v39 = vsel %vm257_vm8, %v2280_v34, -inf  ;;  %v2293_v49 = vmax.f32 %v2253_v21, %v2276_v26  ;;  %v2275_v61 = vsel %vm608_vm9, %v2260_v42, %v2268_v47  ;;  %v2279_v16 = vsel %vm608_vm9, %v2268_v47, %v2260_v42 }
 0x7da   : > { %v2294_v31 = vmax.f32 %v2254_v9, %v2286_v39  ;;  %v2284_v50 = vsel %vm257_vm8, %v2279_v16, -inf  ;;  %v2291_v35 = vmax.f32 %v2251_v63, %v2275_v61  ;;  %v2241_v9 = vsel %vm563_vm11, %v8054_v10, %v8068_v36 }
 0x7db   : > { %4486 = vst [vmem:[%s4680_s18 + $0x190] sm:$0xff] %v2293_v49  ;;  %v2292_v47 = vmax.f32 %v2252_v12, %v2284_v50  ;;  %v2207_v12 = vsel %vm238_vm15, %v2201_v20, -inf  ;;  %v2237_v34 = vsel %vm563_vm11, %v8068_v36, %v8054_v10  ;;  %v2216_v39 = vmax.f32 %v2176_v58, %v2197_v19 }
 0x7dc   : > { %4487 = vst [vmem:[%s4680_s18 + $0x198] sm:$0xff] %v2294_v31 }
 0x7dd   : > { %4484 = vst [vmem:[%s4680_s18 + $0x180] sm:$0xff] %v2291_v35 }
 0x7de   : > { %4485 = vst [vmem:[%s4680_s18 + $0x188] sm:$0xff] %v2292_v47  ;;  %v8166_v28 = vpop.permute.xlu2 %2336 }
 0x7df   : > { %v8168_v4 = vpop.permute.xlu0 %2326 }
 0x7e0   : > { %v2266_v53 = vpop.permute.xlu1 %2265 }
 0x7e1   : > { %v2278_v44 = vsel %vm608_vm9, %v2266_v53, %v8076_v62  ;;  %v2282_v63 = vsel %vm608_vm9, %v8076_v62, %v2266_v53  ;;  %v2175_v62 = vmax.f32 %v7753_v30, %v2167_v1  ;;  %v2248_v30 = vsel %vm249_vm10, %v2241_v9, -inf }
 0x7e2   : > { %v2290_v21 = vsel %vm257_vm8, %v2282_v63, -inf  ;;  %v2297_v41 = vmax.f32 %v2257_v6, %v2278_v44  ;;  %v2256_v16 = vmax.f32 %v2216_v39, %v2248_v30 }
 0x7e3   : > { %v2298_v26 = vmax.f32 %v2258_v52, %v2290_v21  ;;  %v2215_v42 = vmax.f32 %v2175_v62, %v2207_v12 }
 0x7e4   : > { %4490 = vst [vmem:[%s4680_s18 + $0x1b0] sm:$0xff] %v2297_v41 }
 0x7e5   : > { %4491 = vst [vmem:[%s4680_s18 + $0x1b8] sm:$0xff] %v2298_v26  ;;  %v2255_v61 = vmax.f32 %v2215_v42, %v2237_v34 }
 0x7e6   : > { %v2367_v7 = vpop.permute.xlu2 %2366 }
 0x7e7   : > { %v8208_v49 = vpop.permute.xlu0 %2332 }
 0x7e8   : > { %v2272_v18 = vpop.permute.xlu1 %2271 }
 0x7e9   : > { %v2277_v40 = vsel %vm608_vm9, %v8084_v48, %v2272_v18  ;;  %v2281_v10 = vsel %vm608_vm9, %v2272_v18, %v8084_v48 }
 0x7ea   : > { %v2288_v36 = vsel %vm257_vm8, %v2281_v10, -inf  ;;  %v2295_v3 = vmax.f32 %v2255_v61, %v2277_v40 }
 0x7eb   : > { %v2296_v31 = vmax.f32 %v2256_v16, %v2288_v36 }
 0x7ec   : > { %4488 = vst [vmem:[%s4680_s18 + $0x1a0] sm:$0xff] %v2295_v3 }
 0x7ed   : > { %4489 = vst [vmem:[%s4680_s18 + $0x1a8] sm:$0xff] %v2296_v31 }
 0x7ee   : > { %v8222_v60 = vpop.permute.xlu2 %2372 }
 0x7ef   : > { %v8220_v50 = vpop.permute.xlu0 %2338 }
 0x7f0   : > { %v2329_v35 = vpop.permute.xlu1 %2328  ;;  %v2348_v63 = vsel %vm11632_vm2, %v8220_v50, %v8120_v33  ;;  %vm11638_vm2 = vcmp.ge.s32.totalorder %v11537_v13, 0 }
 0x7f1   : > { %v2347_v27 = vsel %vm11633_vm7, %v8166_v28, %v2329_v35  ;;  %v2354_v9 = vsel %vm11635_vm0, %v2348_v63, -inf  ;;  %v2343_v30 = vsel %vm11633_vm7, %v2329_v35, %v8166_v28  ;;  %vm11640_vm0 = vmmov %vm11638_vm2 }
 0x7f2   : > { %v2352_v62 = vsel %vm11637_vm4, %v2347_v27, -inf  ;;  %v2362_v42 = vmax.f32 %v7972_v46, %v2354_v9 }
 0x7f3   : > { %v2360_v18 = vmax.f32 %v7950_v14, %v2352_v62 }
 0x7f6   : > { %v8224_v56 = vpop.permute.xlu2 %2378 }
 0x7f7   : > { %v2369_v15 = vpop.permute.xlu0 %2368 }
 0x7f8   : > { %v2335_v47 = vpop.permute.xlu1 %2334 }
 0x7fe   : > { %v2409_v48 = vpop.permute.xlu2 %2408 }
 0x7ff   : > { %v2375_v32 = vpop.permute.xlu0 %2374 }
 0x800   : > { %v8226_v2 = vpop.permute.xlu1 %2340 }
 0x806   : > { %v2415_v24 = vpop.permute.xlu2 %2414 }
 0x807   : > { %v8228_v22 = vpop.permute.xlu0 %2380 }
 0x808   : > { %v8230_v0 = vpop.permute.xlu1 %2370 }
 0x809   : > { %v2388_v41 = vsel %vm11634_vm5, %v8224_v56, %v8230_v0  ;;  %vm11639_vm5 = vmmov %vm11633_vm7 }
 0x80a   : > { %v2394_v58 = vsel %vm11638_vm2, %v2388_v41, -inf  ;;  %v2346_v39 = vsel %vm11639_vm5, %v2335_v47, %v8168_v4  ;;  %vm11643_vm2 = vcmp.ge.s32.totalorder %v11548_v37, 0  ;;  %vm11644_vm7 = vmmov %vm11639_vm5  ;;  %vm11645_vm5 = vcmp.ge.s32.totalorder %v11535_v8, 0 }
 0x80b   : > { %v2402_v40 = vmax.f32 %v2362_v42, %v2394_v58  ;;  %v2353_v28 = vsel %vm11643_vm2, %v2343_v30, -inf  ;;  %v2342_v36 = vsel %vm11644_vm7, %v8168_v4, %v2335_v47  ;;  %v2350_v3 = vsel %vm11645_vm5, %v2346_v39, -inf }
 0x80c   : > { %vm11649_vm2 = vcmp.lt.s32.totalorder %v11543_v11, 16  ;;  %vm11650_vm7 = vcmp.ge.s32.totalorder %v11548_v37, 0  ;;  %v2361_v30 = vmax.f32 %v7988_v23, %v2353_v28 }
 0x80d   : > { %vm11651_vm5 = vmmov %vm11649_vm2 }
 0x80e   : > { %v8234_v53 = vpop.permute.xlu2 %2420 }
 0x80f   : > { %v8232_v59 = vpop.permute.xlu0 %2410 }
 0x810   : > { %v2377_v51 = vpop.permute.xlu1 %2376 }
 0x811   : > { %v2387_v26 = vsel %vm11636_vm1, %v2377_v51, %v2369_v15  ;;  %vm11641_vm1 = vcmp.lt.s32.totalorder %v11539_v55, 16 }
 0x812   : > { %v2392_v61 = vsel %vm11640_vm0, %v2387_v26, -inf  ;;  %vm11642_vm4 = vmmov %vm11641_vm1  ;;  %vm11646_vm0 = vcmp.lt.s32.totalorder %v4812_v29, 1 }
 0x813   : > { %v2400_v31 = vmax.f32 %v2360_v18, %v2392_v61  ;;  %v2382_v35 = vsel %vm11646_vm0, %v2367_v7, %v2375_v32  ;;  %v2358_v61 = vmax.f32 %v7919_v17, %v2350_v3 }
 0x816   : > { %v8240_v44 = vpop.permute.xlu2 %2450 }
 0x817   : > { %v2417_v20 = vpop.permute.xlu0 %2416 }
 0x818   : > { %v2407_v6 = vpop.permute.xlu1 %2406  ;;  %v2423_v34 = vsel %vm383_vm3, %v2409_v48, %v2417_v20 }
 0x819   : > { %v2432_v46 = vsel %vm11642_vm4, %v2423_v34, -inf  ;;  %vm11648_vm4 = vmmov %vm11646_vm0  ;;  %v2426_v34 = vsel %vm383_vm3, %v2415_v24, %v2407_v6 }
 0x81a   : > { %v2386_v4 = vsel %vm11648_vm4, %v2375_v32, %v2367_v7  ;;  %v2440_v47 = vmax.f32 %v2400_v31, %v2432_v46  ;;  %v2422_v32 = vsel %vm383_vm3, %v2407_v6, %v2415_v24 }
 0x81e   : > { %v2457_v10 = vpop.permute.xlu2 %2456 }
 0x81f   : > { %v8236_v1 = vpop.permute.xlu0 %2446 }
 0x820   : > { %v8238_v52 = vpop.permute.xlu1 %2412 }
 0x827   : > { %v8249_v21 = vpop.permute.xlu0 %2452 }
 0x828   : > { %v8255_v12 = vpop.permute.xlu1 %2418 }
 0x829   : > { %v2424_v19 = vsel %vm383_vm3, %v8232_v59, %v8255_v12 }
 0x82a   : > { %v2434_v16 = vsel %vm11641_vm1, %v2424_v19, -inf  ;;  %vm11647_vm1 = vmmov %vm11646_vm0  ;;  %vm11652_vm0 = vcmp.ge.s32.totalorder %v11560_v25, 0 }
 0x82b   : > { %v2383_v63 = vsel %vm11647_vm1, %v2369_v15, %v2377_v51  ;;  %v2442_v27 = vmax.f32 %v2402_v40, %v2434_v16  ;;  %v2351_v15 = vsel %vm11650_vm7, %v2342_v36, -inf  ;;  %v2427_v51 = vsel %vm383_vm3, %v2417_v20, %v2409_v48  ;;  %vm11654_vm4 = vmmov %vm11652_vm0 }
 0x82c   : > { %v2393_v7 = vsel %vm11652_vm0, %v2383_v63, -inf  ;;  %vm11653_vm1 = vcmp.ge.s32.totalorder %v11537_v13, 0  ;;  %v2391_v20 = vsel %vm11654_vm4, %v2382_v35, -inf  ;;  %v2359_v24 = vmax.f32 %v7961_v43, %v2351_v15 }
 0x82d   : > { %v2390_v48 = vsel %vm11653_vm1, %v2386_v4, -inf  ;;  %vm11656_vm7 = vcmp.lt.s32.totalorder %v11565_v5, 16  ;;  %v2401_v18 = vmax.f32 %v2361_v30, %v2393_v7 }
 0x82e   : > { %v2433_v6 = vsel %vm11656_vm7, %v2427_v51, -inf  ;;  %vm11658_vm0 = vmmov %vm11656_vm7  ;;  %v2398_v40 = vmax.f32 %v2358_v61, %v2390_v48  ;;  %v2399_v43 = vmax.f32 %v2359_v24, %v2391_v20  ;;  %vm11663_vm7 = vcmp.lt.s32.totalorder %v4812_v29, 1 }
 0x82f   : > { %v8292_v14 = vpop.permute.xlu0 %2458  ;;  %v2431_v17 = vsel %vm11658_vm0, %v2426_v34, -inf  ;;  %v2385_v3 = vsel %vm11663_vm7, %v8222_v60, %v8228_v22  ;;  %v2441_v35 = vmax.f32 %v2401_v18, %v2433_v6  ;;  %vm11665_vm0 = vcmp.ge.s32.totalorder %v11548_v37, 0 }
 0x830   : > { %v2464_v41 = vsel %vm428_vm6, %v8240_v44, %v8292_v14  ;;  %v2449_v9 = vpop.permute.xlu1 %2448 }
 0x831   : > { %v2474_v26 = vsel %vm11649_vm2, %v2464_v41, -inf  ;;  %v2463_v62 = vsel %vm428_vm6, %v2449_v9, %v2457_v10  ;;  %v2467_v39 = vsel %vm428_vm6, %v2457_v10, %v2449_v9  ;;  %vm11655_vm2 = vcmp.lt.s32.totalorder %v4812_v29, 2  ;;  %v11660_v10 = vld [vmem:[#allocation9_spill] sm:$0xff] }
 0x832   : > { %v8312_v19 = vmax.f32 %v2442_v27, %v2474_v26  ;;  %v2472_v58 = vsel %vm11651_vm5, %v2463_v62, -inf  ;;  %v2349_v23 = vsel %vm11655_vm2, %v8226_v2, %v8208_v49  ;;  %vm11657_vm5 = vcmp.lt.s32.totalorder %v11539_v55, 16  ;;  %vm11659_vm1 = vmmov %vm11655_vm2 }
 0x833   : > { %v8322_v42 = vmax.f32 %v2440_v47, %v2472_v58  ;;  %v2430_v16 = vsel %vm11657_vm5, %v2422_v32, -inf  ;;  %v2345_v46 = vsel %vm11659_vm1, %v8208_v49, %v8226_v2  ;;  %vm11661_vm4 = vcmp.lt.s32.totalorder %v11660_v10, 16  ;;  %vm11664_vm5 = vmmov %vm11663_vm7  ;;  %v11669_v58 = vld [vmem:[#allocation16_spill] sm:$0xff]  ;;  %v11670_v32 = vld [vmem:[#allocation18_spill] sm:$0xff] }
 0x834   : > { %2490 = vrot.lane.b32.xlu1 %v8312_v19, %s4640_s23  ;;  %v2473_v28 = vsel %vm11661_vm4, %v2467_v39, -inf  ;;  %vm11662_vm2 = vcmp.ge.s32.totalorder %v11535_v8, 0  ;;  %v2389_v31 = vsel %vm11664_vm5, %v8228_v22, %v8222_v60  ;;  %v2438_v27 = vmax.f32 %v2398_v40, %v2430_v16  ;;  %v11679_v40 = vld [vmem:[#allocation14_spill] sm:$0xff] }
 0x835   : > { %2488 = vrot.lane.b32.xlu0 %v8322_v42, %s4640_s23  ;;  %v2356_v36 = vsel %vm11662_vm2, %v2349_v23, -inf  ;;  %v2439_v49 = vmax.f32 %v2399_v43, %v2431_v17  ;;  %v2357_v9 = vsel %vm11665_vm0, %v2345_v46, -inf  ;;  %v8371_v4 = vmax.f32 %v2441_v35, %v2473_v28 }
 0x836   : > { %vm11666_vm1 = vcmp.lt.s32.totalorder %v11543_v11, 16  ;;  %v2425_v47 = vsel %vm383_vm3, %v8238_v52, %v8234_v53  ;;  %vm11667_vm2 = vcmp.ge.s32.totalorder %v11537_v13, 0  ;;  %vm11668_vm7 = vcmp.ge.s32.totalorder %v11560_v25, 0 }
 0x837   : > { %v2396_v15 = vsel %vm11667_vm2, %v2389_v31, -inf  ;;  %v2397_v51 = vsel %vm11668_vm7, %v2385_v3, -inf  ;;  %v2364_v7 = vmax.f32 %v11669_v58, %v2356_v36  ;;  %v2365_v34 = vmax.f32 %v11670_v32, %v2357_v9 }
 0x838   : > { %v2455_v63 = vpop.permute.xlu1 %2454  ;;  %vm11671_vm5 = vcmp.lt.s32.totalorder %v11539_v55, 16  ;;  %vm11672_vm0 = vcmp.lt.s32.totalorder %v11565_v5, 16  ;;  %vm11675_vm2 = vcmp.ge.s32.totalorder %v11548_v37, 0  ;;  %vm11676_vm7 = vcmp.lt.s32.totalorder %v11543_v11, 16 }
 0x839   : > { %v2462_v2 = vsel %vm428_vm6, %v8236_v1, %v2455_v63  ;;  %v2466_v41 = vsel %vm428_vm6, %v2455_v63, %v8236_v1  ;;  %v2429_v1 = vsel %vm383_vm3, %v8234_v53, %v8238_v52  ;;  %v2436_v53 = vsel %vm11671_vm5, %v2425_v47, -inf }
 0x83a   : > { %v2470_v60 = vsel %vm11666_vm1, %v2462_v2, -inf  ;;  %v2471_v22 = vsel %vm11661_vm4, %v2466_v41, -inf  ;;  %v2437_v52 = vsel %vm11672_vm0, %v2429_v1, -inf  ;;  %vm11673_vm1 = vcmp.lt.s32.totalorder %v4812_v29, 2 }
 0x83b   : > { %v8385_v26 = vmax.f32 %v2438_v27, %v2470_v60  ;;  %v8387_v62 = vmax.f32 %v2439_v49, %v2471_v22  ;;  %v2344_v30 = vsel %vm11673_vm1, %v8120_v33, %v8220_v50  ;;  %v2404_v48 = vmax.f32 %v2364_v7, %v2396_v15 }
 0x83c   : > { %2496 = vrot.lane.b32.xlu1 %v8371_v4, %s4640_s23  ;;  %v2405_v20 = vmax.f32 %v2365_v34, %v2397_v51  ;;  %vm11674_vm4 = vcmp.lt.s32.totalorder %v4812_v29, 1  ;;  %v2355_v33 = vsel %vm11675_vm2, %v2344_v30, -inf  ;;  %vm11677_vm5 = vcmp.lt.s32.totalorder %v11660_v10, 16 }
 0x83d   : > { %2494 = vrot.lane.b32.xlu0 %v8387_v62, %s4640_s23  ;;  %2486 = vrot.lane.b32.xlu2 %v8385_v26, %s4640_s23  ;;  %v2384_v39 = vsel %vm11674_vm4, %v8230_v0, %v8224_v56  ;;  %v2444_v24 = vmax.f32 %v2404_v48, %v2436_v53  ;;  %v2428_v0 = vsel %vm383_vm3, %v8255_v12, %v8232_v59  ;;  %vm11678_vm0 = vcmp.ge.s32.totalorder %v11560_v25, 0  ;;  %vm11681_vm4 = vmmov %vm11677_vm5 }
 0x83e   : > { %v2445_v23 = vmax.f32 %v2405_v20, %v2437_v52  ;;  %v2363_v43 = vmax.f32 %v11679_v40, %v2355_v33  ;;  %v2468_v46 = vsel %vm428_vm6, %v8292_v14, %v8240_v44  ;;  %vm11680_vm1 = vcmp.lt.s32.totalorder %v11565_v5, 16 }
 0x83f   : > { %v2435_v59 = vsel %vm11680_vm1, %v2428_v0, -inf  ;;  %v2475_v28 = vsel %vm11681_vm4, %v2468_v46, -inf  ;;  %vm11682_vm2 = vcmp.lt.s32.totalorder %v4812_v29, 2  ;;  %vm11686_vm1 = vcmp.ge.s32.totalorder %v11535_v8, 0 }
 0x840   : > { %v2461_v61 = vpop.permute.xlu1 %2460  ;;  %vm11687_vm4 = vmmov %vm11686_vm1 }
 0x841   : > { %v2465_v6 = vsel %vm428_vm6, %v8249_v21, %v2461_v61  ;;  %v2469_v18 = vsel %vm428_vm6, %v2461_v61, %v8249_v21  ;;  %v2395_v21 = vsel %vm11678_vm0, %v2384_v39, -inf }
 0x842   : > { %v2476_v50 = vsel %vm11676_vm7, %v2465_v6, -inf  ;;  %v2477_v56 = vsel %vm11677_vm5, %v2469_v18, -inf  ;;  %v2403_v12 = vmax.f32 %v2363_v43, %v2395_v21  ;;  %vm11683_vm7 = vmmov %vm11682_vm2  ;;  %vm11684_vm5 = vcmp.lt.s32.totalorder %v4812_v29, 1 }
 0x843   : > { %v8429_v16 = vmax.f32 %v2444_v24, %v2476_v50  ;;  %v8431_v17 = vmax.f32 %v2445_v23, %v2477_v56  ;;  %vm11685_vm0 = vmmov %vm11684_vm5 }
 0x844   : > { %2526 = vrot.lane.b32.xlu1 %v8385_v26, %s4641_s24  ;;  %v2443_v36 = vmax.f32 %v2403_v12, %v2435_v59 }
 0x845   : > { %2500 = vrot.lane.b32.xlu0 %v8431_v17, %s4640_s23  ;;  %2492 = vrot.lane.b32.xlu2 %v8429_v16, %s4640_s23 }
 0x846   : > { %v8450_v3 = vmax.f32 %v2443_v36, %v2475_v28 }
 0x84c   : > { %2532 = vrot.lane.b32.xlu1 %v8429_v16, %s4641_s24 }
 0x84d   : > { %2498 = vrot.lane.b32.xlu2 %v8450_v3, %s4640_s23  ;;  %2530 = vrot.lane.b32.xlu0 %v8312_v19, %s4641_s24 }
 0x854   : > { %2538 = vrot.lane.b32.xlu1 %v8450_v3, %s4641_s24 }
 0x855   : > { %2528 = vrot.lane.b32.xlu2 %v8322_v42, %s4641_s24  ;;  %2536 = vrot.lane.b32.xlu0 %v8371_v4, %s4641_s24 }
 0x85c   : > { %2568 = vrot.lane.b32.xlu1 %v8322_v42, %s4642_s25 }
 0x85d   : > { %2534 = vrot.lane.b32.xlu2 %v8387_v62, %s4641_s24  ;;  %2566 = vrot.lane.b32.xlu0 %v8385_v26, %s4642_s25 }
 0x864   : > { %2574 = vrot.lane.b32.xlu1 %v8387_v62, %s4642_s25 }
 0x865   : > { %2540 = vrot.lane.b32.xlu2 %v8431_v17, %s4641_s24  ;;  %2572 = vrot.lane.b32.xlu0 %v8429_v16, %s4642_s25 }
 0x86c   : > { %2580 = vrot.lane.b32.xlu1 %v8431_v17, %s4642_s25 }
 0x86d   : > { %2570 = vrot.lane.b32.xlu2 %v8312_v19, %s4642_s25  ;;  %2578 = vrot.lane.b32.xlu0 %v8450_v3, %s4642_s25 }
 0x874   : > { %2610 = vrot.lane.b32.xlu1 %v8312_v19, %s4643_s26 }
 0x875   : > { %2576 = vrot.lane.b32.xlu2 %v8371_v4, %s4642_s25  ;;  %2608 = vrot.lane.b32.xlu0 %v8322_v42, %s4643_s26 }
 0x87c   : > { %2616 = vrot.lane.b32.xlu1 %v8371_v4, %s4643_s26 }
 0x87d   : > { %2606 = vrot.lane.b32.xlu2 %v8385_v26, %s4643_s26  ;;  %2614 = vrot.lane.b32.xlu0 %v8387_v62, %s4643_s26 }
 0x885   : > { %2612 = vrot.lane.b32.xlu2 %v8429_v16, %s4643_s26  ;;  %2620 = vrot.lane.b32.xlu0 %v8431_v17, %s4643_s26 }
 0x88d   : > { %2618 = vrot.lane.b32.xlu2 %v8450_v3, %s4643_s26 }
 0x897   : > { %v2487_v44 = vpop.permute.xlu2 %2486 }
 0x89f   : > { %v8500_v14 = vpop.permute.xlu2 %2492 }
 0x8a6   : > { %v2491_v31 = vpop.permute.xlu1 %2490 }
 0x8a7   : > { %v2499_v35 = vpop.permute.xlu2 %2498  ;;  %v2489_v63 = vpop.permute.xlu0 %2488 }
 0x8a8   : > { %v2508_v48 = vsel %vm473_vm12, %v2499_v35, %v2491_v31  ;;  %v2504_v18 = vsel %vm473_vm12, %v2491_v31, %v2499_v35 }
 0x8a9   : > { %v2514_v23 = vsel %vm230_vm14, %v2508_v48, -inf  ;;  %v2523_v43 = vmax.f32 %v8450_v3, %v2504_v18 }
 0x8aa   : > { %v2522_v0 = vmax.f32 %v8312_v19, %v2514_v23 }
 0x8ae   : > { %v2497_v27 = vpop.permute.xlu1 %2496 }
 0x8af   : > { %v2529_v49 = vpop.permute.xlu2 %2528  ;;  %v2495_v2 = vpop.permute.xlu0 %2494  ;;  %v2507_v6 = vsel %vm473_vm12, %v2497_v27, %v2489_v63  ;;  %v2503_v33 = vsel %vm473_vm12, %v2489_v63, %v2497_v27 }
 0x8b0   : > { %v2512_v21 = vsel %vm230_vm14, %v2507_v6, -inf  ;;  %v2506_v46 = vsel %vm473_vm12, %v2495_v2, %v2487_v44  ;;  %v2521_v12 = vmax.f32 %v8371_v4, %v2503_v33  ;;  %v2502_v31 = vsel %vm473_vm12, %v2487_v44, %v2495_v2 }
 0x8b1   : > { %v2520_v36 = vmax.f32 %v8322_v42, %v2512_v21  ;;  %v2510_v27 = vsel %vm230_vm14, %v2506_v46, -inf  ;;  %v2519_v6 = vmax.f32 %v8387_v62, %v2502_v31 }
 0x8b6   : > { %v2527_v41 = vpop.permute.xlu1 %2526 }
 0x8b7   : > { %v2535_v9 = vpop.permute.xlu2 %2534  ;;  %v8502_v60 = vpop.permute.xlu0 %2500 }
 0x8b8   : > { %v2546_v4 = vsel %vm518_vm13, %v2535_v9, %v2527_v41  ;;  %v2542_v18 = vsel %vm518_vm13, %v2527_v41, %v2535_v9 }
 0x8b9   : > { %v2550_v33 = vsel %vm238_vm15, %v2546_v4, -inf  ;;  %v2505_v4 = vsel %vm473_vm12, %v8500_v14, %v8502_v60 }
 0x8be   : > { %v8504_v22 = vpop.permute.xlu1 %2532 }
 0x8bf   : > { %v8506_v47 = vpop.permute.xlu2 %2540  ;;  %v2531_v1 = vpop.permute.xlu0 %2530 }
 0x8c0   : > { %v2549_v46 = vsel %vm518_vm13, %v8506_v47, %v8504_v22 }
 0x8c6   : > { %v2539_v15 = vpop.permute.xlu1 %2538 }
 0x8c7   : > { %v2571_v51 = vpop.permute.xlu2 %2570  ;;  %v2537_v58 = vpop.permute.xlu0 %2536  ;;  %v2548_v39 = vsel %vm518_vm13, %v2539_v15, %v2531_v1  ;;  %v2544_v40 = vsel %vm518_vm13, %v2531_v1, %v2539_v15 }
 0x8c8   : > { %v2554_v50 = vsel %vm238_vm15, %v2548_v39, -inf  ;;  %v2563_v35 = vmax.f32 %v2523_v43, %v2544_v40  ;;  %v2547_v3 = vsel %vm518_vm13, %v2537_v58, %v2529_v49  ;;  %v2543_v1 = vsel %vm518_vm13, %v2529_v49, %v2537_v58 }
 0x8c9   : > { %v2562_v28 = vmax.f32 %v2522_v0, %v2554_v50  ;;  %v2509_v0 = vsel %vm473_vm12, %v8502_v60, %v8500_v14  ;;  %v2561_v9 = vmax.f32 %v2521_v12, %v2543_v1 }
 0x8ce   : > { %v2569_v7 = vpop.permute.xlu1 %2568 }
 0x8cf   : > { %v2577_v32 = vpop.permute.xlu2 %2576  ;;  %v2567_v34 = vpop.permute.xlu0 %2566 }
 0x8d0   : > { %v2587_v44 = vsel %vm563_vm11, %v2577_v32, %v2569_v7  ;;  %v2583_v21 = vsel %vm563_vm11, %v2569_v7, %v2577_v32  ;;  %v2559_v7 = vmax.f32 %v2519_v6, %v2542_v18  ;;  %v2516_v32 = vsel %vm230_vm14, %v2509_v0, -inf }
 0x8d1   : > { %v2593_v62 = vsel %vm249_vm10, %v2587_v44, -inf  ;;  %v2524_v60 = vmax.f32 %v8429_v16, %v2516_v32  ;;  %v2545_v44 = vsel %vm518_vm13, %v8504_v22, %v8506_v47 }
 0x8d2   : > { %v2601_v12 = vmax.f32 %v2561_v9, %v2593_v62 }
 0x8d6   : > { %v2575_v53 = vpop.permute.xlu1 %2574 }
 0x8d7   : > { %v8508_v52 = vpop.permute.xlu2 %2606  ;;  %v8510_v30 = vpop.permute.xlu0 %2572  ;;  %v2586_v49 = vsel %vm563_vm11, %v2575_v53, %v2567_v34 }
 0x8d8   : > { %v2591_v40 = vsel %vm249_vm10, %v2586_v49, -inf }
 0x8de   : > { %v8514_v20 = vpop.permute.xlu1 %2580 }
 0x8df   : > { %v8518_v61 = vpop.permute.xlu2 %2612  ;;  %v2579_v24 = vpop.permute.xlu0 %2578  ;;  %v2585_v16 = vsel %vm563_vm11, %v8510_v30, %v8514_v20 }
 0x8e0   : > { %v2588_v56 = vsel %vm563_vm11, %v2579_v24, %v2571_v51  ;;  %v2584_v59 = vsel %vm563_vm11, %v2571_v51, %v2579_v24  ;;  %v2552_v24 = vsel %vm238_vm15, %v2547_v3, -inf }
 0x8e1   : > { %v2595_v19 = vsel %vm249_vm10, %v2588_v56, -inf  ;;  %v2602_v15 = vmax.f32 %v2562_v28, %v2584_v59  ;;  %v2518_v56 = vmax.f32 %v8385_v26, %v2510_v27  ;;  %v2560_v41 = vmax.f32 %v2520_v36, %v2552_v24 }
 0x8e2   : > { %v2603_v2 = vmax.f32 %v2563_v35, %v2595_v19  ;;  %v2582_v26 = vsel %vm563_vm11, %v2567_v34, %v2575_v53  ;;  %v2599_v53 = vmax.f32 %v2559_v7, %v2591_v40 }
 0x8e3   : > { %v2558_v43 = vmax.f32 %v2518_v56, %v2550_v33  ;;  %v2600_v59 = vmax.f32 %v2560_v41, %v2583_v21 }
 0x8e5   : > { %v2598_v34 = vmax.f32 %v2558_v43, %v2582_v26 }
 0x8e6   : > { %v2611_v63 = vpop.permute.xlu1 %2610 }
 0x8e7   : > { %v2619_v51 = vpop.permute.xlu2 %2618  ;;  %v2609_v42 = vpop.permute.xlu0 %2608 }
 0x8e8   : > { %v2624_v48 = vsel %vm608_vm9, %v2611_v63, %v2619_v51  ;;  %v2628_v39 = vsel %vm608_vm9, %v2619_v51, %v2611_v63 }
 0x8e9   : > { %v2635_v58 = vsel %vm257_vm8, %v2628_v39, -inf  ;;  %v8568_v23 = vmax.f32 %v2602_v15, %v2624_v48 }
 0x8ea   : > { %v8575_v50 = vmax.f32 %v2603_v2, %v2635_v58  ;;  %v2525_v2 = vmax.f32 %v8431_v17, %v2505_v4 }
 0x8eb   : > { %4512 = vst [vmem:[%s4680_s18 + $0x220] sm:$0xff] %v8568_v23  ;;  %2659 = vrot.lane.b32.xlu0 %v8568_v23, %s4636_s19 }
 0x8ec   : > { %4513 = vst [vmem:[%s4680_s18 + $0x228] sm:$0xff] %v8575_v50  ;;  %v2565_v47 = vmax.f32 %v2525_v2, %v2545_v44 }
 0x8ee   : > { %v2617_v28 = vpop.permute.xlu1 %2616 }
 0x8ef   : > { %v2623_v19 = vsel %vm608_vm9, %v2609_v42, %v2617_v28  ;;  %v2627_v36 = vsel %vm608_vm9, %v2617_v28, %v2609_v42  ;;  %v2615_v31 = vpop.permute.xlu0 %2614  ;;  %v2556_v42 = vsel %vm238_vm15, %v2549_v46, -inf }
 0x8f0   : > { %v2633_v35 = vsel %vm257_vm8, %v2627_v36, -inf  ;;  %v8608_v3 = vmax.f32 %v2600_v59, %v2623_v19  ;;  %v2622_v63 = vsel %vm608_vm9, %v8508_v52, %v2615_v31  ;;  %v2626_v27 = vsel %vm608_vm9, %v2615_v31, %v8508_v52 }
 0x8f1   : > { %v8620_v1 = vmax.f32 %v2601_v12, %v2633_v35  ;;  %v2631_v15 = vsel %vm257_vm8, %v2626_v27, -inf  ;;  %v8624_v51 = vmax.f32 %v2598_v34, %v2622_v63  ;;  %v2589_v52 = vsel %vm563_vm11, %v8514_v20, %v8510_v30 }
 0x8f2   : > { %4510 = vst [vmem:[%s4680_s18 + $0x210] sm:$0xff] %v8608_v3  ;;  %v8634_v14 = vmax.f32 %v2599_v53, %v2631_v15  ;;  %2657 = vrot.lane.b32.xlu2 %v8608_v3, %s4636_s19  ;;  %v2564_v48 = vmax.f32 %v2524_v60, %v2556_v42  ;;  %v2597_v22 = vsel %vm249_vm10, %v2589_v52, -inf }
 0x8f3   : > { %4511 = vst [vmem:[%s4680_s18 + $0x218] sm:$0xff] %v8620_v1  ;;  %2665 = vrot.lane.b32.xlu0 %v8620_v1, %s4636_s19  ;;  %2655 = vrot.lane.b32.xlu1 %v8624_v51, %s4636_s19  ;;  %v2605_v49 = vmax.f32 %v2565_v47, %v2597_v22 }
 0x8f4   : > { %4508 = vst [vmem:[%s4680_s18 + $0x200] sm:$0xff] %v8624_v51  ;;  %v2604_v39 = vmax.f32 %v2564_v48, %v2585_v16 }
 0x8f5   : > { %4509 = vst [vmem:[%s4680_s18 + $0x208] sm:$0xff] %v8634_v14 }
 0x8f7   : > { %v2621_v24 = vpop.permute.xlu0 %2620 }
 0x8f8   : > { %v2625_v17 = vsel %vm608_vm9, %v8518_v61, %v2621_v24  ;;  %v2629_v30 = vsel %vm608_vm9, %v2621_v24, %v8518_v61 }
 0x8f9   : > { %v2637_v20 = vsel %vm257_vm8, %v2629_v30, -inf  ;;  %v8668_v58 = vmax.f32 %v2604_v39, %v2625_v17 }
 0x8fa   : > { %v8670_v6 = vmax.f32 %v2605_v49, %v2637_v20  ;;  %2663 = vrot.lane.b32.xlu2 %v8634_v14, %s4636_s19 }
 0x8fb   : > { %4514 = vst [vmem:[%s4680_s18 + $0x230] sm:$0xff] %v8668_v58  ;;  %2695 = vrot.lane.b32.xlu0 %v8624_v51, %s4637_s20  ;;  %2661 = vrot.lane.b32.xlu1 %v8668_v58, %s4636_s19 }
 0x8fc   : > { %4515 = vst [vmem:[%s4680_s18 + $0x238] sm:$0xff] %v8670_v6 }
 0x902   : > { %2669 = vrot.lane.b32.xlu2 %v8670_v6, %s4636_s19 }
 0x903   : > { %2701 = vrot.lane.b32.xlu0 %v8668_v58, %s4637_s20  ;;  %2667 = vrot.lane.b32.xlu1 %v8575_v50, %s4636_s19 }
 0x90a   : > { %2699 = vrot.lane.b32.xlu2 %v8568_v23, %s4637_s20 }
 0x90b   : > { %2707 = vrot.lane.b32.xlu0 %v8575_v50, %s4637_s20  ;;  %2697 = vrot.lane.b32.xlu1 %v8608_v3, %s4637_s20 }
 0x912   : > { %2705 = vrot.lane.b32.xlu2 %v8620_v1, %s4637_s20 }
 0x913   : > { %2737 = vrot.lane.b32.xlu0 %v8608_v3, %s4638_s21  ;;  %2703 = vrot.lane.b32.xlu1 %v8634_v14, %s4637_s20 }
 0x91a   : > { %2735 = vrot.lane.b32.xlu2 %v8624_v51, %s4638_s21 }
 0x91b   : > { %2743 = vrot.lane.b32.xlu0 %v8634_v14, %s4638_s21  ;;  %2709 = vrot.lane.b32.xlu1 %v8670_v6, %s4637_s20 }
 0x922   : > { %2741 = vrot.lane.b32.xlu2 %v8668_v58, %s4638_s21 }
 0x923   : > { %2749 = vrot.lane.b32.xlu0 %v8670_v6, %s4638_s21  ;;  %2739 = vrot.lane.b32.xlu1 %v8568_v23, %s4638_s21 }
 0x92a   : > { %2747 = vrot.lane.b32.xlu2 %v8575_v50, %s4638_s21 }
 0x92b   : > { %2779 = vrot.lane.b32.xlu0 %v8568_v23, %s4639_s22  ;;  %2745 = vrot.lane.b32.xlu1 %v8620_v1, %s4638_s21 }
 0x932   : > { %2777 = vrot.lane.b32.xlu2 %v8608_v3, %s4639_s22 }
 0x933   : > { %2785 = vrot.lane.b32.xlu0 %v8620_v1, %s4639_s22  ;;  %2775 = vrot.lane.b32.xlu1 %v8624_v51, %s4639_s22 }
 0x93a   : > { %2783 = vrot.lane.b32.xlu2 %v8634_v14, %s4639_s22 }
 0x93b   : > { %2781 = vrot.lane.b32.xlu1 %v8668_v58, %s4639_s22 }
 0x942   : > { %2789 = vrot.lane.b32.xlu2 %v8670_v6, %s4639_s22 }
 0x943   : > { %2787 = vrot.lane.b32.xlu1 %v8575_v50, %s4639_s22 }
 0x94c   : > { %v8732_v61 = vpop.permute.xlu2 %2657 }
 0x954   : > { %v2664_v18 = vpop.permute.xlu2 %2663 }
 0x95c   : > { %v2670_v33 = vpop.permute.xlu2 %2669 }
 0x95d   : > { %v8734_v56 = vpop.permute.xlu0 %2659 }
 0x964   : > { %v8738_v62 = vpop.permute.xlu2 %2699 }
 0x965   : > { %v2656_v0 = vpop.permute.xlu1 %2655  ;;  %v8736_v21 = vpop.permute.xlu0 %2665 }
 0x966   : > { %v2675_v63 = vsel %vm11682_vm2, %v2664_v18, %v2656_v0  ;;  %v2676_v27 = vsel %vm11683_vm7, %v8736_v21, %v8732_v61  ;;  %vm11688_vm2 = vcmp.ge.s32.totalorder %v11537_v13, 0 }
 0x967   : > { %v2679_v60 = vsel %vm11686_vm1, %v2675_v63, -inf  ;;  %v2681_v44 = vsel %vm11687_vm4, %v2676_v27, -inf  ;;  %vm11689_vm7 = vmmov %vm11688_vm2 }
 0x968   : > { %v2687_v39 = vmax.f32 %v8624_v51, %v2679_v60  ;;  %v2689_v24 = vmax.f32 %v8608_v3, %v2681_v44 }
 0x96c   : > { %v8740_v26 = vpop.permute.xlu2 %2705 }
 0x96d   : > { %v2662_v41 = vpop.permute.xlu1 %2661  ;;  %v2696_v9 = vpop.permute.xlu0 %2695 }
 0x974   : > { %v2736_v7 = vpop.permute.xlu2 %2735 }
 0x975   : > { %v8742_v40 = vpop.permute.xlu1 %2667  ;;  %v8744_v43 = vpop.permute.xlu0 %2701 }
 0x97c   : > { %v8750_v59 = vpop.permute.xlu2 %2741 }
 0x97d   : > { %v8746_v32 = vpop.permute.xlu1 %2697  ;;  %v8748_v46 = vpop.permute.xlu0 %2707 }
 0x97e   : > { %v2716_v42 = vsel %vm11684_vm5, %v8740_v26, %v8746_v32  ;;  %vm11690_vm5 = vcmp.lt.s32.totalorder %v4812_v29, 2 }
 0x97f   : > { %v2721_v48 = vsel %vm11688_vm2, %v2716_v42, -inf  ;;  %v2671_v47 = vsel %vm11690_vm5, %v2656_v0, %v2664_v18  ;;  %vm11693_vm4 = vmmov %vm11690_vm5  ;;  %vm11694_vm2 = vcmp.ge.s32.totalorder %v11548_v37, 0 }
 0x980   : > { %v2678_v20 = vsel %vm11693_vm4, %v2670_v33, %v2662_v41  ;;  %v2729_v63 = vmax.f32 %v2689_v24, %v2721_v48  ;;  %v2680_v42 = vsel %vm11694_vm2, %v2671_v47, -inf  ;;  %vm11700_vm2 = vcmp.lt.s32.totalorder %v4812_v29, 2 }
 0x981   : > { %v2688_v24 = vmax.f32 %v8634_v14, %v2680_v42 }
 0x984   : > { %v8756_v19 = vpop.permute.xlu2 %2747 }
 0x985   : > { %v2704_v12 = vpop.permute.xlu1 %2703  ;;  %v8752_v28 = vpop.permute.xlu0 %2737 }
 0x986   : > { %v2715_v52 = vsel %vm11685_vm0, %v2704_v12, %v2696_v9  ;;  %vm11691_vm0 = vcmp.lt.s32.totalorder %v11539_v55, 16 }
 0x987   : > { %v2719_v22 = vsel %vm11689_vm7, %v2715_v52, -inf  ;;  %vm11692_vm1 = vmmov %vm11691_vm0  ;;  %vm11695_vm7 = vcmp.lt.s32.totalorder %v4812_v29, 1 }
 0x988   : > { %v2727_v27 = vmax.f32 %v2687_v39, %v2719_v22  ;;  %v2711_v51 = vsel %vm11695_vm7, %v2696_v9, %v2704_v12  ;;  %vm11696_vm5 = vmmov %vm11695_vm7  ;;  %vm11701_vm7 = vcmp.ge.s32.totalorder %v11560_v25, 0 }
 0x98c   : > { %v8762_v35 = vpop.permute.xlu2 %2777 }
 0x98d   : > { %v8754_v34 = vpop.permute.xlu1 %2709  ;;  %v2744_v53 = vpop.permute.xlu0 %2743 }
 0x98e   : > { %v2751_v2 = vsel %vm383_vm3, %v2736_v7, %v2744_v53  ;;  %v2718_v3 = vsel %vm11696_vm5, %v8754_v34, %v8744_v43  ;;  %v2755_v48 = vsel %vm383_vm3, %v2744_v53, %v2736_v7  ;;  %vm11702_vm5 = vcmp.ge.s32.totalorder %v11537_v13, 0 }
 0x98f   : > { %v2759_v49 = vsel %vm11691_vm0, %v2751_v2, -inf  ;;  %vm11697_vm0 = vcmp.ge.s32.totalorder %v11535_v8, 0  ;;  %v2725_v7 = vsel %vm11702_vm5, %v2718_v3, -inf  ;;  %vm11708_vm5 = vcmp.ge.s32.totalorder %v11535_v8, 0 }
 0x990   : > { %v2767_v52 = vmax.f32 %v2727_v27, %v2759_v49  ;;  %v2685_v9 = vsel %vm11697_vm0, %v2678_v20, -inf  ;;  %v2674_v49 = vsel %vm11700_vm2, %v2662_v41, %v2670_v33  ;;  %vm11703_vm0 = vmmov %vm11700_vm2 }
 0x991   : > { %v2693_v53 = vmax.f32 %v8668_v58, %v2685_v9  ;;  %v2677_v20 = vsel %vm11703_vm0, %v8742_v40, %v8734_v56  ;;  %vm11706_vm2 = vmmov %vm11703_vm0  ;;  %vm11709_vm0 = vcmp.lt.s32.totalorder %v4812_v29, 1 }
 0x992   : > { %v2673_v33 = vsel %vm11706_vm2, %v8734_v56, %v8742_v40  ;;  %v2683_v42 = vsel %vm11708_vm5, %v2677_v20, -inf  ;;  %vm11714_vm5 = vcmp.lt.s32.totalorder %v11543_v11, 16 }
 0x993   : > { %v2733_v27 = vmax.f32 %v2693_v53, %v2725_v7 }
 0x994   : > { %v2784_v17 = vpop.permute.xlu2 %2783 }
 0x995   : > { %v8758_v36 = vpop.permute.xlu1 %2739  ;;  %v8760_v31 = vpop.permute.xlu0 %2749 }
 0x996   : > { %v2754_v22 = vsel %vm383_vm3, %v8750_v59, %v8760_v31 }
 0x99c   : > { %v2790_v3 = vpop.permute.xlu2 %2789 }
 0x99d   : > { %v8770_v4 = vpop.permute.xlu1 %2745  ;;  %v8772_v15 = vpop.permute.xlu0 %2779 }
 0x99e   : > { %v2752_v16 = vsel %vm383_vm3, %v8752_v28, %v8770_v4 }
 0x99f   : > { %v2761_v30 = vsel %vm11692_vm1, %v2752_v16, -inf  ;;  %vm11698_vm1 = vcmp.lt.s32.totalorder %v11543_v11, 16 }
 0x9a0   : > { %v2769_v60 = vmax.f32 %v2729_v63, %v2761_v30  ;;  %vm11699_vm4 = vmmov %vm11698_vm1  ;;  %v2720_v30 = vsel %vm11701_vm7, %v2711_v51, -inf  ;;  %vm11707_vm7 = vcmp.ge.s32.totalorder %v11548_v37, 0  ;;  %v2717_v51 = vsel %vm11709_vm0, %v8748_v46, %v8738_v62 }
 0x9a1   : > { %v2728_v41 = vmax.f32 %v2688_v24, %v2720_v30  ;;  %vm11712_vm2 = vmmov %vm11707_vm7  ;;  %v2758_v24 = vsel %vm383_vm3, %v8760_v31, %v8750_v59 }
 0x9a5   : > { %v2776_v18 = vpop.permute.xlu1 %2775  ;;  %v8812_v0 = vpop.permute.xlu0 %2785 }
 0x9a6   : > { %v2791_v44 = vsel %vm428_vm6, %v2776_v18, %v2784_v17  ;;  %v2792_v2 = vsel %vm428_vm6, %v8762_v35, %v8812_v0  ;;  %v2795_v63 = vsel %vm428_vm6, %v2784_v17, %v2776_v18  ;;  %v2686_v17 = vsel %vm11707_vm7, %v2674_v49, -inf  ;;  %vm11713_vm7 = vmmov %vm11709_vm0 }
 0x9a7   : > { %v2799_v12 = vsel %vm11698_vm1, %v2791_v44, -inf  ;;  %v2801_v16 = vsel %vm11699_vm4, %v2792_v2, -inf  ;;  %vm11704_vm1 = vcmp.lt.s32.totalorder %v11565_v5, 16  ;;  %vm11705_vm4 = vcmp.lt.s32.totalorder %v11539_v55, 16 }
 0x9a8   : > { %v8832_v47 = vmax.f32 %v2767_v52, %v2799_v12  ;;  %v8834_v39 = vmax.f32 %v2769_v60, %v2801_v16  ;;  %v2760_v14 = vsel %vm11704_vm1, %v2755_v48, -inf  ;;  %v2765_v58 = vsel %vm11705_vm4, %v2754_v22, -inf  ;;  %vm11711_vm4 = vmmov %vm11709_vm0 }
 0x9a9   : > { %vm11710_vm1 = vcmp.lt.s32.totalorder %v11660_v10, 16  ;;  %v2713_v56 = vsel %vm11711_vm4, %v8738_v62, %v8748_v46  ;;  %v2768_v40 = vmax.f32 %v2728_v41, %v2760_v14  ;;  %v2773_v60 = vmax.f32 %v2733_v27, %v2765_v58 }
 0x9aa   : > { %2815 = vrot.lane.b32.xlu0 %v8832_v47, %s4640_s23  ;;  %2817 = vrot.lane.b32.xlu1 %v8834_v39, %s4640_s23  ;;  %v2800_v18 = vsel %vm11710_vm1, %v2795_v63, -inf  ;;  %v2684_v2 = vsel %vm11712_vm2, %v2673_v33, -inf  ;;  %v2714_v9 = vsel %vm11713_vm7, %v8744_v43, %v8754_v34  ;;  %v2753_v12 = vsel %vm383_vm3, %v8758_v36, %v8756_v19 }
 0x9ab   : > { %vm11715_vm0 = vcmp.ge.s32.totalorder %v11537_v13, 0  ;;  %v2757_v16 = vsel %vm383_vm3, %v8756_v19, %v8758_v36  ;;  %v8896_v48 = vmax.f32 %v2768_v40, %v2800_v18  ;;  %v2691_v43 = vmax.f32 %v8568_v23, %v2683_v42 }
 0x9ac   : > { %v2723_v46 = vsel %vm11715_vm0, %v2717_v51, -inf  ;;  %vm11716_vm1 = vcmp.ge.s32.totalorder %v11560_v25, 0  ;;  %v2692_v49 = vmax.f32 %v8575_v50, %v2684_v2  ;;  %vm11718_vm2 = vcmp.lt.s32.totalorder %v11539_v55, 16 }
 0x9ad   : > { %v2782_v52 = vpop.permute.xlu1 %2781  ;;  %v2724_v34 = vsel %vm11716_vm1, %v2713_v56, -inf  ;;  %vm11717_vm4 = vmmov %vm11716_vm1  ;;  %v2763_v19 = vsel %vm11718_vm2, %v2753_v12, -inf  ;;  %v2694_v23 = vmax.f32 %v8670_v6, %v2686_v17  ;;  %v2731_v36 = vmax.f32 %v2691_v43, %v2723_v46 }
 0x9ae   : > { %v2794_v44 = vsel %vm428_vm6, %v2782_v52, %v2790_v3  ;;  %v2726_v30 = vsel %vm11717_vm4, %v2714_v9, -inf  ;;  %vm11719_vm7 = vcmp.lt.s32.totalorder %v11565_v5, 16  ;;  %v2798_v50 = vsel %vm428_vm6, %v2790_v3, %v2782_v52 }
 0x9af   : > { %v2805_v62 = vsel %vm11714_vm5, %v2794_v44, -inf  ;;  %v2764_v59 = vsel %vm11719_vm7, %v2757_v16, -inf  ;;  %vm11720_vm5 = vcmp.lt.s32.totalorder %v4812_v29, 2  ;;  %v2732_v7 = vmax.f32 %v2692_v49, %v2724_v34  ;;  %vm11721_vm0 = vmmov %vm11719_vm7 }
 0x9b0   : > { %v8898_v22 = vmax.f32 %v2773_v60, %v2805_v62  ;;  %v2672_v31 = vsel %vm11720_vm5, %v8732_v61, %v8736_v21  ;;  %v2766_v53 = vsel %vm11721_vm0, %v2758_v24, -inf  ;;  %vm11722_vm1 = vcmp.lt.s32.totalorder %v4812_v29, 1 }
 0x9b1   : > { %v2712_v6 = vsel %vm11722_vm1, %v8746_v32, %v8740_v26  ;;  %v2734_v20 = vmax.f32 %v2694_v23, %v2726_v30  ;;  %v2771_v63 = vmax.f32 %v2731_v36, %v2763_v19  ;;  %v2772_v58 = vmax.f32 %v2732_v7, %v2764_v59 }
 0x9b2   : > { %2821 = vrot.lane.b32.xlu0 %v8898_v22, %s4640_s23  ;;  %2823 = vrot.lane.b32.xlu1 %v8896_v48, %s4640_s23  ;;  %vm11723_vm4 = vcmp.lt.s32.totalorder %v11660_v10, 16  ;;  %vm11724_vm2 = vcmp.ge.s32.totalorder %v11548_v37, 0  ;;  %vm11725_vm7 = vcmp.lt.s32.totalorder %v11543_v11, 16  ;;  %v2756_v17 = vsel %vm383_vm3, %v8770_v4, %v8752_v28 }
 0x9b3   : > { %v2806_v33 = vsel %vm11723_vm4, %v2798_v50, -inf  ;;  %v2682_v41 = vsel %vm11724_vm2, %v2672_v31, -inf  ;;  %v2774_v27 = vmax.f32 %v2734_v20, %v2766_v53  ;;  %vm11726_vm5 = vmmov %vm11723_vm4  ;;  %vm11727_vm0 = vcmp.ge.s32.totalorder %v11560_v25, 0 }
 0x9b4   : > { %v2690_v18 = vmax.f32 %v8620_v1, %v2682_v41  ;;  %v2796_v52 = vsel %vm428_vm6, %v8812_v0, %v8762_v35  ;;  %vm11728_vm1 = vcmp.lt.s32.totalorder %v11565_v5, 16  ;;  %vm11729_vm2 = vcmp.lt.s32.totalorder %v4812_v29, 2 }
 0x9b5   : > { %v2788_v14 = vpop.permute.xlu1 %2787  ;;  %v8955_v3 = vmax.f32 %v2774_v27, %v2806_v33  ;;  %v2762_v28 = vsel %vm11728_vm1, %v2756_v17, -inf  ;;  %v2802_v1 = vsel %vm11723_vm4, %v2796_v52, -inf  ;;  %vm11733_vm1 = vmmov %vm11729_vm2  ;;  %vm11734_vm4 = vcmp.lt.s32.totalorder %v11539_v55, 16 }
 0x9b6   : > { %v2793_v61 = vsel %vm428_vm6, %v8772_v15, %v2788_v14  ;;  %v2797_v21 = vsel %vm428_vm6, %v2788_v14, %v8772_v15  ;;  %v2722_v15 = vsel %vm11727_vm0, %v2712_v6, -inf  ;;  %vm11732_vm0 = vcmp.ge.s32.totalorder %v11537_v13, 0 }
 0x9b7   : > { %v2803_v26 = vsel %vm11725_vm7, %v2793_v61, -inf  ;;  %v2804_v32 = vsel %vm11726_vm5, %v2797_v21, -inf  ;;  %v2730_v4 = vmax.f32 %v2690_v18, %v2722_v15  ;;  %vm11730_vm7 = vcmp.lt.s32.totalorder %v4812_v29, 1 }
 0x9b8   : > { %v8949_v42 = vmax.f32 %v2771_v63, %v2803_v26  ;;  %v8951_v51 = vmax.f32 %v2772_v58, %v2804_v32  ;;  %vm11731_vm5 = vcmp.ge.s32.totalorder %v11535_v8, 0 }
 0x9b9   : > { %v2770_v56 = vmax.f32 %v2730_v4, %v2762_v28 }
 0x9ba   : > { %2827 = vrot.lane.b32.xlu0 %v8951_v51, %s4640_s23  ;;  %2819 = vrot.lane.b32.xlu2 %v8949_v42, %s4640_s23 }
 0x9bb   : > { %2829 = vrot.lane.b32.xlu1 %v8955_v3, %s4640_s23  ;;  %v8972_v40 = vmax.f32 %v2770_v56, %v2802_v1 }
 0x9c2   : > { %2825 = vrot.lane.b32.xlu2 %v8972_v40, %s4640_s23  ;;  %2857 = vrot.lane.b32.xlu0 %v8834_v39, %s4641_s24 }
 0x9c3   : > { %2859 = vrot.lane.b32.xlu1 %v8949_v42, %s4641_s24 }
 0x9ca   : > { %2855 = vrot.lane.b32.xlu2 %v8832_v47, %s4641_s24  ;;  %2863 = vrot.lane.b32.xlu0 %v8896_v48, %s4641_s24 }
 0x9cb   : > { %2865 = vrot.lane.b32.xlu1 %v8972_v40, %s4641_s24 }
 0x9d2   : > { %2861 = vrot.lane.b32.xlu2 %v8898_v22, %s4641_s24  ;;  %2869 = vrot.lane.b32.xlu0 %v8955_v3, %s4641_s24 }
 0x9d3   : > { %2895 = vrot.lane.b32.xlu1 %v8832_v47, %s4642_s25 }
 0x9da   : > { %2867 = vrot.lane.b32.xlu2 %v8951_v51, %s4641_s24  ;;  %2899 = vrot.lane.b32.xlu0 %v8949_v42, %s4642_s25 }
 0x9db   : > { %2901 = vrot.lane.b32.xlu1 %v8898_v22, %s4642_s25 }
 0x9e2   : > { %2897 = vrot.lane.b32.xlu2 %v8834_v39, %s4642_s25  ;;  %2905 = vrot.lane.b32.xlu0 %v8972_v40, %s4642_s25 }
 0x9e3   : > { %2907 = vrot.lane.b32.xlu1 %v8951_v51, %s4642_s25 }
 0x9ea   : > { %2903 = vrot.lane.b32.xlu2 %v8896_v48, %s4642_s25  ;;  %2935 = vrot.lane.b32.xlu0 %v8832_v47, %s4643_s26 }
 0x9eb   : > { %2937 = vrot.lane.b32.xlu1 %v8834_v39, %s4643_s26 }
 0x9f2   : > { %2909 = vrot.lane.b32.xlu2 %v8955_v3, %s4642_s25  ;;  %2941 = vrot.lane.b32.xlu0 %v8898_v22, %s4643_s26 }
 0x9f3   : > { %2943 = vrot.lane.b32.xlu1 %v8896_v48, %s4643_s26 }
 0x9fa   : > { %2939 = vrot.lane.b32.xlu2 %v8949_v42, %s4643_s26  ;;  %2947 = vrot.lane.b32.xlu0 %v8951_v51, %s4643_s26 }
 0x9fb   : > { %2949 = vrot.lane.b32.xlu1 %v8955_v3, %s4643_s26 }
 0xa02   : > { %2945 = vrot.lane.b32.xlu2 %v8972_v40, %s4643_s26 }
 0xa14   : > { %v9024_v35 = vpop.permute.xlu2 %2819 }
 0xa1c   : > { %v2826_v0 = vpop.permute.xlu2 %2825  ;;  %v2818_v60 = vpop.permute.xlu1 %2817 }
 0xa1d   : > { %v2816_v44 = vpop.permute.xlu0 %2815  ;;  %v2836_v53 = vsel %vm473_vm12, %v2826_v0, %v2818_v60  ;;  %v2832_v33 = vsel %vm473_vm12, %v2818_v60, %v2826_v0 }
 0xa1e   : > { %v2841_v58 = vsel %vm230_vm14, %v2836_v53, -inf  ;;  %v2850_v26 = vmax.f32 %v8972_v40, %v2832_v33 }
 0xa1f   : > { %v2849_v41 = vmax.f32 %v8834_v39, %v2841_v58 }
 0xa24   : > { %v2856_v2 = vpop.permute.xlu2 %2855  ;;  %v2824_v9 = vpop.permute.xlu1 %2823 }
 0xa25   : > { %v2822_v12 = vpop.permute.xlu0 %2821  ;;  %v2835_v32 = vsel %vm473_vm12, %v2824_v9, %v2816_v44 }
 0xa26   : > { %v2839_v39 = vsel %vm230_vm14, %v2835_v32, -inf }
 0xa2c   : > { %v9026_v62 = vpop.permute.xlu2 %2861 }
 0xa2d   : > { %v2830_v46 = vpop.permute.xlu1 %2829  ;;  %v2828_v16 = vpop.permute.xlu0 %2827 }
 0xa34   : > { %v9028_v43 = vpop.permute.xlu2 %2867 }
 0xa35   : > { %v9030_v34 = vpop.permute.xlu1 %2859  ;;  %v2858_v24 = vpop.permute.xlu0 %2857 }
 0xa3c   : > { %v2898_v49 = vpop.permute.xlu2 %2897 }
 0xa3d   : > { %v2866_v30 = vpop.permute.xlu1 %2865  ;;  %v2864_v19 = vpop.permute.xlu0 %2863 }
 0xa3e   : > { %v2876_v20 = vsel %vm518_vm13, %v2866_v30, %v2858_v24  ;;  %v2872_v27 = vsel %vm518_vm13, %v2858_v24, %v2866_v30  ;;  %v2875_v4 = vsel %vm518_vm13, %v2864_v19, %v2856_v2 }
 0xa3f   : > { %v2881_v61 = vsel %vm238_vm15, %v2876_v20, -inf  ;;  %v2890_v52 = vmax.f32 %v2850_v26, %v2872_v27  ;;  %v2847_v20 = vmax.f32 %v8832_v47, %v2839_v39 }
 0xa40   : > { %v2889_v15 = vmax.f32 %v2849_v41, %v2881_v61  ;;  %v2834_v61 = vsel %vm473_vm12, %v2822_v12, %v2830_v46 }
 0xa44   : > { %v2904_v23 = vpop.permute.xlu2 %2903 }
 0xa45   : > { %v2896_v36 = vpop.permute.xlu1 %2895  ;;  %v9032_v59 = vpop.permute.xlu0 %2869 }
 0xa46   : > { %v2915_v58 = vsel %vm563_vm11, %v2904_v23, %v2896_v36  ;;  %v2911_v41 = vsel %vm563_vm11, %v2896_v36, %v2904_v23  ;;  %v2877_v23 = vsel %vm518_vm13, %v9028_v43, %v9030_v34  ;;  %v2878_v32 = vsel %vm518_vm13, %v9032_v59, %v9026_v62 }
 0xa47   : > { %v2883_v39 = vsel %vm238_vm15, %v2877_v23, -inf }
 0xa4c   : > { %v9034_v50 = vpop.permute.xlu2 %2909 }
 0xa4d   : > { %v9036_v31 = vpop.permute.xlu1 %2901  ;;  %v9038_v7 = vpop.permute.xlu0 %2899 }
 0xa54   : > { %v9042_v6 = vpop.permute.xlu2 %2939 }
 0xa55   : > { %v9046_v63 = vpop.permute.xlu1 %2907  ;;  %v2906_v14 = vpop.permute.xlu0 %2905 }
 0xa56   : > { %v2916_v21 = vsel %vm563_vm11, %v2906_v14, %v2898_v49  ;;  %v2912_v17 = vsel %vm563_vm11, %v2898_v49, %v2906_v14  ;;  %v2831_v49 = vsel %vm473_vm12, %v2816_v44, %v2824_v9  ;;  %v2879_v14 = vsel %vm238_vm15, %v2875_v4, -inf }
 0xa57   : > { %v2922_v18 = vsel %vm249_vm10, %v2916_v21, -inf  ;;  %v2929_v1 = vmax.f32 %v2889_v15, %v2912_v17  ;;  %v2838_v44 = vsel %vm473_vm12, %v2830_v46, %v2822_v12  ;;  %v2871_v9 = vsel %vm518_vm13, %v2856_v2, %v2864_v19 }
 0xa58   : > { %v2930_v0 = vmax.f32 %v2890_v52, %v2922_v18  ;;  %v2848_v47 = vmax.f32 %v8896_v48, %v2831_v49  ;;  %v2837_v21 = vsel %vm473_vm12, %v2828_v16, %v9024_v35  ;;  %v2887_v12 = vmax.f32 %v2847_v20, %v2879_v14 }
 0xa59   : > { %v2920_v2 = vsel %vm249_vm10, %v2915_v58, -inf  ;;  %v2845_v46 = vsel %vm230_vm14, %v2838_v44, -inf  ;;  %v2854_v19 = vmax.f32 %v8955_v3, %v2834_v61  ;;  %v2833_v48 = vsel %vm473_vm12, %v9024_v35, %v2828_v16 }
 0xa5a   : > { %v2888_v27 = vmax.f32 %v2848_v47, %v2871_v9  ;;  %v2843_v26 = vsel %vm230_vm14, %v2837_v21, -inf  ;;  %v2927_v36 = vmax.f32 %v2887_v12, %v2911_v41  ;;  %v2873_v35 = vsel %vm518_vm13, %v9030_v34, %v9028_v43 }
 0xa5b   : > { %v2918_v52 = vsel %vm563_vm11, %v9034_v50, %v9036_v31  ;;  %v2874_v4 = vsel %vm518_vm13, %v9026_v62, %v9032_v59  ;;  %v2914_v62 = vsel %vm563_vm11, %v9036_v31, %v9034_v50 }
 0xa5c   : > { %v2946_v28 = vpop.permute.xlu2 %2945  ;;  %v2928_v16 = vmax.f32 %v2888_v27, %v2920_v2  ;;  %v2926_v59 = vsel %vm249_vm10, %v2918_v52, -inf  ;;  %v2894_v50 = vmax.f32 %v2854_v19, %v2874_v4 }
 0xa5d   : > { %v2938_v56 = vpop.permute.xlu1 %2937  ;;  %v2936_v40 = vpop.permute.xlu0 %2935 }
 0xa5e   : > { %v2952_v60 = vsel %vm608_vm9, %v2938_v56, %v2946_v28  ;;  %v2956_v24 = vsel %vm608_vm9, %v2946_v28, %v2938_v56  ;;  %v2917_v28 = vsel %vm563_vm11, %v9046_v63, %v9038_v7 }
 0xa5f   : > { %v2962_v30 = vsel %vm257_vm8, %v2956_v24, -inf  ;;  %v9078_v53 = vmax.f32 %v2929_v1, %v2952_v60  ;;  %v2885_v1 = vsel %vm238_vm15, %v2878_v32, -inf  ;;  %v2852_v60 = vmax.f32 %v8951_v51, %v2833_v48 }
 0xa60   : > { %v9085_v33 = vmax.f32 %v2930_v0, %v2962_v30  ;;  %v2851_v0 = vmax.f32 %v8949_v42, %v2843_v26  ;;  %v2924_v42 = vsel %vm249_vm10, %v2917_v28, -inf  ;;  %v2934_v30 = vmax.f32 %v2894_v50, %v2926_v59 }
 0xa61   : > { %4518 = vst [vmem:[%s4680_s18 + $0x250] sm:$0xff] %v9078_v53  ;;  %2986 = vrot.lane.b32.xlu0 %v9078_v53, %s4636_s19  ;;  %v2892_v24 = vmax.f32 %v2852_v60, %v2873_v35 }
 0xa62   : > { %4519 = vst [vmem:[%s4680_s18 + $0x258] sm:$0xff] %v9085_v33  ;;  %v2891_v51 = vmax.f32 %v2851_v0, %v2883_v39 }
 0xa63   : > { %v2932_v14 = vmax.f32 %v2892_v24, %v2924_v42 }
 0xa65   : > { %v2944_v3 = vpop.permute.xlu1 %2943  ;;  %v2942_v17 = vpop.permute.xlu0 %2941 }
 0xa66   : > { %v2951_v15 = vsel %vm608_vm9, %v2936_v40, %v2944_v3  ;;  %v2955_v18 = vsel %vm608_vm9, %v2944_v3, %v2936_v40  ;;  %v2853_v40 = vmax.f32 %v8898_v22, %v2845_v46  ;;  %v2913_v22 = vsel %vm563_vm11, %v9038_v7, %v9046_v63 }
 0xa67   : > { %v2960_v43 = vsel %vm257_vm8, %v2955_v18, -inf  ;;  %v9141_v34 = vmax.f32 %v2927_v36, %v2951_v15  ;;  %v2931_v20 = vmax.f32 %v2891_v51, %v2913_v22 }
 0xa68   : > { %v9151_v56 = vmax.f32 %v2928_v16, %v2960_v43  ;;  %v2893_v49 = vmax.f32 %v2853_v40, %v2885_v1 }
 0xa69   : > { %4516 = vst [vmem:[%s4680_s18 + $0x240] sm:$0xff] %v9141_v34  ;;  %2984 = vrot.lane.b32.xlu2 %v9141_v34, %s4636_s19 }
 0xa6a   : > { %4517 = vst [vmem:[%s4680_s18 + $0x248] sm:$0xff] %v9151_v56  ;;  %2992 = vrot.lane.b32.xlu0 %v9151_v56, %s4636_s19  ;;  %v2933_v31 = vmax.f32 %v2893_v49, %v2914_v62 }
 0xa6d   : > { %v2950_v58 = vpop.permute.xlu1 %2949  ;;  %v2948_v7 = vpop.permute.xlu0 %2947 }
 0xa6e   : > { %v2954_v63 = vsel %vm608_vm9, %v2942_v17, %v2950_v58  ;;  %v2958_v61 = vsel %vm608_vm9, %v2950_v58, %v2942_v17  ;;  %v2953_v44 = vsel %vm608_vm9, %v9042_v6, %v2948_v7  ;;  %v2957_v9 = vsel %vm608_vm9, %v2948_v7, %v9042_v6 }
 0xa6f   : > { %v2966_v47 = vsel %vm257_vm8, %v2958_v61, -inf  ;;  %v9188_v21 = vmax.f32 %v2933_v31, %v2954_v63  ;;  %v2964_v41 = vsel %vm257_vm8, %v2957_v9, -inf  ;;  %v9192_v12 = vmax.f32 %v2931_v20, %v2953_v44 }
 0xa70   : > { %v9194_v2 = vmax.f32 %v2934_v30, %v2966_v47  ;;  %v9196_v46 = vmax.f32 %v2932_v14, %v2964_v41 }
 0xa71   : > { %4522 = vst [vmem:[%s4680_s18 + $0x270] sm:$0xff] %v9188_v21  ;;  %2990 = vrot.lane.b32.xlu2 %v9188_v21, %s4636_s19  ;;  %2988 = vrot.lane.b32.xlu1 %v9192_v12, %s4636_s19 }
 0xa72   : > { %4523 = vst [vmem:[%s4680_s18 + $0x278] sm:$0xff] %v9194_v2  ;;  %2998 = vrot.lane.b32.xlu0 %v9194_v2, %s4636_s19 }
 0xa73   : > { %4520 = vst [vmem:[%s4680_s18 + $0x260] sm:$0xff] %v9192_v12 }
 0xa74   : > { %4521 = vst [vmem:[%s4680_s18 + $0x268] sm:$0xff] %v9196_v46 }
 0xa79   : > { %2996 = vrot.lane.b32.xlu2 %v9196_v46, %s4636_s19  ;;  %2994 = vrot.lane.b32.xlu1 %v9085_v33, %s4636_s19 }
 0xa7a   : > { %3028 = vrot.lane.b32.xlu0 %v9192_v12, %s4637_s20 }
 0xa81   : > { %3026 = vrot.lane.b32.xlu2 %v9078_v53, %s4637_s20  ;;  %3024 = vrot.lane.b32.xlu1 %v9141_v34, %s4637_s20 }
 0xa82   : > { %3034 = vrot.lane.b32.xlu0 %v9085_v33, %s4637_s20 }
 0xa89   : > { %3032 = vrot.lane.b32.xlu2 %v9151_v56, %s4637_s20  ;;  %3030 = vrot.lane.b32.xlu1 %v9188_v21, %s4637_s20 }
 0xa8a   : > { %3064 = vrot.lane.b32.xlu0 %v9141_v34, %s4638_s21 }
 0xa91   : > { %3038 = vrot.lane.b32.xlu2 %v9194_v2, %s4637_s20  ;;  %3036 = vrot.lane.b32.xlu1 %v9196_v46, %s4637_s20 }
 0xa92   : > { %3070 = vrot.lane.b32.xlu0 %v9188_v21, %s4638_s21 }
 0xa99   : > { %3068 = vrot.lane.b32.xlu2 %v9192_v12, %s4638_s21  ;;  %3066 = vrot.lane.b32.xlu1 %v9078_v53, %s4638_s21 }
 0xa9a   : > { %3076 = vrot.lane.b32.xlu0 %v9196_v46, %s4638_s21 }
 0xaa1   : > { %3074 = vrot.lane.b32.xlu2 %v9085_v33, %s4638_s21  ;;  %3072 = vrot.lane.b32.xlu1 %v9151_v56, %s4638_s21 }
 0xaa2   : > { %3106 = vrot.lane.b32.xlu0 %v9078_v53, %s4639_s22 }
 0xaa9   : > { %3104 = vrot.lane.b32.xlu2 %v9141_v34, %s4639_s22  ;;  %3078 = vrot.lane.b32.xlu1 %v9194_v2, %s4638_s21 }
 0xaaa   : > { %3112 = vrot.lane.b32.xlu0 %v9151_v56, %s4639_s22 }
 0xab1   : > { %3110 = vrot.lane.b32.xlu2 %v9188_v21, %s4639_s22  ;;  %3108 = vrot.lane.b32.xlu1 %v9192_v12, %s4639_s22 }
 0xab2   : > { %3118 = vrot.lane.b32.xlu0 %v9194_v2, %s4639_s22 }
 0xab9   : > { %3116 = vrot.lane.b32.xlu2 %v9196_v46, %s4639_s22  ;;  %3114 = vrot.lane.b32.xlu1 %v9085_v33, %s4639_s22 }
 0xac3   : > { %v9264_v6 = vpop.permute.xlu2 %2984 }
 0xacb   : > { %v9266_v19 = vpop.permute.xlu2 %2990 }
 0xad3   : > { %v2997_v48 = vpop.permute.xlu2 %2996  ;;  %v2987_v27 = vpop.permute.xlu0 %2986 }
 0xadb   : > { %v3027_v23 = vpop.permute.xlu2 %3026 }
 0xadc   : > { %v9268_v26 = vpop.permute.xlu0 %2992 }
 0xadd   : > { %v3004_v62 = vsel %vm11729_vm2, %v9268_v26, %v9264_v6  ;;  %vm11735_vm2 = vmmov %vm11733_vm1 }
 0xade   : > { %v3008_v51 = vsel %vm11731_vm5, %v3004_v62, -inf }
 0xadf   : > { %v3016_v50 = vmax.f32 %v9141_v34, %v3008_v51 }
 0xae3   : > { %v2989_v36 = vpop.permute.xlu1 %2988  ;;  %v9272_v3 = vpop.permute.xlu2 %3032 }
 0xae4   : > { %v9270_v32 = vpop.permute.xlu0 %2998  ;;  %v3006_v30 = vsel %vm11733_vm1, %v2997_v48, %v2989_v36  ;;  %vm11737_vm1 = vmmov %vm11731_vm5  ;;  %v3002_v51 = vsel %vm11735_vm2, %v2989_v36, %v2997_v48 }
 0xae5   : > { %v3007_v14 = vsel %vm11735_vm2, %v9270_v32, %v9266_v19  ;;  %v3012_v61 = vsel %vm11731_vm5, %v3006_v30, -inf  ;;  %vm11740_vm5 = vmmov %vm11735_vm2 }
 0xae6   : > { %v3014_v41 = vsel %vm11737_vm1, %v3007_v14, -inf  ;;  %v3020_v30 = vmax.f32 %v9192_v12, %v3012_v61 }
 0xae7   : > { %v3022_v36 = vmax.f32 %v9188_v21, %v3014_v41 }
 0xaeb   : > { %v2995_v17 = vpop.permute.xlu1 %2994  ;;  %v9274_v16 = vpop.permute.xlu2 %3038 }
 0xaec   : > { %v3029_v35 = vpop.permute.xlu0 %3028 }
 0xaf3   : > { %v9276_v15 = vpop.permute.xlu1 %3024  ;;  %v9278_v52 = vpop.permute.xlu2 %3068 }
 0xaf4   : > { %v3035_v18 = vpop.permute.xlu0 %3034  ;;  %v3044_v42 = vsel %vm11730_vm7, %v9272_v3, %v9276_v15 }
 0xaf5   : > { %v3048_v49 = vsel %vm11732_vm0, %v3044_v42, -inf  ;;  %vm11736_vm0 = vmmov %vm11730_vm7 }
 0xaf6   : > { %v3056_v58 = vmax.f32 %v3016_v50, %v3048_v49 }
 0xafb   : > { %v9280_v28 = vpop.permute.xlu1 %3030  ;;  %v3075_v1 = vpop.permute.xlu2 %3074 }
 0xafc   : > { %v9282_v43 = vpop.permute.xlu0 %3064  ;;  %v3047_v44 = vsel %vm11736_vm0, %v9274_v16, %v9280_v28  ;;  %vm11741_vm0 = vmmov %vm11735_vm2  ;;  %vm11744_vm2 = vcmp.ge.s32.totalorder %v11548_v37, 0 }
 0xafd   : > { %v3005_v14 = vsel %vm11741_vm0, %v2995_v17, %v2987_v27  ;;  %v3013_v12 = vsel %vm11744_vm2, %v3002_v51, -inf  ;;  %vm11747_vm0 = vmmov %vm11744_vm2 }
 0xb03   : > { %v3037_v39 = vpop.permute.xlu1 %3036  ;;  %v9286_v60 = vpop.permute.xlu2 %3104 }
 0xb04   : > { %v9284_v4 = vpop.permute.xlu0 %3070  ;;  %v3046_v63 = vsel %vm11730_vm7, %v3037_v39, %v3029_v35  ;;  %vm11739_vm7 = vcmp.ge.s32.totalorder %v11537_v13, 0 }
 0xb05   : > { %vm11742_vm1 = vmmov %vm11739_vm7 }
 0xb06   : > { %v3054_v48 = vsel %vm11742_vm1, %v3047_v44, -inf  ;;  %vm11748_vm1 = vcmp.lt.s32.totalorder %v4812_v29, 1 }
 0xb07   : > { %v3045_v21 = vsel %vm11748_vm1, %v3035_v18, %v3027_v23  ;;  %v3062_v44 = vmax.f32 %v3022_v36, %v3054_v48  ;;  %vm11750_vm2 = vmmov %vm11748_vm1 }
 0xb0b   : > { %v3067_v40 = vpop.permute.xlu1 %3066  ;;  %v9309_v31 = vpop.permute.xlu2 %3110 }
 0xb0c   : > { %v3077_v0 = vpop.permute.xlu0 %3076 }
 0xb0d   : > { %v3082_v62 = vsel %vm383_vm3, %v9278_v52, %v3077_v0 }
 0xb13   : > { %v9292_v59 = vpop.permute.xlu1 %3072 }
 0xb14   : > { %v9294_v22 = vpop.permute.xlu0 %3106  ;;  %v3080_v24 = vsel %vm383_vm3, %v9282_v43, %v9292_v59 }
 0xb15   : > { %v3088_v20 = vsel %vm11734_vm4, %v3080_v24, -inf  ;;  %vm11738_vm4 = vcmp.lt.s32.totalorder %v11543_v11, 16  ;;  %v3052_v24 = vsel %vm11739_vm7, %v3046_v63, -inf }
 0xb16   : > { %v3096_v9 = vmax.f32 %v3056_v58, %v3088_v20  ;;  %v3001_v20 = vsel %vm11740_vm5, %v2987_v27, %v2995_v17  ;;  %v3060_v63 = vmax.f32 %v3020_v30, %v3052_v24  ;;  %vm11746_vm5 = vcmp.ge.s32.totalorder %v11535_v8, 0 }
 0xb17   : > { %v3010_v27 = vsel %vm11746_vm5, %v3005_v14, -inf  ;;  %v3011_v17 = vsel %vm11747_vm0, %v3001_v20, -inf  ;;  %vm11752_vm5 = vcmp.ge.s32.totalorder %v11537_v13, 0 }
 0xb18   : > { %v3018_v48 = vmax.f32 %v9078_v53, %v3010_v27  ;;  %v3021_v53 = vmax.f32 %v9196_v46, %v3013_v12 }
 0xb1b   : > { %v9319_v7 = vpop.permute.xlu1 %3078 }
 0xb1c   : > { %v9323_v34 = vpop.permute.xlu0 %3112  ;;  %v3083_v49 = vsel %vm383_vm3, %v9284_v4, %v9319_v7 }
 0xb1d   : > { %v3120_v47 = vsel %vm428_vm6, %v9286_v60, %v9323_v34 }
 0xb1e   : > { %v3128_v42 = vsel %vm11738_vm4, %v3120_v47, -inf  ;;  %vm11743_vm4 = vcmp.lt.s32.totalorder %v11539_v55, 16 }
 0xb1f   : > { %v9350_v50 = vmax.f32 %v3096_v9, %v3128_v42  ;;  %v3092_v58 = vsel %vm11743_vm4, %v3082_v62, -inf  ;;  %vm11745_vm7 = vmmov %vm11743_vm4  ;;  %v3117_v9 = vpop.permute.xlu2 %3116  ;;  %v3042_v62 = vsel %vm11750_vm2, %v3029_v35, %v3037_v39  ;;  %v3085_v35 = vsel %vm383_vm3, %v3075_v1, %v3067_v40 }
 0xb20   : > { %v3094_v61 = vsel %vm11745_vm7, %v3083_v49, -inf  ;;  %vm11749_vm4 = vmmov %vm11748_vm1  ;;  %v3100_v42 = vmax.f32 %v3060_v63, %v3092_v58  ;;  %v3081_v49 = vsel %vm383_vm3, %v3067_v40, %v3075_v1  ;;  %vm11751_vm7 = vcmp.lt.s32.totalorder %v11543_v11, 16 }
 0xb21   : > { %3144 = vrot.lane.b32.xlu1 %v9350_v50, %s4640_s23  ;;  %v3041_v41 = vsel %vm11749_vm4, %v3027_v23, %v3035_v18  ;;  %v3102_v30 = vmax.f32 %v3062_v44, %v3094_v61  ;;  %v3050_v23 = vsel %vm11752_vm5, %v3045_v21, -inf  ;;  %vm11753_vm0 = vmmov %vm11751_vm7  ;;  %vm11754_vm1 = vcmp.ge.s32.totalorder %v11560_v25, 0 }
 0xb22   : > { %v3051_v36 = vsel %vm11754_vm1, %v3041_v41, -inf  ;;  %v3086_v58 = vsel %vm383_vm3, %v3077_v0, %v9278_v52  ;;  %v3019_v61 = vmax.f32 %v9085_v33, %v3011_v17  ;;  %vm11755_vm4 = vmmov %vm11754_vm1  ;;  %vm11756_vm2 = vcmp.lt.s32.totalorder %v11539_v55, 16 }
 0xb23   : > { %v3109_v47 = vpop.permute.xlu1 %3108  ;;  %v3053_v1 = vsel %vm11755_vm4, %v3042_v62, -inf  ;;  %v3090_v40 = vsel %vm11756_vm2, %v3081_v49, -inf  ;;  %v3058_v27 = vmax.f32 %v3018_v48, %v3050_v23  ;;  %vm11758_vm5 = vcmp.lt.s32.totalorder %v4812_v29, 2 }
 0xb24   : > { %v3122_v51 = vsel %vm428_vm6, %v3109_v47, %v3117_v9  ;;  %v3119_v24 = vpop.permute.xlu0 %3118  ;;  %v3126_v52 = vsel %vm428_vm6, %v3117_v9, %v3109_v47  ;;  %v3000_v33 = vsel %vm11758_vm5, %v9264_v6, %v9268_v26  ;;  %v3059_v0 = vmax.f32 %v3019_v61, %v3051_v36  ;;  %v9541_v61 = vld [vmem:[%s4675_s15 + $0xf0] sm:$0xff] }
 0xb25   : > { %v3132_v20 = vsel %vm11751_vm7, %v3122_v51, -inf  ;;  %v3123_v14 = vsel %vm428_vm6, %v9309_v31, %v3119_v24  ;;  %vm11757_vm7 = vcmp.lt.s32.totalorder %v11565_v5, 16  ;;  %vm11760_vm1 = vcmp.lt.s32.totalorder %v4812_v29, 1  ;;  %4546 = vst [vmem:[%s4680_s18 + $0x3f0] sm:$0xff] %v9541_v61 }
 0xb26   : > { %v9391_v18 = vmax.f32 %v3100_v42, %v3132_v20  ;;  %v3134_v39 = vsel %vm11753_vm0, %v3123_v14, -inf  ;;  %v3091_v21 = vsel %vm11757_vm7, %v3085_v35, -inf  ;;  %vm11759_vm0 = vmmov %vm11757_vm7  ;;  %v3040_v46 = vsel %vm11760_vm1, %v9276_v15, %v9272_v3 }
 0xb27   : > { %v9401_v63 = vmax.f32 %v3102_v30, %v3134_v39  ;;  %v3093_v17 = vsel %vm11759_vm0, %v3086_v58, -inf  ;;  %v3061_v12 = vmax.f32 %v3021_v53, %v3053_v1  ;;  %v3098_v44 = vmax.f32 %v3058_v27, %v3090_v40  ;;  %v9532_v58 = vld [vmem:[%s4675_s15 + $0xd0] sm:$0xff]  ;;  %v9548_v1 = vld [vmem:[%s4675_s15 + $0xc8] sm:$0xff]  ;;  %v9562_v53 = vld [vmem:[%s4675_s15 + $0xe0] sm:$0xff] }
 0xb28   : > { %3148 = vrot.lane.b32.xlu0 %v9391_v18, %s4640_s23  ;;  %v3099_v47 = vmax.f32 %v3059_v0, %v3091_v21  ;;  %vm11761_vm4 = vcmp.lt.s32.totalorder %v11660_v10, 16  ;;  %vm11762_vm2 = vcmp.ge.s32.totalorder %v11548_v37, 0  ;;  %vm11763_vm7 = vcmp.lt.s32.totalorder %v11543_v11, 16  ;;  %4542 = vst [vmem:[%s4680_s18 + $0x3d0] sm:$0xff] %v9532_v58  ;;  %v9553_v40 = vld [vmem:[%s4675_s15 + $0xe8] sm:$0xff]  ;;  %v9569_v27 = vld [vmem:[%s4675_s15 + $0xf8] sm:$0xff] }
 0xb29   : > { %3150 = vrot.lane.b32.xlu1 %v9401_v63, %s4640_s23  ;;  %v3133_v41 = vsel %vm11761_vm4, %v3126_v52, -inf  ;;  %v3009_v62 = vsel %vm11762_vm2, %v3000_v33, -inf  ;;  %v3101_v42 = vmax.f32 %v3061_v12, %v3093_v17  ;;  %vm11764_vm5 = vmmov %vm11761_vm4  ;;  %v3084_v51 = vsel %vm383_vm3, %v9292_v59, %v9282_v43  ;;  %4541 = vst [vmem:[%s4680_s18 + $0x3c8] sm:$0xff] %v9548_v1  ;;  %v9578_v21 = vld [vmem:[%s4675_s15 + $0xd8] sm:$0xff] }
 0xb2a   : > { %vm11765_vm0 = vcmp.ge.s32.totalorder %v11560_v25, 0  ;;  %v3017_v14 = vmax.f32 %v9151_v56, %v3009_v62  ;;  %v3124_v23 = vsel %vm428_vm6, %v9323_v34, %v9286_v60  ;;  %vm11766_vm1 = vcmp.lt.s32.totalorder %v11565_v5, 16  ;;  %vm11768_vm2 = vmmov %vm11764_vm5  ;;  %4545 = vst [vmem:[%s4680_s18 + $0x3e8] sm:$0xff] %v9553_v40 }
 0xb2b   : > { %v3115_v9 = vpop.permute.xlu1 %3114  ;;  %v9451_v20 = vmax.f32 %v3101_v42, %v3133_v41  ;;  %v3089_v43 = vsel %vm11766_vm1, %v3084_v51, -inf  ;;  %vm11767_vm4 = vcmp.lt.s32.totalorder %v4812_v29, 2  ;;  %v3129_v60 = vsel %vm11768_vm2, %v3124_v23, -inf  ;;  %4544 = vst [vmem:[%s4680_s18 + $0x3e0] sm:$0xff] %v9562_v53 }
 0xb2c   : > { %v3121_v6 = vsel %vm428_vm6, %v9294_v22, %v3115_v9  ;;  %v3125_v26 = vsel %vm428_vm6, %v3115_v9, %v9294_v22  ;;  %v3049_v22 = vsel %vm11765_vm0, %v3040_v46, -inf  ;;  %v3003_v56 = vsel %vm11767_vm4, %v9266_v19, %v9270_v32  ;;  %vm11771_vm4 = vmmov %vm11768_vm2  ;;  %4547 = vst [vmem:[%s4680_s18 + $0x3f8] sm:$0xff] %v9569_v27 }
 0xb2d   : > { %v3130_v3 = vsel %vm11763_vm7, %v3121_v6, -inf  ;;  %v3131_v15 = vsel %vm11764_vm5, %v3125_v26, -inf  ;;  %v3057_v59 = vmax.f32 %v3017_v14, %v3049_v22  ;;  %vm11769_vm7 = vcmp.lt.s32.totalorder %v4812_v29, 1  ;;  %4543 = vst [vmem:[%s4680_s18 + $0x3d8] sm:$0xff] %v9578_v21 }
 0xb2e   : > { %v9445_v49 = vmax.f32 %v3098_v44, %v3130_v3  ;;  %v9447_v30 = vmax.f32 %v3099_v47, %v3131_v15  ;;  %v3043_v34 = vsel %vm11769_vm7, %v9280_v28, %v9274_v16  ;;  %vm11770_vm5 = vcmp.ge.s32.totalorder %v11548_v37, 0 }
 0xb2f   : > { %v3097_v35 = vmax.f32 %v3057_v59, %v3089_v43  ;;  %v3015_v39 = vsel %vm11770_vm5, %v3003_v56, -inf  ;;  %v3087_v48 = vsel %vm383_vm3, %v9319_v7, %v9284_v4  ;;  %v3055_v19 = vsel %vm11765_vm0, %v3043_v34, -inf }
 0xb30   : > { %3154 = vrot.lane.b32.xlu0 %v9447_v30, %s4640_s23  ;;  %3146 = vrot.lane.b32.xlu2 %v9445_v49, %s4640_s23  ;;  %v3023_v32 = vmax.f32 %v9194_v2, %v3015_v39  ;;  %v3127_v16 = vsel %vm428_vm6, %v3119_v24, %v9309_v31  ;;  %v3095_v28 = vsel %vm11766_vm1, %v3087_v48, -inf  ;;  %v9525_v24 = vld [vmem:[%s4675_s15 + $0xc0] sm:$0xff]  ;;  %vm11772_vm2 = vcmp.lt.s32.totalorder %v4812_v29, 2 }
 0xb31   : > { %3156 = vrot.lane.b32.xlu1 %v9451_v20, %s4640_s23  ;;  %v9482_v36 = vmax.f32 %v3097_v35, %v3129_v60  ;;  %v3135_v2 = vsel %vm11771_vm4, %v3127_v16, -inf  ;;  %4540 = vst [vmem:[%s4680_s18 + $0x3c0] sm:$0xff] %v9525_v24  ;;  %vm11773_vm5 = vcmp.ge.s32.totalorder %v11535_v8, 0  ;;  %vm11774_vm0 = vcmp.ge.s32.totalorder %v11537_v13, 0  ;;  %vm11776_vm4 = vmmov %vm11772_vm2 }
 0xb32   : > { %v3063_v4 = vmax.f32 %v3023_v32, %v3055_v19  ;;  %vm11775_vm1 = vcmp.lt.s32.totalorder %v11539_v55, 16 }
 0xb34   : > { %v3103_v7 = vmax.f32 %v3063_v4, %v3095_v28 }
 0xb36   : > { %v9500_v31 = vmax.f32 %v3103_v7, %v3135_v2 }
 0xb38   : > { %3152 = vrot.lane.b32.xlu2 %v9482_v36, %s4640_s23  ;;  %3184 = vrot.lane.b32.xlu0 %v9350_v50, %s4641_s24 }
 0xb39   : > { %3186 = vrot.lane.b32.xlu1 %v9445_v49, %s4641_s24 }
 0xb40   : > { %3158 = vrot.lane.b32.xlu2 %v9500_v31, %s4640_s23  ;;  %3190 = vrot.lane.b32.xlu0 %v9401_v63, %s4641_s24 }
 0xb41   : > { %3192 = vrot.lane.b32.xlu1 %v9482_v36, %s4641_s24 }
 0xb48   : > { %3188 = vrot.lane.b32.xlu2 %v9391_v18, %s4641_s24  ;;  %3196 = vrot.lane.b32.xlu0 %v9451_v20, %s4641_s24 }
 0xb49   : > { %3198 = vrot.lane.b32.xlu1 %v9500_v31, %s4641_s24 }
 0xb50   : > { %3194 = vrot.lane.b32.xlu2 %v9447_v30, %s4641_s24  ;;  %3226 = vrot.lane.b32.xlu0 %v9445_v49, %s4642_s25 }
 0xb51   : > { %3228 = vrot.lane.b32.xlu1 %v9391_v18, %s4642_s25 }
 0xb58   : > { %3224 = vrot.lane.b32.xlu2 %v9350_v50, %s4642_s25  ;;  %3232 = vrot.lane.b32.xlu0 %v9482_v36, %s4642_s25 }
 0xb59   : > { %3234 = vrot.lane.b32.xlu1 %v9447_v30, %s4642_s25 }
 0xb60   : > { %3230 = vrot.lane.b32.xlu2 %v9401_v63, %s4642_s25  ;;  %3238 = vrot.lane.b32.xlu0 %v9500_v31, %s4642_s25 }
 0xb61   : > { %3264 = vrot.lane.b32.xlu1 %v9350_v50, %s4643_s26 }
 0xb68   : > { %3236 = vrot.lane.b32.xlu2 %v9451_v20, %s4642_s25  ;;  %3268 = vrot.lane.b32.xlu0 %v9391_v18, %s4643_s26 }
 0xb69   : > { %3270 = vrot.lane.b32.xlu1 %v9401_v63, %s4643_s26 }
 0xb70   : > { %3266 = vrot.lane.b32.xlu2 %v9445_v49, %s4643_s26  ;;  %3274 = vrot.lane.b32.xlu0 %v9447_v30, %s4643_s26 }
 0xb71   : > { %3276 = vrot.lane.b32.xlu1 %v9451_v20, %s4643_s26 }
 0xb78   : > { %3272 = vrot.lane.b32.xlu2 %v9482_v36, %s4643_s26  ;;  %3331 = vrot.lane.b32.xlu0 %v9525_v24, %s4636_s19 }
 0xb79   : > { %3333 = vrot.lane.b32.xlu1 %v9532_v58, %s4636_s19 }
 0xb80   : > { %3278 = vrot.lane.b32.xlu2 %v9500_v31, %s4643_s26  ;;  %3337 = vrot.lane.b32.xlu0 %v9541_v61, %s4636_s19 }
 0xb81   : > { %3339 = vrot.lane.b32.xlu1 %v9548_v1, %s4636_s19 }
 0xb88   : > { %3343 = vrot.lane.b32.xlu0 %v9553_v40, %s4636_s19  ;;  %3335 = vrot.lane.b32.xlu2 %v9562_v53, %s4636_s19 }
 0xb89   : > { %3345 = vrot.lane.b32.xlu1 %v9569_v27, %s4636_s19 }
 0xb8a   : > { %v9602_v52 = vpop.permute.xlu2 %3146 }
 0xb90   : > { %3373 = vrot.lane.b32.xlu0 %v9532_v58, %s4637_s20  ;;  %3341 = vrot.lane.b32.xlu2 %v9578_v21, %s4636_s19 }
 0xb91   : > { %3375 = vrot.lane.b32.xlu1 %v9562_v53, %s4637_s20 }
 0xb92   : > { %v3153_v33 = vpop.permute.xlu2 %3152 }
 0xb93   : > { %v3145_v0 = vpop.permute.xlu1 %3144 }
 0xb94   : > { %v3164_v56 = vsel %vm473_vm12, %v3153_v33, %v3145_v0  ;;  %v3160_v48 = vsel %vm473_vm12, %v3145_v0, %v3153_v33 }
 0xb95   : > { %v3168_v39 = vsel %vm230_vm14, %v3164_v56, -inf  ;;  %v3177_v4 = vmax.f32 %v9482_v36, %v3160_v48 }
 0xb96   : > { %v3176_v16 = vmax.f32 %v9350_v50, %v3168_v39 }
 0xb98   : > { %3379 = vrot.lane.b32.xlu0 %v9548_v1, %s4637_s20  ;;  %3371 = vrot.lane.b32.xlu2 %v9525_v24, %s4637_s20 }
 0xb99   : > { %3381 = vrot.lane.b32.xlu1 %v9578_v21, %s4637_s20 }
 0xb9a   : > { %v3159_v17 = vpop.permute.xlu2 %3158  ;;  %v9616_v46 = vpop.permute.xlu0 %3148 }
 0xb9b   : > { %v3151_v12 = vpop.permute.xlu1 %3150 }
 0xb9c   : > { %v3167_v7 = vsel %vm473_vm12, %v3159_v17, %v3151_v12 }
 0xba0   : > { %3385 = vrot.lane.b32.xlu0 %v9569_v27, %s4637_s20  ;;  %3377 = vrot.lane.b32.xlu2 %v9541_v61, %s4637_s20 }
 0xba1   : > { %3411 = vrot.lane.b32.xlu1 %v9525_v24, %s4638_s21 }
 0xba2   : > { %v9624_v44 = vpop.permute.xlu2 %3188  ;;  %v9626_v9 = vpop.permute.xlu0 %3154 }
 0xba3   : > { %v9628_v47 = vpop.permute.xlu1 %3156 }
 0xba8   : > { %3415 = vrot.lane.b32.xlu0 %v9562_v53, %s4638_s21  ;;  %3383 = vrot.lane.b32.xlu2 %v9553_v40, %s4637_s20 }
 0xba9   : > { %3417 = vrot.lane.b32.xlu1 %v9541_v61, %s4638_s21 }
 0xbaa   : > { %v9636_v41 = vpop.permute.xlu2 %3194  ;;  %v3185_v6 = vpop.permute.xlu0 %3184 }
 0xbab   : > { %v9638_v26 = vpop.permute.xlu1 %3186 }
 0xbb0   : > { %3421 = vrot.lane.b32.xlu0 %v9578_v21, %s4638_s21  ;;  %3413 = vrot.lane.b32.xlu2 %v9532_v58, %s4638_s21 }
 0xbb1   : > { %3423 = vrot.lane.b32.xlu1 %v9553_v40, %s4638_s21 }
 0xbb2   : > { %v3225_v62 = vpop.permute.xlu2 %3224  ;;  %v3191_v42 = vpop.permute.xlu0 %3190 }
 0xbb3   : > { %v3193_v3 = vpop.permute.xlu1 %3192 }
 0xbb4   : > { %v3204_v34 = vsel %vm518_vm13, %v3193_v3, %v3185_v6  ;;  %v3200_v28 = vsel %vm518_vm13, %v3185_v6, %v3193_v3  ;;  %v3163_v6 = vsel %vm473_vm12, %v3151_v12, %v3159_v17  ;;  %v3165_v17 = vsel %vm473_vm12, %v9626_v9, %v9602_v52 }
 0xbb5   : > { %v3208_v19 = vsel %vm238_vm15, %v3204_v34, -inf  ;;  %v3217_v56 = vmax.f32 %v3177_v4, %v3200_v28 }
 0xbb6   : > { %v3216_v33 = vmax.f32 %v3176_v16, %v3208_v19 }
 0xbb8   : > { %3451 = vrot.lane.b32.xlu0 %v9525_v24, %s4639_s22  ;;  %3419 = vrot.lane.b32.xlu2 %v9548_v1, %s4638_s21 }
 0xbb9   : > { %3453 = vrot.lane.b32.xlu1 %v9532_v58, %s4639_s22 }
 0xbba   : > { %v3231_v15 = vpop.permute.xlu2 %3230  ;;  %v9652_v51 = vpop.permute.xlu0 %3196 }
 0xbbb   : > { %v3199_v22 = vpop.permute.xlu1 %3198 }
 0xbbc   : > { %v3207_v36 = vsel %vm518_vm13, %v3199_v22, %v3191_v42 }
 0xbbd   : > { %v3214_v16 = vsel %vm238_vm15, %v3207_v36, -inf }
 0xbc0   : > { %3457 = vrot.lane.b32.xlu0 %v9541_v61, %s4639_s22  ;;  %3425 = vrot.lane.b32.xlu2 %v9569_v27, %s4638_s21 }
 0xbc1   : > { %3459 = vrot.lane.b32.xlu1 %v9548_v1, %s4639_s22 }
 0xbc2   : > { %v9660_v14 = vpop.permute.xlu2 %3236  ;;  %v9662_v23 = vpop.permute.xlu0 %3226 }
 0xbc3   : > { %v9664_v43 = vpop.permute.xlu1 %3228 }
 0xbc8   : > { %3463 = vrot.lane.b32.xlu0 %v9553_v40, %s4639_s22  ;;  %3455 = vrot.lane.b32.xlu2 %v9562_v53, %s4639_s22 }
 0xbc9   : > { %3465 = vrot.lane.b32.xlu1 %v9569_v27, %s4639_s22 }
 0xbca   : > { %v9674_v59 = vpop.permute.xlu2 %3266  ;;  %v3233_v60 = vpop.permute.xlu0 %3232 }
 0xbcb   : > { %v9678_v35 = vpop.permute.xlu1 %3234  ;;  %v3244_v32 = vsel %vm563_vm11, %v3233_v60, %v3225_v62  ;;  %v3240_v2 = vsel %vm563_vm11, %v3225_v62, %v3233_v60  ;;  %v3174_v60 = vsel %vm230_vm14, %v3167_v7, -inf  ;;  %v3183_v7 = vmax.f32 %v9500_v31, %v3163_v6 }
 0xbcc   : > { %v3249_v0 = vsel %vm249_vm10, %v3244_v32, -inf  ;;  %v3256_v62 = vmax.f32 %v3216_v33, %v3240_v2  ;;  %v3182_v2 = vmax.f32 %v9401_v63, %v3174_v60  ;;  %v3203_v33 = vsel %vm518_vm13, %v3191_v42, %v3199_v22 }
 0xbcd   : > { %v3257_v39 = vmax.f32 %v3217_v56, %v3249_v0  ;;  %v3170_v0 = vsel %vm230_vm14, %v3165_v17, -inf  ;;  %v3166_v56 = vsel %vm473_vm12, %v9628_v47, %v9616_v46  ;;  %v3206_v31 = vsel %vm518_vm13, %v9652_v51, %v9624_v44 }
 0xbce   : > { %v3222_v42 = vmax.f32 %v3182_v2, %v3214_v16  ;;  %v3161_v6 = vsel %vm473_vm12, %v9602_v52, %v9626_v9  ;;  %v3172_v60 = vsel %vm230_vm14, %v3166_v56, -inf  ;;  %v3212_v52 = vsel %vm238_vm15, %v3206_v31, -inf }
 0xbcf   : > { %v3245_v17 = vsel %vm563_vm11, %v9678_v35, %v9662_v23  ;;  %v3180_v16 = vmax.f32 %v9391_v18, %v3172_v60  ;;  %v3242_v18 = vsel %vm563_vm11, %v9664_v43, %v9660_v14 }
 0xbd0   : > { %3461 = vrot.lane.b32.xlu2 %v9578_v21, %s4639_s22 }
 0xbd2   : > { %v3273_v50 = vpop.permute.xlu2 %3272  ;;  %v3239_v34 = vpop.permute.xlu0 %3238 }
 0xbd3   : > { %v3265_v3 = vpop.permute.xlu1 %3264  ;;  %v3247_v28 = vsel %vm563_vm11, %v3239_v34, %v3231_v15  ;;  %v3243_v63 = vsel %vm563_vm11, %v3231_v15, %v3239_v34  ;;  %v3162_v15 = vsel %vm473_vm12, %v9616_v46, %v9628_v47  ;;  %v3223_v34 = vmax.f32 %v3183_v7, %v3203_v33 }
 0xbd4   : > { %v3280_v48 = vsel %vm608_vm9, %v3265_v3, %v3273_v50  ;;  %v3284_v19 = vsel %vm608_vm9, %v3273_v50, %v3265_v3  ;;  %v3205_v50 = vsel %vm518_vm13, %v9636_v41, %v9638_v26  ;;  %v3255_v22 = vsel %vm249_vm10, %v3247_v28, -inf }
 0xbd5   : > { %v3289_v12 = vsel %vm257_vm8, %v3284_v19, -inf  ;;  %v3296_v32 = vmax.f32 %v3256_v62, %v3280_v48  ;;  %v3178_v3 = vmax.f32 %v9445_v49, %v3170_v0  ;;  %v3262_v48 = vmax.f32 %v3222_v42, %v3243_v63 }
 0xbd6   : > { %v3297_v4 = vmax.f32 %v3257_v39, %v3289_v12  ;;  %v3210_v39 = vsel %vm238_vm15, %v3205_v50, -inf  ;;  %v3263_v9 = vmax.f32 %v3223_v34, %v3255_v22  ;;  %v3246_v49 = vsel %vm563_vm11, %v9660_v14, %v9664_v43 }
 0xbd7   : > { %4524 = vst [vmem:[%s4680_s18 + $0x280] sm:$0xff] %v3296_v32  ;;  %v3201_v28 = vsel %vm518_vm13, %v9638_v26, %v9636_v41  ;;  %v3179_v7 = vmax.f32 %v9447_v30, %v3161_v6  ;;  %v3181_v33 = vmax.f32 %v9451_v20, %v3162_v15  ;;  %v3241_v41 = vsel %vm563_vm11, %v9662_v23, %v9678_v35 }
 0xbd8   : > { %4525 = vst [vmem:[%s4680_s18 + $0x288] sm:$0xff] %v3297_v4  ;;  %v3202_v4 = vsel %vm518_vm13, %v9624_v44, %v9652_v51  ;;  %v3218_v26 = vmax.f32 %v3178_v3, %v3210_v39  ;;  %v3220_v0 = vmax.f32 %v3180_v16, %v3212_v52  ;;  %v3253_v44 = vsel %vm249_vm10, %v3246_v49, -inf }
 0xbd9   : > { %v3251_v30 = vsel %vm249_vm10, %v3245_v17, -inf  ;;  %v3219_v20 = vmax.f32 %v3179_v7, %v3201_v28  ;;  %v3221_v51 = vmax.f32 %v3181_v33, %v3202_v4 }
 0xbda   : > { %v3279_v36 = vpop.permute.xlu2 %3278  ;;  %v3269_v62 = vpop.permute.xlu0 %3268  ;;  %v3260_v56 = vmax.f32 %v3220_v0, %v3242_v18  ;;  %v3258_v14 = vmax.f32 %v3218_v26, %v3241_v41 }
 0xbdb   : > { %v3271_v19 = vpop.permute.xlu1 %3270  ;;  %v3261_v23 = vmax.f32 %v3221_v51, %v3253_v44  ;;  %v3259_v35 = vmax.f32 %v3219_v20, %v3251_v30 }
 0xbdc   : > { %v3283_v46 = vsel %vm608_vm9, %v3271_v19, %v3279_v36  ;;  %v3287_v47 = vsel %vm608_vm9, %v3279_v36, %v3271_v19 }
 0xbdd   : > { %v3295_v12 = vsel %vm257_vm8, %v3287_v47, -inf  ;;  %v3302_v32 = vmax.f32 %v3262_v48, %v3283_v46 }
 0xbde   : > { %v3303_v2 = vmax.f32 %v3263_v9, %v3295_v12 }
 0xbdf   : > { %4530 = vst [vmem:[%s4680_s18 + $0x2b0] sm:$0xff] %v3302_v32 }
 0xbe0   : > { %4531 = vst [vmem:[%s4680_s18 + $0x2b8] sm:$0xff] %v3303_v2 }
 0xbe2   : > { %v3275_v43 = vpop.permute.xlu0 %3274  ;;  %v9798_v50 = vpop.permute.xlu2 %3335 }
 0xbe3   : > { %v3281_v63 = vsel %vm608_vm9, %v9674_v59, %v3275_v43  ;;  %v3285_v31 = vsel %vm608_vm9, %v3275_v43, %v9674_v59  ;;  %v3277_v42 = vpop.permute.xlu1 %3276 }
 0xbe4   : > { %v3291_v22 = vsel %vm257_vm8, %v3285_v31, -inf  ;;  %v3298_v6 = vmax.f32 %v3258_v14, %v3281_v63  ;;  %v3282_v15 = vsel %vm608_vm9, %v3269_v62, %v3277_v42  ;;  %v3286_v34 = vsel %vm608_vm9, %v3277_v42, %v3269_v62 }
 0xbe5   : > { %v3299_v36 = vmax.f32 %v3259_v35, %v3291_v22  ;;  %v3293_v3 = vsel %vm257_vm8, %v3286_v34, -inf  ;;  %v3300_v60 = vmax.f32 %v3260_v56, %v3282_v15 }
 0xbe6   : > { %4526 = vst [vmem:[%s4680_s18 + $0x290] sm:$0xff] %v3298_v6  ;;  %v3301_v39 = vmax.f32 %v3261_v23, %v3293_v3 }
 0xbe7   : > { %4527 = vst [vmem:[%s4680_s18 + $0x298] sm:$0xff] %v3299_v36 }
 0xbe8   : > { %4528 = vst [vmem:[%s4680_s18 + $0x2a0] sm:$0xff] %v3300_v60 }
 0xbe9   : > { %4529 = vst [vmem:[%s4680_s18 + $0x2a8] sm:$0xff] %v3301_v39 }
 0xbea   : > { %v3332_v59 = vpop.permute.xlu0 %3331  ;;  %v3342_v48 = vpop.permute.xlu2 %3341 }
 0xbeb   : > { %v3334_v19 = vpop.permute.xlu1 %3333 }
 0xbec   : > { %v3352_v0 = vsel %vm11772_vm2, %v3342_v48, %v3334_v19 }
 0xbed   : > { %v3357_v56 = vsel %vm11773_vm5, %v3352_v0, -inf  ;;  %vm11777_vm5 = vmmov %vm11769_vm7 }
 0xbee   : > { %v3365_v23 = vmax.f32 %v9532_v58, %v3357_v56 }
 0xbf2   : > { %v3338_v52 = vpop.permute.xlu0 %3337  ;;  %v3372_v9 = vpop.permute.xlu2 %3371 }
 0xbf3   : > { %v3340_v46 = vpop.permute.xlu1 %3339 }
 0xbf4   : > { %v3347_v63 = vsel %vm11776_vm4, %v3332_v59, %v3340_v46  ;;  %v3351_v31 = vsel %vm11772_vm2, %v3340_v46, %v3332_v59  ;;  %vm11780_vm4 = vcmp.lt.s32.totalorder %v11543_v11, 16 }
 0xbfa   : > { %v9818_v47 = vpop.permute.xlu0 %3343  ;;  %v3378_v49 = vpop.permute.xlu2 %3377 }
 0xbfb   : > { %v3346_v62 = vpop.permute.xlu1 %3345  ;;  %v3353_v0 = vsel %vm11772_vm2, %v9818_v47, %v9798_v50 }
 0xc02   : > { %v9820_v17 = vpop.permute.xlu0 %3373  ;;  %v9822_v12 = vpop.permute.xlu2 %3383 }
 0xc03   : > { %v9824_v32 = vpop.permute.xlu1 %3375 }
 0xc0a   : > { %v3380_v16 = vpop.permute.xlu0 %3379  ;;  %v9826_v28 = vpop.permute.xlu2 %3413 }
 0xc0b   : > { %v9828_v4 = vpop.permute.xlu1 %3381  ;;  %v3387_v34 = vsel %vm11769_vm7, %v3372_v9, %v3380_v16  ;;  %v3391_v58 = vsel %vm11777_vm5, %v3380_v16, %v3372_v9  ;;  %vm11782_vm5 = vcmp.ge.s32.totalorder %v11537_v13, 0 }
 0xc0c   : > { %v3392_v51 = vsel %vm11769_vm7, %v9828_v4, %v9820_v17  ;;  %vm11781_vm7 = vmmov %vm11772_vm2  ;;  %v3395_v56 = vsel %vm11782_vm5, %v3391_v58, -inf  ;;  %vm11788_vm5 = vcmp.lt.s32.totalorder %v11565_v5, 16 }
 0xc0d   : > { %v3397_v43 = vsel %vm11774_vm0, %v3392_v51, -inf  ;;  %vm11778_vm0 = vcmp.ge.s32.totalorder %v11535_v8, 0  ;;  %v3354_v51 = vsel %vm11781_vm7, %v3346_v62, %v3338_v52  ;;  %vm11787_vm7 = vcmp.lt.s32.totalorder %v11539_v55, 16 }
 0xc0e   : > { %v3405_v42 = vmax.f32 %v3365_v23, %v3397_v43  ;;  %v3355_v60 = vsel %vm11778_vm0, %v3351_v31, -inf  ;;  %vm11783_vm0 = vcmp.ge.s32.totalorder %v11560_v25, 0 }
 0xc0f   : > { %v3363_v43 = vmax.f32 %v9525_v24, %v3355_v60 }
 0xc12   : > { %v3386_v2 = vpop.permute.xlu0 %3385  ;;  %v3420_v7 = vpop.permute.xlu2 %3419 }
 0xc13   : > { %v3412_v33 = vpop.permute.xlu1 %3411 }
 0xc14   : > { %v3427_v46 = vsel %vm383_vm3, %v3412_v33, %v3420_v7  ;;  %v3431_v9 = vsel %vm383_vm3, %v3420_v7, %v3412_v33 }
 0xc15   : > { %v3436_v24 = vsel %vm11788_vm5, %v3431_v9, -inf }
 0xc1a   : > { %v9830_v18 = vpop.permute.xlu0 %3415  ;;  %v3426_v41 = vpop.permute.xlu2 %3425 }
 0xc1b   : > { %v3418_v26 = vpop.permute.xlu1 %3417 }
 0xc22   : > { %v9834_v44 = vpop.permute.xlu0 %3421  ;;  %v9836_v30 = vpop.permute.xlu2 %3455 }
 0xc23   : > { %v9838_v20 = vpop.permute.xlu1 %3423  ;;  %v3428_v14 = vsel %vm383_vm3, %v9826_v28, %v9834_v44 }
 0xc24   : > { %v3437_v35 = vsel %vm11775_vm1, %v3428_v14, -inf  ;;  %vm11779_vm1 = vcmp.ge.s32.totalorder %v11548_v37, 0  ;;  %v3396_v14 = vsel %vm11783_vm0, %v3387_v34, -inf  ;;  %vm11789_vm0 = vcmp.ge.s32.totalorder %v11535_v8, 0 }
 0xc25   : > { %v3445_v36 = vmax.f32 %v3405_v42, %v3437_v35  ;;  %v3356_v39 = vsel %vm11779_vm1, %v3347_v63, -inf  ;;  %vm11784_vm1 = vmmov %vm11772_vm2  ;;  %v3435_v63 = vsel %vm11787_vm7, %v3427_v46, -inf  ;;  %vm11793_vm7 = vcmp.lt.s32.totalorder %v4812_v29, 1 }
 0xc26   : > { %v3364_v7 = vmax.f32 %v9548_v1, %v3356_v39  ;;  %v3350_v33 = vsel %vm11784_vm1, %v3338_v52, %v3346_v62  ;;  %vm11786_vm2 = vmmov %vm11784_vm1  ;;  %v3359_v1 = vsel %vm11789_vm0, %v3353_v0, -inf  ;;  %v3403_v62 = vmax.f32 %v3363_v43, %v3395_v56 }
 0xc27   : > { %v3348_v35 = vsel %vm11786_vm2, %v3334_v19, %v3342_v48  ;;  %vm11790_vm1 = vmmov %vm11789_vm0  ;;  %vm11792_vm2 = vcmp.ge.s32.totalorder %v11537_v13, 0  ;;  %v3390_v19 = vsel %vm11793_vm7, %v3378_v49, %v3386_v2  ;;  %v3430_v46 = vsel %vm383_vm3, %v3418_v26, %v3426_v41 }
 0xc28   : > { %v3361_v52 = vsel %vm11790_vm1, %v3354_v51, -inf  ;;  %v3404_v31 = vmax.f32 %v3364_v7, %v3396_v14  ;;  %vm11794_vm5 = vmmov %vm11793_vm7  ;;  %v3429_v9 = vsel %vm383_vm3, %v9830_v18, %v9838_v20  ;;  %vm11795_vm0 = vcmp.lt.s32.totalorder %v11543_v11, 16 }
 0xc29   : > { %v3394_v58 = vsel %vm11794_vm5, %v3386_v2, %v3378_v49  ;;  %vm11796_vm1 = vcmp.lt.s32.totalorder %v11660_v10, 16  ;;  %v3367_v43 = vmax.f32 %v9562_v53, %v3359_v1  ;;  %v3369_v7 = vmax.f32 %v9541_v61, %v3361_v52 }
 0xc2a   : > { %v3452_v22 = vpop.permute.xlu0 %3451  ;;  %v9859_v6 = vpop.permute.xlu2 %3461  ;;  %v3444_v60 = vmax.f32 %v3404_v31, %v3436_v24  ;;  %vm11799_vm7 = vcmp.ge.s32.totalorder %v11560_v25, 0  ;;  %vm11800_vm5 = vcmp.lt.s32.totalorder %v11539_v55, 16 }
 0xc2b   : > { %v9861_v15 = vpop.permute.xlu1 %3453 }
 0xc2c   : > { %v3468_v3 = vsel %vm428_vm6, %v9861_v15, %v9859_v6 }
 0xc2d   : > { %v3477_v59 = vsel %vm11780_vm4, %v3468_v3, -inf  ;;  %vm11785_vm4 = vcmp.lt.s32.totalorder %v4812_v29, 1  ;;  %v3443_v3 = vmax.f32 %v3403_v62, %v3435_v63 }
 0xc2e   : > { %v9881_v16 = vmax.f32 %v3445_v36, %v3477_v59  ;;  %v3393_v23 = vsel %vm11785_vm4, %v9822_v12, %v9824_v32  ;;  %vm11791_vm4 = vcmp.ge.s32.totalorder %v11548_v37, 0 }
 0xc2f   : > { %v3362_v34 = vsel %vm11791_vm4, %v3350_v33, -inf  ;;  %v3399_v48 = vsel %vm11792_vm2, %v3393_v23, -inf  ;;  %vm11797_vm4 = vmmov %vm11792_vm2  ;;  %vm11798_vm2 = vcmp.lt.s32.totalorder %v4812_v29, 2  ;;  %v3402_v33 = vsel %vm11799_vm7, %v3390_v19, -inf }
 0xc30   : > { %3493 = vrot.lane.b32.xlu0 %v9881_v16, %s4640_s23  ;;  %v3401_v0 = vsel %vm11797_vm4, %v3394_v58, -inf  ;;  %v3349_v14 = vsel %vm11798_vm2, %v9798_v50, %v9818_v47  ;;  %v3370_v23 = vmax.f32 %v9569_v27, %v3362_v34  ;;  %v3407_v53 = vmax.f32 %v3367_v43, %v3399_v48 }
 0xc31   : > { %v3409_v50 = vmax.f32 %v3369_v7, %v3401_v0  ;;  %vm11803_vm4 = vcmp.ge.s32.totalorder %v11548_v37, 0  ;;  %vm11805_vm7 = vcmp.lt.s32.totalorder %v4812_v29, 1 }
 0xc32   : > { %v3458_v42 = vpop.permute.xlu0 %3457  ;;  %v3358_v27 = vsel %vm11803_vm4, %v3348_v35, -inf  ;;  %vm11804_vm2 = vmmov %vm11803_vm4  ;;  %v3389_v63 = vsel %vm11805_vm7, %v9824_v32, %v9822_v12  ;;  %v3410_v24 = vmax.f32 %v3370_v23, %v3402_v33  ;;  %vm11809_vm4 = vcmp.lt.s32.totalorder %v11660_v10, 16 }
 0xc33   : > { %v3460_v36 = vpop.permute.xlu1 %3459  ;;  %v3360_v47 = vsel %vm11804_vm2, %v3349_v14, -inf  ;;  %vm11810_vm2 = vcmp.ge.s32.totalorder %v11560_v25, 0 }
 0xc34   : > { %v3467_v39 = vsel %vm428_vm6, %v3452_v22, %v3460_v36  ;;  %v3471_v59 = vsel %vm428_vm6, %v3460_v36, %v3452_v22  ;;  %v3434_v22 = vsel %vm383_vm3, %v3426_v41, %v3418_v26  ;;  %v3441_v41 = vsel %vm11800_vm5, %v3430_v46, -inf }
 0xc35   : > { %v3475_v49 = vsel %vm11795_vm0, %v3467_v39, -inf  ;;  %v3476_v2 = vsel %vm11796_vm1, %v3471_v59, -inf  ;;  %vm11801_vm0 = vmmov %vm11800_vm5  ;;  %vm11802_vm1 = vcmp.lt.s32.totalorder %v11565_v5, 16  ;;  %v3449_v62 = vmax.f32 %v3409_v50, %v3441_v41 }
 0xc36   : > { %v9939_v51 = vmax.f32 %v3443_v3, %v3475_v49  ;;  %v9941_v56 = vmax.f32 %v3444_v60, %v3476_v2  ;;  %v3439_v26 = vsel %vm11801_vm0, %v3429_v9, -inf  ;;  %v3442_v61 = vsel %vm11802_vm1, %v3434_v22, -inf  ;;  %vm11806_vm5 = vmmov %vm11805_vm7 }
 0xc37   : > { %v3388_v52 = vsel %vm11806_vm5, %v9820_v17, %v9828_v4  ;;  %v3447_v31 = vmax.f32 %v3407_v53, %v3439_v26  ;;  %v3450_v48 = vmax.f32 %v3410_v24, %v3442_v61  ;;  %vm11807_vm0 = vcmp.lt.s32.totalorder %v11543_v11, 16  ;;  %vm11811_vm7 = vmmov %vm11810_vm2 }
 0xc38   : > { %3499 = vrot.lane.b32.xlu0 %v9941_v56, %s4640_s23  ;;  %3491 = vrot.lane.b32.xlu2 %v9939_v51, %s4640_s23  ;;  %v3432_v17 = vsel %vm383_vm3, %v9834_v44, %v9826_v28  ;;  %vm11808_vm1 = vmmov %vm11807_vm0  ;;  %v3398_v3 = vsel %vm11810_vm2, %v3388_v52, -inf  ;;  %v3366_v28 = vmax.f32 %v9578_v21, %v3358_v27  ;;  %v3400_v44 = vsel %vm11811_vm7, %v3389_v63, -inf }
 0xc39   : > { %v3472_v59 = vsel %vm428_vm6, %v9859_v6, %v9861_v15  ;;  %v3368_v46 = vmax.f32 %v9553_v40, %v3360_v47  ;;  %vm11812_vm5 = vcmp.lt.s32.totalorder %v11565_v5, 16  ;;  %vm11816_vm2 = vcmp.lt.s32.totalorder %v4812_v29, 2 }
 0xc3a   : > { %v3464_v1 = vpop.permute.xlu0 %3463  ;;  %vm11817_vm7 = vmmov %vm11816_vm2 }
 0xc3b   : > { %v3469_v35 = vsel %vm428_vm6, %v9836_v30, %v3464_v1  ;;  %v3466_v34 = vpop.permute.xlu1 %3465  ;;  %v3473_v21 = vsel %vm428_vm6, %v3464_v1, %v9836_v30  ;;  %v3408_v15 = vmax.f32 %v3368_v46, %v3400_v44 }
 0xc3c   : > { %v3479_v19 = vsel %vm11807_vm0, %v3469_v35, -inf  ;;  %v3470_v12 = vsel %vm428_vm6, %v3458_v42, %v3466_v34  ;;  %v3474_v32 = vsel %vm428_vm6, %v3466_v34, %v3458_v42  ;;  %v3433_v42 = vsel %vm383_vm3, %v9838_v20, %v9830_v18  ;;  %vm11813_vm0 = vmmov %vm11812_vm5 }
 0xc3d   : > { %v9987_v4 = vmax.f32 %v3447_v31, %v3479_v19  ;;  %v3481_v58 = vsel %vm11808_vm1, %v3470_v12, -inf  ;;  %v3482_v36 = vsel %vm11809_vm4, %v3474_v32, -inf  ;;  %v3438_v18 = vsel %vm11812_vm5, %v3432_v17, -inf  ;;  %vm11814_vm1 = vmmov %vm11809_vm4 }
 0xc3e   : > { %v9999_v60 = vmax.f32 %v3449_v62, %v3481_v58  ;;  %v10001_v39 = vmax.f32 %v3450_v48, %v3482_v36  ;;  %v3406_v20 = vmax.f32 %v3366_v28, %v3398_v3  ;;  %v3440_v6 = vsel %vm11813_vm0, %v3433_v42, -inf  ;;  %vm11815_vm4 = vmmov %vm11814_vm1 }
 0xc3f   : > { %3495 = vrot.lane.b32.xlu1 %v9987_v4, %s4640_s23  ;;  %v3478_v40 = vsel %vm11814_vm1, %v3472_v59, -inf  ;;  %v3480_v49 = vsel %vm11815_vm4, %v3473_v21, -inf  ;;  %v3448_v2 = vmax.f32 %v3408_v15, %v3440_v6  ;;  %vm11818_vm5 = vmmov %vm11816_vm2  ;;  %vm11820_vm1 = vcmp.lt.s32.totalorder %v4812_v29, 1 }
 0xc40   : > { %3505 = vrot.lane.b32.xlu0 %v10001_v39, %s4640_s23  ;;  %3497 = vrot.lane.b32.xlu2 %v9999_v60, %s4640_s23  ;;  %v3446_v9 = vmax.f32 %v3406_v20, %v3438_v18  ;;  %vm11819_vm0 = vmmov %vm11816_vm2  ;;  %vm11821_vm4 = vcmp.ge.s32.totalorder %v11535_v8, 0 }
 0xc41   : > { %v10030_v0 = vmax.f32 %v3448_v2, %v3480_v49 }
 0xc42   : > { %v10028_v30 = vmax.f32 %v3446_v9, %v3478_v40 }
 0xc47   : > { %3501 = vrot.lane.b32.xlu1 %v10028_v30, %s4640_s23 }
 0xc48   : > { %3503 = vrot.lane.b32.xlu2 %v10030_v0, %s4640_s23  ;;  %3535 = vrot.lane.b32.xlu0 %v9987_v4, %s4641_s24 }
 0xc4f   : > { %3531 = vrot.lane.b32.xlu1 %v9939_v51, %s4641_s24 }
 0xc50   : > { %3533 = vrot.lane.b32.xlu2 %v9881_v16, %s4641_s24  ;;  %3541 = vrot.lane.b32.xlu0 %v10028_v30, %s4641_s24 }
 0xc57   : > { %3537 = vrot.lane.b32.xlu1 %v9999_v60, %s4641_s24 }
 0xc58   : > { %3539 = vrot.lane.b32.xlu2 %v9941_v56, %s4641_s24  ;;  %3571 = vrot.lane.b32.xlu0 %v9939_v51, %s4642_s25 }
 0xc5f   : > { %3543 = vrot.lane.b32.xlu1 %v10030_v0, %s4641_s24 }
 0xc60   : > { %3545 = vrot.lane.b32.xlu2 %v10001_v39, %s4641_s24  ;;  %3577 = vrot.lane.b32.xlu0 %v9999_v60, %s4642_s25 }
 0xc67   : > { %3573 = vrot.lane.b32.xlu1 %v9881_v16, %s4642_s25 }
 0xc68   : > { %3575 = vrot.lane.b32.xlu2 %v9987_v4, %s4642_s25  ;;  %3583 = vrot.lane.b32.xlu0 %v10030_v0, %s4642_s25 }
 0xc6f   : > { %3579 = vrot.lane.b32.xlu1 %v9941_v56, %s4642_s25 }
 0xc70   : > { %3581 = vrot.lane.b32.xlu2 %v10028_v30, %s4642_s25  ;;  %3613 = vrot.lane.b32.xlu0 %v9881_v16, %s4643_s26 }
 0xc77   : > { %3585 = vrot.lane.b32.xlu1 %v10001_v39, %s4642_s25 }
 0xc78   : > { %3611 = vrot.lane.b32.xlu2 %v9939_v51, %s4643_s26  ;;  %3619 = vrot.lane.b32.xlu0 %v9941_v56, %s4643_s26 }
 0xc7f   : > { %3615 = vrot.lane.b32.xlu1 %v9987_v4, %s4643_s26 }
 0xc80   : > { %3617 = vrot.lane.b32.xlu2 %v9999_v60, %s4643_s26  ;;  %3625 = vrot.lane.b32.xlu0 %v10001_v39, %s4643_s26 }
 0xc87   : > { %3621 = vrot.lane.b32.xlu1 %v10028_v30, %s4643_s26 }
 0xc88   : > { %3623 = vrot.lane.b32.xlu2 %v10030_v0, %s4643_s26 }
 0xc92   : > { %v3492_v22 = vpop.permute.xlu2 %3491 }
 0xc9a   : > { %v3498_v14 = vpop.permute.xlu2 %3497 }
 0xca2   : > { %v3504_v43 = vpop.permute.xlu2 %3503  ;;  %v10084_v7 = vpop.permute.xlu0 %3493 }
 0xcaa   : > { %v3500_v33 = vpop.permute.xlu0 %3499  ;;  %v10086_v23 = vpop.permute.xlu2 %3533 }
 0xcab   : > { %v3511_v12 = vsel %vm473_vm12, %v3500_v33, %v3492_v22  ;;  %v3507_v42 = vsel %vm473_vm12, %v3492_v22, %v3500_v33 }
 0xcac   : > { %v3515_v36 = vsel %vm230_vm14, %v3511_v12, -inf  ;;  %v3524_v6 = vmax.f32 %v9941_v56, %v3507_v42 }
 0xcad   : > { %v3523_v46 = vmax.f32 %v9939_v51, %v3515_v36 }
 0xcb1   : > { %v3496_v41 = vpop.permute.xlu1 %3495 }
 0xcb2   : > { %v3506_v26 = vpop.permute.xlu0 %3505  ;;  %v3540_v53 = vpop.permute.xlu2 %3539  ;;  %v3513_v3 = vsel %vm473_vm12, %v3504_v43, %v3496_v41  ;;  %v3509_v28 = vsel %vm473_vm12, %v3496_v41, %v3504_v43 }
 0xcb3   : > { %v3519_v18 = vsel %vm230_vm14, %v3513_v3, -inf  ;;  %v3514_v21 = vsel %vm473_vm12, %v3506_v26, %v3498_v14  ;;  %v3510_v15 = vsel %vm473_vm12, %v3498_v14, %v3506_v26  ;;  %v3528_v51 = vmax.f32 %v10030_v0, %v3509_v28 }
 0xcb4   : > { %v3527_v22 = vmax.f32 %v9987_v4, %v3519_v18  ;;  %v3521_v43 = vsel %vm230_vm14, %v3514_v21, -inf  ;;  %v3530_v41 = vmax.f32 %v10001_v39, %v3510_v15 }
 0xcb5   : > { %v3529_v36 = vmax.f32 %v9999_v60, %v3521_v43 }
 0xcb9   : > { %v10088_v50 = vpop.permute.xlu1 %3501 }
 0xcba   : > { %v3536_v61 = vpop.permute.xlu0 %3535  ;;  %v3546_v27 = vpop.permute.xlu2 %3545  ;;  %v3512_v28 = vsel %vm473_vm12, %v10088_v50, %v10084_v7 }
 0xcc1   : > { %v3532_v47 = vpop.permute.xlu1 %3531 }
 0xcc2   : > { %v10090_v63 = vpop.permute.xlu0 %3541  ;;  %v3576_v24 = vpop.permute.xlu2 %3575  ;;  %v3551_v17 = vsel %vm518_vm13, %v3540_v53, %v3532_v47  ;;  %v3547_v20 = vsel %vm518_vm13, %v3532_v47, %v3540_v53 }
 0xcc3   : > { %v3555_v44 = vsel %vm238_vm15, %v3551_v17, -inf  ;;  %v3564_v33 = vmax.f32 %v3524_v6, %v3547_v20  ;;  %v3517_v20 = vsel %vm230_vm14, %v3512_v28, -inf }
 0xcc4   : > { %v3563_v49 = vmax.f32 %v3523_v46, %v3555_v44  ;;  %v3552_v44 = vsel %vm518_vm13, %v10090_v63, %v10086_v23 }
 0xcc5   : > { %v3557_v6 = vsel %vm238_vm15, %v3552_v44, -inf }
 0xcc9   : > { %v3538_v1 = vpop.permute.xlu1 %3537 }
 0xcca   : > { %v3572_v52 = vpop.permute.xlu0 %3571  ;;  %v10092_v35 = vpop.permute.xlu2 %3581  ;;  %v3554_v26 = vsel %vm518_vm13, %v3546_v27, %v3538_v1  ;;  %v3550_v3 = vsel %vm518_vm13, %v3538_v1, %v3546_v27 }
 0xcd1   : > { %v3544_v62 = vpop.permute.xlu1 %3543 }
 0xcd2   : > { %v3578_v31 = vpop.permute.xlu0 %3577  ;;  %v3612_v19 = vpop.permute.xlu2 %3611  ;;  %v3553_v56 = vsel %vm518_vm13, %v3544_v62, %v3536_v61  ;;  %v3549_v0 = vsel %vm518_vm13, %v3536_v61, %v3544_v62 }
 0xcd3   : > { %v3559_v39 = vsel %vm238_vm15, %v3553_v56, -inf }
 0xcd4   : > { %v3567_v1 = vmax.f32 %v3527_v22, %v3559_v39 }
 0xcd9   : > { %v10094_v34 = vpop.permute.xlu1 %3573 }
 0xcda   : > { %v3584_v48 = vpop.permute.xlu0 %3583  ;;  %v3618_v40 = vpop.permute.xlu2 %3617 }
 0xcdb   : > { %v3593_v4 = vsel %vm563_vm11, %v3584_v48, %v3576_v24  ;;  %v3589_v60 = vsel %vm563_vm11, %v3576_v24, %v3584_v48  ;;  %v3508_v24 = vsel %vm473_vm12, %v10084_v7, %v10088_v50  ;;  %v3570_v48 = vmax.f32 %v3530_v41, %v3550_v3 }
 0xcdc   : > { %v3600_v27 = vsel %vm249_vm10, %v3593_v4, -inf  ;;  %v3607_v15 = vmax.f32 %v3567_v1, %v3589_v60  ;;  %v3592_v41 = vsel %vm563_vm11, %v10092_v35, %v10094_v34 }
 0xce1   : > { %v3580_v32 = vpop.permute.xlu1 %3579 }
 0xce2   : > { %v10100_v58 = vpop.permute.xlu0 %3613  ;;  %v3591_v59 = vsel %vm563_vm11, %v3580_v32, %v3572_v52  ;;  %v3587_v9 = vsel %vm563_vm11, %v3572_v52, %v3580_v32 }
 0xce3   : > { %v3596_v2 = vsel %vm249_vm10, %v3591_v59, -inf  ;;  %v3603_v53 = vmax.f32 %v3563_v49, %v3587_v9  ;;  %v3568_v59 = vmax.f32 %v3528_v51, %v3549_v0  ;;  %v3624_v9 = vpop.permute.xlu2 %3623 }
 0xce4   : > { %v3604_v52 = vmax.f32 %v3564_v33, %v3596_v2 }
 0xce9   : > { %v3586_v14 = vpop.permute.xlu1 %3585 }
 0xcea   : > { %v3620_v47 = vpop.permute.xlu0 %3619  ;;  %v3594_v17 = vsel %vm563_vm11, %v3586_v14, %v3578_v31  ;;  %v3590_v46 = vsel %vm563_vm11, %v3578_v31, %v3586_v14  ;;  %v3608_v31 = vmax.f32 %v3568_v59, %v3600_v27 }
 0xceb   : > { %v3627_v12 = vsel %vm608_vm9, %v3612_v19, %v3620_v47  ;;  %v3631_v32 = vsel %vm608_vm9, %v3620_v47, %v3612_v19  ;;  %v3561_v19 = vsel %vm238_vm15, %v3554_v26, -inf  ;;  %v3602_v18 = vsel %vm249_vm10, %v3594_v17, -inf }
 0xcec   : > { %v3636_v61 = vsel %vm257_vm8, %v3631_v32, -inf  ;;  %v10151_v62 = vmax.f32 %v3603_v53, %v3627_v12  ;;  %v3569_v21 = vmax.f32 %v3529_v36, %v3561_v19  ;;  %v3610_v2 = vmax.f32 %v3570_v48, %v3602_v18 }
 0xced   : > { %v10158_v42 = vmax.f32 %v3604_v52, %v3636_v61  ;;  %v3525_v47 = vmax.f32 %v9881_v16, %v3517_v20  ;;  %v3526_v52 = vmax.f32 %v10028_v30, %v3508_v24  ;;  %v3588_v12 = vsel %vm563_vm11, %v10094_v34, %v10092_v35 }
 0xcee   : > { %4548 = vst [vmem:[%s4680_s18 + $0x300] sm:$0xff] %v10151_v62  ;;  %3660 = vrot.lane.b32.xlu1 %v10151_v62, %s4636_s19  ;;  %v3609_v49 = vmax.f32 %v3569_v21, %v3590_v46 }
 0xcef   : > { %4549 = vst [vmem:[%s4680_s18 + $0x308] sm:$0xff] %v10158_v42  ;;  %v3565_v16 = vmax.f32 %v3525_v47, %v3557_v6 }
 0xcf1   : > { %v3616_v51 = vpop.permute.xlu1 %3615  ;;  %v3605_v30 = vmax.f32 %v3565_v16, %v3588_v12 }
 0xcf2   : > { %v3629_v22 = vsel %vm608_vm9, %v3616_v51, %v3624_v9  ;;  %v3633_v7 = vsel %vm608_vm9, %v3624_v9, %v3616_v51  ;;  %v3626_v50 = vpop.permute.xlu0 %3625 }
 0xcf3   : > { %v3640_v43 = vsel %vm257_vm8, %v3633_v7, -inf  ;;  %v10196_v33 = vmax.f32 %v3607_v15, %v3629_v22  ;;  %v3630_v56 = vsel %vm608_vm9, %v3618_v40, %v3626_v50  ;;  %v3634_v14 = vsel %vm608_vm9, %v3626_v50, %v3618_v40 }
 0xcf4   : > { %v10206_v26 = vmax.f32 %v3608_v31, %v3640_v43  ;;  %v3642_v0 = vsel %vm257_vm8, %v3634_v14, -inf  ;;  %v10210_v53 = vmax.f32 %v3609_v49, %v3630_v56  ;;  %v3548_v40 = vsel %vm518_vm13, %v10086_v23, %v10090_v63 }
 0xcf5   : > { %4552 = vst [vmem:[%s4680_s18 + $0x320] sm:$0xff] %v10196_v33  ;;  %v10219_v4 = vmax.f32 %v3610_v2, %v3642_v0  ;;  %3664 = vrot.lane.b32.xlu0 %v10196_v33, %s4636_s19  ;;  %v3598_v23 = vsel %vm249_vm10, %v3592_v41, -inf  ;;  %v3566_v63 = vmax.f32 %v3526_v52, %v3548_v40 }
 0xcf6   : > { %4553 = vst [vmem:[%s4680_s18 + $0x328] sm:$0xff] %v10206_v26  ;;  %3666 = vrot.lane.b32.xlu1 %v10210_v53, %s4636_s19 }
 0xcf7   : > { %4554 = vst [vmem:[%s4680_s18 + $0x330] sm:$0xff] %v10210_v53  ;;  %v3606_v39 = vmax.f32 %v3566_v63, %v3598_v23 }
 0xcf8   : > { %4555 = vst [vmem:[%s4680_s18 + $0x338] sm:$0xff] %v10219_v4 }
 0xcf9   : > { %v3622_v32 = vpop.permute.xlu1 %3621 }
 0xcfa   : > { %v3628_v35 = vsel %vm608_vm9, %v10100_v58, %v3622_v32  ;;  %v3632_v34 = vsel %vm608_vm9, %v3622_v32, %v10100_v58 }
 0xcfb   : > { %v3638_v17 = vsel %vm257_vm8, %v3632_v34, -inf  ;;  %v10246_v61 = vmax.f32 %v3605_v30, %v3628_v35 }
 0xcfc   : > { %v10248_v36 = vmax.f32 %v3606_v39, %v3638_v17 }
 0xcfd   : > { %4550 = vst [vmem:[%s4680_s18 + $0x310] sm:$0xff] %v10246_v61  ;;  %3662 = vrot.lane.b32.xlu2 %v10246_v61, %s4636_s19 }
 0xcfe   : > { %4551 = vst [vmem:[%s4680_s18 + $0x318] sm:$0xff] %v10248_v36  ;;  %3670 = vrot.lane.b32.xlu0 %v10248_v36, %s4636_s19  ;;  %3672 = vrot.lane.b32.xlu1 %v10206_v26, %s4636_s19 }
 0xd05   : > { %3668 = vrot.lane.b32.xlu2 %v10158_v42, %s4636_s19 }
 0xd06   : > { %3700 = vrot.lane.b32.xlu0 %v10151_v62, %s4637_s20  ;;  %3702 = vrot.lane.b32.xlu1 %v10246_v61, %s4637_s20 }
 0xd0d   : > { %3674 = vrot.lane.b32.xlu2 %v10219_v4, %s4636_s19 }
 0xd0e   : > { %3706 = vrot.lane.b32.xlu0 %v10210_v53, %s4637_s20  ;;  %3708 = vrot.lane.b32.xlu1 %v10158_v42, %s4637_s20 }
 0xd15   : > { %3704 = vrot.lane.b32.xlu2 %v10196_v33, %s4637_s20 }
 0xd16   : > { %3712 = vrot.lane.b32.xlu0 %v10206_v26, %s4637_s20  ;;  %3714 = vrot.lane.b32.xlu1 %v10219_v4, %s4637_s20 }
 0xd1d   : > { %3710 = vrot.lane.b32.xlu2 %v10248_v36, %s4637_s20 }
 0xd1e   : > { %3742 = vrot.lane.b32.xlu0 %v10246_v61, %s4638_s21  ;;  %3744 = vrot.lane.b32.xlu1 %v10196_v33, %s4638_s21 }
 0xd25   : > { %3740 = vrot.lane.b32.xlu2 %v10151_v62, %s4638_s21 }
 0xd26   : > { %3748 = vrot.lane.b32.xlu0 %v10158_v42, %s4638_s21  ;;  %3750 = vrot.lane.b32.xlu1 %v10248_v36, %s4638_s21 }
 0xd2d   : > { %3746 = vrot.lane.b32.xlu2 %v10210_v53, %s4638_s21 }
 0xd2e   : > { %3754 = vrot.lane.b32.xlu0 %v10219_v4, %s4638_s21  ;;  %3780 = vrot.lane.b32.xlu1 %v10151_v62, %s4639_s22 }
 0xd35   : > { %3752 = vrot.lane.b32.xlu2 %v10206_v26, %s4638_s21 }
 0xd36   : > { %3784 = vrot.lane.b32.xlu0 %v10196_v33, %s4639_s22  ;;  %3786 = vrot.lane.b32.xlu1 %v10210_v53, %s4639_s22 }
 0xd3d   : > { %3782 = vrot.lane.b32.xlu2 %v10246_v61, %s4639_s22 }
 0xd3e   : > { %3790 = vrot.lane.b32.xlu0 %v10248_v36, %s4639_s22  ;;  %3792 = vrot.lane.b32.xlu1 %v10206_v26, %s4639_s22 }
 0xd45   : > { %3788 = vrot.lane.b32.xlu2 %v10158_v42, %s4639_s22 }
 0xd4d   : > { %3794 = vrot.lane.b32.xlu2 %v10219_v4, %s4639_s22 }
 0xd57   : > { %v3663_v58 = vpop.permute.xlu2 %3662 }
 0xd5f   : > { %v3669_v3 = vpop.permute.xlu2 %3668 }
 0xd60   : > { %v3661_v19 = vpop.permute.xlu1 %3660 }
 0xd61   : > { %v10314_v28 = vsel %vm11816_vm2, %v3661_v19, %v3669_v3  ;;  %v3680_v50 = vsel %vm11819_vm0, %v3669_v3, %v3661_v19  ;;  %vm11822_vm2 = vcmp.ge.s32.totalorder %v11537_v13, 0 }
 0xd62   : > { %v3684_v0 = vsel %vm11821_vm4, %v3680_v50, -inf }
 0xd63   : > { %v3692_v52 = vmax.f32 %v10151_v62, %v3684_v0 }
 0xd67   : > { %v3675_v44 = vpop.permute.xlu2 %3674  ;;  %v3665_v60 = vpop.permute.xlu0 %3664 }
 0xd68   : > { %v3667_v27 = vpop.permute.xlu1 %3666 }
 0xd69   : > { %v10318_v1 = vsel %vm11817_vm7, %v3667_v27, %v3675_v44  ;;  %vm11823_vm7 = vcmp.lt.s32.totalorder %v11539_v55, 16 }
 0xd6f   : > { %v3705_v59 = vpop.permute.xlu2 %3704 }
 0xd70   : > { %v3673_v46 = vpop.permute.xlu1 %3672  ;;  %v3671_v18 = vpop.permute.xlu0 %3670 }
 0xd71   : > { %v10322_v24 = vsel %vm11818_vm5, %v3663_v58, %v3671_v18  ;;  %vm11824_vm5 = vmmov %vm11819_vm0 }
 0xd72   : > { %v3683_v16 = vsel %vm11824_vm5, %v3675_v44, %v3667_v27  ;;  %vm11825_vm0 = vmmov %vm11820_vm1 }
 0xd77   : > { %v10324_v48 = vpop.permute.xlu2 %3710 }
 0xd78   : > { %v10326_v21 = vpop.permute.xlu1 %3702  ;;  %v10328_v20 = vpop.permute.xlu0 %3700 }
 0xd7f   : > { %v10330_v6 = vpop.permute.xlu2 %3740 }
 0xd80   : > { %v10332_v15 = vpop.permute.xlu1 %3708  ;;  %v10334_v31 = vpop.permute.xlu0 %3706 }
 0xd81   : > { %v3720_v41 = vsel %vm11820_vm1, %v10332_v15, %v10328_v20  ;;  %vm11826_vm1 = vmmov %vm11821_vm4  ;;  %vm11827_vm4 = vcmp.lt.s32.totalorder %v11543_v11, 16 }
 0xd82   : > { %v3724_v40 = vsel %vm11822_vm2, %v3720_v41, -inf  ;;  %v3690_v34 = vsel %vm11826_vm1, %v3683_v16, -inf  ;;  %v3678_v41 = vsel %vm11824_vm5, %v3665_v60, %v3673_v46  ;;  %vm11830_vm1 = vmmov %vm11824_vm5 }
 0xd83   : > { %v3732_v23 = vmax.f32 %v3692_v52, %v3724_v40  ;;  %v3698_v27 = vmax.f32 %v10210_v53, %v3690_v34 }
 0xd87   : > { %v10336_v9 = vpop.permute.xlu2 %3746 }
 0xd88   : > { %v10338_v51 = vpop.permute.xlu1 %3714  ;;  %v3713_v49 = vpop.permute.xlu0 %3712 }
 0xd89   : > { %v3723_v39 = vsel %vm11825_vm0, %v10338_v51, %v10334_v31  ;;  %vm11829_vm0 = vcmp.lt.s32.totalorder %v11539_v55, 16 }
 0xd8a   : > { %v3730_v44 = vsel %vm11822_vm2, %v3723_v39, -inf  ;;  %vm11832_vm2 = vcmp.lt.s32.totalorder %v4812_v29, 1 }
 0xd8b   : > { %v3738_v40 = vmax.f32 %v3698_v27, %v3730_v44 }
 0xd8f   : > { %v3753_v2 = vpop.permute.xlu2 %3752 }
 0xd90   : > { %v3745_v22 = vpop.permute.xlu1 %3744  ;;  %v10340_v7 = vpop.permute.xlu0 %3742 }
 0xd97   : > { %v10344_v43 = vpop.permute.xlu2 %3782 }
 0xd98   : > { %v10346_v56 = vpop.permute.xlu1 %3750  ;;  %v10348_v14 = vpop.permute.xlu0 %3748 }
 0xd99   : > { %v3756_v47 = vsel %vm383_vm3, %v10330_v6, %v10348_v14 }
 0xd9a   : > { %v3764_v12 = vsel %vm11823_vm7, %v3756_v47, -inf  ;;  %vm11828_vm7 = vmmov %vm11824_vm5  ;;  %v3681_v47 = vsel %vm11830_vm1, %v3671_v18, %v3663_v58  ;;  %vm11834_vm5 = vcmp.ge.s32.totalorder %v11548_v37, 0 }
 0xd9b   : > { %v3772_v35 = vmax.f32 %v3732_v23, %v3764_v12  ;;  %v3682_v50 = vsel %vm11828_vm7, %v3673_v46, %v3665_v60  ;;  %v3718_v12 = vsel %vm11832_vm2, %v3705_v59, %v3713_v49  ;;  %vm11833_vm7 = vmmov %vm11832_vm2  ;;  %v3689_v46 = vsel %vm11834_vm5, %v3678_v41, -inf }
 0xd9c   : > { %v3722_v16 = vsel %vm11833_vm7, %v3713_v49, %v3705_v59  ;;  %v3758_v49 = vsel %vm383_vm3, %v3745_v22, %v3753_v2  ;;  %vm11839_vm7 = vcmp.ge.s32.totalorder %v11560_v25, 0 }
 0xd9f   : > { %v10367_v63 = vpop.permute.xlu2 %3788 }
 0xda0   : > { %v10369_v30 = vpop.permute.xlu1 %3780  ;;  %v10371_v32 = vpop.permute.xlu0 %3754 }
 0xda1   : > { %v3796_v62 = vsel %vm428_vm6, %v10369_v30, %v10367_v63  ;;  %v3759_v19 = vsel %vm383_vm3, %v10336_v9, %v10371_v32 }
 0xda2   : > { %v3804_v17 = vsel %vm11827_vm4, %v3796_v62, -inf  ;;  %v3770_v0 = vsel %vm11829_vm0, %v3759_v19, -inf  ;;  %vm11831_vm4 = vcmp.ge.s32.totalorder %v11535_v8, 0  ;;  %vm11835_vm0 = vmmov %vm11832_vm2  ;;  %vm11838_vm2 = vcmp.ge.s32.totalorder %v11537_v13, 0 }
 0xda3   : > { %v10385_v3 = vmax.f32 %v3772_v35, %v3804_v17  ;;  %v3688_v53 = vsel %vm11831_vm4, %v3682_v50, -inf  ;;  %v3721_v58 = vsel %vm11835_vm0, %v10324_v48, %v10326_v21  ;;  %v3778_v18 = vmax.f32 %v3738_v40, %v3770_v0  ;;  %vm11836_vm1 = vmmov %vm11831_vm4 }
 0xda4   : > { %v3686_v59 = vsel %vm11836_vm1, %v3681_v47, -inf  ;;  %v3762_v35 = vsel %vm383_vm3, %v3753_v2, %v3745_v22  ;;  %vm11837_vm4 = vcmp.lt.s32.totalorder %v11543_v11, 16  ;;  %v3728_v34 = vsel %vm11838_vm2, %v3722_v16, -inf  ;;  %vm11840_vm5 = vmmov %vm11838_vm2 }
 0xda5   : > { %3820 = vrot.lane.b32.xlu0 %v10385_v3, %s4640_s23  ;;  %v3729_v17 = vsel %vm11839_vm7, %v3718_v12, -inf  ;;  %v3757_v19 = vsel %vm383_vm3, %v10340_v7, %v10346_v56  ;;  %v3696_v27 = vmax.f32 %v10196_v33, %v3688_v53  ;;  %v3697_v2 = vmax.f32 %v10206_v26, %v3689_v46 }
 0xda6   : > { %v3726_v22 = vsel %vm11840_vm5, %v3721_v58, -inf  ;;  %v3694_v50 = vmax.f32 %v10246_v61, %v3686_v59  ;;  %vm11841_vm0 = vcmp.lt.s32.totalorder %v11539_v55, 16  ;;  %vm11842_vm1 = vcmp.lt.s32.totalorder %v11565_v5, 16 }
 0xda7   : > { %v10404_v52 = vpop.permute.xlu2 %3794  ;;  %v3768_v41 = vsel %vm11841_vm0, %v3758_v49, -inf  ;;  %v3769_v0 = vsel %vm11842_vm1, %v3762_v35, -inf  ;;  %v3736_v47 = vmax.f32 %v3696_v27, %v3728_v34  ;;  %v3737_v40 = vmax.f32 %v3697_v2, %v3729_v17 }
 0xda8   : > { %v10412_v23 = vpop.permute.xlu1 %3786  ;;  %v3785_v60 = vpop.permute.xlu0 %3784  ;;  %vm11844_vm2 = vcmp.ge.s32.totalorder %v11548_v37, 0  ;;  %v3734_v53 = vmax.f32 %v3694_v50, %v3726_v22  ;;  %vm11846_vm5 = vcmp.lt.s32.totalorder %v4812_v29, 1  ;;  %vm11848_vm1 = vcmp.lt.s32.totalorder %v11543_v11, 16 }
 0xda9   : > { %v3799_v39 = vsel %vm428_vm6, %v10412_v23, %v10404_v52  ;;  %v3685_v26 = vsel %vm11844_vm2, %v10314_v28, -inf  ;;  %vm11845_vm7 = vmmov %vm11844_vm2  ;;  %v3717_v12 = vsel %vm11846_vm5, %v10326_v21, %v10324_v48  ;;  %v3776_v16 = vmax.f32 %v3736_v47, %v3768_v41 }
 0xdaa   : > { %v3810_v62 = vsel %vm11837_vm4, %v3799_v39, -inf  ;;  %vm11843_vm4 = vmmov %vm11841_vm0  ;;  %v3687_v61 = vsel %vm11845_vm7, %v10322_v24, -inf  ;;  %v3777_v46 = vmax.f32 %v3737_v40, %v3769_v0  ;;  %vm11851_vm7 = vcmp.ge.s32.totalorder %v11560_v25, 0 }
 0xdab   : > { %v10440_v44 = vmax.f32 %v3778_v18, %v3810_v62  ;;  %v3766_v33 = vsel %vm11843_vm4, %v3757_v19, -inf  ;;  %vm11847_vm0 = vmmov %vm11846_vm5  ;;  %vm11849_vm4 = vcmp.lt.s32.totalorder %v11660_v10, 16  ;;  %v3695_v19 = vmax.f32 %v10248_v36, %v3687_v61 }
 0xdac   : > { %v3774_v39 = vmax.f32 %v3734_v53, %v3766_v33  ;;  %v3716_v48 = vsel %vm11847_vm0, %v10328_v20, %v10332_v15  ;;  %vm11850_vm2 = vmmov %vm11848_vm1  ;;  %v3727_v20 = vsel %vm11851_vm7, %v3717_v12, -inf  ;;  %v3760_v15 = vsel %vm383_vm3, %v10348_v14, %v10330_v6 }
 0xdad   : > { %3826 = vrot.lane.b32.xlu0 %v10440_v44, %s4640_s23  ;;  %vm11852_vm5 = vmmov %vm11851_vm7  ;;  %vm11853_vm0 = vcmp.lt.s32.totalorder %v11565_v5, 16  ;;  %v3800_v36 = vsel %vm428_vm6, %v10367_v63, %v10369_v30  ;;  %vm11856_vm7 = vcmp.lt.s32.totalorder %v4812_v29, 1  ;;  %v3763_v40 = vsel %vm383_vm3, %v10371_v32, %v10336_v9 }
 0xdae   : > { %v3725_v27 = vsel %vm11852_vm5, %v3716_v48, -inf  ;;  %v3719_v63 = vsel %vm11856_vm7, %v10334_v31, %v10338_v51  ;;  %vm11857_vm5 = vcmp.ge.s32.totalorder %v11548_v37, 0  ;;  %v3803_v31 = vsel %vm428_vm6, %v10404_v52, %v10412_v23 }
 0xdaf   : > { %v3691_v41 = vsel %vm11857_vm5, %v10318_v1, -inf }
 0xdb0   : > { %v3793_v58 = vpop.permute.xlu1 %3792  ;;  %v3791_v18 = vpop.permute.xlu0 %3790  ;;  %v3699_v1 = vmax.f32 %v10219_v4, %v3691_v41 }
 0xdb1   : > { %v3798_v59 = vsel %vm428_vm6, %v3785_v60, %v3793_v58  ;;  %v3802_v28 = vsel %vm428_vm6, %v3793_v58, %v3785_v60  ;;  %v3797_v24 = vsel %vm428_vm6, %v10344_v43, %v3791_v18  ;;  %v3761_v60 = vsel %vm383_vm3, %v10346_v56, %v10340_v7 }
 0xdb2   : > { %v3808_v21 = vsel %vm11848_vm1, %v3798_v59, -inf  ;;  %v3809_v49 = vsel %vm11849_vm4, %v3802_v28, -inf  ;;  %v3806_v35 = vsel %vm11850_vm2, %v3797_v24, -inf  ;;  %v3801_v7 = vsel %vm428_vm6, %v3791_v18, %v10344_v43  ;;  %vm11854_vm1 = vmmov %vm11853_vm0 }
 0xdb3   : > { %v10486_v62 = vmax.f32 %v3776_v16, %v3808_v21  ;;  %v10488_v34 = vmax.f32 %v3777_v46, %v3809_v49  ;;  %v10490_v17 = vmax.f32 %v3774_v39, %v3806_v35  ;;  %v3693_v56 = vmax.f32 %v10158_v42, %v3685_v26  ;;  %vm11855_vm2 = vmmov %vm11849_vm4 }
 0xdb4   : > { %v3767_v6 = vsel %vm11853_vm0, %v3761_v60, -inf  ;;  %v3735_v43 = vmax.f32 %v3695_v19, %v3727_v20  ;;  %v3765_v14 = vsel %vm11854_vm1, %v3760_v15, -inf  ;;  %v3807_v22 = vsel %vm11849_vm4, %v3801_v7, -inf  ;;  %vm11859_vm4 = vmmov %vm11855_vm2 }
 0xdb5   : > { %3832 = vrot.lane.b32.xlu0 %v10488_v34, %s4640_s23  ;;  %3824 = vrot.lane.b32.xlu2 %v10486_v62, %s4640_s23  ;;  %v3733_v2 = vmax.f32 %v3693_v56, %v3725_v27  ;;  %v3805_v50 = vsel %vm11855_vm2, %v3800_v36, -inf  ;;  %vm11858_vm0 = vcmp.ge.s32.totalorder %v11560_v25, 0  ;;  %v3771_v9 = vsel %vm11854_vm1, %v3763_v40, -inf }
 0xdb6   : > { %3822 = vrot.lane.b32.xlu1 %v10490_v17, %s4640_s23  ;;  %v3775_v42 = vmax.f32 %v3735_v43, %v3767_v6  ;;  %v3731_v33 = vsel %vm11858_vm0, %v3719_v63, -inf  ;;  %v3811_v32 = vsel %vm11859_vm4, %v3803_v31, -inf  ;;  %vm11860_vm2 = vcmp.lt.s32.totalorder %v4812_v29, 2 }
 0xdb7   : > { %v3773_v30 = vmax.f32 %v3733_v2, %v3765_v14  ;;  %v3739_v51 = vmax.f32 %v3699_v1, %v3731_v33  ;;  %vm11861_vm7 = vmmov %vm11860_vm2  ;;  %vm11864_vm1 = vcmp.lt.s32.totalorder %v4812_v29, 1  ;;  %vm11865_vm4 = vcmp.ge.s32.totalorder %v11535_v8, 0 }
 0xdb8   : > { %v10530_v0 = vmax.f32 %v3775_v42, %v3807_v22  ;;  %vm11862_vm5 = vmmov %vm11860_vm2 }
 0xdb9   : > { %v10532_v47 = vmax.f32 %v3773_v30, %v3805_v50  ;;  %v3779_v26 = vmax.f32 %v3739_v51, %v3771_v9  ;;  %vm11863_vm0 = vmmov %vm11860_vm2 }
 0xdbb   : > { %v10555_v53 = vmax.f32 %v3779_v26, %v3811_v32 }
 0xdbd   : > { %3830 = vrot.lane.b32.xlu2 %v10530_v0, %s4640_s23  ;;  %3862 = vrot.lane.b32.xlu0 %v10490_v17, %s4641_s24 }
 0xdbe   : > { %3828 = vrot.lane.b32.xlu1 %v10532_v47, %s4640_s23 }
 0xdc5   : > { %3860 = vrot.lane.b32.xlu2 %v10385_v3, %s4641_s24  ;;  %3868 = vrot.lane.b32.xlu0 %v10532_v47, %s4641_s24 }
 0xdc6   : > { %3834 = vrot.lane.b32.xlu1 %v10555_v53, %s4640_s23 }
 0xdcd   : > { %3866 = vrot.lane.b32.xlu2 %v10440_v44, %s4641_s24  ;;  %3874 = vrot.lane.b32.xlu0 %v10555_v53, %s4641_s24 }
 0xdce   : > { %3864 = vrot.lane.b32.xlu1 %v10486_v62, %s4641_s24 }
 0xdd5   : > { %3872 = vrot.lane.b32.xlu2 %v10488_v34, %s4641_s24  ;;  %3904 = vrot.lane.b32.xlu0 %v10486_v62, %s4642_s25 }
 0xdd6   : > { %3870 = vrot.lane.b32.xlu1 %v10530_v0, %s4641_s24 }
 0xddd   : > { %3902 = vrot.lane.b32.xlu2 %v10490_v17, %s4642_s25  ;;  %3910 = vrot.lane.b32.xlu0 %v10530_v0, %s4642_s25 }
 0xdde   : > { %3900 = vrot.lane.b32.xlu1 %v10385_v3, %s4642_s25 }
 0xde5   : > { %3908 = vrot.lane.b32.xlu2 %v10532_v47, %s4642_s25  ;;  %3940 = vrot.lane.b32.xlu0 %v10385_v3, %s4643_s26 }
 0xde6   : > { %3906 = vrot.lane.b32.xlu1 %v10440_v44, %s4642_s25 }
 0xded   : > { %3914 = vrot.lane.b32.xlu2 %v10555_v53, %s4642_s25  ;;  %3946 = vrot.lane.b32.xlu0 %v10440_v44, %s4643_s26 }
 0xdee   : > { %3912 = vrot.lane.b32.xlu1 %v10488_v34, %s4642_s25 }
 0xdf5   : > { %3944 = vrot.lane.b32.xlu2 %v10486_v62, %s4643_s26  ;;  %3952 = vrot.lane.b32.xlu0 %v10488_v34, %s4643_s26 }
 0xdf6   : > { %3942 = vrot.lane.b32.xlu1 %v10490_v17, %s4643_s26 }
 0xdfd   : > { %3950 = vrot.lane.b32.xlu2 %v10530_v0, %s4643_s26 }
 0xdfe   : > { %3948 = vrot.lane.b32.xlu1 %v10532_v47, %s4643_s26 }
 0xe06   : > { %3954 = vrot.lane.b32.xlu1 %v10555_v53, %s4643_s26 }
 0xe0f   : > { %v3825_v4 = vpop.permute.xlu2 %3824 }
 0xe17   : > { %v10605_v52 = vpop.permute.xlu0 %3820  ;;  %v3831_v23 = vpop.permute.xlu2 %3830 }
 0xe1f   : > { %v10607_v61 = vpop.permute.xlu0 %3826  ;;  %v10609_v12 = vpop.permute.xlu2 %3860 }
 0xe27   : > { %v3833_v16 = vpop.permute.xlu0 %3832  ;;  %v10611_v58 = vpop.permute.xlu2 %3866 }
 0xe28   : > { %v3823_v46 = vpop.permute.xlu1 %3822  ;;  %v3842_v36 = vsel %vm473_vm12, %v3833_v16, %v3825_v4  ;;  %v3838_v43 = vsel %vm473_vm12, %v3825_v4, %v3833_v16 }
 0xe29   : > { %v3841_v6 = vsel %vm473_vm12, %v3831_v23, %v3823_v46  ;;  %v3848_v63 = vsel %vm230_vm14, %v3842_v36, -inf  ;;  %v3837_v41 = vsel %vm473_vm12, %v3823_v46, %v3831_v23  ;;  %v3857_v40 = vmax.f32 %v10488_v34, %v3838_v43 }
 0xe2a   : > { %v3846_v50 = vsel %vm230_vm14, %v3841_v6, -inf  ;;  %v3856_v32 = vmax.f32 %v10486_v62, %v3848_v63  ;;  %v3855_v4 = vmax.f32 %v10530_v0, %v3837_v41 }
 0xe2b   : > { %v3854_v51 = vmax.f32 %v10490_v17, %v3846_v50 }
 0xe2f   : > { %v3863_v18 = vpop.permute.xlu0 %3862  ;;  %v3873_v59 = vpop.permute.xlu2 %3872 }
 0xe30   : > { %v3829_v39 = vpop.permute.xlu1 %3828 }
 0xe31   : > { %v3840_v23 = vsel %vm473_vm12, %v3829_v39, %v10605_v52 }
 0xe37   : > { %v10613_v28 = vpop.permute.xlu0 %3868  ;;  %v3903_v21 = vpop.permute.xlu2 %3902 }
 0xe38   : > { %v10615_v24 = vpop.permute.xlu1 %3834 }
 0xe3f   : > { %v10617_v48 = vpop.permute.xlu0 %3874  ;;  %v10619_v20 = vpop.permute.xlu2 %3908 }
 0xe40   : > { %v3865_v49 = vpop.permute.xlu1 %3864 }
 0xe41   : > { %v3882_v2 = vsel %vm518_vm13, %v3873_v59, %v3865_v49  ;;  %v3878_v26 = vsel %vm518_vm13, %v3865_v49, %v3873_v59 }
 0xe42   : > { %v3888_v33 = vsel %vm238_vm15, %v3882_v2, -inf  ;;  %v3897_v49 = vmax.f32 %v3857_v40, %v3878_v26 }
 0xe43   : > { %v3896_v46 = vmax.f32 %v3856_v32, %v3888_v33 }
 0xe47   : > { %v3905_v35 = vpop.permute.xlu0 %3904  ;;  %v10623_v27 = vpop.permute.xlu2 %3914 }
 0xe48   : > { %v3871_v60 = vpop.permute.xlu1 %3870 }
 0xe49   : > { %v3881_v22 = vsel %vm518_vm13, %v3871_v60, %v3863_v18  ;;  %v3877_v34 = vsel %vm518_vm13, %v3863_v18, %v3871_v60  ;;  %v3844_v60 = vsel %vm230_vm14, %v3840_v23, -inf }
 0xe4a   : > { %v3886_v1 = vsel %vm238_vm15, %v3881_v22, -inf  ;;  %v3895_v0 = vmax.f32 %v3855_v4, %v3877_v34 }
 0xe4b   : > { %v3894_v62 = vmax.f32 %v3854_v51, %v3886_v1  ;;  %v3836_v1 = vsel %vm473_vm12, %v10605_v52, %v3829_v39  ;;  %v3852_v52 = vmax.f32 %v10385_v3, %v3844_v60  ;;  %v3876_v39 = vsel %vm518_vm13, %v10609_v12, %v10613_v28 }
 0xe4c   : > { %v3853_v34 = vmax.f32 %v10532_v47, %v3836_v1  ;;  %v3843_v3 = vsel %vm473_vm12, %v10615_v24, %v10607_v61  ;;  %v3883_v47 = vsel %vm518_vm13, %v10617_v48, %v10611_v58 }
 0xe4e   : > { %v3893_v23 = vmax.f32 %v3853_v34, %v3876_v39 }
 0xe4f   : > { %v3911_v15 = vpop.permute.xlu0 %3910  ;;  %v3945_v14 = vpop.permute.xlu2 %3944 }
 0xe50   : > { %v10621_v19 = vpop.permute.xlu1 %3900  ;;  %v3921_v31 = vsel %vm563_vm11, %v3911_v15, %v3903_v21  ;;  %v3917_v16 = vsel %vm563_vm11, %v3903_v21, %v3911_v15  ;;  %v3880_v21 = vsel %vm518_vm13, %v10613_v28, %v10609_v12 }
 0xe51   : > { %v3927_v59 = vsel %vm249_vm10, %v3921_v31, -inf  ;;  %v3934_v15 = vmax.f32 %v3894_v62, %v3917_v16  ;;  %v3884_v51 = vsel %vm238_vm15, %v3880_v21, -inf  ;;  %v3920_v32 = vsel %vm563_vm11, %v10619_v20, %v10621_v19 }
 0xe52   : > { %v3935_v36 = vmax.f32 %v3895_v0, %v3927_v59  ;;  %v3916_v4 = vsel %vm563_vm11, %v10621_v19, %v10619_v20  ;;  %v3892_v12 = vmax.f32 %v3852_v52, %v3884_v51  ;;  %v3925_v28 = vsel %vm249_vm10, %v3920_v32, -inf }
 0xe53   : > { %v3850_v16 = vsel %vm230_vm14, %v3843_v3, -inf  ;;  %v3839_v59 = vsel %vm473_vm12, %v10607_v61, %v10615_v24  ;;  %v3890_v0 = vsel %vm238_vm15, %v3883_v47, -inf  ;;  %v3879_v24 = vsel %vm518_vm13, %v10611_v58, %v10617_v48 }
 0xe54   : > { %v3932_v20 = vmax.f32 %v3892_v12, %v3916_v4  ;;  %v3858_v61 = vmax.f32 %v10440_v44, %v3850_v16 }
 0xe56   : > { %v3898_v44 = vmax.f32 %v3858_v61, %v3890_v0 }
 0xe57   : > { %v10625_v7 = vpop.permute.xlu0 %3940  ;;  %v3951_v43 = vpop.permute.xlu2 %3950 }
 0xe58   : > { %v10627_v56 = vpop.permute.xlu1 %3906 }
 0xe59   : > { %v3923_v60 = vsel %vm563_vm11, %v10623_v27, %v10627_v56 }
 0xe5a   : > { %v3931_v58 = vsel %vm249_vm10, %v3923_v60, -inf }
 0xe5f   : > { %v10639_v42 = vpop.permute.xlu0 %3946 }
 0xe60   : > { %v3913_v30 = vpop.permute.xlu1 %3912 }
 0xe61   : > { %v3922_v9 = vsel %vm563_vm11, %v3913_v30, %v3905_v35  ;;  %v3918_v17 = vsel %vm563_vm11, %v3905_v35, %v3913_v30 }
 0xe62   : > { %v3929_v18 = vsel %vm249_vm10, %v3922_v9, -inf  ;;  %v3936_v35 = vmax.f32 %v3896_v46, %v3918_v17  ;;  %v3933_v17 = vmax.f32 %v3893_v23, %v3925_v28 }
 0xe63   : > { %v3937_v2 = vmax.f32 %v3897_v49, %v3929_v18 }
 0xe67   : > { %v3953_v6 = vpop.permute.xlu0 %3952 }
 0xe68   : > { %v3943_v22 = vpop.permute.xlu1 %3942  ;;  %v3958_v50 = vsel %vm608_vm9, %v3945_v14, %v3953_v6  ;;  %v3962_v63 = vsel %vm608_vm9, %v3953_v6, %v3945_v14 }
 0xe69   : > { %v3957_v30 = vsel %vm608_vm9, %v3943_v22, %v3951_v43  ;;  %v3961_v41 = vsel %vm608_vm9, %v3951_v43, %v3943_v22  ;;  %v3969_v40 = vsel %vm257_vm8, %v3962_v63, -inf  ;;  %v10690_v33 = vmax.f32 %v3936_v35, %v3958_v50 }
 0xe6a   : > { %v3967_v14 = vsel %vm257_vm8, %v3961_v41, -inf  ;;  %v10697_v31 = vmax.f32 %v3934_v15, %v3957_v30  ;;  %v10699_v9 = vmax.f32 %v3937_v2, %v3969_v40  ;;  %v3919_v15 = vsel %vm563_vm11, %v10627_v56, %v10623_v27 }
 0xe6b   : > { %v10707_v26 = vmax.f32 %v3935_v36, %v3967_v14  ;;  %4560 = vst [vmem:[%s4680_s18 + $0x360] sm:$0xff] %v10690_v33  ;;  %3993 = vrot.lane.b32.xlu1 %v10690_v33, %s4636_s19  ;;  %v3938_v35 = vmax.f32 %v3898_v44, %v3919_v15 }
 0xe6c   : > { %4558 = vst [vmem:[%s4680_s18 + $0x350] sm:$0xff] %v10697_v31  ;;  %3991 = vrot.lane.b32.xlu0 %v10697_v31, %s4636_s19 }
 0xe6d   : > { %4559 = vst [vmem:[%s4680_s18 + $0x358] sm:$0xff] %v10707_v26 }
 0xe6e   : > { %4561 = vst [vmem:[%s4680_s18 + $0x368] sm:$0xff] %v10699_v9 }
 0xe70   : > { %v3949_v19 = vpop.permute.xlu1 %3948 }
 0xe71   : > { %v3956_v46 = vsel %vm608_vm9, %v10625_v7, %v3949_v19  ;;  %v3960_v62 = vsel %vm608_vm9, %v3949_v19, %v10625_v7  ;;  %v3859_v7 = vmax.f32 %v10555_v53, %v3839_v59 }
 0xe72   : > { %v3965_v18 = vsel %vm257_vm8, %v3960_v62, -inf  ;;  %v10755_v49 = vmax.f32 %v3932_v20, %v3956_v46 }
 0xe73   : > { %v10763_v21 = vmax.f32 %v3933_v17, %v3965_v18  ;;  %3999 = vrot.lane.b32.xlu1 %v10707_v26, %s4636_s19  ;;  %v3899_v48 = vmax.f32 %v3859_v7, %v3879_v24 }
 0xe74   : > { %4556 = vst [vmem:[%s4680_s18 + $0x340] sm:$0xff] %v10755_v49  ;;  %3989 = vrot.lane.b32.xlu2 %v10755_v49, %s4636_s19 }
 0xe75   : > { %4557 = vst [vmem:[%s4680_s18 + $0x348] sm:$0xff] %v10763_v21  ;;  %3997 = vrot.lane.b32.xlu0 %v10763_v21, %s4636_s19  ;;  %v3939_v53 = vmax.f32 %v3899_v48, %v3931_v58 }
 0xe78   : > { %v3955_v6 = vpop.permute.xlu1 %3954 }
 0xe79   : > { %v3959_v36 = vsel %vm608_vm9, %v10639_v42, %v3955_v6  ;;  %v3963_v27 = vsel %vm608_vm9, %v3955_v6, %v10639_v42 }
 0xe7a   : > { %v3971_v56 = vsel %vm257_vm8, %v3963_v27, -inf  ;;  %v10795_v43 = vmax.f32 %v3938_v35, %v3959_v36 }
 0xe7b   : > { %v10797_v2 = vmax.f32 %v3939_v53, %v3971_v56  ;;  %4029 = vrot.lane.b32.xlu1 %v10755_v49, %s4637_s20 }
 0xe7c   : > { %4562 = vst [vmem:[%s4680_s18 + $0x370] sm:$0xff] %v10795_v43  ;;  %3995 = vrot.lane.b32.xlu2 %v10795_v43, %s4636_s19 }
 0xe7d   : > { %4563 = vst [vmem:[%s4680_s18 + $0x378] sm:$0xff] %v10797_v2  ;;  %4003 = vrot.lane.b32.xlu0 %v10797_v2, %s4636_s19 }
 0xe83   : > { %4035 = vrot.lane.b32.xlu1 %v10795_v43, %s4637_s20 }
 0xe84   : > { %4001 = vrot.lane.b32.xlu2 %v10699_v9, %s4636_s19 }
 0xe85   : > { %4033 = vrot.lane.b32.xlu0 %v10690_v33, %s4637_s20 }
 0xe8b   : > { %4041 = vrot.lane.b32.xlu1 %v10699_v9, %s4637_s20 }
 0xe8c   : > { %4031 = vrot.lane.b32.xlu2 %v10697_v31, %s4637_s20 }
 0xe8d   : > { %4039 = vrot.lane.b32.xlu0 %v10707_v26, %s4637_s20 }
 0xe93   : > { %4071 = vrot.lane.b32.xlu1 %v10697_v31, %s4638_s21 }
 0xe94   : > { %4037 = vrot.lane.b32.xlu2 %v10763_v21, %s4637_s20 }
 0xe95   : > { %4069 = vrot.lane.b32.xlu0 %v10755_v49, %s4638_s21 }
 0xe9b   : > { %4077 = vrot.lane.b32.xlu1 %v10763_v21, %s4638_s21 }
 0xe9c   : > { %4043 = vrot.lane.b32.xlu2 %v10797_v2, %s4637_s20 }
 0xe9d   : > { %4075 = vrot.lane.b32.xlu0 %v10795_v43, %s4638_s21 }
 0xea3   : > { %4083 = vrot.lane.b32.xlu1 %v10797_v2, %s4638_s21 }
 0xea4   : > { %4073 = vrot.lane.b32.xlu2 %v10690_v33, %s4638_s21 }
 0xea5   : > { %4081 = vrot.lane.b32.xlu0 %v10699_v9, %s4638_s21 }
 0xeab   : > { %4113 = vrot.lane.b32.xlu1 %v10690_v33, %s4639_s22 }
 0xeac   : > { %4079 = vrot.lane.b32.xlu2 %v10707_v26, %s4638_s21 }
 0xead   : > { %4111 = vrot.lane.b32.xlu0 %v10697_v31, %s4639_s22 }
 0xeb3   : > { %4119 = vrot.lane.b32.xlu1 %v10707_v26, %s4639_s22 }
 0xeb4   : > { %4109 = vrot.lane.b32.xlu2 %v10755_v49, %s4639_s22 }
 0xeb5   : > { %4117 = vrot.lane.b32.xlu0 %v10763_v21, %s4639_s22 }
 0xebc   : > { %4115 = vrot.lane.b32.xlu2 %v10795_v43, %s4639_s22 }
 0xebd   : > { %4123 = vrot.lane.b32.xlu0 %v10797_v2, %s4639_s22 }
 0xec4   : > { %4121 = vrot.lane.b32.xlu2 %v10699_v9, %s4639_s22 }
 0xece   : > { %v3990_v42 = vpop.permute.xlu2 %3989 }
 0xed6   : > { %v10857_v22 = vpop.permute.xlu2 %3995 }
 0xedd   : > { %v3994_v50 = vpop.permute.xlu1 %3993 }
 0xede   : > { %v4002_v63 = vpop.permute.xlu2 %4001  ;;  %v3992_v30 = vpop.permute.xlu0 %3991 }
 0xedf   : > { %v10861_v41 = vsel %vm11860_vm2, %v3994_v50, %v4002_v63  ;;  %v4011_v59 = vsel %vm11863_vm0, %v4002_v63, %v3994_v50  ;;  %vm11866_vm2 = vcmp.ge.s32.totalorder %v11537_v13, 0 }
 0xee0   : > { %v4017_v24 = vsel %vm11865_vm4, %v4011_v59, -inf }
 0xee1   : > { %v4025_v44 = vmax.f32 %v10690_v33, %v4017_v24 }
 0xee5   : > { %v4000_v40 = vpop.permute.xlu1 %3999 }
 0xee6   : > { %v4032_v1 = vpop.permute.xlu2 %4031 }
 0xee7   : > { %v3998_v14 = vpop.permute.xlu0 %3997 }
 0xee8   : > { %v4005_v51 = vsel %vm11861_vm7, %v3990_v42, %v3998_v14  ;;  %vm11867_vm7 = vmmov %vm11863_vm0 }
 0xee9   : > { %v4010_v58 = vsel %vm11867_vm7, %v4000_v40, %v3992_v30 }
 0xeea   : > { %v4015_v27 = vsel %vm11865_vm4, %v4010_v58, -inf }
 0xeed   : > { %v4030_v32 = vpop.permute.xlu1 %4029 }
 0xeee   : > { %v4038_v52 = vpop.permute.xlu2 %4037 }
 0xeef   : > { %v4004_v39 = vpop.permute.xlu0 %4003 }
 0xef0   : > { %v10868_v34 = vsel %vm11862_vm5, %v10857_v22, %v4004_v39  ;;  %vm11868_vm5 = vmmov %vm11863_vm0  ;;  %vm11869_vm0 = vcmp.lt.s32.totalorder %v11539_v55, 16 }
 0xef1   : > { %v4006_v48 = vsel %vm11868_vm5, %v3992_v30, %v4000_v40 }
 0xef5   : > { %v10870_v4 = vpop.permute.xlu1 %4035 }
 0xef6   : > { %v10872_v3 = vpop.permute.xlu2 %4043 }
 0xef7   : > { %v10874_v12 = vpop.permute.xlu0 %4033 }
 0xefd   : > { %v10876_v28 = vpop.permute.xlu1 %4041 }
 0xefe   : > { %v10878_v23 = vpop.permute.xlu2 %4073  ;;  %v4051_v60 = vsel %vm11864_vm1, %v10876_v28, %v10874_v12  ;;  %vm11870_vm1 = vmmov %vm11868_vm5  ;;  %vm11873_vm5 = vcmp.ge.s32.totalorder %v11548_v37, 0 }
 0xeff   : > { %v4040_v47 = vpop.permute.xlu0 %4039  ;;  %v4057_v15 = vsel %vm11866_vm2, %v4051_v60, -inf  ;;  %v4009_v6 = vsel %vm11870_vm1, %v3998_v14, %v3990_v42  ;;  %vm11871_vm2 = vcmp.lt.s32.totalorder %v4812_v29, 1  ;;  %v4016_v63 = vsel %vm11873_vm5, %v4006_v48, -inf  ;;  %vm11875_vm1 = vmmov %vm11865_vm4 }
 0xf00   : > { %v4065_v53 = vmax.f32 %v4025_v44, %v4057_v15  ;;  %v4046_v33 = vsel %vm11871_vm2, %v4032_v1, %v4040_v47  ;;  %vm11872_vm7 = vmmov %vm11871_vm2  ;;  %v4013_v59 = vsel %vm11875_vm1, %v4009_v6, -inf  ;;  %vm11876_vm4 = vcmp.lt.s32.totalorder %v11543_v11, 16 }
 0xf01   : > { %v4050_v56 = vsel %vm11872_vm7, %v4040_v47, %v4032_v1  ;;  %vm11878_vm7 = vcmp.ge.s32.totalorder %v11560_v25, 0  ;;  %v4023_v44 = vmax.f32 %v10697_v31, %v4015_v27  ;;  %v4024_v58 = vmax.f32 %v10707_v26, %v4016_v63 }
 0xf02   : > { %vm11881_vm1 = vcmp.lt.s32.totalorder %v11565_v5, 16 }
 0xf05   : > { %v4072_v20 = vpop.permute.xlu1 %4071 }
 0xf06   : > { %v4080_v19 = vpop.permute.xlu2 %4079 }
 0xf07   : > { %v4070_v16 = vpop.permute.xlu0 %4069  ;;  %v4086_v1 = vsel %vm383_vm3, %v4072_v20, %v4080_v19  ;;  %v4090_v47 = vsel %vm383_vm3, %v4080_v19, %v4072_v20  ;;  %v4021_v19 = vmax.f32 %v10755_v49, %v4013_v59 }
 0xf08   : > { %v4096_v6 = vsel %vm11881_vm1, %v4090_v47, -inf  ;;  %vm11887_vm1 = vcmp.lt.s32.totalorder %v11543_v11, 16 }
 0xf0d   : > { %v4078_v17 = vpop.permute.xlu1 %4077 }
 0xf0e   : > { %v10880_v46 = vpop.permute.xlu2 %4109  ;;  %v4085_v20 = vsel %vm383_vm3, %v4070_v16, %v4078_v17 }
 0xf0f   : > { %v10882_v62 = vpop.permute.xlu0 %4075 }
 0xf15   : > { %v10886_v18 = vpop.permute.xlu1 %4083 }
 0xf16   : > { %v10888_v0 = vpop.permute.xlu2 %4115 }
 0xf17   : > { %v10894_v61 = vpop.permute.xlu0 %4081 }
 0xf18   : > { %v4087_v7 = vsel %vm383_vm3, %v10878_v23, %v10894_v61 }
 0xf19   : > { %v4097_v35 = vsel %vm11869_vm0, %v4087_v7, -inf  ;;  %vm11874_vm0 = vmmov %vm11871_vm2  ;;  %vm11877_vm2 = vcmp.ge.s32.totalorder %v11537_v13, 0  ;;  %v4056_v7 = vsel %vm11878_vm7, %v4046_v33, -inf  ;;  %vm11884_vm7 = vcmp.lt.s32.totalorder %v4812_v29, 2 }
 0xf1a   : > { %v4049_v42 = vsel %vm11874_vm0, %v4038_v52, %v4030_v32  ;;  %v4105_v30 = vmax.f32 %v4065_v53, %v4097_v35  ;;  %v4055_v24 = vsel %vm11877_vm2, %v4050_v56, -inf  ;;  %vm11879_vm5 = vmmov %vm11877_vm2  ;;  %vm11880_vm0 = vcmp.lt.s32.totalorder %v11539_v55, 16 }
 0xf1b   : > { %v4053_v48 = vsel %vm11879_vm5, %v4049_v42, -inf  ;;  %v4095_v35 = vsel %vm11880_vm0, %v4086_v1, -inf  ;;  %v4063_v26 = vmax.f32 %v4023_v44, %v4055_v24  ;;  %v4064_v53 = vmax.f32 %v4024_v58, %v4056_v7  ;;  %vm11885_vm5 = vmmov %vm11880_vm0 }
 0xf1c   : > { %vm11883_vm2 = vcmp.lt.s32.totalorder %v4812_v29, 1  ;;  %v4061_v33 = vmax.f32 %v4021_v19, %v4053_v48  ;;  %v4012_v49 = vsel %vm11884_vm7, %v4004_v39, %v10857_v22  ;;  %v4093_v56 = vsel %vm11885_vm5, %v4085_v20, -inf  ;;  %vm11891_vm5 = vmmov %vm11887_vm1 }
 0xf1d   : > { %v10913_v36 = vpop.permute.xlu1 %4113  ;;  %v4045_v27 = vsel %vm11883_vm2, %v4030_v32, %v4038_v52  ;;  %v4103_v42 = vmax.f32 %v4063_v26, %v4095_v35  ;;  %vm11886_vm0 = vmmov %vm11883_vm2  ;;  %v4089_v22 = vsel %vm383_vm3, %v4078_v17, %v4070_v16  ;;  %vm11889_vm2 = vcmp.ge.s32.totalorder %v11560_v25, 0 }
 0xf1e   : > { %v10921_v50 = vpop.permute.xlu2 %4121  ;;  %v4052_v32 = vsel %vm11886_vm0, %v10872_v3, %v10870_v4  ;;  %v4101_v1 = vmax.f32 %v4061_v33, %v4093_v56  ;;  %v4054_v24 = vsel %vm11889_vm2, %v4045_v27, -inf  ;;  %vm11890_vm7 = vcmp.ge.s32.totalorder %v11535_v8, 0 }
 0xf1f   : > { %v4127_v40 = vsel %vm428_vm6, %v10913_v36, %v10921_v50  ;;  %v4112_v14 = vpop.permute.xlu0 %4111  ;;  %v4019_v16 = vsel %vm11890_vm7, %v4012_v49, -inf  ;;  %v4088_v44 = vsel %vm383_vm3, %v10882_v62, %v10886_v18  ;;  %vm11892_vm0 = vcmp.ge.s32.totalorder %v11537_v13, 0 }
 0xf20   : > { %v4137_v60 = vsel %vm11876_vm4, %v4127_v40, -inf  ;;  %vm11882_vm4 = vcmp.ge.s32.totalorder %v11548_v37, 0  ;;  %v4059_v8 = vsel %vm11892_vm0, %v4052_v32, -inf  ;;  %v4027_v19 = vmax.f32 %v10795_v43, %v4019_v16 }
 0xf21   : > { %v10943_v15 = vmax.f32 %v4105_v30, %v4137_v60  ;;  %v4014_v31 = vsel %vm11882_vm4, %v4005_v51, -inf  ;;  %v4104_v30 = vmax.f32 %v4064_v53, %v4096_v6  ;;  %vm11888_vm4 = vcmp.lt.s32.totalorder %v11660_v10, 16 }
 0xf22   : > { %v4022_v7 = vmax.f32 %v10763_v21, %v4014_v31  ;;  %vm11895_vm2 = vcmp.lt.s32.totalorder %v11660_v10, 16  ;;  %vm11896_vm7 = vcmp.lt.s32.totalorder %v4812_v29, 1  ;;  %v4067_v6 = vmax.f32 %v4027_v19, %v4059_v8 }
 0xf23   : > { %4153 = vrot.lane.b32.xlu0 %v10943_v15, %s4640_s23  ;;  %v4048_v13 = vsel %vm11896_vm7, %v10870_v4, %v10872_v3  ;;  %vm11898_vm0 = vmmov %vm11896_vm7  ;;  %v4092_v53 = vsel %vm383_vm3, %v10886_v18, %v10882_v62  ;;  %v4091_v62 = vsel %vm383_vm3, %v10894_v61, %v10878_v23  ;;  %v4131_v23 = vsel %vm428_vm6, %v10921_v50, %v10913_v36 }
 0xf24   : > { %v4062_v20 = vmax.f32 %v4022_v7, %v4054_v24 }
 0xf25   : > { %v4120_v63 = vpop.permute.xlu1 %4119 }
 0xf26   : > { %v4126_v40 = vsel %vm428_vm6, %v4112_v14, %v4120_v63  ;;  %v4130_v51 = vsel %vm428_vm6, %v4120_v63, %v4112_v14 }
 0xf27   : > { %v4135_v52 = vsel %vm11887_vm1, %v4126_v40, -inf  ;;  %v4136_v39 = vsel %vm11888_vm4, %v4130_v51, -inf  ;;  %v4118_v59 = vpop.permute.xlu0 %4117  ;;  %vm11893_vm1 = vcmp.lt.s32.totalorder %v11565_v5, 16  ;;  %vm11894_vm4 = vcmp.lt.s32.totalorder %v11539_v55, 16 }
 0xf28   : > { %v10981_v47 = vmax.f32 %v4103_v42, %v4135_v52  ;;  %v10983_v60 = vmax.f32 %v4104_v30, %v4136_v39  ;;  %v4125_v14 = vsel %vm428_vm6, %v10880_v46, %v4118_v59  ;;  %v4129_v58 = vsel %vm428_vm6, %v4118_v59, %v10880_v46 }
 0xf29   : > { %v4133_v17 = vsel %vm11891_vm5, %v4125_v14, -inf  ;;  %v4094_v21 = vsel %vm11893_vm1, %v4089_v22, -inf  ;;  %v4099_v46 = vsel %vm11894_vm4, %v4088_v44, -inf  ;;  %v4134_v35 = vsel %vm11895_vm2, %v4129_v58, -inf }
 0xf2a   : > { %v11002_v48 = vmax.f32 %v4101_v1, %v4133_v17  ;;  %4151 = vrot.lane.b32.xlu2 %v10981_v47, %s4640_s23  ;;  %v4102_v31 = vmax.f32 %v4062_v20, %v4094_v21  ;;  %vm11897_vm5 = vcmp.ge.s32.totalorder %v11548_v37, 0  ;;  %v4047_v55 = vsel %vm11898_vm0, %v10874_v12, %v10876_v28 }
 0xf2b   : > { %4159 = vrot.lane.b32.xlu0 %v10983_v60, %s4640_s23  ;;  %v4020_v43 = vsel %vm11897_vm5, %v10868_v34, -inf  ;;  %v4107_v27 = vmax.f32 %v4067_v6, %v4099_v46  ;;  %vm11899_vm1 = vmmov %vm11897_vm5  ;;  %vm11900_vm4 = vcmp.ge.s32.totalorder %v11560_v25, 0  ;;  %vm11901_vm2 = vcmp.lt.s32.totalorder %v11543_v11, 16 }
 0xf2c   : > { %4149 = vrot.lane.b32.xlu1 %v11002_v48, %s4640_s23  ;;  %v11034_v33 = vmax.f32 %v4102_v31, %v4134_v35  ;;  %v4018_v34 = vsel %vm11899_vm1, %v10861_v41, -inf  ;;  %v4060_v3 = vsel %vm11900_vm4, %v4048_v13, -inf  ;;  %v4028_v28 = vmax.f32 %v10797_v2, %v4020_v43  ;;  %vm11902_vm7 = vmmov %vm11900_vm4 }
 0xf2d   : > { %v4058_v11 = vsel %vm11902_vm7, %v4047_v55, -inf  ;;  %vm11903_vm5 = vcmp.lt.s32.totalorder %v11565_v5, 16  ;;  %v4026_v2 = vmax.f32 %v10699_v9, %v4018_v34  ;;  %vm11905_vm0 = vcmp.lt.s32.totalorder %v11660_v10, 16 }
 0xf2e   : > { %v4100_v37 = vsel %vm11903_vm5, %v4092_v53, -inf  ;;  %v4068_v41 = vmax.f32 %v4028_v28, %v4060_v3  ;;  %vm11904_vm3 = vmmov %vm11903_vm5 }
 0xf2f   : > { %v4124_v26 = vpop.permute.xlu0 %4123  ;;  %v4098_v25 = vsel %vm11904_vm3, %v4091_v62, -inf  ;;  %v4066_v61 = vmax.f32 %v4026_v2, %v4058_v11  ;;  %vm11906_vm1 = vmmov %vm11905_vm0 }
 0xf30   : > { %v4128_v4 = vsel %vm428_vm6, %v10888_v0, %v4124_v26  ;;  %v4132_v18 = vsel %vm428_vm6, %v4124_v26, %v10888_v0  ;;  %v4108_v56 = vmax.f32 %v4068_v41, %v4100_v37  ;;  %v4138_v9 = vsel %vm11906_vm1, %v4131_v23, -inf }
 0xf31   : > { %v4139_v12 = vsel %vm11901_vm2, %v4128_v4, -inf  ;;  %v4140_v0 = vsel %vm11905_vm0, %v4132_v18, -inf  ;;  %v4106_v63 = vmax.f32 %v4066_v61, %v4098_v25 }
 0xf32   : > { %v11054_v49 = vmax.f32 %v4107_v27, %v4139_v12  ;;  %4157 = vrot.lane.b32.xlu2 %v11034_v33, %s4640_s23  ;;  %v11077_v42 = vmax.f32 %v4108_v56, %v4140_v0 }
 0xf33   : > { %4189 = vrot.lane.b32.xlu0 %v11002_v48, %s4641_s24  ;;  %v11079_v30 = vmax.f32 %v4106_v63, %v4138_v9 }
 0xf34   : > { %4155 = vrot.lane.b32.xlu1 %v11054_v49, %s4640_s23 }
 0xf3a   : > { %4163 = vrot.lane.b32.xlu2 %v11077_v42, %s4640_s23 }
 0xf3b   : > { %4195 = vrot.lane.b32.xlu0 %v11054_v49, %s4641_s24 }
 0xf3c   : > { %4161 = vrot.lane.b32.xlu1 %v11079_v30, %s4640_s23 }
 0xf42   : > { %4193 = vrot.lane.b32.xlu2 %v10943_v15, %s4641_s24 }
 0xf43   : > { %4201 = vrot.lane.b32.xlu0 %v11079_v30, %s4641_s24 }
 0xf44   : > { %4191 = vrot.lane.b32.xlu1 %v10981_v47, %s4641_s24 }
 0xf4a   : > { %4199 = vrot.lane.b32.xlu2 %v10983_v60, %s4641_s24 }
 0xf4b   : > { %4231 = vrot.lane.b32.xlu0 %v10981_v47, %s4642_s25 }
 0xf4c   : > { %4197 = vrot.lane.b32.xlu1 %v11034_v33, %s4641_s24 }
 0xf52   : > { %4229 = vrot.lane.b32.xlu2 %v11002_v48, %s4642_s25 }
 0xf53   : > { %4237 = vrot.lane.b32.xlu0 %v11034_v33, %s4642_s25 }
 0xf54   : > { %4203 = vrot.lane.b32.xlu1 %v11077_v42, %s4641_s24 }
 0xf5a   : > { %4235 = vrot.lane.b32.xlu2 %v11054_v49, %s4642_s25 }
 0xf5b   : > { %4243 = vrot.lane.b32.xlu0 %v11077_v42, %s4642_s25 }
 0xf5c   : > { %4233 = vrot.lane.b32.xlu1 %v10943_v15, %s4642_s25 }
 0xf62   : > { %4241 = vrot.lane.b32.xlu2 %v11079_v30, %s4642_s25 }
 0xf63   : > { %4273 = vrot.lane.b32.xlu0 %v10943_v15, %s4643_s26 }
 0xf64   : > { %4239 = vrot.lane.b32.xlu1 %v10983_v60, %s4642_s25 }
 0xf6a   : > { %4271 = vrot.lane.b32.xlu2 %v10981_v47, %s4643_s26 }
 0xf6b   : > { %4279 = vrot.lane.b32.xlu0 %v10983_v60, %s4643_s26 }
 0xf6c   : > { %4269 = vrot.lane.b32.xlu1 %v11002_v48, %s4643_s26 }
 0xf72   : > { %4277 = vrot.lane.b32.xlu2 %v11034_v33, %s4643_s26 }
 0xf74   : > { %4275 = vrot.lane.b32.xlu1 %v11054_v49, %s4643_s26 }
 0xf7a   : > { %4283 = vrot.lane.b32.xlu2 %v11077_v42, %s4643_s26 }
 0xf7c   : > { %4281 = vrot.lane.b32.xlu1 %v11079_v30, %s4643_s26 }
 0xf84   : > { %v4152_v5 = vpop.permute.xlu2 %4151 }
 0xf8c   : > { %v4158_v10 = vpop.permute.xlu2 %4157 }
 0xf94   : > { %v11133_v50 = vpop.permute.xlu2 %4163 }
 0xf95   : > { %v11131_v36 = vpop.permute.xlu0 %4153 }
 0xf9c   : > { %v11135_v32 = vpop.permute.xlu2 %4193 }
 0xf9d   : > { %v4160_v40 = vpop.permute.xlu0 %4159 }
 0xf9e   : > { %v4150_v51 = vpop.permute.xlu1 %4149  ;;  %v4170_v35 = vsel %vm473_vm12, %v4160_v40, %v4152_v5  ;;  %v4166_v6 = vsel %vm473_vm12, %v4152_v5, %v4160_v40 }
 0xf9f   : > { %v4169_v13 = vsel %vm473_vm12, %v4158_v10, %v4150_v51  ;;  %v4175_v26 = vsel %vm230_vm14, %v4170_v35, -inf  ;;  %v4184_v4 = vmax.f32 %v10983_v60, %v4166_v6  ;;  %v4165_v34 = vsel %vm473_vm12, %v4150_v51, %v4158_v10 }
 0xfa0   : > { %v4173_v53 = vsel %vm230_vm14, %v4169_v13, -inf  ;;  %v4183_v18 = vmax.f32 %v10981_v47, %v4175_v26  ;;  %v4182_v2 = vmax.f32 %v11034_v33, %v4165_v34 }
 0xfa1   : > { %v4181_v11 = vmax.f32 %v11002_v48, %v4173_v53 }
 0xfa4   : > { %v4200_v39 = vpop.permute.xlu2 %4199 }
 0xfa5   : > { %v4190_v22 = vpop.permute.xlu0 %4189 }
 0xfa6   : > { %v4156_v52 = vpop.permute.xlu1 %4155 }
 0xfa7   : > { %v4172_v41 = vsel %vm473_vm12, %v11133_v50, %v4156_v52  ;;  %v4168_v6 = vsel %vm473_vm12, %v4156_v52, %v11133_v50 }
 0xfa8   : > { %v4179_v63 = vsel %vm230_vm14, %v4172_v41, -inf  ;;  %v4188_v52 = vmax.f32 %v11077_v42, %v4168_v6 }
 0xfac   : > { %v4230_v14 = vpop.permute.xlu2 %4229 }
 0xfad   : > { %v11137_v59 = vpop.permute.xlu0 %4195 }
 0xfae   : > { %v11139_v1 = vpop.permute.xlu1 %4161 }
 0xfb4   : > { %v11143_v7 = vpop.permute.xlu2 %4235 }
 0xfb5   : > { %v11141_v24 = vpop.permute.xlu0 %4201 }
 0xfb6   : > { %v4192_v16 = vpop.permute.xlu1 %4191  ;;  %v4211_v42 = vsel %vm518_vm13, %v11141_v24, %v11135_v32 }
 0xfb7   : > { %v4210_v31 = vsel %vm518_vm13, %v4200_v39, %v4192_v16  ;;  %v4206_v60 = vsel %vm518_vm13, %v4192_v16, %v4200_v39  ;;  %v4217_v38 = vsel %vm238_vm15, %v4211_v42, -inf }
 0xfb8   : > { %v4215_v3 = vsel %vm238_vm15, %v4210_v31, -inf  ;;  %v4224_v56 = vmax.f32 %v4184_v4, %v4206_v60  ;;  %v4187_v4 = vmax.f32 %v11054_v49, %v4179_v63  ;;  %v4167_v60 = vsel %vm473_vm12, %v11131_v36, %v11139_v1 }
 0xfb9   : > { %v4223_v25 = vmax.f32 %v4183_v18, %v4215_v3  ;;  %v4171_v3 = vsel %vm473_vm12, %v11139_v1, %v11131_v36  ;;  %v4207_v36 = vsel %vm518_vm13, %v11135_v32, %v11141_v24  ;;  %v4186_v1 = vmax.f32 %v11079_v30, %v4167_v60 }
 0xfbc   : > { %v11145_v21 = vpop.permute.xlu2 %4241 }
 0xfbd   : > { %v4232_v17 = vpop.permute.xlu0 %4231 }
 0xfbe   : > { %v4198_v44 = vpop.permute.xlu1 %4197 }
 0xfbf   : > { %v4209_v43 = vsel %vm518_vm13, %v4198_v44, %v4190_v22  ;;  %v4205_v37 = vsel %vm518_vm13, %v4190_v22, %v4198_v44 }
 0xfc0   : > { %v4213_v12 = vsel %vm238_vm15, %v4209_v43, -inf  ;;  %v4222_v33 = vmax.f32 %v4182_v2, %v4205_v37 }
 0xfc1   : > { %v4221_v48 = vmax.f32 %v4181_v11, %v4213_v12 }
 0xfc4   : > { %v4272_v46 = vpop.permute.xlu2 %4271 }
 0xfc5   : > { %v4238_v58 = vpop.permute.xlu0 %4237 }
 0xfc6   : > { %v4204_v8 = vpop.permute.xlu1 %4203  ;;  %v4249_v28 = vsel %vm563_vm11, %v4238_v58, %v4230_v14  ;;  %v4245_v23 = vsel %vm563_vm11, %v4230_v14, %v4238_v58 }
 0xfc7   : > { %v4254_v0 = vsel %vm249_vm10, %v4249_v28, -inf  ;;  %v4261_v5 = vmax.f32 %v4221_v48, %v4245_v23  ;;  %v4212_v10 = vsel %vm518_vm13, %v4204_v8, %v11137_v59  ;;  %v4208_v50 = vsel %vm518_vm13, %v11137_v59, %v4204_v8 }
 0xfc8   : > { %v4262_v22 = vmax.f32 %v4222_v33, %v4254_v0  ;;  %v4219_v26 = vsel %vm238_vm15, %v4212_v10, -inf  ;;  %v4228_v28 = vmax.f32 %v4188_v52, %v4208_v50  ;;  %v4226_v48 = vmax.f32 %v4186_v1, %v4207_v36 }
 0xfc9   : > { %v4227_v12 = vmax.f32 %v4187_v4, %v4219_v26 }
 0xfcc   : > { %v4278_v9 = vpop.permute.xlu2 %4277 }
 0xfcd   : > { %v4244_v20 = vpop.permute.xlu0 %4243 }
 0xfce   : > { %v11147_v19 = vpop.permute.xlu1 %4233  ;;  %v4252_v53 = vsel %vm563_vm11, %v4244_v20, %v11143_v7  ;;  %v4248_v34 = vsel %vm563_vm11, %v11143_v7, %v4244_v20  ;;  %v4177_v20 = vsel %vm230_vm14, %v4171_v3, -inf }
 0xfcf   : > { %v4260_v49 = vsel %vm249_vm10, %v4252_v53, -inf  ;;  %v4267_v59 = vmax.f32 %v4227_v12, %v4248_v34  ;;  %v4251_v41 = vsel %vm563_vm11, %v11145_v21, %v11147_v19  ;;  %v4247_v54 = vsel %vm563_vm11, %v11147_v19, %v11145_v21 }
 0xfd4   : > { %v4284_v7 = vpop.permute.xlu2 %4283 }
 0xfd5   : > { %v11159_v55 = vpop.permute.xlu0 %4273 }
 0xfd6   : > { %v4240_v27 = vpop.permute.xlu1 %4239 }
 0xfd7   : > { %v4250_v62 = vsel %vm563_vm11, %v4240_v27, %v4232_v17  ;;  %v4246_v47 = vsel %vm563_vm11, %v4232_v17, %v4240_v27 }
 0xfd8   : > { %v4256_v61 = vsel %vm249_vm10, %v4250_v62, -inf  ;;  %v4263_v40 = vmax.f32 %v4223_v25, %v4246_v47  ;;  %v4268_v62 = vmax.f32 %v4228_v28, %v4260_v49  ;;  %v4185_v47 = vmax.f32 %v10943_v15, %v4177_v20 }
 0xfd9   : > { %v4264_v39 = vmax.f32 %v4224_v56, %v4256_v61  ;;  %v4258_v15 = vsel %vm249_vm10, %v4251_v41, -inf }
 0xfda   : > { %v4225_v25 = vmax.f32 %v4185_v47, %v4217_v38  ;;  %v4266_v56 = vmax.f32 %v4226_v48, %v4258_v15 }
 0xfdc   : > { %v4265_v0 = vmax.f32 %v4225_v25, %v4247_v54 }
 0xfdd   : > { %v4280_v51 = vpop.permute.xlu0 %4279 }
 0xfde   : > { %v4286_v14 = vsel %vm608_vm9, %v4272_v46, %v4280_v51  ;;  %v4290_v16 = vsel %vm608_vm9, %v4280_v51, %v4272_v46  ;;  %v4270_v17 = vpop.permute.xlu1 %4269 }
 0xfdf   : > { %v4296_v44 = vsel %vm257_vm8, %v4290_v16, -inf  ;;  %v4303_v58 = vmax.f32 %v4263_v40, %v4286_v14  ;;  %v4285_v35 = vsel %vm608_vm9, %v4270_v17, %v4278_v9  ;;  %v4289_v13 = vsel %vm608_vm9, %v4278_v9, %v4270_v17 }
 0xfe0   : > { %v4304_v31 = vmax.f32 %v4264_v39, %v4296_v44  ;;  %v4294_v46 = vsel %vm257_vm8, %v4289_v13, -inf  ;;  %v4301_v43 = vmax.f32 %v4261_v5, %v4285_v35 }
 0xfe1   : > { %4566 = vst [vmem:[%s4680_s18 + $0x390] sm:$0xff] %v4303_v58  ;;  %v4302_v27 = vmax.f32 %v4262_v22, %v4294_v46 }
 0xfe2   : > { %4567 = vst [vmem:[%s4680_s18 + $0x398] sm:$0xff] %v4304_v31 }
 0xfe3   : > { %4564 = vst [vmem:[%s4680_s18 + $0x380] sm:$0xff] %v4301_v43 }
 0xfe4   : > { %4565 = vst [vmem:[%s4680_s18 + $0x388] sm:$0xff] %v4302_v27 }
 0xfe6   : > { %v4276_v8 = vpop.permute.xlu1 %4275 }
 0xfe7   : > { %v4288_v18 = vsel %vm608_vm9, %v4276_v8, %v4284_v7  ;;  %v4292_v11 = vsel %vm608_vm9, %v4284_v7, %v4276_v8 }
 0xfe8   : > { %v4300_v37 = vsel %vm257_vm8, %v4292_v11, -inf  ;;  %v4307_v2 = vmax.f32 %v4267_v59, %v4288_v18 }
 0xfe9   : > { %v4308_v23 = vmax.f32 %v4268_v62, %v4300_v37 }
 0xfea   : > { %4570 = vst [vmem:[%s4680_s18 + $0x3b0] sm:$0xff] %v4307_v2 }
 0xfeb   : > { %4571 = vst [vmem:[%s4680_s18 + $0x3b8] sm:$0xff] %v4308_v23 }
 0xfee   : > { %v4282_v61 = vpop.permute.xlu1 %4281 }
 0xfef   : > { %v4287_v32 = vsel %vm608_vm9, %v11159_v55, %v4282_v61  ;;  %v4291_v30 = vsel %vm608_vm9, %v4282_v61, %v11159_v55 }
 0xff0   : > { %v4298_v24 = vsel %vm257_vm8, %v4291_v30, -inf  ;;  %v4305_v21 = vmax.f32 %v4265_v0, %v4287_v32 }
 0xff1   : > { %v4306_v19 = vmax.f32 %v4266_v56, %v4298_v24 }
 0xff2   : > { %4568 = vst [vmem:[%s4680_s18 + $0x3a0] sm:$0xff] %v4305_v21 }
 0xff3   : > { %4569 = vst [vmem:[%s4680_s18 + $0x3a8] sm:$0xff] %v4306_v19 }
 0xff4 PF: > { %s11_s8 = sadd.s32 1, %s4634_s8   ;;  %s11907_s6 = smov %s4630_s7 }
 0xff5   : > { %p8_p5 = scmp.ge.s32.totalorder %s11_s8, 4   ;;  %s11908_s7 = smov %s11910_s9 }
 0xff7   :  { %10 = sbr.rel (!%p8_p5) target bundleno = 2 (0x2), region = 72 }

</bundles_post_ra>
